<compile_context>
chip_gen: v7x
topology: tpu7x:2x2x1
jax: 0.10.0
libtpu: 0.0.40
codegen_flags: <defaults>
</compile_context>

<pallas_src>
import functools
import math

import jax
import jax.numpy as jnp
from jax.experimental import pallas as pl
from jax.experimental.pallas import tpu as pltpu


def _full_spec(shape):
    """BlockSpec covering the whole array (no grid)."""
    return pl.BlockSpec(shape, lambda *_: (0,) * len(shape))


# -----------------------------------------------------------------------------
# The single fused kernel
# -----------------------------------------------------------------------------
def _read_fused_kernel(
    # views
    xa_ref, xi_ref, xo_ref,
    # per-view encoder params
    w_in_a_ref, w_in_i_ref, w_in_o_ref, b_in_ref,
    w_qkv_e_ref, b_qkv_e_ref, wo_e_ref, bo_e_ref,
    # dynamic adjacency params
    w1_dyn_ref, w2_dyn_ref,
    # shared GCN stack + BN
    gcn_w_ref, gcn_b_ref, bn_g_ref, bn_b_ref,
    # cross-view attention
    w_qkv_x_ref, b_qkv_x_ref, wo_x_ref, bo_x_ref,
    # fusion
    fw_ref, fb_ref, fq_ref,
    # graphs
    adj_ref, mob_ref,
    # output
    loss_ref,
    *, num_heads, gcn_layers, alpha, beta, ln_eps, bn_eps, slope):

    f32 = jnp.float32
    N = adj_ref.shape[0]
    H = fw_ref.shape[0]
    dh = H // num_heads
    scale = 1.0 / math.sqrt(dh)

    def mm(a, b):
        return jnp.dot(a, b, preferred_element_type=f32)

    def softmax_rows(s):
        s = s - jnp.max(s, axis=-1, keepdims=True)
        p = jnp.exp(s)
        return p * pl.reciprocal(jnp.sum(p, axis=-1, keepdims=True), approx=True)

    # Head bookkeeping matrices (iota-built, no transposes):
    #   R: (H, heads)  sums a head's dh lanes             (score reduction)
    #   E: (heads, H)  repeats a per-head value over lanes (prob broadcast/mask)
    d_i = jax.lax.broadcasted_iota(jnp.int32, (H, num_heads), 0)
    h_i = jax.lax.broadcasted_iota(jnp.int32, (H, num_heads), 1)
    R = ((d_i >= h_i * dh) & (d_i < (h_i + 1) * dh)).astype(f32)
    h_j = jax.lax.broadcasted_iota(jnp.int32, (num_heads, H), 0)
    d_j = jax.lax.broadcasted_iota(jnp.int32, (num_heads, H), 1)
    E = ((d_j >= h_j * dh) & (d_j < (h_j + 1) * dh)).astype(f32)
    head_masks = [E[h:h + 1, :] for h in range(num_heads)]        # (1, H) each

    # -- city-context transformer encoder -------------------------------------
    # TODO(synk): CityContextTransformerEncoder source not provided; implemented
    # as input projection + multi-head self-attention over the N regions +
    # residual + LayerNorm.  Heads use lane masks -> lane-dense (N, H) math.
    def encoder(x, w_in, v):
        h0 = mm(x, w_in) + b_in_ref[v]                            # (N, H)
        qkv = mm(h0, w_qkv_e_ref[v]) + b_qkv_e_ref[v]             # fused QKV
        q = qkv[:, :H] * scale
        k = qkv[:, H:2 * H]
        v_ = qkv[:, 2 * H:]
        o = None
        for hm in head_masks:
            p = softmax_rows(mm(q * hm, k.T))                     # (N, N)
            oh = mm(p, v_ * hm)                                   # head's lanes only
            o = oh if o is None else o + oh
        y = h0 + mm(o, wo_e_ref[v]) + bo_e_ref[v]
        mu = jnp.mean(y, axis=-1, keepdims=True)
        var = jnp.mean((y - mu) ** 2, axis=-1, keepdims=True)
        return (y - mu) * jax.lax.rsqrt(var + ln_eps)

    # -- dynamic adjacency fused with dense gcn_norm ---------------------------
    # TODO(synk): AdaptiveWeightedMultiGraphConstruction source not provided;
    # implemented as row-softmax(relu((XW1)(XW2)^T)).  gcn_norm (self loops +
    # symmetric degree scaling, dense equivalent of the sparse-COO path) is
    # folded in: returns (A_hat, D^-1/2) so the normalized adjacency is applied
    # as dinv * (A_hat @ (dinv * X)) and never materialized or transposed.
    def dyn_adj(f, v):
        e1 = mm(f, w1_dyn_ref[v])
        e2 = mm(f, w2_dyn_ref[v])
        a = softmax_rows(jnp.maximum(mm(e1, e2.T), 0.0))          # (N, N)
        rows = jax.lax.broadcasted_iota(jnp.int32, (N, N), 0)
        cols = jax.lax.broadcasted_iota(jnp.int32, (N, N), 1)
        a_hat = a + (rows == cols).astype(f32)                    # self loops
        deg = jnp.sum(a_hat, axis=1, keepdims=True)               # (N, 1)
        dinv = jax.lax.rsqrt(jnp.maximum(deg, 1e-12))
        return a_hat, dinv

    # -- shared GCN stack with fused BatchNorm + LeakyReLU epilogue ------------
    def gcn_stack(a_hat, dinv, x):
        for i in range(gcn_layers - 1):
            x = dinv * mm(a_hat, dinv * mm(x, gcn_w_ref[i])) + gcn_b_ref[i]
            mu = jnp.mean(x, axis=0, keepdims=True)               # training-mode BN
            var = jnp.mean((x - mu) ** 2, axis=0, keepdims=True)
            x = (x - mu) * jax.lax.rsqrt(var + bn_eps) * bn_g_ref[i] + bn_b_ref[i]
            x = jnp.where(x >= 0.0, x, slope * x)                 # LeakyReLU
        last = gcn_layers - 1
        return dinv * mm(a_hat, dinv * mm(x, gcn_w_ref[last])) + gcn_b_ref[last]

    # per-view pipeline (3 views, statically unrolled)
    views_x = (xa_ref[...], xi_ref[...], xo_ref[...])
    views_w = (w_in_a_ref[...], w_in_i_ref[...], w_in_o_ref[...])
    feats = []
    for v in range(3):
        f = encoder(views_x[v], views_w[v], v)
        a_hat, dinv = dyn_adj(f, v)
        feats.append(gcn_stack(a_hat, dinv, f))

    # -- cross-view multi-head self-attention (L=3 views, batch=N regions) -----
    # All N*heads attentions at once via R / E; no per-head grid and no unused
    # (batch*heads, 3, 3) attention-weight writeback.
    qs, ks, vs = [], [], []
    for f in feats:
        qkv = mm(f, w_qkv_x_ref[...]) + b_qkv_x_ref[...]          # fused QKV
        qs.append(qkv[:, :H] * scale)
        ks.append(qkv[:, H:2 * H])
        vs.append(qkv[:, 2 * H:])
    # scores[i][j][n, h] = <q_i[n, head h], k_j[n, head h]>
    s = [[mm(qs[i] * ks[j], R) for j in range(3)] for i in range(3)]

    out_views = []
    for i in range(3):
        m = jnp.maximum(jnp.maximum(s[i][0], s[i][1]), s[i][2])
        es = [jnp.exp(s[i][j] - m) for j in range(3)]
        inv_z = pl.reciprocal(es[0] + es[1] + es[2], approx=True)
        o = None
        for j in range(3):
            pj = mm(es[j] * inv_z, E)                             # (N, H)
            o = pj * vs[j] if o is None else o + pj * vs[j]
        attn_i = mm(o, wo_x_ref[...]) + bo_x_ref[...]
        out_views.append(alpha * attn_i + (1.0 - alpha) * feats[i])

    # -- fusion -----------------------------------------------------------------
    # TODO(synk): Fusion source not provided; implemented as semantic attention
    # over the 3 views.  Score uses a VPU reduction (no degenerate (H,1) matmul).
    def view_score(h):
        t = jnp.tanh(mm(h, fw_ref[...]) + fb_ref[...])
        return jnp.sum(t * fq_ref[...]) * (1.0 / N)

    sc = [view_score(h) for h in out_views]
    msc = jnp.maximum(jnp.maximum(sc[0], sc[1]), sc[2])
    ex = [jnp.exp(x - msc) for x in sc]
    zf = ex[0] + ex[1] + ex[2]
    fused = (ex[0] * out_views[0] + ex[1] * out_views[1]
             + ex[2] * out_views[2]) / zf                         # (N, H)

    outs = [beta * feats[i] + (1.0 - beta) * fused for i in range(3)]

    # -- losses (fused in this same kernel) -------------------------------------
    adj = adj_ref[...]
    mob = mob_ref[...]

    # semantic relation reconstruction (masked MSE), guarded against 0/0
    amask = (adj != 0.0).astype(f32)
    diff = (mm(outs[0], outs[0].T) - adj) * amask
    attr_loss = jnp.sum(diff * diff) / jnp.maximum(jnp.sum(amask), 1.0)

    # mobility prediction (masked NLL over row log-softmax, both directions)
    def log_softmax_rows(x):
        xs = x - jnp.max(x, axis=-1, keepdims=True)
        return xs - jnp.log(jnp.sum(jnp.exp(xs), axis=-1, keepdims=True))

    ls = log_softmax_rows(mm(outs[1], outs[2].T))
    ld = log_softmax_rows(mm(outs[2], outs[1].T))
    wmob = (mob != 0.0).astype(f32) * mob
    mob_loss = -jnp.sum(wmob * (ls + ld.T))

    loss_ref[0, 0] = attr_loss + mob_loss


# -----------------------------------------------------------------------------
# Wrapper: one pallas_call for the whole forward pass
# -----------------------------------------------------------------------------
def read_forward(params, view_attr, view_inflow, view_outflow, adj_, mob,
                 num_heads=8, gcn_layers=2, alpha=0.2, beta=0.5):
    kernel = functools.partial(
        _read_fused_kernel,
        num_heads=num_heads, gcn_layers=gcn_layers,
        alpha=alpha, beta=beta, ln_eps=1e-5, bn_eps=1e-5, slope=0.01)

    args = (
        view_attr, view_inflow, view_outflow,
        params["w_in_a"], params["w_in_i"], params["w_in_o"], params["b_in"],
        params["w_qkv_e"], params["b_qkv_e"], params["wo_e"], params["bo_e"],
        params["w1_dyn"], params["w2_dyn"],
        params["gcn_w"], params["gcn_b"], params["bn_g"], params["bn_b"],
        params["w_qkv_x"], params["b_qkv_x"], params["wo_x"], params["bo_x"],
        params["fw"], params["fb"], params["fq"],
        adj_, mob,
    )
    # TODO(synk): at realistic region counts (thousands) the dense (N, N)
    # adjacency/mobility inputs need BlockSpec tiling over N plus a
    # vmem_limit_bytes bump (v7x has 64 MiB VMEM); whole-array residency is
    # only valid at these small shapes.
    loss = pl.pallas_call(
        kernel,
        out_shape=jax.ShapeDtypeStruct((1, 1), jnp.float32),
        in_specs=[_full_spec(a.shape) for a in args],
        out_specs=pl.BlockSpec(memory_space=pltpu.MemorySpace.SMEM),
    )(*args)
    return loss[0, 0]


# -----------------------------------------------------------------------------
# Deterministic parameter init (packed for the fused kernel)
# -----------------------------------------------------------------------------
def _init_linear(key, in_dim, out_dim):
    k1, k2 = jax.random.split(key)
    bound = 1.0 / math.sqrt(in_dim)
    w = jax.random.uniform(k1, (in_dim, out_dim), jnp.float32, -bound, bound)
    b = jax.random.uniform(k2, (1, out_dim), jnp.float32, -bound, bound)
    return w, b


def init_params(key, attr_dim, flow_dim, hidden, gcn_layers):
    ks = iter(jax.random.split(key, 64))
    H = hidden

    def lin(i, o):
        return _init_linear(next(ks), i, o)

    w_in_a, b_in_a = lin(attr_dim, H)
    w_in_i, b_in_i = lin(flow_dim, H)
    w_in_o, b_in_o = lin(flow_dim, H)
    enc_qkv = [lin(H, 3 * H) for _ in range(3)]       # fused QKV per view
    enc_out = [lin(H, H) for _ in range(3)]
    dyn1 = [lin(H, H)[0] for _ in range(3)]
    dyn2 = [lin(H, H)[0] for _ in range(3)]
    gcn = [lin(H, H) for _ in range(gcn_layers)]
    n_bn = max(gcn_layers - 1, 1)
    w_qkv_x, b_qkv_x = lin(H, 3 * H)                  # cross-view fused QKV
    wo_x, bo_x = lin(H, H)
    fw, fb = lin(H, H)
    fq = lin(H, 1)[0].reshape(1, H)                   # row vector (VPU reduce)

    return dict(
        w_in_a=w_in_a, w_in_i=w_in_i, w_in_o=w_in_o,
        b_in=jnp.stack([b_in_a, b_in_i, b_in_o]),
        w_qkv_e=jnp.stack([w for w, _ in enc_qkv]),
        b_qkv_e=jnp.stack([b for _, b in enc_qkv]),
        wo_e=jnp.stack([w for w, _ in enc_out]),
        bo_e=jnp.stack([b for _, b in enc_out]),
        w1_dyn=jnp.stack(dyn1), w2_dyn=jnp.stack(dyn2),
        gcn_w=jnp.stack([w for w, _ in gcn]),
        gcn_b=jnp.stack([b for _, b in gcn]),
        bn_g=jnp.ones((n_bn, 1, H), jnp.float32),
        bn_b=jnp.zeros((n_bn, 1, H), jnp.float32),
        w_qkv_x=w_qkv_x, b_qkv_x=b_qkv_x, wo_x=wo_x, bo_x=bo_x,
        fw=fw, fb=fb, fq=fq,
    )


# -----------------------------------------------------------------------------
# Main
# -----------------------------------------------------------------------------
if __name__ == "__main__":
    N, HIDDEN, NUM_HEADS, GCN_LAYERS = 16, 32, 8, 2
    ATTR_DIM, FLOW_DIM = 9, 270

    key = jax.random.PRNGKey(0)
    k_params, k1, k2, k3, k4, k5 = jax.random.split(key, 6)

    params = init_params(k_params, ATTR_DIM, FLOW_DIM, HIDDEN, GCN_LAYERS)

    view_attr = jax.random.normal(k1, (N, ATTR_DIM), jnp.float32)
    view_inflow = jax.random.normal(k2, (N, FLOW_DIM), jnp.float32)
    view_outflow = jax.random.normal(k3, (N, FLOW_DIM), jnp.float32)

    adj_raw = jax.random.uniform(k4, (N, N), jnp.float32)
    adj_ = jnp.where(adj_raw > 0.5, adj_raw, 0.0)            # sparse-ish
    mob_raw = jax.random.uniform(k5, (N, N), jnp.float32)
    mob = jnp.where(mob_raw > 0.5, mob_raw, 0.0)             # sparse-ish

    fwd = jax.jit(functools.partial(read_forward,
                                    num_heads=NUM_HEADS, gcn_layers=GCN_LAYERS))
    loss = fwd(params, view_attr, view_inflow, view_outflow, adj_, mob)
    jax.block_until_ready(loss)
    print("KERNEL_OK")
</pallas_src>

<mosaic_0001>
module attributes {stable_mosaic.version = 11 : i64} {
  func.func @_read_fused_kernel(%arg0: memref<16x9xf32, #tpu.memory_space<vmem>>, %arg1: memref<16x270xf32, #tpu.memory_space<vmem>>, %arg2: memref<16x270xf32, #tpu.memory_space<vmem>>, %arg3: memref<9x32xf32, #tpu.memory_space<vmem>>, %arg4: memref<270x32xf32, #tpu.memory_space<vmem>>, %arg5: memref<270x32xf32, #tpu.memory_space<vmem>>, %arg6: memref<3x1x32xf32, #tpu.memory_space<vmem>>, %arg7: memref<3x32x96xf32, #tpu.memory_space<vmem>>, %arg8: memref<3x1x96xf32, #tpu.memory_space<vmem>>, %arg9: memref<3x32x32xf32, #tpu.memory_space<vmem>>, %arg10: memref<3x1x32xf32, #tpu.memory_space<vmem>>, %arg11: memref<3x32x32xf32, #tpu.memory_space<vmem>>, %arg12: memref<3x32x32xf32, #tpu.memory_space<vmem>>, %arg13: memref<2x32x32xf32, #tpu.memory_space<vmem>>, %arg14: memref<2x1x32xf32, #tpu.memory_space<vmem>>, %arg15: memref<1x1x32xf32, #tpu.memory_space<vmem>>, %arg16: memref<1x1x32xf32, #tpu.memory_space<vmem>>, %arg17: memref<32x96xf32, #tpu.memory_space<vmem>>, %arg18: memref<1x96xf32, #tpu.memory_space<vmem>>, %arg19: memref<32x32xf32, #tpu.memory_space<vmem>>, %arg20: memref<1x32xf32, #tpu.memory_space<vmem>>, %arg21: memref<32x32xf32, #tpu.memory_space<vmem>>, %arg22: memref<1x32xf32, #tpu.memory_space<vmem>>, %arg23: memref<1x32xf32, #tpu.memory_space<vmem>>, %arg24: memref<16x16xf32, #tpu.memory_space<vmem>>, %arg25: memref<16x16xf32, #tpu.memory_space<vmem>>, %arg26: memref<1x1xf32, #tpu.memory_space<smem>>) attributes {dimension_semantics = [], scalar_prefetch = 0 : i64, scratch_operands = 0 : i64, tpu.core_type = #tpu.core_type<tc>} {
    %0 = tpu.iota {dimensions = array<i32: 0>} : vector<32x8xi32>
    %1 = tpu.iota {dimensions = array<i32: 1>} : vector<32x8xi32>
    %c4_i32 = arith.constant 4 : i32
    %2 = vector.broadcast %c4_i32 : i32 to vector<32x8xi32>
    %3 = arith.muli %1, %2 : vector<32x8xi32>
    %4 = arith.cmpi sge, %0, %3 : vector<32x8xi32>
    %c1_i32 = arith.constant 1 : i32
    %5 = vector.broadcast %c1_i32 : i32 to vector<32x8xi32>
    %6 = arith.addi %1, %5 : vector<32x8xi32>
    %c4_i32_0 = arith.constant 4 : i32
    %7 = vector.broadcast %c4_i32_0 : i32 to vector<32x8xi32>
    %8 = arith.muli %6, %7 : vector<32x8xi32>
    %9 = arith.cmpi slt, %0, %8 : vector<32x8xi32>
    %10 = arith.andi %4, %9 : vector<32x8xi1>
    %11 = arith.extui %10 : vector<32x8xi1> to vector<32x8xi32>
    %12 = arith.sitofp %11 : vector<32x8xi32> to vector<32x8xf32>
    %13 = tpu.iota {dimensions = array<i32: 0>} : vector<8x32xi32>
    %14 = tpu.iota {dimensions = array<i32: 1>} : vector<8x32xi32>
    %c4_i32_1 = arith.constant 4 : i32
    %15 = vector.broadcast %c4_i32_1 : i32 to vector<8x32xi32>
    %16 = arith.muli %13, %15 : vector<8x32xi32>
    %17 = arith.cmpi sge, %14, %16 : vector<8x32xi32>
    %c1_i32_2 = arith.constant 1 : i32
    %18 = vector.broadcast %c1_i32_2 : i32 to vector<8x32xi32>
    %19 = arith.addi %13, %18 : vector<8x32xi32>
    %c4_i32_3 = arith.constant 4 : i32
    %20 = vector.broadcast %c4_i32_3 : i32 to vector<8x32xi32>
    %21 = arith.muli %19, %20 : vector<8x32xi32>
    %22 = arith.cmpi slt, %14, %21 : vector<8x32xi32>
    %23 = arith.andi %17, %22 : vector<8x32xi1>
    %24 = arith.extui %23 : vector<8x32xi1> to vector<8x32xi32>
    %25 = arith.sitofp %24 : vector<8x32xi32> to vector<8x32xf32>
    %26 = vector.extract_strided_slice %25 {offsets = [0, 0], sizes = [1, 32], strides = [1, 1]} : vector<8x32xf32> to vector<1x32xf32>
    %27 = vector.extract_strided_slice %25 {offsets = [1, 0], sizes = [1, 32], strides = [1, 1]} : vector<8x32xf32> to vector<1x32xf32>
    %28 = vector.extract_strided_slice %25 {offsets = [2, 0], sizes = [1, 32], strides = [1, 1]} : vector<8x32xf32> to vector<1x32xf32>
    %29 = vector.extract_strided_slice %25 {offsets = [3, 0], sizes = [1, 32], strides = [1, 1]} : vector<8x32xf32> to vector<1x32xf32>
    %30 = vector.extract_strided_slice %25 {offsets = [4, 0], sizes = [1, 32], strides = [1, 1]} : vector<8x32xf32> to vector<1x32xf32>
    %31 = vector.extract_strided_slice %25 {offsets = [5, 0], sizes = [1, 32], strides = [1, 1]} : vector<8x32xf32> to vector<1x32xf32>
    %32 = vector.extract_strided_slice %25 {offsets = [6, 0], sizes = [1, 32], strides = [1, 1]} : vector<8x32xf32> to vector<1x32xf32>
    %33 = vector.extract_strided_slice %25 {offsets = [7, 0], sizes = [1, 32], strides = [1, 1]} : vector<8x32xf32> to vector<1x32xf32>
    %c0 = arith.constant 0 : index
    %c0_4 = arith.constant 0 : index
    %34 = vector.load %arg0[%c0, %c0_4] : memref<16x9xf32, #tpu.memory_space<vmem>>, vector<16x9xf32>
    %c0_5 = arith.constant 0 : index
    %c0_6 = arith.constant 0 : index
    %35 = vector.load %arg1[%c0_5, %c0_6] : memref<16x270xf32, #tpu.memory_space<vmem>>, vector<16x270xf32>
    %c0_7 = arith.constant 0 : index
    %c0_8 = arith.constant 0 : index
    %36 = vector.load %arg2[%c0_7, %c0_8] : memref<16x270xf32, #tpu.memory_space<vmem>>, vector<16x270xf32>
    %c0_9 = arith.constant 0 : index
    %c0_10 = arith.constant 0 : index
    %37 = vector.load %arg3[%c0_9, %c0_10] : memref<9x32xf32, #tpu.memory_space<vmem>>, vector<9x32xf32>
    %c0_11 = arith.constant 0 : index
    %c0_12 = arith.constant 0 : index
    %38 = vector.load %arg4[%c0_11, %c0_12] : memref<270x32xf32, #tpu.memory_space<vmem>>, vector<270x32xf32>
    %c0_13 = arith.constant 0 : index
    %c0_14 = arith.constant 0 : index
    %39 = vector.load %arg5[%c0_13, %c0_14] : memref<270x32xf32, #tpu.memory_space<vmem>>, vector<270x32xf32>
    %cst = arith.constant dense<0.000000e+00> : vector<16x32xf32>
    %40 = tpu.matmul %34, %37, %cst {dimension_numbers = #tpu.dot_dimension_numbers<[1], [0], [0], [1], [0, 0, 1, 1], [], []>} : vector<16x9xf32>, vector<9x32xf32>, vector<16x32xf32> -> vector<16x32xf32>
    %c0_15 = arith.constant 0 : index
    %c0_16 = arith.constant 0 : index
    %c0_17 = arith.constant 0 : index
    %41 = vector.load %arg6[%c0_15, %c0_16, %c0_17] : memref<3x1x32xf32, #tpu.memory_space<vmem>>, vector<1x1x32xf32>
    %42 = vector.shape_cast %41 : vector<1x1x32xf32> to vector<1x32xf32>
    %43 = vector.broadcast %42 : vector<1x32xf32> to vector<16x32xf32>
    %44 = arith.addf %40, %43 : vector<16x32xf32>
    %c0_18 = arith.constant 0 : index
    %c0_19 = arith.constant 0 : index
    %c0_20 = arith.constant 0 : index
    %45 = vector.load %arg7[%c0_18, %c0_19, %c0_20] : memref<3x32x96xf32, #tpu.memory_space<vmem>>, vector<1x32x96xf32>
    %46 = vector.shape_cast %45 : vector<1x32x96xf32> to vector<32x96xf32>
    %cst_21 = arith.constant dense<0.000000e+00> : vector<16x96xf32>
    %47 = tpu.matmul %44, %46, %cst_21 {dimension_numbers = #tpu.dot_dimension_numbers<[1], [0], [0], [1], [0, 0, 1, 1], [], []>} : vector<16x32xf32>, vector<32x96xf32>, vector<16x96xf32> -> vector<16x96xf32>
    %c0_22 = arith.constant 0 : index
    %c0_23 = arith.constant 0 : index
    %c0_24 = arith.constant 0 : index
    %48 = vector.load %arg8[%c0_22, %c0_23, %c0_24] : memref<3x1x96xf32, #tpu.memory_space<vmem>>, vector<1x1x96xf32>
    %49 = vector.shape_cast %48 : vector<1x1x96xf32> to vector<1x96xf32>
    %50 = vector.broadcast %49 : vector<1x96xf32> to vector<16x96xf32>
    %51 = arith.addf %47, %50 : vector<16x96xf32>
    %52 = vector.extract_strided_slice %51 {offsets = [0, 0], sizes = [16, 32], strides = [1, 1]} : vector<16x96xf32> to vector<16x32xf32>
    %cst_25 = arith.constant 5.000000e-01 : f32
    %53 = vector.broadcast %cst_25 : f32 to vector<16x32xf32>
    %54 = arith.mulf %52, %53 : vector<16x32xf32>
    %55 = vector.extract_strided_slice %51 {offsets = [0, 32], sizes = [16, 32], strides = [1, 1]} : vector<16x96xf32> to vector<16x32xf32>
    %56 = vector.extract_strided_slice %51 {offsets = [0, 64], sizes = [16, 32], strides = [1, 1]} : vector<16x96xf32> to vector<16x32xf32>
    %57 = vector.broadcast %26 : vector<1x32xf32> to vector<16x32xf32>
    %58 = arith.mulf %54, %57 : vector<16x32xf32>
    %59 = tpu.transpose %55, [1, 0] : vector<16x32xf32> -> vector<32x16xf32>
    %cst_26 = arith.constant dense<0.000000e+00> : vector<16x16xf32>
    %60 = tpu.matmul %58, %59, %cst_26 {dimension_numbers = #tpu.dot_dimension_numbers<[1], [0], [0], [1], [0, 0, 1, 1], [], []>} : vector<16x32xf32>, vector<32x16xf32>, vector<16x16xf32> -> vector<16x16xf32>
    %cst_27 = arith.constant dense<0xFF800000> : vector<16xf32>
    %61 = vector.multi_reduction <maximumf>, %60, %cst_27 [1] : vector<16x16xf32> to vector<16xf32>
    %62 = vector.shape_cast %61 : vector<16xf32> to vector<16x1xf32>
    %63 = vector.broadcast %62 : vector<16x1xf32> to vector<16x16xf32>
    %64 = arith.subf %60, %63 : vector<16x16xf32>
    %65 = math.exp %64 : vector<16x16xf32>
    %cst_28 = arith.constant dense<0.000000e+00> : vector<16xf32>
    %66 = vector.multi_reduction <add>, %65, %cst_28 [1] : vector<16x16xf32> to vector<16xf32>
    %67 = vector.shape_cast %66 : vector<16xf32> to vector<16x1xf32>
    %68 = tpu.reciprocal %67 {approx = true} : vector<16x1xf32> -> vector<16x1xf32>
    %69 = vector.broadcast %68 : vector<16x1xf32> to vector<16x16xf32>
    %70 = arith.mulf %65, %69 : vector<16x16xf32>
    %71 = vector.broadcast %26 : vector<1x32xf32> to vector<16x32xf32>
    %72 = arith.mulf %56, %71 : vector<16x32xf32>
    %cst_29 = arith.constant dense<0.000000e+00> : vector<16x32xf32>
    %73 = tpu.matmul %70, %72, %cst_29 {dimension_numbers = #tpu.dot_dimension_numbers<[1], [0], [0], [1], [0, 0, 1, 1], [], []>} : vector<16x16xf32>, vector<16x32xf32>, vector<16x32xf32> -> vector<16x32xf32>
    %74 = vector.broadcast %27 : vector<1x32xf32> to vector<16x32xf32>
    %75 = arith.mulf %54, %74 : vector<16x32xf32>
    %76 = tpu.transpose %55, [1, 0] : vector<16x32xf32> -> vector<32x16xf32>
    %cst_30 = arith.constant dense<0.000000e+00> : vector<16x16xf32>
    %77 = tpu.matmul %75, %76, %cst_30 {dimension_numbers = #tpu.dot_dimension_numbers<[1], [0], [0], [1], [0, 0, 1, 1], [], []>} : vector<16x32xf32>, vector<32x16xf32>, vector<16x16xf32> -> vector<16x16xf32>
    %cst_31 = arith.constant dense<0xFF800000> : vector<16xf32>
    %78 = vector.multi_reduction <maximumf>, %77, %cst_31 [1] : vector<16x16xf32> to vector<16xf32>
    %79 = vector.shape_cast %78 : vector<16xf32> to vector<16x1xf32>
    %80 = vector.broadcast %79 : vector<16x1xf32> to vector<16x16xf32>
    %81 = arith.subf %77, %80 : vector<16x16xf32>
    %82 = math.exp %81 : vector<16x16xf32>
    %cst_32 = arith.constant dense<0.000000e+00> : vector<16xf32>
    %83 = vector.multi_reduction <add>, %82, %cst_32 [1] : vector<16x16xf32> to vector<16xf32>
    %84 = vector.shape_cast %83 : vector<16xf32> to vector<16x1xf32>
    %85 = tpu.reciprocal %84 {approx = true} : vector<16x1xf32> -> vector<16x1xf32>
    %86 = vector.broadcast %85 : vector<16x1xf32> to vector<16x16xf32>
    %87 = arith.mulf %82, %86 : vector<16x16xf32>
    %88 = vector.broadcast %27 : vector<1x32xf32> to vector<16x32xf32>
    %89 = arith.mulf %56, %88 : vector<16x32xf32>
    %cst_33 = arith.constant dense<0.000000e+00> : vector<16x32xf32>
    %90 = tpu.matmul %87, %89, %cst_33 {dimension_numbers = #tpu.dot_dimension_numbers<[1], [0], [0], [1], [0, 0, 1, 1], [], []>} : vector<16x16xf32>, vector<16x32xf32>, vector<16x32xf32> -> vector<16x32xf32>
    %91 = arith.addf %73, %90 : vector<16x32xf32>
    %92 = vector.broadcast %28 : vector<1x32xf32> to vector<16x32xf32>
    %93 = arith.mulf %54, %92 : vector<16x32xf32>
    %94 = tpu.transpose %55, [1, 0] : vector<16x32xf32> -> vector<32x16xf32>
    %cst_34 = arith.constant dense<0.000000e+00> : vector<16x16xf32>
    %95 = tpu.matmul %93, %94, %cst_34 {dimension_numbers = #tpu.dot_dimension_numbers<[1], [0], [0], [1], [0, 0, 1, 1], [], []>} : vector<16x32xf32>, vector<32x16xf32>, vector<16x16xf32> -> vector<16x16xf32>
    %cst_35 = arith.constant dense<0xFF800000> : vector<16xf32>
    %96 = vector.multi_reduction <maximumf>, %95, %cst_35 [1] : vector<16x16xf32> to vector<16xf32>
    %97 = vector.shape_cast %96 : vector<16xf32> to vector<16x1xf32>
    %98 = vector.broadcast %97 : vector<16x1xf32> to vector<16x16xf32>
    %99 = arith.subf %95, %98 : vector<16x16xf32>
    %100 = math.exp %99 : vector<16x16xf32>
    %cst_36 = arith.constant dense<0.000000e+00> : vector<16xf32>
    %101 = vector.multi_reduction <add>, %100, %cst_36 [1] : vector<16x16xf32> to vector<16xf32>
    %102 = vector.shape_cast %101 : vector<16xf32> to vector<16x1xf32>
    %103 = tpu.reciprocal %102 {approx = true} : vector<16x1xf32> -> vector<16x1xf32>
    %104 = vector.broadcast %103 : vector<16x1xf32> to vector<16x16xf32>
    %105 = arith.mulf %100, %104 : vector<16x16xf32>
    %106 = vector.broadcast %28 : vector<1x32xf32> to vector<16x32xf32>
    %107 = arith.mulf %56, %106 : vector<16x32xf32>
    %cst_37 = arith.constant dense<0.000000e+00> : vector<16x32xf32>
    %108 = tpu.matmul %105, %107, %cst_37 {dimension_numbers = #tpu.dot_dimension_numbers<[1], [0], [0], [1], [0, 0, 1, 1], [], []>} : vector<16x16xf32>, vector<16x32xf32>, vector<16x32xf32> -> vector<16x32xf32>
    %109 = arith.addf %91, %108 : vector<16x32xf32>
    %110 = vector.broadcast %29 : vector<1x32xf32> to vector<16x32xf32>
    %111 = arith.mulf %54, %110 : vector<16x32xf32>
    %112 = tpu.transpose %55, [1, 0] : vector<16x32xf32> -> vector<32x16xf32>
    %cst_38 = arith.constant dense<0.000000e+00> : vector<16x16xf32>
    %113 = tpu.matmul %111, %112, %cst_38 {dimension_numbers = #tpu.dot_dimension_numbers<[1], [0], [0], [1], [0, 0, 1, 1], [], []>} : vector<16x32xf32>, vector<32x16xf32>, vector<16x16xf32> -> vector<16x16xf32>
    %cst_39 = arith.constant dense<0xFF800000> : vector<16xf32>
    %114 = vector.multi_reduction <maximumf>, %113, %cst_39 [1] : vector<16x16xf32> to vector<16xf32>
    %115 = vector.shape_cast %114 : vector<16xf32> to vector<16x1xf32>
    %116 = vector.broadcast %115 : vector<16x1xf32> to vector<16x16xf32>
    %117 = arith.subf %113, %116 : vector<16x16xf32>
    %118 = math.exp %117 : vector<16x16xf32>
    %cst_40 = arith.constant dense<0.000000e+00> : vector<16xf32>
    %119 = vector.multi_reduction <add>, %118, %cst_40 [1] : vector<16x16xf32> to vector<16xf32>
    %120 = vector.shape_cast %119 : vector<16xf32> to vector<16x1xf32>
    %121 = tpu.reciprocal %120 {approx = true} : vector<16x1xf32> -> vector<16x1xf32>
    %122 = vector.broadcast %121 : vector<16x1xf32> to vector<16x16xf32>
    %123 = arith.mulf %118, %122 : vector<16x16xf32>
    %124 = vector.broadcast %29 : vector<1x32xf32> to vector<16x32xf32>
    %125 = arith.mulf %56, %124 : vector<16x32xf32>
    %cst_41 = arith.constant dense<0.000000e+00> : vector<16x32xf32>
    %126 = tpu.matmul %123, %125, %cst_41 {dimension_numbers = #tpu.dot_dimension_numbers<[1], [0], [0], [1], [0, 0, 1, 1], [], []>} : vector<16x16xf32>, vector<16x32xf32>, vector<16x32xf32> -> vector<16x32xf32>
    %127 = arith.addf %109, %126 : vector<16x32xf32>
    %128 = vector.broadcast %30 : vector<1x32xf32> to vector<16x32xf32>
    %129 = arith.mulf %54, %128 : vector<16x32xf32>
    %130 = tpu.transpose %55, [1, 0] : vector<16x32xf32> -> vector<32x16xf32>
    %cst_42 = arith.constant dense<0.000000e+00> : vector<16x16xf32>
    %131 = tpu.matmul %129, %130, %cst_42 {dimension_numbers = #tpu.dot_dimension_numbers<[1], [0], [0], [1], [0, 0, 1, 1], [], []>} : vector<16x32xf32>, vector<32x16xf32>, vector<16x16xf32> -> vector<16x16xf32>
    %cst_43 = arith.constant dense<0xFF800000> : vector<16xf32>
    %132 = vector.multi_reduction <maximumf>, %131, %cst_43 [1] : vector<16x16xf32> to vector<16xf32>
    %133 = vector.shape_cast %132 : vector<16xf32> to vector<16x1xf32>
    %134 = vector.broadcast %133 : vector<16x1xf32> to vector<16x16xf32>
    %135 = arith.subf %131, %134 : vector<16x16xf32>
    %136 = math.exp %135 : vector<16x16xf32>
    %cst_44 = arith.constant dense<0.000000e+00> : vector<16xf32>
    %137 = vector.multi_reduction <add>, %136, %cst_44 [1] : vector<16x16xf32> to vector<16xf32>
    %138 = vector.shape_cast %137 : vector<16xf32> to vector<16x1xf32>
    %139 = tpu.reciprocal %138 {approx = true} : vector<16x1xf32> -> vector<16x1xf32>
    %140 = vector.broadcast %139 : vector<16x1xf32> to vector<16x16xf32>
    %141 = arith.mulf %136, %140 : vector<16x16xf32>
    %142 = vector.broadcast %30 : vector<1x32xf32> to vector<16x32xf32>
    %143 = arith.mulf %56, %142 : vector<16x32xf32>
    %cst_45 = arith.constant dense<0.000000e+00> : vector<16x32xf32>
    %144 = tpu.matmul %141, %143, %cst_45 {dimension_numbers = #tpu.dot_dimension_numbers<[1], [0], [0], [1], [0, 0, 1, 1], [], []>} : vector<16x16xf32>, vector<16x32xf32>, vector<16x32xf32> -> vector<16x32xf32>
    %145 = arith.addf %127, %144 : vector<16x32xf32>
    %146 = vector.broadcast %31 : vector<1x32xf32> to vector<16x32xf32>
    %147 = arith.mulf %54, %146 : vector<16x32xf32>
    %148 = tpu.transpose %55, [1, 0] : vector<16x32xf32> -> vector<32x16xf32>
    %cst_46 = arith.constant dense<0.000000e+00> : vector<16x16xf32>
    %149 = tpu.matmul %147, %148, %cst_46 {dimension_numbers = #tpu.dot_dimension_numbers<[1], [0], [0], [1], [0, 0, 1, 1], [], []>} : vector<16x32xf32>, vector<32x16xf32>, vector<16x16xf32> -> vector<16x16xf32>
    %cst_47 = arith.constant dense<0xFF800000> : vector<16xf32>
    %150 = vector.multi_reduction <maximumf>, %149, %cst_47 [1] : vector<16x16xf32> to vector<16xf32>
    %151 = vector.shape_cast %150 : vector<16xf32> to vector<16x1xf32>
    %152 = vector.broadcast %151 : vector<16x1xf32> to vector<16x16xf32>
    %153 = arith.subf %149, %152 : vector<16x16xf32>
    %154 = math.exp %153 : vector<16x16xf32>
    %cst_48 = arith.constant dense<0.000000e+00> : vector<16xf32>
    %155 = vector.multi_reduction <add>, %154, %cst_48 [1] : vector<16x16xf32> to vector<16xf32>
    %156 = vector.shape_cast %155 : vector<16xf32> to vector<16x1xf32>
    %157 = tpu.reciprocal %156 {approx = true} : vector<16x1xf32> -> vector<16x1xf32>
    %158 = vector.broadcast %157 : vector<16x1xf32> to vector<16x16xf32>
    %159 = arith.mulf %154, %158 : vector<16x16xf32>
    %160 = vector.broadcast %31 : vector<1x32xf32> to vector<16x32xf32>
    %161 = arith.mulf %56, %160 : vector<16x32xf32>
    %cst_49 = arith.constant dense<0.000000e+00> : vector<16x32xf32>
    %162 = tpu.matmul %159, %161, %cst_49 {dimension_numbers = #tpu.dot_dimension_numbers<[1], [0], [0], [1], [0, 0, 1, 1], [], []>} : vector<16x16xf32>, vector<16x32xf32>, vector<16x32xf32> -> vector<16x32xf32>
    %163 = arith.addf %145, %162 : vector<16x32xf32>
    %164 = vector.broadcast %32 : vector<1x32xf32> to vector<16x32xf32>
    %165 = arith.mulf %54, %164 : vector<16x32xf32>
    %166 = tpu.transpose %55, [1, 0] : vector<16x32xf32> -> vector<32x16xf32>
    %cst_50 = arith.constant dense<0.000000e+00> : vector<16x16xf32>
    %167 = tpu.matmul %165, %166, %cst_50 {dimension_numbers = #tpu.dot_dimension_numbers<[1], [0], [0], [1], [0, 0, 1, 1], [], []>} : vector<16x32xf32>, vector<32x16xf32>, vector<16x16xf32> -> vector<16x16xf32>
    %cst_51 = arith.constant dense<0xFF800000> : vector<16xf32>
    %168 = vector.multi_reduction <maximumf>, %167, %cst_51 [1] : vector<16x16xf32> to vector<16xf32>
    %169 = vector.shape_cast %168 : vector<16xf32> to vector<16x1xf32>
    %170 = vector.broadcast %169 : vector<16x1xf32> to vector<16x16xf32>
    %171 = arith.subf %167, %170 : vector<16x16xf32>
    %172 = math.exp %171 : vector<16x16xf32>
    %cst_52 = arith.constant dense<0.000000e+00> : vector<16xf32>
    %173 = vector.multi_reduction <add>, %172, %cst_52 [1] : vector<16x16xf32> to vector<16xf32>
    %174 = vector.shape_cast %173 : vector<16xf32> to vector<16x1xf32>
    %175 = tpu.reciprocal %174 {approx = true} : vector<16x1xf32> -> vector<16x1xf32>
    %176 = vector.broadcast %175 : vector<16x1xf32> to vector<16x16xf32>
    %177 = arith.mulf %172, %176 : vector<16x16xf32>
    %178 = vector.broadcast %32 : vector<1x32xf32> to vector<16x32xf32>
    %179 = arith.mulf %56, %178 : vector<16x32xf32>
    %cst_53 = arith.constant dense<0.000000e+00> : vector<16x32xf32>
    %180 = tpu.matmul %177, %179, %cst_53 {dimension_numbers = #tpu.dot_dimension_numbers<[1], [0], [0], [1], [0, 0, 1, 1], [], []>} : vector<16x16xf32>, vector<16x32xf32>, vector<16x32xf32> -> vector<16x32xf32>
    %181 = arith.addf %163, %180 : vector<16x32xf32>
    %182 = vector.broadcast %33 : vector<1x32xf32> to vector<16x32xf32>
    %183 = arith.mulf %54, %182 : vector<16x32xf32>
    %184 = tpu.transpose %55, [1, 0] : vector<16x32xf32> -> vector<32x16xf32>
    %cst_54 = arith.constant dense<0.000000e+00> : vector<16x16xf32>
    %185 = tpu.matmul %183, %184, %cst_54 {dimension_numbers = #tpu.dot_dimension_numbers<[1], [0], [0], [1], [0, 0, 1, 1], [], []>} : vector<16x32xf32>, vector<32x16xf32>, vector<16x16xf32> -> vector<16x16xf32>
    %cst_55 = arith.constant dense<0xFF800000> : vector<16xf32>
    %186 = vector.multi_reduction <maximumf>, %185, %cst_55 [1] : vector<16x16xf32> to vector<16xf32>
    %187 = vector.shape_cast %186 : vector<16xf32> to vector<16x1xf32>
    %188 = vector.broadcast %187 : vector<16x1xf32> to vector<16x16xf32>
    %189 = arith.subf %185, %188 : vector<16x16xf32>
    %190 = math.exp %189 : vector<16x16xf32>
    %cst_56 = arith.constant dense<0.000000e+00> : vector<16xf32>
    %191 = vector.multi_reduction <add>, %190, %cst_56 [1] : vector<16x16xf32> to vector<16xf32>
    %192 = vector.shape_cast %191 : vector<16xf32> to vector<16x1xf32>
    %193 = tpu.reciprocal %192 {approx = true} : vector<16x1xf32> -> vector<16x1xf32>
    %194 = vector.broadcast %193 : vector<16x1xf32> to vector<16x16xf32>
    %195 = arith.mulf %190, %194 : vector<16x16xf32>
    %196 = vector.broadcast %33 : vector<1x32xf32> to vector<16x32xf32>
    %197 = arith.mulf %56, %196 : vector<16x32xf32>
    %cst_57 = arith.constant dense<0.000000e+00> : vector<16x32xf32>
    %198 = tpu.matmul %195, %197, %cst_57 {dimension_numbers = #tpu.dot_dimension_numbers<[1], [0], [0], [1], [0, 0, 1, 1], [], []>} : vector<16x16xf32>, vector<16x32xf32>, vector<16x32xf32> -> vector<16x32xf32>
    %199 = arith.addf %181, %198 : vector<16x32xf32>
    %c0_58 = arith.constant 0 : index
    %c0_59 = arith.constant 0 : index
    %c0_60 = arith.constant 0 : index
    %200 = vector.load %arg9[%c0_58, %c0_59, %c0_60] : memref<3x32x32xf32, #tpu.memory_space<vmem>>, vector<1x32x32xf32>
    %201 = vector.shape_cast %200 : vector<1x32x32xf32> to vector<32x32xf32>
    %cst_61 = arith.constant dense<0.000000e+00> : vector<16x32xf32>
    %202 = tpu.matmul %199, %201, %cst_61 {dimension_numbers = #tpu.dot_dimension_numbers<[1], [0], [0], [1], [0, 0, 1, 1], [], []>} : vector<16x32xf32>, vector<32x32xf32>, vector<16x32xf32> -> vector<16x32xf32>
    %203 = arith.addf %44, %202 : vector<16x32xf32>
    %c0_62 = arith.constant 0 : index
    %c0_63 = arith.constant 0 : index
    %c0_64 = arith.constant 0 : index
    %204 = vector.load %arg10[%c0_62, %c0_63, %c0_64] : memref<3x1x32xf32, #tpu.memory_space<vmem>>, vector<1x1x32xf32>
    %205 = vector.shape_cast %204 : vector<1x1x32xf32> to vector<1x32xf32>
    %206 = vector.broadcast %205 : vector<1x32xf32> to vector<16x32xf32>
    %207 = arith.addf %203, %206 : vector<16x32xf32>
    %cst_65 = arith.constant dense<0.000000e+00> : vector<16xf32>
    %208 = vector.multi_reduction <add>, %207, %cst_65 [1] : vector<16x32xf32> to vector<16xf32>
    %209 = vector.shape_cast %208 : vector<16xf32> to vector<16x1xf32>
    %cst_66 = arith.constant 3.200000e+01 : f32
    %210 = vector.broadcast %cst_66 : f32 to vector<16x1xf32>
    %211 = arith.divf %209, %210 : vector<16x1xf32>
    %212 = vector.broadcast %211 : vector<16x1xf32> to vector<16x32xf32>
    %213 = arith.subf %207, %212 : vector<16x32xf32>
    %214 = arith.mulf %213, %213 : vector<16x32xf32>
    %cst_67 = arith.constant dense<0.000000e+00> : vector<16xf32>
    %215 = vector.multi_reduction <add>, %214, %cst_67 [1] : vector<16x32xf32> to vector<16xf32>
    %216 = vector.shape_cast %215 : vector<16xf32> to vector<16x1xf32>
    %cst_68 = arith.constant 3.200000e+01 : f32
    %217 = vector.broadcast %cst_68 : f32 to vector<16x1xf32>
    %218 = arith.divf %216, %217 : vector<16x1xf32>
    %219 = vector.broadcast %211 : vector<16x1xf32> to vector<16x32xf32>
    %220 = arith.subf %207, %219 : vector<16x32xf32>
    %cst_69 = arith.constant 9.99999974E-6 : f32
    %221 = vector.broadcast %cst_69 : f32 to vector<16x1xf32>
    %222 = arith.addf %218, %221 : vector<16x1xf32>
    %223 = math.rsqrt %222 : vector<16x1xf32>
    %224 = vector.broadcast %223 : vector<16x1xf32> to vector<16x32xf32>
    %225 = arith.mulf %220, %224 : vector<16x32xf32>
    %c0_70 = arith.constant 0 : index
    %c0_71 = arith.constant 0 : index
    %c0_72 = arith.constant 0 : index
    %226 = vector.load %arg11[%c0_70, %c0_71, %c0_72] : memref<3x32x32xf32, #tpu.memory_space<vmem>>, vector<1x32x32xf32>
    %227 = vector.shape_cast %226 : vector<1x32x32xf32> to vector<32x32xf32>
    %cst_73 = arith.constant dense<0.000000e+00> : vector<16x32xf32>
    %228 = tpu.matmul %225, %227, %cst_73 {dimension_numbers = #tpu.dot_dimension_numbers<[1], [0], [0], [1], [0, 0, 1, 1], [], []>} : vector<16x32xf32>, vector<32x32xf32>, vector<16x32xf32> -> vector<16x32xf32>
    %c0_74 = arith.constant 0 : index
    %c0_75 = arith.constant 0 : index
    %c0_76 = arith.constant 0 : index
    %229 = vector.load %arg12[%c0_74, %c0_75, %c0_76] : memref<3x32x32xf32, #tpu.memory_space<vmem>>, vector<1x32x32xf32>
    %230 = vector.shape_cast %229 : vector<1x32x32xf32> to vector<32x32xf32>
    %cst_77 = arith.constant dense<0.000000e+00> : vector<16x32xf32>
    %231 = tpu.matmul %225, %230, %cst_77 {dimension_numbers = #tpu.dot_dimension_numbers<[1], [0], [0], [1], [0, 0, 1, 1], [], []>} : vector<16x32xf32>, vector<32x32xf32>, vector<16x32xf32> -> vector<16x32xf32>
    %232 = tpu.transpose %231, [1, 0] : vector<16x32xf32> -> vector<32x16xf32>
    %cst_78 = arith.constant dense<0.000000e+00> : vector<16x16xf32>
    %233 = tpu.matmul %228, %232, %cst_78 {dimension_numbers = #tpu.dot_dimension_numbers<[1], [0], [0], [1], [0, 0, 1, 1], [], []>} : vector<16x32xf32>, vector<32x16xf32>, vector<16x16xf32> -> vector<16x16xf32>
    %cst_79 = arith.constant 0.000000e+00 : f32
    %234 = vector.broadcast %cst_79 : f32 to vector<16x16xf32>
    %235 = arith.maximumf %233, %234 : vector<16x16xf32>
    %cst_80 = arith.constant dense<0xFF800000> : vector<16xf32>
    %236 = vector.multi_reduction <maximumf>, %235, %cst_80 [1] : vector<16x16xf32> to vector<16xf32>
    %237 = vector.shape_cast %236 : vector<16xf32> to vector<16x1xf32>
    %238 = vector.broadcast %237 : vector<16x1xf32> to vector<16x16xf32>
    %239 = arith.subf %235, %238 : vector<16x16xf32>
    %240 = math.exp %239 : vector<16x16xf32>
    %cst_81 = arith.constant dense<0.000000e+00> : vector<16xf32>
    %241 = vector.multi_reduction <add>, %240, %cst_81 [1] : vector<16x16xf32> to vector<16xf32>
    %242 = vector.shape_cast %241 : vector<16xf32> to vector<16x1xf32>
    %243 = tpu.reciprocal %242 {approx = true} : vector<16x1xf32> -> vector<16x1xf32>
    %244 = vector.broadcast %243 : vector<16x1xf32> to vector<16x16xf32>
    %245 = arith.mulf %240, %244 : vector<16x16xf32>
    %246 = tpu.iota {dimensions = array<i32: 0>} : vector<16x16xi32>
    %247 = tpu.iota {dimensions = array<i32: 1>} : vector<16x16xi32>
    %248 = arith.cmpi eq, %246, %247 : vector<16x16xi32>
    %249 = arith.extui %248 : vector<16x16xi1> to vector<16x16xi32>
    %250 = arith.sitofp %249 : vector<16x16xi32> to vector<16x16xf32>
    %251 = arith.addf %245, %250 : vector<16x16xf32>
    %cst_82 = arith.constant dense<0.000000e+00> : vector<16xf32>
    %252 = vector.multi_reduction <add>, %251, %cst_82 [1] : vector<16x16xf32> to vector<16xf32>
    %253 = vector.shape_cast %252 : vector<16xf32> to vector<16x1xf32>
    %cst_83 = arith.constant 9.99999996E-13 : f32
    %254 = vector.broadcast %cst_83 : f32 to vector<16x1xf32>
    %255 = arith.maximumf %253, %254 : vector<16x1xf32>
    %256 = math.rsqrt %255 : vector<16x1xf32>
    %c0_84 = arith.constant 0 : index
    %c0_85 = arith.constant 0 : index
    %c0_86 = arith.constant 0 : index
    %257 = vector.load %arg13[%c0_84, %c0_85, %c0_86] : memref<2x32x32xf32, #tpu.memory_space<vmem>>, vector<1x32x32xf32>
    %258 = vector.shape_cast %257 : vector<1x32x32xf32> to vector<32x32xf32>
    %cst_87 = arith.constant dense<0.000000e+00> : vector<16x32xf32>
    %259 = tpu.matmul %225, %258, %cst_87 {dimension_numbers = #tpu.dot_dimension_numbers<[1], [0], [0], [1], [0, 0, 1, 1], [], []>} : vector<16x32xf32>, vector<32x32xf32>, vector<16x32xf32> -> vector<16x32xf32>
    %260 = vector.broadcast %256 : vector<16x1xf32> to vector<16x32xf32>
    %261 = arith.mulf %260, %259 : vector<16x32xf32>
    %cst_88 = arith.constant dense<0.000000e+00> : vector<16x32xf32>
    %262 = tpu.matmul %251, %261, %cst_88 {dimension_numbers = #tpu.dot_dimension_numbers<[1], [0], [0], [1], [0, 0, 1, 1], [], []>} : vector<16x16xf32>, vector<16x32xf32>, vector<16x32xf32> -> vector<16x32xf32>
    %263 = vector.broadcast %256 : vector<16x1xf32> to vector<16x32xf32>
    %264 = arith.mulf %263, %262 : vector<16x32xf32>
    %c0_89 = arith.constant 0 : index
    %c0_90 = arith.constant 0 : index
    %c0_91 = arith.constant 0 : index
    %265 = vector.load %arg14[%c0_89, %c0_90, %c0_91] : memref<2x1x32xf32, #tpu.memory_space<vmem>>, vector<1x1x32xf32>
    %266 = vector.shape_cast %265 : vector<1x1x32xf32> to vector<1x32xf32>
    %267 = vector.broadcast %266 : vector<1x32xf32> to vector<16x32xf32>
    %268 = arith.addf %264, %267 : vector<16x32xf32>
    %cst_92 = arith.constant dense<0.000000e+00> : vector<32xf32>
    %269 = vector.multi_reduction <add>, %268, %cst_92 [0] : vector<16x32xf32> to vector<32xf32>
    %270 = vector.shape_cast %269 : vector<32xf32> to vector<1x32xf32>
    %cst_93 = arith.constant 1.600000e+01 : f32
    %271 = vector.broadcast %cst_93 : f32 to vector<1x32xf32>
    %272 = arith.divf %270, %271 : vector<1x32xf32>
    %273 = vector.broadcast %272 : vector<1x32xf32> to vector<16x32xf32>
    %274 = arith.subf %268, %273 : vector<16x32xf32>
    %275 = arith.mulf %274, %274 : vector<16x32xf32>
    %cst_94 = arith.constant dense<0.000000e+00> : vector<32xf32>
    %276 = vector.multi_reduction <add>, %275, %cst_94 [0] : vector<16x32xf32> to vector<32xf32>
    %277 = vector.shape_cast %276 : vector<32xf32> to vector<1x32xf32>
    %cst_95 = arith.constant 1.600000e+01 : f32
    %278 = vector.broadcast %cst_95 : f32 to vector<1x32xf32>
    %279 = arith.divf %277, %278 : vector<1x32xf32>
    %280 = vector.broadcast %272 : vector<1x32xf32> to vector<16x32xf32>
    %281 = arith.subf %268, %280 : vector<16x32xf32>
    %cst_96 = arith.constant 9.99999974E-6 : f32
    %282 = vector.broadcast %cst_96 : f32 to vector<1x32xf32>
    %283 = arith.addf %279, %282 : vector<1x32xf32>
    %284 = math.rsqrt %283 : vector<1x32xf32>
    %285 = vector.broadcast %284 : vector<1x32xf32> to vector<16x32xf32>
    %286 = arith.mulf %281, %285 : vector<16x32xf32>
    %c0_97 = arith.constant 0 : index
    %c0_98 = arith.constant 0 : index
    %c0_99 = arith.constant 0 : index
    %287 = vector.load %arg15[%c0_97, %c0_98, %c0_99] : memref<1x1x32xf32, #tpu.memory_space<vmem>>, vector<1x1x32xf32>
    %288 = vector.shape_cast %287 : vector<1x1x32xf32> to vector<1x32xf32>
    %289 = vector.broadcast %288 : vector<1x32xf32> to vector<16x32xf32>
    %290 = arith.mulf %286, %289 : vector<16x32xf32>
    %c0_100 = arith.constant 0 : index
    %c0_101 = arith.constant 0 : index
    %c0_102 = arith.constant 0 : index
    %291 = vector.load %arg16[%c0_100, %c0_101, %c0_102] : memref<1x1x32xf32, #tpu.memory_space<vmem>>, vector<1x1x32xf32>
    %292 = vector.shape_cast %291 : vector<1x1x32xf32> to vector<1x32xf32>
    %293 = vector.broadcast %292 : vector<1x32xf32> to vector<16x32xf32>
    %294 = arith.addf %290, %293 : vector<16x32xf32>
    %cst_103 = arith.constant 0.000000e+00 : f32
    %295 = vector.broadcast %cst_103 : f32 to vector<16x32xf32>
    %296 = arith.cmpf oge, %294, %295 : vector<16x32xf32>
    %cst_104 = arith.constant 0.00999999977 : f32
    %297 = vector.broadcast %cst_104 : f32 to vector<16x32xf32>
    %298 = arith.mulf %297, %294 : vector<16x32xf32>
    %299 = arith.select %296, %294, %298 : vector<16x32xi1>, vector<16x32xf32>
    %c1 = arith.constant 1 : index
    %c0_105 = arith.constant 0 : index
    %c0_106 = arith.constant 0 : index
    %300 = vector.load %arg13[%c1, %c0_105, %c0_106] : memref<2x32x32xf32, #tpu.memory_space<vmem>>, vector<1x32x32xf32>
    %301 = vector.shape_cast %300 : vector<1x32x32xf32> to vector<32x32xf32>
    %cst_107 = arith.constant dense<0.000000e+00> : vector<16x32xf32>
    %302 = tpu.matmul %299, %301, %cst_107 {dimension_numbers = #tpu.dot_dimension_numbers<[1], [0], [0], [1], [0, 0, 1, 1], [], []>} : vector<16x32xf32>, vector<32x32xf32>, vector<16x32xf32> -> vector<16x32xf32>
    %303 = vector.broadcast %256 : vector<16x1xf32> to vector<16x32xf32>
    %304 = arith.mulf %303, %302 : vector<16x32xf32>
    %cst_108 = arith.constant dense<0.000000e+00> : vector<16x32xf32>
    %305 = tpu.matmul %251, %304, %cst_108 {dimension_numbers = #tpu.dot_dimension_numbers<[1], [0], [0], [1], [0, 0, 1, 1], [], []>} : vector<16x16xf32>, vector<16x32xf32>, vector<16x32xf32> -> vector<16x32xf32>
    %306 = vector.broadcast %256 : vector<16x1xf32> to vector<16x32xf32>
    %307 = arith.mulf %306, %305 : vector<16x32xf32>
    %c1_109 = arith.constant 1 : index
    %c0_110 = arith.constant 0 : index
    %c0_111 = arith.constant 0 : index
    %308 = vector.load %arg14[%c1_109, %c0_110, %c0_111] : memref<2x1x32xf32, #tpu.memory_space<vmem>>, vector<1x1x32xf32>
    %309 = vector.shape_cast %308 : vector<1x1x32xf32> to vector<1x32xf32>
    %310 = vector.broadcast %309 : vector<1x32xf32> to vector<16x32xf32>
    %311 = arith.addf %307, %310 : vector<16x32xf32>
    %cst_112 = arith.constant dense<0.000000e+00> : vector<16x32xf32>
    %312 = tpu.matmul %35, %38, %cst_112 {dimension_numbers = #tpu.dot_dimension_numbers<[1], [0], [0], [1], [0, 0, 1, 1], [], []>} : vector<16x270xf32>, vector<270x32xf32>, vector<16x32xf32> -> vector<16x32xf32>
    %c1_113 = arith.constant 1 : index
    %c0_114 = arith.constant 0 : index
    %c0_115 = arith.constant 0 : index
    %313 = vector.load %arg6[%c1_113, %c0_114, %c0_115] : memref<3x1x32xf32, #tpu.memory_space<vmem>>, vector<1x1x32xf32>
    %314 = vector.shape_cast %313 : vector<1x1x32xf32> to vector<1x32xf32>
    %315 = vector.broadcast %314 : vector<1x32xf32> to vector<16x32xf32>
    %316 = arith.addf %312, %315 : vector<16x32xf32>
    %c1_116 = arith.constant 1 : index
    %c0_117 = arith.constant 0 : index
    %c0_118 = arith.constant 0 : index
    %317 = vector.load %arg7[%c1_116, %c0_117, %c0_118] : memref<3x32x96xf32, #tpu.memory_space<vmem>>, vector<1x32x96xf32>
    %318 = vector.shape_cast %317 : vector<1x32x96xf32> to vector<32x96xf32>
    %cst_119 = arith.constant dense<0.000000e+00> : vector<16x96xf32>
    %319 = tpu.matmul %316, %318, %cst_119 {dimension_numbers = #tpu.dot_dimension_numbers<[1], [0], [0], [1], [0, 0, 1, 1], [], []>} : vector<16x32xf32>, vector<32x96xf32>, vector<16x96xf32> -> vector<16x96xf32>
    %c1_120 = arith.constant 1 : index
    %c0_121 = arith.constant 0 : index
    %c0_122 = arith.constant 0 : index
    %320 = vector.load %arg8[%c1_120, %c0_121, %c0_122] : memref<3x1x96xf32, #tpu.memory_space<vmem>>, vector<1x1x96xf32>
    %321 = vector.shape_cast %320 : vector<1x1x96xf32> to vector<1x96xf32>
    %322 = vector.broadcast %321 : vector<1x96xf32> to vector<16x96xf32>
    %323 = arith.addf %319, %322 : vector<16x96xf32>
    %324 = vector.extract_strided_slice %323 {offsets = [0, 0], sizes = [16, 32], strides = [1, 1]} : vector<16x96xf32> to vector<16x32xf32>
    %cst_123 = arith.constant 5.000000e-01 : f32
    %325 = vector.broadcast %cst_123 : f32 to vector<16x32xf32>
    %326 = arith.mulf %324, %325 : vector<16x32xf32>
    %327 = vector.extract_strided_slice %323 {offsets = [0, 32], sizes = [16, 32], strides = [1, 1]} : vector<16x96xf32> to vector<16x32xf32>
    %328 = vector.extract_strided_slice %323 {offsets = [0, 64], sizes = [16, 32], strides = [1, 1]} : vector<16x96xf32> to vector<16x32xf32>
    %329 = vector.broadcast %26 : vector<1x32xf32> to vector<16x32xf32>
    %330 = arith.mulf %326, %329 : vector<16x32xf32>
    %331 = tpu.transpose %327, [1, 0] : vector<16x32xf32> -> vector<32x16xf32>
    %cst_124 = arith.constant dense<0.000000e+00> : vector<16x16xf32>
    %332 = tpu.matmul %330, %331, %cst_124 {dimension_numbers = #tpu.dot_dimension_numbers<[1], [0], [0], [1], [0, 0, 1, 1], [], []>} : vector<16x32xf32>, vector<32x16xf32>, vector<16x16xf32> -> vector<16x16xf32>
    %cst_125 = arith.constant dense<0xFF800000> : vector<16xf32>
    %333 = vector.multi_reduction <maximumf>, %332, %cst_125 [1] : vector<16x16xf32> to vector<16xf32>
    %334 = vector.shape_cast %333 : vector<16xf32> to vector<16x1xf32>
    %335 = vector.broadcast %334 : vector<16x1xf32> to vector<16x16xf32>
    %336 = arith.subf %332, %335 : vector<16x16xf32>
    %337 = math.exp %336 : vector<16x16xf32>
    %cst_126 = arith.constant dense<0.000000e+00> : vector<16xf32>
    %338 = vector.multi_reduction <add>, %337, %cst_126 [1] : vector<16x16xf32> to vector<16xf32>
    %339 = vector.shape_cast %338 : vector<16xf32> to vector<16x1xf32>
    %340 = tpu.reciprocal %339 {approx = true} : vector<16x1xf32> -> vector<16x1xf32>
    %341 = vector.broadcast %340 : vector<16x1xf32> to vector<16x16xf32>
    %342 = arith.mulf %337, %341 : vector<16x16xf32>
    %343 = vector.broadcast %26 : vector<1x32xf32> to vector<16x32xf32>
    %344 = arith.mulf %328, %343 : vector<16x32xf32>
    %cst_127 = arith.constant dense<0.000000e+00> : vector<16x32xf32>
    %345 = tpu.matmul %342, %344, %cst_127 {dimension_numbers = #tpu.dot_dimension_numbers<[1], [0], [0], [1], [0, 0, 1, 1], [], []>} : vector<16x16xf32>, vector<16x32xf32>, vector<16x32xf32> -> vector<16x32xf32>
    %346 = vector.broadcast %27 : vector<1x32xf32> to vector<16x32xf32>
    %347 = arith.mulf %326, %346 : vector<16x32xf32>
    %348 = tpu.transpose %327, [1, 0] : vector<16x32xf32> -> vector<32x16xf32>
    %cst_128 = arith.constant dense<0.000000e+00> : vector<16x16xf32>
    %349 = tpu.matmul %347, %348, %cst_128 {dimension_numbers = #tpu.dot_dimension_numbers<[1], [0], [0], [1], [0, 0, 1, 1], [], []>} : vector<16x32xf32>, vector<32x16xf32>, vector<16x16xf32> -> vector<16x16xf32>
    %cst_129 = arith.constant dense<0xFF800000> : vector<16xf32>
    %350 = vector.multi_reduction <maximumf>, %349, %cst_129 [1] : vector<16x16xf32> to vector<16xf32>
    %351 = vector.shape_cast %350 : vector<16xf32> to vector<16x1xf32>
    %352 = vector.broadcast %351 : vector<16x1xf32> to vector<16x16xf32>
    %353 = arith.subf %349, %352 : vector<16x16xf32>
    %354 = math.exp %353 : vector<16x16xf32>
    %cst_130 = arith.constant dense<0.000000e+00> : vector<16xf32>
    %355 = vector.multi_reduction <add>, %354, %cst_130 [1] : vector<16x16xf32> to vector<16xf32>
    %356 = vector.shape_cast %355 : vector<16xf32> to vector<16x1xf32>
    %357 = tpu.reciprocal %356 {approx = true} : vector<16x1xf32> -> vector<16x1xf32>
    %358 = vector.broadcast %357 : vector<16x1xf32> to vector<16x16xf32>
    %359 = arith.mulf %354, %358 : vector<16x16xf32>
    %360 = vector.broadcast %27 : vector<1x32xf32> to vector<16x32xf32>
    %361 = arith.mulf %328, %360 : vector<16x32xf32>
    %cst_131 = arith.constant dense<0.000000e+00> : vector<16x32xf32>
    %362 = tpu.matmul %359, %361, %cst_131 {dimension_numbers = #tpu.dot_dimension_numbers<[1], [0], [0], [1], [0, 0, 1, 1], [], []>} : vector<16x16xf32>, vector<16x32xf32>, vector<16x32xf32> -> vector<16x32xf32>
    %363 = arith.addf %345, %362 : vector<16x32xf32>
    %364 = vector.broadcast %28 : vector<1x32xf32> to vector<16x32xf32>
    %365 = arith.mulf %326, %364 : vector<16x32xf32>
    %366 = tpu.transpose %327, [1, 0] : vector<16x32xf32> -> vector<32x16xf32>
    %cst_132 = arith.constant dense<0.000000e+00> : vector<16x16xf32>
    %367 = tpu.matmul %365, %366, %cst_132 {dimension_numbers = #tpu.dot_dimension_numbers<[1], [0], [0], [1], [0, 0, 1, 1], [], []>} : vector<16x32xf32>, vector<32x16xf32>, vector<16x16xf32> -> vector<16x16xf32>
    %cst_133 = arith.constant dense<0xFF800000> : vector<16xf32>
    %368 = vector.multi_reduction <maximumf>, %367, %cst_133 [1] : vector<16x16xf32> to vector<16xf32>
    %369 = vector.shape_cast %368 : vector<16xf32> to vector<16x1xf32>
    %370 = vector.broadcast %369 : vector<16x1xf32> to vector<16x16xf32>
    %371 = arith.subf %367, %370 : vector<16x16xf32>
    %372 = math.exp %371 : vector<16x16xf32>
    %cst_134 = arith.constant dense<0.000000e+00> : vector<16xf32>
    %373 = vector.multi_reduction <add>, %372, %cst_134 [1] : vector<16x16xf32> to vector<16xf32>
    %374 = vector.shape_cast %373 : vector<16xf32> to vector<16x1xf32>
    %375 = tpu.reciprocal %374 {approx = true} : vector<16x1xf32> -> vector<16x1xf32>
    %376 = vector.broadcast %375 : vector<16x1xf32> to vector<16x16xf32>
    %377 = arith.mulf %372, %376 : vector<16x16xf32>
    %378 = vector.broadcast %28 : vector<1x32xf32> to vector<16x32xf32>
    %379 = arith.mulf %328, %378 : vector<16x32xf32>
    %cst_135 = arith.constant dense<0.000000e+00> : vector<16x32xf32>
    %380 = tpu.matmul %377, %379, %cst_135 {dimension_numbers = #tpu.dot_dimension_numbers<[1], [0], [0], [1], [0, 0, 1, 1], [], []>} : vector<16x16xf32>, vector<16x32xf32>, vector<16x32xf32> -> vector<16x32xf32>
    %381 = arith.addf %363, %380 : vector<16x32xf32>
    %382 = vector.broadcast %29 : vector<1x32xf32> to vector<16x32xf32>
    %383 = arith.mulf %326, %382 : vector<16x32xf32>
    %384 = tpu.transpose %327, [1, 0] : vector<16x32xf32> -> vector<32x16xf32>
    %cst_136 = arith.constant dense<0.000000e+00> : vector<16x16xf32>
    %385 = tpu.matmul %383, %384, %cst_136 {dimension_numbers = #tpu.dot_dimension_numbers<[1], [0], [0], [1], [0, 0, 1, 1], [], []>} : vector<16x32xf32>, vector<32x16xf32>, vector<16x16xf32> -> vector<16x16xf32>
    %cst_137 = arith.constant dense<0xFF800000> : vector<16xf32>
    %386 = vector.multi_reduction <maximumf>, %385, %cst_137 [1] : vector<16x16xf32> to vector<16xf32>
    %387 = vector.shape_cast %386 : vector<16xf32> to vector<16x1xf32>
    %388 = vector.broadcast %387 : vector<16x1xf32> to vector<16x16xf32>
    %389 = arith.subf %385, %388 : vector<16x16xf32>
    %390 = math.exp %389 : vector<16x16xf32>
    %cst_138 = arith.constant dense<0.000000e+00> : vector<16xf32>
    %391 = vector.multi_reduction <add>, %390, %cst_138 [1] : vector<16x16xf32> to vector<16xf32>
    %392 = vector.shape_cast %391 : vector<16xf32> to vector<16x1xf32>
    %393 = tpu.reciprocal %392 {approx = true} : vector<16x1xf32> -> vector<16x1xf32>
    %394 = vector.broadcast %393 : vector<16x1xf32> to vector<16x16xf32>
    %395 = arith.mulf %390, %394 : vector<16x16xf32>
    %396 = vector.broadcast %29 : vector<1x32xf32> to vector<16x32xf32>
    %397 = arith.mulf %328, %396 : vector<16x32xf32>
    %cst_139 = arith.constant dense<0.000000e+00> : vector<16x32xf32>
    %398 = tpu.matmul %395, %397, %cst_139 {dimension_numbers = #tpu.dot_dimension_numbers<[1], [0], [0], [1], [0, 0, 1, 1], [], []>} : vector<16x16xf32>, vector<16x32xf32>, vector<16x32xf32> -> vector<16x32xf32>
    %399 = arith.addf %381, %398 : vector<16x32xf32>
    %400 = vector.broadcast %30 : vector<1x32xf32> to vector<16x32xf32>
    %401 = arith.mulf %326, %400 : vector<16x32xf32>
    %402 = tpu.transpose %327, [1, 0] : vector<16x32xf32> -> vector<32x16xf32>
    %cst_140 = arith.constant dense<0.000000e+00> : vector<16x16xf32>
    %403 = tpu.matmul %401, %402, %cst_140 {dimension_numbers = #tpu.dot_dimension_numbers<[1], [0], [0], [1], [0, 0, 1, 1], [], []>} : vector<16x32xf32>, vector<32x16xf32>, vector<16x16xf32> -> vector<16x16xf32>
    %cst_141 = arith.constant dense<0xFF800000> : vector<16xf32>
    %404 = vector.multi_reduction <maximumf>, %403, %cst_141 [1] : vector<16x16xf32> to vector<16xf32>
    %405 = vector.shape_cast %404 : vector<16xf32> to vector<16x1xf32>
    %406 = vector.broadcast %405 : vector<16x1xf32> to vector<16x16xf32>
    %407 = arith.subf %403, %406 : vector<16x16xf32>
    %408 = math.exp %407 : vector<16x16xf32>
    %cst_142 = arith.constant dense<0.000000e+00> : vector<16xf32>
    %409 = vector.multi_reduction <add>, %408, %cst_142 [1] : vector<16x16xf32> to vector<16xf32>
    %410 = vector.shape_cast %409 : vector<16xf32> to vector<16x1xf32>
    %411 = tpu.reciprocal %410 {approx = true} : vector<16x1xf32> -> vector<16x1xf32>
    %412 = vector.broadcast %411 : vector<16x1xf32> to vector<16x16xf32>
    %413 = arith.mulf %408, %412 : vector<16x16xf32>
    %414 = vector.broadcast %30 : vector<1x32xf32> to vector<16x32xf32>
    %415 = arith.mulf %328, %414 : vector<16x32xf32>
    %cst_143 = arith.constant dense<0.000000e+00> : vector<16x32xf32>
    %416 = tpu.matmul %413, %415, %cst_143 {dimension_numbers = #tpu.dot_dimension_numbers<[1], [0], [0], [1], [0, 0, 1, 1], [], []>} : vector<16x16xf32>, vector<16x32xf32>, vector<16x32xf32> -> vector<16x32xf32>
    %417 = arith.addf %399, %416 : vector<16x32xf32>
    %418 = vector.broadcast %31 : vector<1x32xf32> to vector<16x32xf32>
    %419 = arith.mulf %326, %418 : vector<16x32xf32>
    %420 = tpu.transpose %327, [1, 0] : vector<16x32xf32> -> vector<32x16xf32>
    %cst_144 = arith.constant dense<0.000000e+00> : vector<16x16xf32>
    %421 = tpu.matmul %419, %420, %cst_144 {dimension_numbers = #tpu.dot_dimension_numbers<[1], [0], [0], [1], [0, 0, 1, 1], [], []>} : vector<16x32xf32>, vector<32x16xf32>, vector<16x16xf32> -> vector<16x16xf32>
    %cst_145 = arith.constant dense<0xFF800000> : vector<16xf32>
    %422 = vector.multi_reduction <maximumf>, %421, %cst_145 [1] : vector<16x16xf32> to vector<16xf32>
    %423 = vector.shape_cast %422 : vector<16xf32> to vector<16x1xf32>
    %424 = vector.broadcast %423 : vector<16x1xf32> to vector<16x16xf32>
    %425 = arith.subf %421, %424 : vector<16x16xf32>
    %426 = math.exp %425 : vector<16x16xf32>
    %cst_146 = arith.constant dense<0.000000e+00> : vector<16xf32>
    %427 = vector.multi_reduction <add>, %426, %cst_146 [1] : vector<16x16xf32> to vector<16xf32>
    %428 = vector.shape_cast %427 : vector<16xf32> to vector<16x1xf32>
    %429 = tpu.reciprocal %428 {approx = true} : vector<16x1xf32> -> vector<16x1xf32>
    %430 = vector.broadcast %429 : vector<16x1xf32> to vector<16x16xf32>
    %431 = arith.mulf %426, %430 : vector<16x16xf32>
    %432 = vector.broadcast %31 : vector<1x32xf32> to vector<16x32xf32>
    %433 = arith.mulf %328, %432 : vector<16x32xf32>
    %cst_147 = arith.constant dense<0.000000e+00> : vector<16x32xf32>
    %434 = tpu.matmul %431, %433, %cst_147 {dimension_numbers = #tpu.dot_dimension_numbers<[1], [0], [0], [1], [0, 0, 1, 1], [], []>} : vector<16x16xf32>, vector<16x32xf32>, vector<16x32xf32> -> vector<16x32xf32>
    %435 = arith.addf %417, %434 : vector<16x32xf32>
    %436 = vector.broadcast %32 : vector<1x32xf32> to vector<16x32xf32>
    %437 = arith.mulf %326, %436 : vector<16x32xf32>
    %438 = tpu.transpose %327, [1, 0] : vector<16x32xf32> -> vector<32x16xf32>
    %cst_148 = arith.constant dense<0.000000e+00> : vector<16x16xf32>
    %439 = tpu.matmul %437, %438, %cst_148 {dimension_numbers = #tpu.dot_dimension_numbers<[1], [0], [0], [1], [0, 0, 1, 1], [], []>} : vector<16x32xf32>, vector<32x16xf32>, vector<16x16xf32> -> vector<16x16xf32>
    %cst_149 = arith.constant dense<0xFF800000> : vector<16xf32>
    %440 = vector.multi_reduction <maximumf>, %439, %cst_149 [1] : vector<16x16xf32> to vector<16xf32>
    %441 = vector.shape_cast %440 : vector<16xf32> to vector<16x1xf32>
    %442 = vector.broadcast %441 : vector<16x1xf32> to vector<16x16xf32>
    %443 = arith.subf %439, %442 : vector<16x16xf32>
    %444 = math.exp %443 : vector<16x16xf32>
    %cst_150 = arith.constant dense<0.000000e+00> : vector<16xf32>
    %445 = vector.multi_reduction <add>, %444, %cst_150 [1] : vector<16x16xf32> to vector<16xf32>
    %446 = vector.shape_cast %445 : vector<16xf32> to vector<16x1xf32>
    %447 = tpu.reciprocal %446 {approx = true} : vector<16x1xf32> -> vector<16x1xf32>
    %448 = vector.broadcast %447 : vector<16x1xf32> to vector<16x16xf32>
    %449 = arith.mulf %444, %448 : vector<16x16xf32>
    %450 = vector.broadcast %32 : vector<1x32xf32> to vector<16x32xf32>
    %451 = arith.mulf %328, %450 : vector<16x32xf32>
    %cst_151 = arith.constant dense<0.000000e+00> : vector<16x32xf32>
    %452 = tpu.matmul %449, %451, %cst_151 {dimension_numbers = #tpu.dot_dimension_numbers<[1], [0], [0], [1], [0, 0, 1, 1], [], []>} : vector<16x16xf32>, vector<16x32xf32>, vector<16x32xf32> -> vector<16x32xf32>
    %453 = arith.addf %435, %452 : vector<16x32xf32>
    %454 = vector.broadcast %33 : vector<1x32xf32> to vector<16x32xf32>
    %455 = arith.mulf %326, %454 : vector<16x32xf32>
    %456 = tpu.transpose %327, [1, 0] : vector<16x32xf32> -> vector<32x16xf32>
    %cst_152 = arith.constant dense<0.000000e+00> : vector<16x16xf32>
    %457 = tpu.matmul %455, %456, %cst_152 {dimension_numbers = #tpu.dot_dimension_numbers<[1], [0], [0], [1], [0, 0, 1, 1], [], []>} : vector<16x32xf32>, vector<32x16xf32>, vector<16x16xf32> -> vector<16x16xf32>
    %cst_153 = arith.constant dense<0xFF800000> : vector<16xf32>
    %458 = vector.multi_reduction <maximumf>, %457, %cst_153 [1] : vector<16x16xf32> to vector<16xf32>
    %459 = vector.shape_cast %458 : vector<16xf32> to vector<16x1xf32>
    %460 = vector.broadcast %459 : vector<16x1xf32> to vector<16x16xf32>
    %461 = arith.subf %457, %460 : vector<16x16xf32>
    %462 = math.exp %461 : vector<16x16xf32>
    %cst_154 = arith.constant dense<0.000000e+00> : vector<16xf32>
    %463 = vector.multi_reduction <add>, %462, %cst_154 [1] : vector<16x16xf32> to vector<16xf32>
    %464 = vector.shape_cast %463 : vector<16xf32> to vector<16x1xf32>
    %465 = tpu.reciprocal %464 {approx = true} : vector<16x1xf32> -> vector<16x1xf32>
    %466 = vector.broadcast %465 : vector<16x1xf32> to vector<16x16xf32>
    %467 = arith.mulf %462, %466 : vector<16x16xf32>
    %468 = vector.broadcast %33 : vector<1x32xf32> to vector<16x32xf32>
    %469 = arith.mulf %328, %468 : vector<16x32xf32>
    %cst_155 = arith.constant dense<0.000000e+00> : vector<16x32xf32>
    %470 = tpu.matmul %467, %469, %cst_155 {dimension_numbers = #tpu.dot_dimension_numbers<[1], [0], [0], [1], [0, 0, 1, 1], [], []>} : vector<16x16xf32>, vector<16x32xf32>, vector<16x32xf32> -> vector<16x32xf32>
    %471 = arith.addf %453, %470 : vector<16x32xf32>
    %c1_156 = arith.constant 1 : index
    %c0_157 = arith.constant 0 : index
    %c0_158 = arith.constant 0 : index
    %472 = vector.load %arg9[%c1_156, %c0_157, %c0_158] : memref<3x32x32xf32, #tpu.memory_space<vmem>>, vector<1x32x32xf32>
    %473 = vector.shape_cast %472 : vector<1x32x32xf32> to vector<32x32xf32>
    %cst_159 = arith.constant dense<0.000000e+00> : vector<16x32xf32>
    %474 = tpu.matmul %471, %473, %cst_159 {dimension_numbers = #tpu.dot_dimension_numbers<[1], [0], [0], [1], [0, 0, 1, 1], [], []>} : vector<16x32xf32>, vector<32x32xf32>, vector<16x32xf32> -> vector<16x32xf32>
    %475 = arith.addf %316, %474 : vector<16x32xf32>
    %c1_160 = arith.constant 1 : index
    %c0_161 = arith.constant 0 : index
    %c0_162 = arith.constant 0 : index
    %476 = vector.load %arg10[%c1_160, %c0_161, %c0_162] : memref<3x1x32xf32, #tpu.memory_space<vmem>>, vector<1x1x32xf32>
    %477 = vector.shape_cast %476 : vector<1x1x32xf32> to vector<1x32xf32>
    %478 = vector.broadcast %477 : vector<1x32xf32> to vector<16x32xf32>
    %479 = arith.addf %475, %478 : vector<16x32xf32>
    %cst_163 = arith.constant dense<0.000000e+00> : vector<16xf32>
    %480 = vector.multi_reduction <add>, %479, %cst_163 [1] : vector<16x32xf32> to vector<16xf32>
    %481 = vector.shape_cast %480 : vector<16xf32> to vector<16x1xf32>
    %cst_164 = arith.constant 3.200000e+01 : f32
    %482 = vector.broadcast %cst_164 : f32 to vector<16x1xf32>
    %483 = arith.divf %481, %482 : vector<16x1xf32>
    %484 = vector.broadcast %483 : vector<16x1xf32> to vector<16x32xf32>
    %485 = arith.subf %479, %484 : vector<16x32xf32>
    %486 = arith.mulf %485, %485 : vector<16x32xf32>
    %cst_165 = arith.constant dense<0.000000e+00> : vector<16xf32>
    %487 = vector.multi_reduction <add>, %486, %cst_165 [1] : vector<16x32xf32> to vector<16xf32>
    %488 = vector.shape_cast %487 : vector<16xf32> to vector<16x1xf32>
    %cst_166 = arith.constant 3.200000e+01 : f32
    %489 = vector.broadcast %cst_166 : f32 to vector<16x1xf32>
    %490 = arith.divf %488, %489 : vector<16x1xf32>
    %491 = vector.broadcast %483 : vector<16x1xf32> to vector<16x32xf32>
    %492 = arith.subf %479, %491 : vector<16x32xf32>
    %cst_167 = arith.constant 9.99999974E-6 : f32
    %493 = vector.broadcast %cst_167 : f32 to vector<16x1xf32>
    %494 = arith.addf %490, %493 : vector<16x1xf32>
    %495 = math.rsqrt %494 : vector<16x1xf32>
    %496 = vector.broadcast %495 : vector<16x1xf32> to vector<16x32xf32>
    %497 = arith.mulf %492, %496 : vector<16x32xf32>
    %c1_168 = arith.constant 1 : index
    %c0_169 = arith.constant 0 : index
    %c0_170 = arith.constant 0 : index
    %498 = vector.load %arg11[%c1_168, %c0_169, %c0_170] : memref<3x32x32xf32, #tpu.memory_space<vmem>>, vector<1x32x32xf32>
    %499 = vector.shape_cast %498 : vector<1x32x32xf32> to vector<32x32xf32>
    %cst_171 = arith.constant dense<0.000000e+00> : vector<16x32xf32>
    %500 = tpu.matmul %497, %499, %cst_171 {dimension_numbers = #tpu.dot_dimension_numbers<[1], [0], [0], [1], [0, 0, 1, 1], [], []>} : vector<16x32xf32>, vector<32x32xf32>, vector<16x32xf32> -> vector<16x32xf32>
    %c1_172 = arith.constant 1 : index
    %c0_173 = arith.constant 0 : index
    %c0_174 = arith.constant 0 : index
    %501 = vector.load %arg12[%c1_172, %c0_173, %c0_174] : memref<3x32x32xf32, #tpu.memory_space<vmem>>, vector<1x32x32xf32>
    %502 = vector.shape_cast %501 : vector<1x32x32xf32> to vector<32x32xf32>
    %cst_175 = arith.constant dense<0.000000e+00> : vector<16x32xf32>
    %503 = tpu.matmul %497, %502, %cst_175 {dimension_numbers = #tpu.dot_dimension_numbers<[1], [0], [0], [1], [0, 0, 1, 1], [], []>} : vector<16x32xf32>, vector<32x32xf32>, vector<16x32xf32> -> vector<16x32xf32>
    %504 = tpu.transpose %503, [1, 0] : vector<16x32xf32> -> vector<32x16xf32>
    %cst_176 = arith.constant dense<0.000000e+00> : vector<16x16xf32>
    %505 = tpu.matmul %500, %504, %cst_176 {dimension_numbers = #tpu.dot_dimension_numbers<[1], [0], [0], [1], [0, 0, 1, 1], [], []>} : vector<16x32xf32>, vector<32x16xf32>, vector<16x16xf32> -> vector<16x16xf32>
    %cst_177 = arith.constant 0.000000e+00 : f32
    %506 = vector.broadcast %cst_177 : f32 to vector<16x16xf32>
    %507 = arith.maximumf %505, %506 : vector<16x16xf32>
    %cst_178 = arith.constant dense<0xFF800000> : vector<16xf32>
    %508 = vector.multi_reduction <maximumf>, %507, %cst_178 [1] : vector<16x16xf32> to vector<16xf32>
    %509 = vector.shape_cast %508 : vector<16xf32> to vector<16x1xf32>
    %510 = vector.broadcast %509 : vector<16x1xf32> to vector<16x16xf32>
    %511 = arith.subf %507, %510 : vector<16x16xf32>
    %512 = math.exp %511 : vector<16x16xf32>
    %cst_179 = arith.constant dense<0.000000e+00> : vector<16xf32>
    %513 = vector.multi_reduction <add>, %512, %cst_179 [1] : vector<16x16xf32> to vector<16xf32>
    %514 = vector.shape_cast %513 : vector<16xf32> to vector<16x1xf32>
    %515 = tpu.reciprocal %514 {approx = true} : vector<16x1xf32> -> vector<16x1xf32>
    %516 = vector.broadcast %515 : vector<16x1xf32> to vector<16x16xf32>
    %517 = arith.mulf %512, %516 : vector<16x16xf32>
    %518 = tpu.iota {dimensions = array<i32: 0>} : vector<16x16xi32>
    %519 = tpu.iota {dimensions = array<i32: 1>} : vector<16x16xi32>
    %520 = arith.cmpi eq, %518, %519 : vector<16x16xi32>
    %521 = arith.extui %520 : vector<16x16xi1> to vector<16x16xi32>
    %522 = arith.sitofp %521 : vector<16x16xi32> to vector<16x16xf32>
    %523 = arith.addf %517, %522 : vector<16x16xf32>
    %cst_180 = arith.constant dense<0.000000e+00> : vector<16xf32>
    %524 = vector.multi_reduction <add>, %523, %cst_180 [1] : vector<16x16xf32> to vector<16xf32>
    %525 = vector.shape_cast %524 : vector<16xf32> to vector<16x1xf32>
    %cst_181 = arith.constant 9.99999996E-13 : f32
    %526 = vector.broadcast %cst_181 : f32 to vector<16x1xf32>
    %527 = arith.maximumf %525, %526 : vector<16x1xf32>
    %528 = math.rsqrt %527 : vector<16x1xf32>
    %c0_182 = arith.constant 0 : index
    %c0_183 = arith.constant 0 : index
    %c0_184 = arith.constant 0 : index
    %529 = vector.load %arg13[%c0_182, %c0_183, %c0_184] : memref<2x32x32xf32, #tpu.memory_space<vmem>>, vector<1x32x32xf32>
    %530 = vector.shape_cast %529 : vector<1x32x32xf32> to vector<32x32xf32>
    %cst_185 = arith.constant dense<0.000000e+00> : vector<16x32xf32>
    %531 = tpu.matmul %497, %530, %cst_185 {dimension_numbers = #tpu.dot_dimension_numbers<[1], [0], [0], [1], [0, 0, 1, 1], [], []>} : vector<16x32xf32>, vector<32x32xf32>, vector<16x32xf32> -> vector<16x32xf32>
    %532 = vector.broadcast %528 : vector<16x1xf32> to vector<16x32xf32>
    %533 = arith.mulf %532, %531 : vector<16x32xf32>
    %cst_186 = arith.constant dense<0.000000e+00> : vector<16x32xf32>
    %534 = tpu.matmul %523, %533, %cst_186 {dimension_numbers = #tpu.dot_dimension_numbers<[1], [0], [0], [1], [0, 0, 1, 1], [], []>} : vector<16x16xf32>, vector<16x32xf32>, vector<16x32xf32> -> vector<16x32xf32>
    %535 = vector.broadcast %528 : vector<16x1xf32> to vector<16x32xf32>
    %536 = arith.mulf %535, %534 : vector<16x32xf32>
    %c0_187 = arith.constant 0 : index
    %c0_188 = arith.constant 0 : index
    %c0_189 = arith.constant 0 : index
    %537 = vector.load %arg14[%c0_187, %c0_188, %c0_189] : memref<2x1x32xf32, #tpu.memory_space<vmem>>, vector<1x1x32xf32>
    %538 = vector.shape_cast %537 : vector<1x1x32xf32> to vector<1x32xf32>
    %539 = vector.broadcast %538 : vector<1x32xf32> to vector<16x32xf32>
    %540 = arith.addf %536, %539 : vector<16x32xf32>
    %cst_190 = arith.constant dense<0.000000e+00> : vector<32xf32>
    %541 = vector.multi_reduction <add>, %540, %cst_190 [0] : vector<16x32xf32> to vector<32xf32>
    %542 = vector.shape_cast %541 : vector<32xf32> to vector<1x32xf32>
    %cst_191 = arith.constant 1.600000e+01 : f32
    %543 = vector.broadcast %cst_191 : f32 to vector<1x32xf32>
    %544 = arith.divf %542, %543 : vector<1x32xf32>
    %545 = vector.broadcast %544 : vector<1x32xf32> to vector<16x32xf32>
    %546 = arith.subf %540, %545 : vector<16x32xf32>
    %547 = arith.mulf %546, %546 : vector<16x32xf32>
    %cst_192 = arith.constant dense<0.000000e+00> : vector<32xf32>
    %548 = vector.multi_reduction <add>, %547, %cst_192 [0] : vector<16x32xf32> to vector<32xf32>
    %549 = vector.shape_cast %548 : vector<32xf32> to vector<1x32xf32>
    %cst_193 = arith.constant 1.600000e+01 : f32
    %550 = vector.broadcast %cst_193 : f32 to vector<1x32xf32>
    %551 = arith.divf %549, %550 : vector<1x32xf32>
    %552 = vector.broadcast %544 : vector<1x32xf32> to vector<16x32xf32>
    %553 = arith.subf %540, %552 : vector<16x32xf32>
    %cst_194 = arith.constant 9.99999974E-6 : f32
    %554 = vector.broadcast %cst_194 : f32 to vector<1x32xf32>
    %555 = arith.addf %551, %554 : vector<1x32xf32>
    %556 = math.rsqrt %555 : vector<1x32xf32>
    %557 = vector.broadcast %556 : vector<1x32xf32> to vector<16x32xf32>
    %558 = arith.mulf %553, %557 : vector<16x32xf32>
    %c0_195 = arith.constant 0 : index
    %c0_196 = arith.constant 0 : index
    %c0_197 = arith.constant 0 : index
    %559 = vector.load %arg15[%c0_195, %c0_196, %c0_197] : memref<1x1x32xf32, #tpu.memory_space<vmem>>, vector<1x1x32xf32>
    %560 = vector.shape_cast %559 : vector<1x1x32xf32> to vector<1x32xf32>
    %561 = vector.broadcast %560 : vector<1x32xf32> to vector<16x32xf32>
    %562 = arith.mulf %558, %561 : vector<16x32xf32>
    %c0_198 = arith.constant 0 : index
    %c0_199 = arith.constant 0 : index
    %c0_200 = arith.constant 0 : index
    %563 = vector.load %arg16[%c0_198, %c0_199, %c0_200] : memref<1x1x32xf32, #tpu.memory_space<vmem>>, vector<1x1x32xf32>
    %564 = vector.shape_cast %563 : vector<1x1x32xf32> to vector<1x32xf32>
    %565 = vector.broadcast %564 : vector<1x32xf32> to vector<16x32xf32>
    %566 = arith.addf %562, %565 : vector<16x32xf32>
    %cst_201 = arith.constant 0.000000e+00 : f32
    %567 = vector.broadcast %cst_201 : f32 to vector<16x32xf32>
    %568 = arith.cmpf oge, %566, %567 : vector<16x32xf32>
    %cst_202 = arith.constant 0.00999999977 : f32
    %569 = vector.broadcast %cst_202 : f32 to vector<16x32xf32>
    %570 = arith.mulf %569, %566 : vector<16x32xf32>
    %571 = arith.select %568, %566, %570 : vector<16x32xi1>, vector<16x32xf32>
    %c1_203 = arith.constant 1 : index
    %c0_204 = arith.constant 0 : index
    %c0_205 = arith.constant 0 : index
    %572 = vector.load %arg13[%c1_203, %c0_204, %c0_205] : memref<2x32x32xf32, #tpu.memory_space<vmem>>, vector<1x32x32xf32>
    %573 = vector.shape_cast %572 : vector<1x32x32xf32> to vector<32x32xf32>
    %cst_206 = arith.constant dense<0.000000e+00> : vector<16x32xf32>
    %574 = tpu.matmul %571, %573, %cst_206 {dimension_numbers = #tpu.dot_dimension_numbers<[1], [0], [0], [1], [0, 0, 1, 1], [], []>} : vector<16x32xf32>, vector<32x32xf32>, vector<16x32xf32> -> vector<16x32xf32>
    %575 = vector.broadcast %528 : vector<16x1xf32> to vector<16x32xf32>
    %576 = arith.mulf %575, %574 : vector<16x32xf32>
    %cst_207 = arith.constant dense<0.000000e+00> : vector<16x32xf32>
    %577 = tpu.matmul %523, %576, %cst_207 {dimension_numbers = #tpu.dot_dimension_numbers<[1], [0], [0], [1], [0, 0, 1, 1], [], []>} : vector<16x16xf32>, vector<16x32xf32>, vector<16x32xf32> -> vector<16x32xf32>
    %578 = vector.broadcast %528 : vector<16x1xf32> to vector<16x32xf32>
    %579 = arith.mulf %578, %577 : vector<16x32xf32>
    %c1_208 = arith.constant 1 : index
    %c0_209 = arith.constant 0 : index
    %c0_210 = arith.constant 0 : index
    %580 = vector.load %arg14[%c1_208, %c0_209, %c0_210] : memref<2x1x32xf32, #tpu.memory_space<vmem>>, vector<1x1x32xf32>
    %581 = vector.shape_cast %580 : vector<1x1x32xf32> to vector<1x32xf32>
    %582 = vector.broadcast %581 : vector<1x32xf32> to vector<16x32xf32>
    %583 = arith.addf %579, %582 : vector<16x32xf32>
    %cst_211 = arith.constant dense<0.000000e+00> : vector<16x32xf32>
    %584 = tpu.matmul %36, %39, %cst_211 {dimension_numbers = #tpu.dot_dimension_numbers<[1], [0], [0], [1], [0, 0, 1, 1], [], []>} : vector<16x270xf32>, vector<270x32xf32>, vector<16x32xf32> -> vector<16x32xf32>
    %c2 = arith.constant 2 : index
    %c0_212 = arith.constant 0 : index
    %c0_213 = arith.constant 0 : index
    %585 = vector.load %arg6[%c2, %c0_212, %c0_213] : memref<3x1x32xf32, #tpu.memory_space<vmem>>, vector<1x1x32xf32>
    %586 = vector.shape_cast %585 : vector<1x1x32xf32> to vector<1x32xf32>
    %587 = vector.broadcast %586 : vector<1x32xf32> to vector<16x32xf32>
    %588 = arith.addf %584, %587 : vector<16x32xf32>
    %c2_214 = arith.constant 2 : index
    %c0_215 = arith.constant 0 : index
    %c0_216 = arith.constant 0 : index
    %589 = vector.load %arg7[%c2_214, %c0_215, %c0_216] : memref<3x32x96xf32, #tpu.memory_space<vmem>>, vector<1x32x96xf32>
    %590 = vector.shape_cast %589 : vector<1x32x96xf32> to vector<32x96xf32>
    %cst_217 = arith.constant dense<0.000000e+00> : vector<16x96xf32>
    %591 = tpu.matmul %588, %590, %cst_217 {dimension_numbers = #tpu.dot_dimension_numbers<[1], [0], [0], [1], [0, 0, 1, 1], [], []>} : vector<16x32xf32>, vector<32x96xf32>, vector<16x96xf32> -> vector<16x96xf32>
    %c2_218 = arith.constant 2 : index
    %c0_219 = arith.constant 0 : index
    %c0_220 = arith.constant 0 : index
    %592 = vector.load %arg8[%c2_218, %c0_219, %c0_220] : memref<3x1x96xf32, #tpu.memory_space<vmem>>, vector<1x1x96xf32>
    %593 = vector.shape_cast %592 : vector<1x1x96xf32> to vector<1x96xf32>
    %594 = vector.broadcast %593 : vector<1x96xf32> to vector<16x96xf32>
    %595 = arith.addf %591, %594 : vector<16x96xf32>
    %596 = vector.extract_strided_slice %595 {offsets = [0, 0], sizes = [16, 32], strides = [1, 1]} : vector<16x96xf32> to vector<16x32xf32>
    %cst_221 = arith.constant 5.000000e-01 : f32
    %597 = vector.broadcast %cst_221 : f32 to vector<16x32xf32>
    %598 = arith.mulf %596, %597 : vector<16x32xf32>
    %599 = vector.extract_strided_slice %595 {offsets = [0, 32], sizes = [16, 32], strides = [1, 1]} : vector<16x96xf32> to vector<16x32xf32>
    %600 = vector.extract_strided_slice %595 {offsets = [0, 64], sizes = [16, 32], strides = [1, 1]} : vector<16x96xf32> to vector<16x32xf32>
    %601 = vector.broadcast %26 : vector<1x32xf32> to vector<16x32xf32>
    %602 = arith.mulf %598, %601 : vector<16x32xf32>
    %603 = tpu.transpose %599, [1, 0] : vector<16x32xf32> -> vector<32x16xf32>
    %cst_222 = arith.constant dense<0.000000e+00> : vector<16x16xf32>
    %604 = tpu.matmul %602, %603, %cst_222 {dimension_numbers = #tpu.dot_dimension_numbers<[1], [0], [0], [1], [0, 0, 1, 1], [], []>} : vector<16x32xf32>, vector<32x16xf32>, vector<16x16xf32> -> vector<16x16xf32>
    %cst_223 = arith.constant dense<0xFF800000> : vector<16xf32>
    %605 = vector.multi_reduction <maximumf>, %604, %cst_223 [1] : vector<16x16xf32> to vector<16xf32>
    %606 = vector.shape_cast %605 : vector<16xf32> to vector<16x1xf32>
    %607 = vector.broadcast %606 : vector<16x1xf32> to vector<16x16xf32>
    %608 = arith.subf %604, %607 : vector<16x16xf32>
    %609 = math.exp %608 : vector<16x16xf32>
    %cst_224 = arith.constant dense<0.000000e+00> : vector<16xf32>
    %610 = vector.multi_reduction <add>, %609, %cst_224 [1] : vector<16x16xf32> to vector<16xf32>
    %611 = vector.shape_cast %610 : vector<16xf32> to vector<16x1xf32>
    %612 = tpu.reciprocal %611 {approx = true} : vector<16x1xf32> -> vector<16x1xf32>
    %613 = vector.broadcast %612 : vector<16x1xf32> to vector<16x16xf32>
    %614 = arith.mulf %609, %613 : vector<16x16xf32>
    %615 = vector.broadcast %26 : vector<1x32xf32> to vector<16x32xf32>
    %616 = arith.mulf %600, %615 : vector<16x32xf32>
    %cst_225 = arith.constant dense<0.000000e+00> : vector<16x32xf32>
    %617 = tpu.matmul %614, %616, %cst_225 {dimension_numbers = #tpu.dot_dimension_numbers<[1], [0], [0], [1], [0, 0, 1, 1], [], []>} : vector<16x16xf32>, vector<16x32xf32>, vector<16x32xf32> -> vector<16x32xf32>
    %618 = vector.broadcast %27 : vector<1x32xf32> to vector<16x32xf32>
    %619 = arith.mulf %598, %618 : vector<16x32xf32>
    %620 = tpu.transpose %599, [1, 0] : vector<16x32xf32> -> vector<32x16xf32>
    %cst_226 = arith.constant dense<0.000000e+00> : vector<16x16xf32>
    %621 = tpu.matmul %619, %620, %cst_226 {dimension_numbers = #tpu.dot_dimension_numbers<[1], [0], [0], [1], [0, 0, 1, 1], [], []>} : vector<16x32xf32>, vector<32x16xf32>, vector<16x16xf32> -> vector<16x16xf32>
    %cst_227 = arith.constant dense<0xFF800000> : vector<16xf32>
    %622 = vector.multi_reduction <maximumf>, %621, %cst_227 [1] : vector<16x16xf32> to vector<16xf32>
    %623 = vector.shape_cast %622 : vector<16xf32> to vector<16x1xf32>
    %624 = vector.broadcast %623 : vector<16x1xf32> to vector<16x16xf32>
    %625 = arith.subf %621, %624 : vector<16x16xf32>
    %626 = math.exp %625 : vector<16x16xf32>
    %cst_228 = arith.constant dense<0.000000e+00> : vector<16xf32>
    %627 = vector.multi_reduction <add>, %626, %cst_228 [1] : vector<16x16xf32> to vector<16xf32>
    %628 = vector.shape_cast %627 : vector<16xf32> to vector<16x1xf32>
    %629 = tpu.reciprocal %628 {approx = true} : vector<16x1xf32> -> vector<16x1xf32>
    %630 = vector.broadcast %629 : vector<16x1xf32> to vector<16x16xf32>
    %631 = arith.mulf %626, %630 : vector<16x16xf32>
    %632 = vector.broadcast %27 : vector<1x32xf32> to vector<16x32xf32>
    %633 = arith.mulf %600, %632 : vector<16x32xf32>
    %cst_229 = arith.constant dense<0.000000e+00> : vector<16x32xf32>
    %634 = tpu.matmul %631, %633, %cst_229 {dimension_numbers = #tpu.dot_dimension_numbers<[1], [0], [0], [1], [0, 0, 1, 1], [], []>} : vector<16x16xf32>, vector<16x32xf32>, vector<16x32xf32> -> vector<16x32xf32>
    %635 = arith.addf %617, %634 : vector<16x32xf32>
    %636 = vector.broadcast %28 : vector<1x32xf32> to vector<16x32xf32>
    %637 = arith.mulf %598, %636 : vector<16x32xf32>
    %638 = tpu.transpose %599, [1, 0] : vector<16x32xf32> -> vector<32x16xf32>
    %cst_230 = arith.constant dense<0.000000e+00> : vector<16x16xf32>
    %639 = tpu.matmul %637, %638, %cst_230 {dimension_numbers = #tpu.dot_dimension_numbers<[1], [0], [0], [1], [0, 0, 1, 1], [], []>} : vector<16x32xf32>, vector<32x16xf32>, vector<16x16xf32> -> vector<16x16xf32>
    %cst_231 = arith.constant dense<0xFF800000> : vector<16xf32>
    %640 = vector.multi_reduction <maximumf>, %639, %cst_231 [1] : vector<16x16xf32> to vector<16xf32>
    %641 = vector.shape_cast %640 : vector<16xf32> to vector<16x1xf32>
    %642 = vector.broadcast %641 : vector<16x1xf32> to vector<16x16xf32>
    %643 = arith.subf %639, %642 : vector<16x16xf32>
    %644 = math.exp %643 : vector<16x16xf32>
    %cst_232 = arith.constant dense<0.000000e+00> : vector<16xf32>
    %645 = vector.multi_reduction <add>, %644, %cst_232 [1] : vector<16x16xf32> to vector<16xf32>
    %646 = vector.shape_cast %645 : vector<16xf32> to vector<16x1xf32>
    %647 = tpu.reciprocal %646 {approx = true} : vector<16x1xf32> -> vector<16x1xf32>
    %648 = vector.broadcast %647 : vector<16x1xf32> to vector<16x16xf32>
    %649 = arith.mulf %644, %648 : vector<16x16xf32>
    %650 = vector.broadcast %28 : vector<1x32xf32> to vector<16x32xf32>
    %651 = arith.mulf %600, %650 : vector<16x32xf32>
    %cst_233 = arith.constant dense<0.000000e+00> : vector<16x32xf32>
    %652 = tpu.matmul %649, %651, %cst_233 {dimension_numbers = #tpu.dot_dimension_numbers<[1], [0], [0], [1], [0, 0, 1, 1], [], []>} : vector<16x16xf32>, vector<16x32xf32>, vector<16x32xf32> -> vector<16x32xf32>
    %653 = arith.addf %635, %652 : vector<16x32xf32>
    %654 = vector.broadcast %29 : vector<1x32xf32> to vector<16x32xf32>
    %655 = arith.mulf %598, %654 : vector<16x32xf32>
    %656 = tpu.transpose %599, [1, 0] : vector<16x32xf32> -> vector<32x16xf32>
    %cst_234 = arith.constant dense<0.000000e+00> : vector<16x16xf32>
    %657 = tpu.matmul %655, %656, %cst_234 {dimension_numbers = #tpu.dot_dimension_numbers<[1], [0], [0], [1], [0, 0, 1, 1], [], []>} : vector<16x32xf32>, vector<32x16xf32>, vector<16x16xf32> -> vector<16x16xf32>
    %cst_235 = arith.constant dense<0xFF800000> : vector<16xf32>
    %658 = vector.multi_reduction <maximumf>, %657, %cst_235 [1] : vector<16x16xf32> to vector<16xf32>
    %659 = vector.shape_cast %658 : vector<16xf32> to vector<16x1xf32>
    %660 = vector.broadcast %659 : vector<16x1xf32> to vector<16x16xf32>
    %661 = arith.subf %657, %660 : vector<16x16xf32>
    %662 = math.exp %661 : vector<16x16xf32>
    %cst_236 = arith.constant dense<0.000000e+00> : vector<16xf32>
    %663 = vector.multi_reduction <add>, %662, %cst_236 [1] : vector<16x16xf32> to vector<16xf32>
    %664 = vector.shape_cast %663 : vector<16xf32> to vector<16x1xf32>
    %665 = tpu.reciprocal %664 {approx = true} : vector<16x1xf32> -> vector<16x1xf32>
    %666 = vector.broadcast %665 : vector<16x1xf32> to vector<16x16xf32>
    %667 = arith.mulf %662, %666 : vector<16x16xf32>
    %668 = vector.broadcast %29 : vector<1x32xf32> to vector<16x32xf32>
    %669 = arith.mulf %600, %668 : vector<16x32xf32>
    %cst_237 = arith.constant dense<0.000000e+00> : vector<16x32xf32>
    %670 = tpu.matmul %667, %669, %cst_237 {dimension_numbers = #tpu.dot_dimension_numbers<[1], [0], [0], [1], [0, 0, 1, 1], [], []>} : vector<16x16xf32>, vector<16x32xf32>, vector<16x32xf32> -> vector<16x32xf32>
    %671 = arith.addf %653, %670 : vector<16x32xf32>
    %672 = vector.broadcast %30 : vector<1x32xf32> to vector<16x32xf32>
    %673 = arith.mulf %598, %672 : vector<16x32xf32>
    %674 = tpu.transpose %599, [1, 0] : vector<16x32xf32> -> vector<32x16xf32>
    %cst_238 = arith.constant dense<0.000000e+00> : vector<16x16xf32>
    %675 = tpu.matmul %673, %674, %cst_238 {dimension_numbers = #tpu.dot_dimension_numbers<[1], [0], [0], [1], [0, 0, 1, 1], [], []>} : vector<16x32xf32>, vector<32x16xf32>, vector<16x16xf32> -> vector<16x16xf32>
    %cst_239 = arith.constant dense<0xFF800000> : vector<16xf32>
    %676 = vector.multi_reduction <maximumf>, %675, %cst_239 [1] : vector<16x16xf32> to vector<16xf32>
    %677 = vector.shape_cast %676 : vector<16xf32> to vector<16x1xf32>
    %678 = vector.broadcast %677 : vector<16x1xf32> to vector<16x16xf32>
    %679 = arith.subf %675, %678 : vector<16x16xf32>
    %680 = math.exp %679 : vector<16x16xf32>
    %cst_240 = arith.constant dense<0.000000e+00> : vector<16xf32>
    %681 = vector.multi_reduction <add>, %680, %cst_240 [1] : vector<16x16xf32> to vector<16xf32>
    %682 = vector.shape_cast %681 : vector<16xf32> to vector<16x1xf32>
    %683 = tpu.reciprocal %682 {approx = true} : vector<16x1xf32> -> vector<16x1xf32>
    %684 = vector.broadcast %683 : vector<16x1xf32> to vector<16x16xf32>
    %685 = arith.mulf %680, %684 : vector<16x16xf32>
    %686 = vector.broadcast %30 : vector<1x32xf32> to vector<16x32xf32>
    %687 = arith.mulf %600, %686 : vector<16x32xf32>
    %cst_241 = arith.constant dense<0.000000e+00> : vector<16x32xf32>
    %688 = tpu.matmul %685, %687, %cst_241 {dimension_numbers = #tpu.dot_dimension_numbers<[1], [0], [0], [1], [0, 0, 1, 1], [], []>} : vector<16x16xf32>, vector<16x32xf32>, vector<16x32xf32> -> vector<16x32xf32>
    %689 = arith.addf %671, %688 : vector<16x32xf32>
    %690 = vector.broadcast %31 : vector<1x32xf32> to vector<16x32xf32>
    %691 = arith.mulf %598, %690 : vector<16x32xf32>
    %692 = tpu.transpose %599, [1, 0] : vector<16x32xf32> -> vector<32x16xf32>
    %cst_242 = arith.constant dense<0.000000e+00> : vector<16x16xf32>
    %693 = tpu.matmul %691, %692, %cst_242 {dimension_numbers = #tpu.dot_dimension_numbers<[1], [0], [0], [1], [0, 0, 1, 1], [], []>} : vector<16x32xf32>, vector<32x16xf32>, vector<16x16xf32> -> vector<16x16xf32>
    %cst_243 = arith.constant dense<0xFF800000> : vector<16xf32>
    %694 = vector.multi_reduction <maximumf>, %693, %cst_243 [1] : vector<16x16xf32> to vector<16xf32>
    %695 = vector.shape_cast %694 : vector<16xf32> to vector<16x1xf32>
    %696 = vector.broadcast %695 : vector<16x1xf32> to vector<16x16xf32>
    %697 = arith.subf %693, %696 : vector<16x16xf32>
    %698 = math.exp %697 : vector<16x16xf32>
    %cst_244 = arith.constant dense<0.000000e+00> : vector<16xf32>
    %699 = vector.multi_reduction <add>, %698, %cst_244 [1] : vector<16x16xf32> to vector<16xf32>
    %700 = vector.shape_cast %699 : vector<16xf32> to vector<16x1xf32>
    %701 = tpu.reciprocal %700 {approx = true} : vector<16x1xf32> -> vector<16x1xf32>
    %702 = vector.broadcast %701 : vector<16x1xf32> to vector<16x16xf32>
    %703 = arith.mulf %698, %702 : vector<16x16xf32>
    %704 = vector.broadcast %31 : vector<1x32xf32> to vector<16x32xf32>
    %705 = arith.mulf %600, %704 : vector<16x32xf32>
    %cst_245 = arith.constant dense<0.000000e+00> : vector<16x32xf32>
    %706 = tpu.matmul %703, %705, %cst_245 {dimension_numbers = #tpu.dot_dimension_numbers<[1], [0], [0], [1], [0, 0, 1, 1], [], []>} : vector<16x16xf32>, vector<16x32xf32>, vector<16x32xf32> -> vector<16x32xf32>
    %707 = arith.addf %689, %706 : vector<16x32xf32>
    %708 = vector.broadcast %32 : vector<1x32xf32> to vector<16x32xf32>
    %709 = arith.mulf %598, %708 : vector<16x32xf32>
    %710 = tpu.transpose %599, [1, 0] : vector<16x32xf32> -> vector<32x16xf32>
    %cst_246 = arith.constant dense<0.000000e+00> : vector<16x16xf32>
    %711 = tpu.matmul %709, %710, %cst_246 {dimension_numbers = #tpu.dot_dimension_numbers<[1], [0], [0], [1], [0, 0, 1, 1], [], []>} : vector<16x32xf32>, vector<32x16xf32>, vector<16x16xf32> -> vector<16x16xf32>
    %cst_247 = arith.constant dense<0xFF800000> : vector<16xf32>
    %712 = vector.multi_reduction <maximumf>, %711, %cst_247 [1] : vector<16x16xf32> to vector<16xf32>
    %713 = vector.shape_cast %712 : vector<16xf32> to vector<16x1xf32>
    %714 = vector.broadcast %713 : vector<16x1xf32> to vector<16x16xf32>
    %715 = arith.subf %711, %714 : vector<16x16xf32>
    %716 = math.exp %715 : vector<16x16xf32>
    %cst_248 = arith.constant dense<0.000000e+00> : vector<16xf32>
    %717 = vector.multi_reduction <add>, %716, %cst_248 [1] : vector<16x16xf32> to vector<16xf32>
    %718 = vector.shape_cast %717 : vector<16xf32> to vector<16x1xf32>
    %719 = tpu.reciprocal %718 {approx = true} : vector<16x1xf32> -> vector<16x1xf32>
    %720 = vector.broadcast %719 : vector<16x1xf32> to vector<16x16xf32>
    %721 = arith.mulf %716, %720 : vector<16x16xf32>
    %722 = vector.broadcast %32 : vector<1x32xf32> to vector<16x32xf32>
    %723 = arith.mulf %600, %722 : vector<16x32xf32>
    %cst_249 = arith.constant dense<0.000000e+00> : vector<16x32xf32>
    %724 = tpu.matmul %721, %723, %cst_249 {dimension_numbers = #tpu.dot_dimension_numbers<[1], [0], [0], [1], [0, 0, 1, 1], [], []>} : vector<16x16xf32>, vector<16x32xf32>, vector<16x32xf32> -> vector<16x32xf32>
    %725 = arith.addf %707, %724 : vector<16x32xf32>
    %726 = vector.broadcast %33 : vector<1x32xf32> to vector<16x32xf32>
    %727 = arith.mulf %598, %726 : vector<16x32xf32>
    %728 = tpu.transpose %599, [1, 0] : vector<16x32xf32> -> vector<32x16xf32>
    %cst_250 = arith.constant dense<0.000000e+00> : vector<16x16xf32>
    %729 = tpu.matmul %727, %728, %cst_250 {dimension_numbers = #tpu.dot_dimension_numbers<[1], [0], [0], [1], [0, 0, 1, 1], [], []>} : vector<16x32xf32>, vector<32x16xf32>, vector<16x16xf32> -> vector<16x16xf32>
    %cst_251 = arith.constant dense<0xFF800000> : vector<16xf32>
    %730 = vector.multi_reduction <maximumf>, %729, %cst_251 [1] : vector<16x16xf32> to vector<16xf32>
    %731 = vector.shape_cast %730 : vector<16xf32> to vector<16x1xf32>
    %732 = vector.broadcast %731 : vector<16x1xf32> to vector<16x16xf32>
    %733 = arith.subf %729, %732 : vector<16x16xf32>
    %734 = math.exp %733 : vector<16x16xf32>
    %cst_252 = arith.constant dense<0.000000e+00> : vector<16xf32>
    %735 = vector.multi_reduction <add>, %734, %cst_252 [1] : vector<16x16xf32> to vector<16xf32>
    %736 = vector.shape_cast %735 : vector<16xf32> to vector<16x1xf32>
    %737 = tpu.reciprocal %736 {approx = true} : vector<16x1xf32> -> vector<16x1xf32>
    %738 = vector.broadcast %737 : vector<16x1xf32> to vector<16x16xf32>
    %739 = arith.mulf %734, %738 : vector<16x16xf32>
    %740 = vector.broadcast %33 : vector<1x32xf32> to vector<16x32xf32>
    %741 = arith.mulf %600, %740 : vector<16x32xf32>
    %cst_253 = arith.constant dense<0.000000e+00> : vector<16x32xf32>
    %742 = tpu.matmul %739, %741, %cst_253 {dimension_numbers = #tpu.dot_dimension_numbers<[1], [0], [0], [1], [0, 0, 1, 1], [], []>} : vector<16x16xf32>, vector<16x32xf32>, vector<16x32xf32> -> vector<16x32xf32>
    %743 = arith.addf %725, %742 : vector<16x32xf32>
    %c2_254 = arith.constant 2 : index
    %c0_255 = arith.constant 0 : index
    %c0_256 = arith.constant 0 : index
    %744 = vector.load %arg9[%c2_254, %c0_255, %c0_256] : memref<3x32x32xf32, #tpu.memory_space<vmem>>, vector<1x32x32xf32>
    %745 = vector.shape_cast %744 : vector<1x32x32xf32> to vector<32x32xf32>
    %cst_257 = arith.constant dense<0.000000e+00> : vector<16x32xf32>
    %746 = tpu.matmul %743, %745, %cst_257 {dimension_numbers = #tpu.dot_dimension_numbers<[1], [0], [0], [1], [0, 0, 1, 1], [], []>} : vector<16x32xf32>, vector<32x32xf32>, vector<16x32xf32> -> vector<16x32xf32>
    %747 = arith.addf %588, %746 : vector<16x32xf32>
    %c2_258 = arith.constant 2 : index
    %c0_259 = arith.constant 0 : index
    %c0_260 = arith.constant 0 : index
    %748 = vector.load %arg10[%c2_258, %c0_259, %c0_260] : memref<3x1x32xf32, #tpu.memory_space<vmem>>, vector<1x1x32xf32>
    %749 = vector.shape_cast %748 : vector<1x1x32xf32> to vector<1x32xf32>
    %750 = vector.broadcast %749 : vector<1x32xf32> to vector<16x32xf32>
    %751 = arith.addf %747, %750 : vector<16x32xf32>
    %cst_261 = arith.constant dense<0.000000e+00> : vector<16xf32>
    %752 = vector.multi_reduction <add>, %751, %cst_261 [1] : vector<16x32xf32> to vector<16xf32>
    %753 = vector.shape_cast %752 : vector<16xf32> to vector<16x1xf32>
    %cst_262 = arith.constant 3.200000e+01 : f32
    %754 = vector.broadcast %cst_262 : f32 to vector<16x1xf32>
    %755 = arith.divf %753, %754 : vector<16x1xf32>
    %756 = vector.broadcast %755 : vector<16x1xf32> to vector<16x32xf32>
    %757 = arith.subf %751, %756 : vector<16x32xf32>
    %758 = arith.mulf %757, %757 : vector<16x32xf32>
    %cst_263 = arith.constant dense<0.000000e+00> : vector<16xf32>
    %759 = vector.multi_reduction <add>, %758, %cst_263 [1] : vector<16x32xf32> to vector<16xf32>
    %760 = vector.shape_cast %759 : vector<16xf32> to vector<16x1xf32>
    %cst_264 = arith.constant 3.200000e+01 : f32
    %761 = vector.broadcast %cst_264 : f32 to vector<16x1xf32>
    %762 = arith.divf %760, %761 : vector<16x1xf32>
    %763 = vector.broadcast %755 : vector<16x1xf32> to vector<16x32xf32>
    %764 = arith.subf %751, %763 : vector<16x32xf32>
    %cst_265 = arith.constant 9.99999974E-6 : f32
    %765 = vector.broadcast %cst_265 : f32 to vector<16x1xf32>
    %766 = arith.addf %762, %765 : vector<16x1xf32>
    %767 = math.rsqrt %766 : vector<16x1xf32>
    %768 = vector.broadcast %767 : vector<16x1xf32> to vector<16x32xf32>
    %769 = arith.mulf %764, %768 : vector<16x32xf32>
    %c2_266 = arith.constant 2 : index
    %c0_267 = arith.constant 0 : index
    %c0_268 = arith.constant 0 : index
    %770 = vector.load %arg11[%c2_266, %c0_267, %c0_268] : memref<3x32x32xf32, #tpu.memory_space<vmem>>, vector<1x32x32xf32>
    %771 = vector.shape_cast %770 : vector<1x32x32xf32> to vector<32x32xf32>
    %cst_269 = arith.constant dense<0.000000e+00> : vector<16x32xf32>
    %772 = tpu.matmul %769, %771, %cst_269 {dimension_numbers = #tpu.dot_dimension_numbers<[1], [0], [0], [1], [0, 0, 1, 1], [], []>} : vector<16x32xf32>, vector<32x32xf32>, vector<16x32xf32> -> vector<16x32xf32>
    %c2_270 = arith.constant 2 : index
    %c0_271 = arith.constant 0 : index
    %c0_272 = arith.constant 0 : index
    %773 = vector.load %arg12[%c2_270, %c0_271, %c0_272] : memref<3x32x32xf32, #tpu.memory_space<vmem>>, vector<1x32x32xf32>
    %774 = vector.shape_cast %773 : vector<1x32x32xf32> to vector<32x32xf32>
    %cst_273 = arith.constant dense<0.000000e+00> : vector<16x32xf32>
    %775 = tpu.matmul %769, %774, %cst_273 {dimension_numbers = #tpu.dot_dimension_numbers<[1], [0], [0], [1], [0, 0, 1, 1], [], []>} : vector<16x32xf32>, vector<32x32xf32>, vector<16x32xf32> -> vector<16x32xf32>
    %776 = tpu.transpose %775, [1, 0] : vector<16x32xf32> -> vector<32x16xf32>
    %cst_274 = arith.constant dense<0.000000e+00> : vector<16x16xf32>
    %777 = tpu.matmul %772, %776, %cst_274 {dimension_numbers = #tpu.dot_dimension_numbers<[1], [0], [0], [1], [0, 0, 1, 1], [], []>} : vector<16x32xf32>, vector<32x16xf32>, vector<16x16xf32> -> vector<16x16xf32>
    %cst_275 = arith.constant 0.000000e+00 : f32
    %778 = vector.broadcast %cst_275 : f32 to vector<16x16xf32>
    %779 = arith.maximumf %777, %778 : vector<16x16xf32>
    %cst_276 = arith.constant dense<0xFF800000> : vector<16xf32>
    %780 = vector.multi_reduction <maximumf>, %779, %cst_276 [1] : vector<16x16xf32> to vector<16xf32>
    %781 = vector.shape_cast %780 : vector<16xf32> to vector<16x1xf32>
    %782 = vector.broadcast %781 : vector<16x1xf32> to vector<16x16xf32>
    %783 = arith.subf %779, %782 : vector<16x16xf32>
    %784 = math.exp %783 : vector<16x16xf32>
    %cst_277 = arith.constant dense<0.000000e+00> : vector<16xf32>
    %785 = vector.multi_reduction <add>, %784, %cst_277 [1] : vector<16x16xf32> to vector<16xf32>
    %786 = vector.shape_cast %785 : vector<16xf32> to vector<16x1xf32>
    %787 = tpu.reciprocal %786 {approx = true} : vector<16x1xf32> -> vector<16x1xf32>
    %788 = vector.broadcast %787 : vector<16x1xf32> to vector<16x16xf32>
    %789 = arith.mulf %784, %788 : vector<16x16xf32>
    %790 = tpu.iota {dimensions = array<i32: 0>} : vector<16x16xi32>
    %791 = tpu.iota {dimensions = array<i32: 1>} : vector<16x16xi32>
    %792 = arith.cmpi eq, %790, %791 : vector<16x16xi32>
    %793 = arith.extui %792 : vector<16x16xi1> to vector<16x16xi32>
    %794 = arith.sitofp %793 : vector<16x16xi32> to vector<16x16xf32>
    %795 = arith.addf %789, %794 : vector<16x16xf32>
    %cst_278 = arith.constant dense<0.000000e+00> : vector<16xf32>
    %796 = vector.multi_reduction <add>, %795, %cst_278 [1] : vector<16x16xf32> to vector<16xf32>
    %797 = vector.shape_cast %796 : vector<16xf32> to vector<16x1xf32>
    %cst_279 = arith.constant 9.99999996E-13 : f32
    %798 = vector.broadcast %cst_279 : f32 to vector<16x1xf32>
    %799 = arith.maximumf %797, %798 : vector<16x1xf32>
    %800 = math.rsqrt %799 : vector<16x1xf32>
    %c0_280 = arith.constant 0 : index
    %c0_281 = arith.constant 0 : index
    %c0_282 = arith.constant 0 : index
    %801 = vector.load %arg13[%c0_280, %c0_281, %c0_282] : memref<2x32x32xf32, #tpu.memory_space<vmem>>, vector<1x32x32xf32>
    %802 = vector.shape_cast %801 : vector<1x32x32xf32> to vector<32x32xf32>
    %cst_283 = arith.constant dense<0.000000e+00> : vector<16x32xf32>
    %803 = tpu.matmul %769, %802, %cst_283 {dimension_numbers = #tpu.dot_dimension_numbers<[1], [0], [0], [1], [0, 0, 1, 1], [], []>} : vector<16x32xf32>, vector<32x32xf32>, vector<16x32xf32> -> vector<16x32xf32>
    %804 = vector.broadcast %800 : vector<16x1xf32> to vector<16x32xf32>
    %805 = arith.mulf %804, %803 : vector<16x32xf32>
    %cst_284 = arith.constant dense<0.000000e+00> : vector<16x32xf32>
    %806 = tpu.matmul %795, %805, %cst_284 {dimension_numbers = #tpu.dot_dimension_numbers<[1], [0], [0], [1], [0, 0, 1, 1], [], []>} : vector<16x16xf32>, vector<16x32xf32>, vector<16x32xf32> -> vector<16x32xf32>
    %807 = vector.broadcast %800 : vector<16x1xf32> to vector<16x32xf32>
    %808 = arith.mulf %807, %806 : vector<16x32xf32>
    %c0_285 = arith.constant 0 : index
    %c0_286 = arith.constant 0 : index
    %c0_287 = arith.constant 0 : index
    %809 = vector.load %arg14[%c0_285, %c0_286, %c0_287] : memref<2x1x32xf32, #tpu.memory_space<vmem>>, vector<1x1x32xf32>
    %810 = vector.shape_cast %809 : vector<1x1x32xf32> to vector<1x32xf32>
    %811 = vector.broadcast %810 : vector<1x32xf32> to vector<16x32xf32>
    %812 = arith.addf %808, %811 : vector<16x32xf32>
    %cst_288 = arith.constant dense<0.000000e+00> : vector<32xf32>
    %813 = vector.multi_reduction <add>, %812, %cst_288 [0] : vector<16x32xf32> to vector<32xf32>
    %814 = vector.shape_cast %813 : vector<32xf32> to vector<1x32xf32>
    %cst_289 = arith.constant 1.600000e+01 : f32
    %815 = vector.broadcast %cst_289 : f32 to vector<1x32xf32>
    %816 = arith.divf %814, %815 : vector<1x32xf32>
    %817 = vector.broadcast %816 : vector<1x32xf32> to vector<16x32xf32>
    %818 = arith.subf %812, %817 : vector<16x32xf32>
    %819 = arith.mulf %818, %818 : vector<16x32xf32>
    %cst_290 = arith.constant dense<0.000000e+00> : vector<32xf32>
    %820 = vector.multi_reduction <add>, %819, %cst_290 [0] : vector<16x32xf32> to vector<32xf32>
    %821 = vector.shape_cast %820 : vector<32xf32> to vector<1x32xf32>
    %cst_291 = arith.constant 1.600000e+01 : f32
    %822 = vector.broadcast %cst_291 : f32 to vector<1x32xf32>
    %823 = arith.divf %821, %822 : vector<1x32xf32>
    %824 = vector.broadcast %816 : vector<1x32xf32> to vector<16x32xf32>
    %825 = arith.subf %812, %824 : vector<16x32xf32>
    %cst_292 = arith.constant 9.99999974E-6 : f32
    %826 = vector.broadcast %cst_292 : f32 to vector<1x32xf32>
    %827 = arith.addf %823, %826 : vector<1x32xf32>
    %828 = math.rsqrt %827 : vector<1x32xf32>
    %829 = vector.broadcast %828 : vector<1x32xf32> to vector<16x32xf32>
    %830 = arith.mulf %825, %829 : vector<16x32xf32>
    %c0_293 = arith.constant 0 : index
    %c0_294 = arith.constant 0 : index
    %c0_295 = arith.constant 0 : index
    %831 = vector.load %arg15[%c0_293, %c0_294, %c0_295] : memref<1x1x32xf32, #tpu.memory_space<vmem>>, vector<1x1x32xf32>
    %832 = vector.shape_cast %831 : vector<1x1x32xf32> to vector<1x32xf32>
    %833 = vector.broadcast %832 : vector<1x32xf32> to vector<16x32xf32>
    %834 = arith.mulf %830, %833 : vector<16x32xf32>
    %c0_296 = arith.constant 0 : index
    %c0_297 = arith.constant 0 : index
    %c0_298 = arith.constant 0 : index
    %835 = vector.load %arg16[%c0_296, %c0_297, %c0_298] : memref<1x1x32xf32, #tpu.memory_space<vmem>>, vector<1x1x32xf32>
    %836 = vector.shape_cast %835 : vector<1x1x32xf32> to vector<1x32xf32>
    %837 = vector.broadcast %836 : vector<1x32xf32> to vector<16x32xf32>
    %838 = arith.addf %834, %837 : vector<16x32xf32>
    %cst_299 = arith.constant 0.000000e+00 : f32
    %839 = vector.broadcast %cst_299 : f32 to vector<16x32xf32>
    %840 = arith.cmpf oge, %838, %839 : vector<16x32xf32>
    %cst_300 = arith.constant 0.00999999977 : f32
    %841 = vector.broadcast %cst_300 : f32 to vector<16x32xf32>
    %842 = arith.mulf %841, %838 : vector<16x32xf32>
    %843 = arith.select %840, %838, %842 : vector<16x32xi1>, vector<16x32xf32>
    %c1_301 = arith.constant 1 : index
    %c0_302 = arith.constant 0 : index
    %c0_303 = arith.constant 0 : index
    %844 = vector.load %arg13[%c1_301, %c0_302, %c0_303] : memref<2x32x32xf32, #tpu.memory_space<vmem>>, vector<1x32x32xf32>
    %845 = vector.shape_cast %844 : vector<1x32x32xf32> to vector<32x32xf32>
    %cst_304 = arith.constant dense<0.000000e+00> : vector<16x32xf32>
    %846 = tpu.matmul %843, %845, %cst_304 {dimension_numbers = #tpu.dot_dimension_numbers<[1], [0], [0], [1], [0, 0, 1, 1], [], []>} : vector<16x32xf32>, vector<32x32xf32>, vector<16x32xf32> -> vector<16x32xf32>
    %847 = vector.broadcast %800 : vector<16x1xf32> to vector<16x32xf32>
    %848 = arith.mulf %847, %846 : vector<16x32xf32>
    %cst_305 = arith.constant dense<0.000000e+00> : vector<16x32xf32>
    %849 = tpu.matmul %795, %848, %cst_305 {dimension_numbers = #tpu.dot_dimension_numbers<[1], [0], [0], [1], [0, 0, 1, 1], [], []>} : vector<16x16xf32>, vector<16x32xf32>, vector<16x32xf32> -> vector<16x32xf32>
    %850 = vector.broadcast %800 : vector<16x1xf32> to vector<16x32xf32>
    %851 = arith.mulf %850, %849 : vector<16x32xf32>
    %c1_306 = arith.constant 1 : index
    %c0_307 = arith.constant 0 : index
    %c0_308 = arith.constant 0 : index
    %852 = vector.load %arg14[%c1_306, %c0_307, %c0_308] : memref<2x1x32xf32, #tpu.memory_space<vmem>>, vector<1x1x32xf32>
    %853 = vector.shape_cast %852 : vector<1x1x32xf32> to vector<1x32xf32>
    %854 = vector.broadcast %853 : vector<1x32xf32> to vector<16x32xf32>
    %855 = arith.addf %851, %854 : vector<16x32xf32>
    %c0_309 = arith.constant 0 : index
    %c0_310 = arith.constant 0 : index
    %856 = vector.load %arg17[%c0_309, %c0_310] : memref<32x96xf32, #tpu.memory_space<vmem>>, vector<32x96xf32>
    %cst_311 = arith.constant dense<0.000000e+00> : vector<16x96xf32>
    %857 = tpu.matmul %311, %856, %cst_311 {dimension_numbers = #tpu.dot_dimension_numbers<[1], [0], [0], [1], [0, 0, 1, 1], [], []>} : vector<16x32xf32>, vector<32x96xf32>, vector<16x96xf32> -> vector<16x96xf32>
    %c0_312 = arith.constant 0 : index
    %c0_313 = arith.constant 0 : index
    %858 = vector.load %arg18[%c0_312, %c0_313] : memref<1x96xf32, #tpu.memory_space<vmem>>, vector<1x96xf32>
    %859 = vector.broadcast %858 : vector<1x96xf32> to vector<16x96xf32>
    %860 = arith.addf %857, %859 : vector<16x96xf32>
    %861 = vector.extract_strided_slice %860 {offsets = [0, 0], sizes = [16, 32], strides = [1, 1]} : vector<16x96xf32> to vector<16x32xf32>
    %cst_314 = arith.constant 5.000000e-01 : f32
    %862 = vector.broadcast %cst_314 : f32 to vector<16x32xf32>
    %863 = arith.mulf %861, %862 : vector<16x32xf32>
    %864 = vector.extract_strided_slice %860 {offsets = [0, 32], sizes = [16, 32], strides = [1, 1]} : vector<16x96xf32> to vector<16x32xf32>
    %865 = vector.extract_strided_slice %860 {offsets = [0, 64], sizes = [16, 32], strides = [1, 1]} : vector<16x96xf32> to vector<16x32xf32>
    %c0_315 = arith.constant 0 : index
    %c0_316 = arith.constant 0 : index
    %866 = vector.load %arg17[%c0_315, %c0_316] : memref<32x96xf32, #tpu.memory_space<vmem>>, vector<32x96xf32>
    %cst_317 = arith.constant dense<0.000000e+00> : vector<16x96xf32>
    %867 = tpu.matmul %583, %866, %cst_317 {dimension_numbers = #tpu.dot_dimension_numbers<[1], [0], [0], [1], [0, 0, 1, 1], [], []>} : vector<16x32xf32>, vector<32x96xf32>, vector<16x96xf32> -> vector<16x96xf32>
    %c0_318 = arith.constant 0 : index
    %c0_319 = arith.constant 0 : index
    %868 = vector.load %arg18[%c0_318, %c0_319] : memref<1x96xf32, #tpu.memory_space<vmem>>, vector<1x96xf32>
    %869 = vector.broadcast %868 : vector<1x96xf32> to vector<16x96xf32>
    %870 = arith.addf %867, %869 : vector<16x96xf32>
    %871 = vector.extract_strided_slice %870 {offsets = [0, 0], sizes = [16, 32], strides = [1, 1]} : vector<16x96xf32> to vector<16x32xf32>
    %cst_320 = arith.constant 5.000000e-01 : f32
    %872 = vector.broadcast %cst_320 : f32 to vector<16x32xf32>
    %873 = arith.mulf %871, %872 : vector<16x32xf32>
    %874 = vector.extract_strided_slice %870 {offsets = [0, 32], sizes = [16, 32], strides = [1, 1]} : vector<16x96xf32> to vector<16x32xf32>
    %875 = vector.extract_strided_slice %870 {offsets = [0, 64], sizes = [16, 32], strides = [1, 1]} : vector<16x96xf32> to vector<16x32xf32>
    %c0_321 = arith.constant 0 : index
    %c0_322 = arith.constant 0 : index
    %876 = vector.load %arg17[%c0_321, %c0_322] : memref<32x96xf32, #tpu.memory_space<vmem>>, vector<32x96xf32>
    %cst_323 = arith.constant dense<0.000000e+00> : vector<16x96xf32>
    %877 = tpu.matmul %855, %876, %cst_323 {dimension_numbers = #tpu.dot_dimension_numbers<[1], [0], [0], [1], [0, 0, 1, 1], [], []>} : vector<16x32xf32>, vector<32x96xf32>, vector<16x96xf32> -> vector<16x96xf32>
    %c0_324 = arith.constant 0 : index
    %c0_325 = arith.constant 0 : index
    %878 = vector.load %arg18[%c0_324, %c0_325] : memref<1x96xf32, #tpu.memory_space<vmem>>, vector<1x96xf32>
    %879 = vector.broadcast %878 : vector<1x96xf32> to vector<16x96xf32>
    %880 = arith.addf %877, %879 : vector<16x96xf32>
    %881 = vector.extract_strided_slice %880 {offsets = [0, 0], sizes = [16, 32], strides = [1, 1]} : vector<16x96xf32> to vector<16x32xf32>
    %cst_326 = arith.constant 5.000000e-01 : f32
    %882 = vector.broadcast %cst_326 : f32 to vector<16x32xf32>
    %883 = arith.mulf %881, %882 : vector<16x32xf32>
    %884 = vector.extract_strided_slice %880 {offsets = [0, 32], sizes = [16, 32], strides = [1, 1]} : vector<16x96xf32> to vector<16x32xf32>
    %885 = vector.extract_strided_slice %880 {offsets = [0, 64], sizes = [16, 32], strides = [1, 1]} : vector<16x96xf32> to vector<16x32xf32>
    %886 = arith.mulf %863, %864 : vector<16x32xf32>
    %cst_327 = arith.constant dense<0.000000e+00> : vector<16x8xf32>
    %887 = tpu.matmul %886, %12, %cst_327 {dimension_numbers = #tpu.dot_dimension_numbers<[1], [0], [0], [1], [0, 0, 1, 1], [], []>} : vector<16x32xf32>, vector<32x8xf32>, vector<16x8xf32> -> vector<16x8xf32>
    %888 = arith.mulf %863, %874 : vector<16x32xf32>
    %cst_328 = arith.constant dense<0.000000e+00> : vector<16x8xf32>
    %889 = tpu.matmul %888, %12, %cst_328 {dimension_numbers = #tpu.dot_dimension_numbers<[1], [0], [0], [1], [0, 0, 1, 1], [], []>} : vector<16x32xf32>, vector<32x8xf32>, vector<16x8xf32> -> vector<16x8xf32>
    %890 = arith.mulf %863, %884 : vector<16x32xf32>
    %cst_329 = arith.constant dense<0.000000e+00> : vector<16x8xf32>
    %891 = tpu.matmul %890, %12, %cst_329 {dimension_numbers = #tpu.dot_dimension_numbers<[1], [0], [0], [1], [0, 0, 1, 1], [], []>} : vector<16x32xf32>, vector<32x8xf32>, vector<16x8xf32> -> vector<16x8xf32>
    %892 = arith.mulf %873, %864 : vector<16x32xf32>
    %cst_330 = arith.constant dense<0.000000e+00> : vector<16x8xf32>
    %893 = tpu.matmul %892, %12, %cst_330 {dimension_numbers = #tpu.dot_dimension_numbers<[1], [0], [0], [1], [0, 0, 1, 1], [], []>} : vector<16x32xf32>, vector<32x8xf32>, vector<16x8xf32> -> vector<16x8xf32>
    %894 = arith.mulf %873, %874 : vector<16x32xf32>
    %cst_331 = arith.constant dense<0.000000e+00> : vector<16x8xf32>
    %895 = tpu.matmul %894, %12, %cst_331 {dimension_numbers = #tpu.dot_dimension_numbers<[1], [0], [0], [1], [0, 0, 1, 1], [], []>} : vector<16x32xf32>, vector<32x8xf32>, vector<16x8xf32> -> vector<16x8xf32>
    %896 = arith.mulf %873, %884 : vector<16x32xf32>
    %cst_332 = arith.constant dense<0.000000e+00> : vector<16x8xf32>
    %897 = tpu.matmul %896, %12, %cst_332 {dimension_numbers = #tpu.dot_dimension_numbers<[1], [0], [0], [1], [0, 0, 1, 1], [], []>} : vector<16x32xf32>, vector<32x8xf32>, vector<16x8xf32> -> vector<16x8xf32>
    %898 = arith.mulf %883, %864 : vector<16x32xf32>
    %cst_333 = arith.constant dense<0.000000e+00> : vector<16x8xf32>
    %899 = tpu.matmul %898, %12, %cst_333 {dimension_numbers = #tpu.dot_dimension_numbers<[1], [0], [0], [1], [0, 0, 1, 1], [], []>} : vector<16x32xf32>, vector<32x8xf32>, vector<16x8xf32> -> vector<16x8xf32>
    %900 = arith.mulf %883, %874 : vector<16x32xf32>
    %cst_334 = arith.constant dense<0.000000e+00> : vector<16x8xf32>
    %901 = tpu.matmul %900, %12, %cst_334 {dimension_numbers = #tpu.dot_dimension_numbers<[1], [0], [0], [1], [0, 0, 1, 1], [], []>} : vector<16x32xf32>, vector<32x8xf32>, vector<16x8xf32> -> vector<16x8xf32>
    %902 = arith.mulf %883, %884 : vector<16x32xf32>
    %cst_335 = arith.constant dense<0.000000e+00> : vector<16x8xf32>
    %903 = tpu.matmul %902, %12, %cst_335 {dimension_numbers = #tpu.dot_dimension_numbers<[1], [0], [0], [1], [0, 0, 1, 1], [], []>} : vector<16x32xf32>, vector<32x8xf32>, vector<16x8xf32> -> vector<16x8xf32>
    %904 = arith.maximumf %887, %889 : vector<16x8xf32>
    %905 = arith.maximumf %904, %891 : vector<16x8xf32>
    %906 = arith.subf %887, %905 : vector<16x8xf32>
    %907 = math.exp %906 : vector<16x8xf32>
    %908 = arith.subf %889, %905 : vector<16x8xf32>
    %909 = math.exp %908 : vector<16x8xf32>
    %910 = arith.subf %891, %905 : vector<16x8xf32>
    %911 = math.exp %910 : vector<16x8xf32>
    %912 = arith.addf %907, %909 : vector<16x8xf32>
    %913 = arith.addf %912, %911 : vector<16x8xf32>
    %914 = tpu.reciprocal %913 {approx = true} : vector<16x8xf32> -> vector<16x8xf32>
    %915 = arith.mulf %907, %914 : vector<16x8xf32>
    %cst_336 = arith.constant dense<0.000000e+00> : vector<16x32xf32>
    %916 = tpu.matmul %915, %25, %cst_336 {dimension_numbers = #tpu.dot_dimension_numbers<[1], [0], [0], [1], [0, 0, 1, 1], [], []>} : vector<16x8xf32>, vector<8x32xf32>, vector<16x32xf32> -> vector<16x32xf32>
    %917 = arith.mulf %916, %865 : vector<16x32xf32>
    %918 = arith.mulf %909, %914 : vector<16x8xf32>
    %cst_337 = arith.constant dense<0.000000e+00> : vector<16x32xf32>
    %919 = tpu.matmul %918, %25, %cst_337 {dimension_numbers = #tpu.dot_dimension_numbers<[1], [0], [0], [1], [0, 0, 1, 1], [], []>} : vector<16x8xf32>, vector<8x32xf32>, vector<16x32xf32> -> vector<16x32xf32>
    %920 = arith.mulf %919, %875 : vector<16x32xf32>
    %921 = arith.addf %917, %920 : vector<16x32xf32>
    %922 = arith.mulf %911, %914 : vector<16x8xf32>
    %cst_338 = arith.constant dense<0.000000e+00> : vector<16x32xf32>
    %923 = tpu.matmul %922, %25, %cst_338 {dimension_numbers = #tpu.dot_dimension_numbers<[1], [0], [0], [1], [0, 0, 1, 1], [], []>} : vector<16x8xf32>, vector<8x32xf32>, vector<16x32xf32> -> vector<16x32xf32>
    %924 = arith.mulf %923, %885 : vector<16x32xf32>
    %925 = arith.addf %921, %924 : vector<16x32xf32>
    %c0_339 = arith.constant 0 : index
    %c0_340 = arith.constant 0 : index
    %926 = vector.load %arg19[%c0_339, %c0_340] : memref<32x32xf32, #tpu.memory_space<vmem>>, vector<32x32xf32>
    %cst_341 = arith.constant dense<0.000000e+00> : vector<16x32xf32>
    %927 = tpu.matmul %925, %926, %cst_341 {dimension_numbers = #tpu.dot_dimension_numbers<[1], [0], [0], [1], [0, 0, 1, 1], [], []>} : vector<16x32xf32>, vector<32x32xf32>, vector<16x32xf32> -> vector<16x32xf32>
    %c0_342 = arith.constant 0 : index
    %c0_343 = arith.constant 0 : index
    %928 = vector.load %arg20[%c0_342, %c0_343] : memref<1x32xf32, #tpu.memory_space<vmem>>, vector<1x32xf32>
    %929 = vector.broadcast %928 : vector<1x32xf32> to vector<16x32xf32>
    %930 = arith.addf %927, %929 : vector<16x32xf32>
    %cst_344 = arith.constant 2.000000e-01 : f32
    %931 = vector.broadcast %cst_344 : f32 to vector<16x32xf32>
    %932 = arith.mulf %931, %930 : vector<16x32xf32>
    %cst_345 = arith.constant 8.000000e-01 : f32
    %933 = vector.broadcast %cst_345 : f32 to vector<16x32xf32>
    %934 = arith.mulf %933, %311 : vector<16x32xf32>
    %935 = arith.addf %932, %934 : vector<16x32xf32>
    %936 = arith.maximumf %893, %895 : vector<16x8xf32>
    %937 = arith.maximumf %936, %897 : vector<16x8xf32>
    %938 = arith.subf %893, %937 : vector<16x8xf32>
    %939 = math.exp %938 : vector<16x8xf32>
    %940 = arith.subf %895, %937 : vector<16x8xf32>
    %941 = math.exp %940 : vector<16x8xf32>
    %942 = arith.subf %897, %937 : vector<16x8xf32>
    %943 = math.exp %942 : vector<16x8xf32>
    %944 = arith.addf %939, %941 : vector<16x8xf32>
    %945 = arith.addf %944, %943 : vector<16x8xf32>
    %946 = tpu.reciprocal %945 {approx = true} : vector<16x8xf32> -> vector<16x8xf32>
    %947 = arith.mulf %939, %946 : vector<16x8xf32>
    %cst_346 = arith.constant dense<0.000000e+00> : vector<16x32xf32>
    %948 = tpu.matmul %947, %25, %cst_346 {dimension_numbers = #tpu.dot_dimension_numbers<[1], [0], [0], [1], [0, 0, 1, 1], [], []>} : vector<16x8xf32>, vector<8x32xf32>, vector<16x32xf32> -> vector<16x32xf32>
    %949 = arith.mulf %948, %865 : vector<16x32xf32>
    %950 = arith.mulf %941, %946 : vector<16x8xf32>
    %cst_347 = arith.constant dense<0.000000e+00> : vector<16x32xf32>
    %951 = tpu.matmul %950, %25, %cst_347 {dimension_numbers = #tpu.dot_dimension_numbers<[1], [0], [0], [1], [0, 0, 1, 1], [], []>} : vector<16x8xf32>, vector<8x32xf32>, vector<16x32xf32> -> vector<16x32xf32>
    %952 = arith.mulf %951, %875 : vector<16x32xf32>
    %953 = arith.addf %949, %952 : vector<16x32xf32>
    %954 = arith.mulf %943, %946 : vector<16x8xf32>
    %cst_348 = arith.constant dense<0.000000e+00> : vector<16x32xf32>
    %955 = tpu.matmul %954, %25, %cst_348 {dimension_numbers = #tpu.dot_dimension_numbers<[1], [0], [0], [1], [0, 0, 1, 1], [], []>} : vector<16x8xf32>, vector<8x32xf32>, vector<16x32xf32> -> vector<16x32xf32>
    %956 = arith.mulf %955, %885 : vector<16x32xf32>
    %957 = arith.addf %953, %956 : vector<16x32xf32>
    %c0_349 = arith.constant 0 : index
    %c0_350 = arith.constant 0 : index
    %958 = vector.load %arg19[%c0_349, %c0_350] : memref<32x32xf32, #tpu.memory_space<vmem>>, vector<32x32xf32>
    %cst_351 = arith.constant dense<0.000000e+00> : vector<16x32xf32>
    %959 = tpu.matmul %957, %958, %cst_351 {dimension_numbers = #tpu.dot_dimension_numbers<[1], [0], [0], [1], [0, 0, 1, 1], [], []>} : vector<16x32xf32>, vector<32x32xf32>, vector<16x32xf32> -> vector<16x32xf32>
    %c0_352 = arith.constant 0 : index
    %c0_353 = arith.constant 0 : index
    %960 = vector.load %arg20[%c0_352, %c0_353] : memref<1x32xf32, #tpu.memory_space<vmem>>, vector<1x32xf32>
    %961 = vector.broadcast %960 : vector<1x32xf32> to vector<16x32xf32>
    %962 = arith.addf %959, %961 : vector<16x32xf32>
    %cst_354 = arith.constant 2.000000e-01 : f32
    %963 = vector.broadcast %cst_354 : f32 to vector<16x32xf32>
    %964 = arith.mulf %963, %962 : vector<16x32xf32>
    %cst_355 = arith.constant 8.000000e-01 : f32
    %965 = vector.broadcast %cst_355 : f32 to vector<16x32xf32>
    %966 = arith.mulf %965, %583 : vector<16x32xf32>
    %967 = arith.addf %964, %966 : vector<16x32xf32>
    %968 = arith.maximumf %899, %901 : vector<16x8xf32>
    %969 = arith.maximumf %968, %903 : vector<16x8xf32>
    %970 = arith.subf %899, %969 : vector<16x8xf32>
    %971 = math.exp %970 : vector<16x8xf32>
    %972 = arith.subf %901, %969 : vector<16x8xf32>
    %973 = math.exp %972 : vector<16x8xf32>
    %974 = arith.subf %903, %969 : vector<16x8xf32>
    %975 = math.exp %974 : vector<16x8xf32>
    %976 = arith.addf %971, %973 : vector<16x8xf32>
    %977 = arith.addf %976, %975 : vector<16x8xf32>
    %978 = tpu.reciprocal %977 {approx = true} : vector<16x8xf32> -> vector<16x8xf32>
    %979 = arith.mulf %971, %978 : vector<16x8xf32>
    %cst_356 = arith.constant dense<0.000000e+00> : vector<16x32xf32>
    %980 = tpu.matmul %979, %25, %cst_356 {dimension_numbers = #tpu.dot_dimension_numbers<[1], [0], [0], [1], [0, 0, 1, 1], [], []>} : vector<16x8xf32>, vector<8x32xf32>, vector<16x32xf32> -> vector<16x32xf32>
    %981 = arith.mulf %980, %865 : vector<16x32xf32>
    %982 = arith.mulf %973, %978 : vector<16x8xf32>
    %cst_357 = arith.constant dense<0.000000e+00> : vector<16x32xf32>
    %983 = tpu.matmul %982, %25, %cst_357 {dimension_numbers = #tpu.dot_dimension_numbers<[1], [0], [0], [1], [0, 0, 1, 1], [], []>} : vector<16x8xf32>, vector<8x32xf32>, vector<16x32xf32> -> vector<16x32xf32>
    %984 = arith.mulf %983, %875 : vector<16x32xf32>
    %985 = arith.addf %981, %984 : vector<16x32xf32>
    %986 = arith.mulf %975, %978 : vector<16x8xf32>
    %cst_358 = arith.constant dense<0.000000e+00> : vector<16x32xf32>
    %987 = tpu.matmul %986, %25, %cst_358 {dimension_numbers = #tpu.dot_dimension_numbers<[1], [0], [0], [1], [0, 0, 1, 1], [], []>} : vector<16x8xf32>, vector<8x32xf32>, vector<16x32xf32> -> vector<16x32xf32>
    %988 = arith.mulf %987, %885 : vector<16x32xf32>
    %989 = arith.addf %985, %988 : vector<16x32xf32>
    %c0_359 = arith.constant 0 : index
    %c0_360 = arith.constant 0 : index
    %990 = vector.load %arg19[%c0_359, %c0_360] : memref<32x32xf32, #tpu.memory_space<vmem>>, vector<32x32xf32>
    %cst_361 = arith.constant dense<0.000000e+00> : vector<16x32xf32>
    %991 = tpu.matmul %989, %990, %cst_361 {dimension_numbers = #tpu.dot_dimension_numbers<[1], [0], [0], [1], [0, 0, 1, 1], [], []>} : vector<16x32xf32>, vector<32x32xf32>, vector<16x32xf32> -> vector<16x32xf32>
    %c0_362 = arith.constant 0 : index
    %c0_363 = arith.constant 0 : index
    %992 = vector.load %arg20[%c0_362, %c0_363] : memref<1x32xf32, #tpu.memory_space<vmem>>, vector<1x32xf32>
    %993 = vector.broadcast %992 : vector<1x32xf32> to vector<16x32xf32>
    %994 = arith.addf %991, %993 : vector<16x32xf32>
    %cst_364 = arith.constant 2.000000e-01 : f32
    %995 = vector.broadcast %cst_364 : f32 to vector<16x32xf32>
    %996 = arith.mulf %995, %994 : vector<16x32xf32>
    %cst_365 = arith.constant 8.000000e-01 : f32
    %997 = vector.broadcast %cst_365 : f32 to vector<16x32xf32>
    %998 = arith.mulf %997, %855 : vector<16x32xf32>
    %999 = arith.addf %996, %998 : vector<16x32xf32>
    %c0_366 = arith.constant 0 : index
    %c0_367 = arith.constant 0 : index
    %1000 = vector.load %arg21[%c0_366, %c0_367] : memref<32x32xf32, #tpu.memory_space<vmem>>, vector<32x32xf32>
    %cst_368 = arith.constant dense<0.000000e+00> : vector<16x32xf32>
    %1001 = tpu.matmul %935, %1000, %cst_368 {dimension_numbers = #tpu.dot_dimension_numbers<[1], [0], [0], [1], [0, 0, 1, 1], [], []>} : vector<16x32xf32>, vector<32x32xf32>, vector<16x32xf32> -> vector<16x32xf32>
    %c0_369 = arith.constant 0 : index
    %c0_370 = arith.constant 0 : index
    %1002 = vector.load %arg22[%c0_369, %c0_370] : memref<1x32xf32, #tpu.memory_space<vmem>>, vector<1x32xf32>
    %1003 = vector.broadcast %1002 : vector<1x32xf32> to vector<16x32xf32>
    %1004 = arith.addf %1001, %1003 : vector<16x32xf32>
    %1005 = math.tanh %1004 : vector<16x32xf32>
    %c0_371 = arith.constant 0 : index
    %c0_372 = arith.constant 0 : index
    %1006 = vector.load %arg23[%c0_371, %c0_372] : memref<1x32xf32, #tpu.memory_space<vmem>>, vector<1x32xf32>
    %1007 = vector.broadcast %1006 : vector<1x32xf32> to vector<16x32xf32>
    %1008 = arith.mulf %1005, %1007 : vector<16x32xf32>
    %1009 = vector.shape_cast %1008 : vector<16x32xf32> to vector<1x16x32xf32>
    %cst_373 = arith.constant dense<0.000000e+00> : vector<1xf32>
    %1010 = vector.multi_reduction <add>, %1009, %cst_373 [1, 2] : vector<1x16x32xf32> to vector<1xf32>
    %1011 = vector.shape_cast %1010 : vector<1xf32> to vector<1x1x1xf32>
    %1012 = vector.extract %1011[0, 0, 0] : f32 from vector<1x1x1xf32>
    %cst_374 = arith.constant 6.250000e-02 : f32
    %1013 = arith.mulf %1012, %cst_374 : f32
    %c0_375 = arith.constant 0 : index
    %c0_376 = arith.constant 0 : index
    %1014 = vector.load %arg21[%c0_375, %c0_376] : memref<32x32xf32, #tpu.memory_space<vmem>>, vector<32x32xf32>
    %cst_377 = arith.constant dense<0.000000e+00> : vector<16x32xf32>
    %1015 = tpu.matmul %967, %1014, %cst_377 {dimension_numbers = #tpu.dot_dimension_numbers<[1], [0], [0], [1], [0, 0, 1, 1], [], []>} : vector<16x32xf32>, vector<32x32xf32>, vector<16x32xf32> -> vector<16x32xf32>
    %c0_378 = arith.constant 0 : index
    %c0_379 = arith.constant 0 : index
    %1016 = vector.load %arg22[%c0_378, %c0_379] : memref<1x32xf32, #tpu.memory_space<vmem>>, vector<1x32xf32>
    %1017 = vector.broadcast %1016 : vector<1x32xf32> to vector<16x32xf32>
    %1018 = arith.addf %1015, %1017 : vector<16x32xf32>
    %1019 = math.tanh %1018 : vector<16x32xf32>
    %c0_380 = arith.constant 0 : index
    %c0_381 = arith.constant 0 : index
    %1020 = vector.load %arg23[%c0_380, %c0_381] : memref<1x32xf32, #tpu.memory_space<vmem>>, vector<1x32xf32>
    %1021 = vector.broadcast %1020 : vector<1x32xf32> to vector<16x32xf32>
    %1022 = arith.mulf %1019, %1021 : vector<16x32xf32>
    %1023 = vector.shape_cast %1022 : vector<16x32xf32> to vector<1x16x32xf32>
    %cst_382 = arith.constant dense<0.000000e+00> : vector<1xf32>
    %1024 = vector.multi_reduction <add>, %1023, %cst_382 [1, 2] : vector<1x16x32xf32> to vector<1xf32>
    %1025 = vector.shape_cast %1024 : vector<1xf32> to vector<1x1x1xf32>
    %1026 = vector.extract %1025[0, 0, 0] : f32 from vector<1x1x1xf32>
    %cst_383 = arith.constant 6.250000e-02 : f32
    %1027 = arith.mulf %1026, %cst_383 : f32
    %c0_384 = arith.constant 0 : index
    %c0_385 = arith.constant 0 : index
    %1028 = vector.load %arg21[%c0_384, %c0_385] : memref<32x32xf32, #tpu.memory_space<vmem>>, vector<32x32xf32>
    %cst_386 = arith.constant dense<0.000000e+00> : vector<16x32xf32>
    %1029 = tpu.matmul %999, %1028, %cst_386 {dimension_numbers = #tpu.dot_dimension_numbers<[1], [0], [0], [1], [0, 0, 1, 1], [], []>} : vector<16x32xf32>, vector<32x32xf32>, vector<16x32xf32> -> vector<16x32xf32>
    %c0_387 = arith.constant 0 : index
    %c0_388 = arith.constant 0 : index
    %1030 = vector.load %arg22[%c0_387, %c0_388] : memref<1x32xf32, #tpu.memory_space<vmem>>, vector<1x32xf32>
    %1031 = vector.broadcast %1030 : vector<1x32xf32> to vector<16x32xf32>
    %1032 = arith.addf %1029, %1031 : vector<16x32xf32>
    %1033 = math.tanh %1032 : vector<16x32xf32>
    %c0_389 = arith.constant 0 : index
    %c0_390 = arith.constant 0 : index
    %1034 = vector.load %arg23[%c0_389, %c0_390] : memref<1x32xf32, #tpu.memory_space<vmem>>, vector<1x32xf32>
    %1035 = vector.broadcast %1034 : vector<1x32xf32> to vector<16x32xf32>
    %1036 = arith.mulf %1033, %1035 : vector<16x32xf32>
    %1037 = vector.shape_cast %1036 : vector<16x32xf32> to vector<1x16x32xf32>
    %cst_391 = arith.constant dense<0.000000e+00> : vector<1xf32>
    %1038 = vector.multi_reduction <add>, %1037, %cst_391 [1, 2] : vector<1x16x32xf32> to vector<1xf32>
    %1039 = vector.shape_cast %1038 : vector<1xf32> to vector<1x1x1xf32>
    %1040 = vector.extract %1039[0, 0, 0] : f32 from vector<1x1x1xf32>
    %cst_392 = arith.constant 6.250000e-02 : f32
    %1041 = arith.mulf %1040, %cst_392 : f32
    %1042 = arith.maximumf %1013, %1027 : f32
    %1043 = arith.maximumf %1042, %1041 : f32
    %1044 = arith.subf %1013, %1043 : f32
    %1045 = math.exp %1044 : f32
    %1046 = arith.subf %1027, %1043 : f32
    %1047 = math.exp %1046 : f32
    %1048 = arith.subf %1041, %1043 : f32
    %1049 = math.exp %1048 : f32
    %1050 = arith.addf %1045, %1047 : f32
    %1051 = arith.addf %1050, %1049 : f32
    %1052 = vector.broadcast %1045 : f32 to vector<16x32xf32>
    %1053 = arith.mulf %1052, %935 : vector<16x32xf32>
    %1054 = vector.broadcast %1047 : f32 to vector<16x32xf32>
    %1055 = arith.mulf %1054, %967 : vector<16x32xf32>
    %1056 = arith.addf %1053, %1055 : vector<16x32xf32>
    %1057 = vector.broadcast %1049 : f32 to vector<16x32xf32>
    %1058 = arith.mulf %1057, %999 : vector<16x32xf32>
    %1059 = arith.addf %1056, %1058 : vector<16x32xf32>
    %1060 = vector.broadcast %1051 : f32 to vector<16x32xf32>
    %1061 = arith.divf %1059, %1060 : vector<16x32xf32>
    %cst_393 = arith.constant 5.000000e-01 : f32
    %1062 = vector.broadcast %cst_393 : f32 to vector<16x32xf32>
    %1063 = arith.mulf %1062, %311 : vector<16x32xf32>
    %cst_394 = arith.constant 5.000000e-01 : f32
    %1064 = vector.broadcast %cst_394 : f32 to vector<16x32xf32>
    %1065 = arith.mulf %1064, %1061 : vector<16x32xf32>
    %1066 = arith.addf %1063, %1065 : vector<16x32xf32>
    %cst_395 = arith.constant 5.000000e-01 : f32
    %1067 = vector.broadcast %cst_395 : f32 to vector<16x32xf32>
    %1068 = arith.mulf %1067, %583 : vector<16x32xf32>
    %cst_396 = arith.constant 5.000000e-01 : f32
    %1069 = vector.broadcast %cst_396 : f32 to vector<16x32xf32>
    %1070 = arith.mulf %1069, %1061 : vector<16x32xf32>
    %1071 = arith.addf %1068, %1070 : vector<16x32xf32>
    %cst_397 = arith.constant 5.000000e-01 : f32
    %1072 = vector.broadcast %cst_397 : f32 to vector<16x32xf32>
    %1073 = arith.mulf %1072, %855 : vector<16x32xf32>
    %cst_398 = arith.constant 5.000000e-01 : f32
    %1074 = vector.broadcast %cst_398 : f32 to vector<16x32xf32>
    %1075 = arith.mulf %1074, %1061 : vector<16x32xf32>
    %1076 = arith.addf %1073, %1075 : vector<16x32xf32>
    %c0_399 = arith.constant 0 : index
    %c0_400 = arith.constant 0 : index
    %1077 = vector.load %arg24[%c0_399, %c0_400] : memref<16x16xf32, #tpu.memory_space<vmem>>, vector<16x16xf32>
    %c0_401 = arith.constant 0 : index
    %c0_402 = arith.constant 0 : index
    %1078 = vector.load %arg25[%c0_401, %c0_402] : memref<16x16xf32, #tpu.memory_space<vmem>>, vector<16x16xf32>
    %cst_403 = arith.constant 0.000000e+00 : f32
    %1079 = vector.broadcast %cst_403 : f32 to vector<16x16xf32>
    %1080 = arith.cmpf one, %1077, %1079 : vector<16x16xf32>
    %1081 = arith.extui %1080 : vector<16x16xi1> to vector<16x16xi32>
    %1082 = arith.sitofp %1081 : vector<16x16xi32> to vector<16x16xf32>
    %1083 = tpu.transpose %1066, [1, 0] : vector<16x32xf32> -> vector<32x16xf32>
    %cst_404 = arith.constant dense<0.000000e+00> : vector<16x16xf32>
    %1084 = tpu.matmul %1066, %1083, %cst_404 {dimension_numbers = #tpu.dot_dimension_numbers<[1], [0], [0], [1], [0, 0, 1, 1], [], []>} : vector<16x32xf32>, vector<32x16xf32>, vector<16x16xf32> -> vector<16x16xf32>
    %1085 = arith.subf %1084, %1077 : vector<16x16xf32>
    %1086 = arith.mulf %1085, %1082 : vector<16x16xf32>
    %1087 = arith.mulf %1086, %1086 : vector<16x16xf32>
    %1088 = vector.shape_cast %1087 : vector<16x16xf32> to vector<1x16x16xf32>
    %cst_405 = arith.constant dense<0.000000e+00> : vector<1xf32>
    %1089 = vector.multi_reduction <add>, %1088, %cst_405 [1, 2] : vector<1x16x16xf32> to vector<1xf32>
    %1090 = vector.shape_cast %1089 : vector<1xf32> to vector<1x1x1xf32>
    %1091 = vector.extract %1090[0, 0, 0] : f32 from vector<1x1x1xf32>
    %1092 = vector.shape_cast %1082 : vector<16x16xf32> to vector<1x16x16xf32>
    %cst_406 = arith.constant dense<0.000000e+00> : vector<1xf32>
    %1093 = vector.multi_reduction <add>, %1092, %cst_406 [1, 2] : vector<1x16x16xf32> to vector<1xf32>
    %1094 = vector.shape_cast %1093 : vector<1xf32> to vector<1x1x1xf32>
    %1095 = vector.extract %1094[0, 0, 0] : f32 from vector<1x1x1xf32>
    %cst_407 = arith.constant 1.000000e+00 : f32
    %1096 = arith.maximumf %1095, %cst_407 : f32
    %1097 = arith.divf %1091, %1096 : f32
    %1098 = tpu.transpose %1076, [1, 0] : vector<16x32xf32> -> vector<32x16xf32>
    %cst_408 = arith.constant dense<0.000000e+00> : vector<16x16xf32>
    %1099 = tpu.matmul %1071, %1098, %cst_408 {dimension_numbers = #tpu.dot_dimension_numbers<[1], [0], [0], [1], [0, 0, 1, 1], [], []>} : vector<16x32xf32>, vector<32x16xf32>, vector<16x16xf32> -> vector<16x16xf32>
    %cst_409 = arith.constant dense<0xFF800000> : vector<16xf32>
    %1100 = vector.multi_reduction <maximumf>, %1099, %cst_409 [1] : vector<16x16xf32> to vector<16xf32>
    %1101 = vector.shape_cast %1100 : vector<16xf32> to vector<16x1xf32>
    %1102 = vector.broadcast %1101 : vector<16x1xf32> to vector<16x16xf32>
    %1103 = arith.subf %1099, %1102 : vector<16x16xf32>
    %1104 = math.exp %1103 : vector<16x16xf32>
    %cst_410 = arith.constant dense<0.000000e+00> : vector<16xf32>
    %1105 = vector.multi_reduction <add>, %1104, %cst_410 [1] : vector<16x16xf32> to vector<16xf32>
    %1106 = vector.shape_cast %1105 : vector<16xf32> to vector<16x1xf32>
    %1107 = math.log %1106 : vector<16x1xf32>
    %1108 = vector.broadcast %1107 : vector<16x1xf32> to vector<16x16xf32>
    %1109 = arith.subf %1103, %1108 : vector<16x16xf32>
    %1110 = tpu.transpose %1071, [1, 0] : vector<16x32xf32> -> vector<32x16xf32>
    %cst_411 = arith.constant dense<0.000000e+00> : vector<16x16xf32>
    %1111 = tpu.matmul %1076, %1110, %cst_411 {dimension_numbers = #tpu.dot_dimension_numbers<[1], [0], [0], [1], [0, 0, 1, 1], [], []>} : vector<16x32xf32>, vector<32x16xf32>, vector<16x16xf32> -> vector<16x16xf32>
    %cst_412 = arith.constant dense<0xFF800000> : vector<16xf32>
    %1112 = vector.multi_reduction <maximumf>, %1111, %cst_412 [1] : vector<16x16xf32> to vector<16xf32>
    %1113 = vector.shape_cast %1112 : vector<16xf32> to vector<16x1xf32>
    %1114 = vector.broadcast %1113 : vector<16x1xf32> to vector<16x16xf32>
    %1115 = arith.subf %1111, %1114 : vector<16x16xf32>
    %1116 = math.exp %1115 : vector<16x16xf32>
    %cst_413 = arith.constant dense<0.000000e+00> : vector<16xf32>
    %1117 = vector.multi_reduction <add>, %1116, %cst_413 [1] : vector<16x16xf32> to vector<16xf32>
    %1118 = vector.shape_cast %1117 : vector<16xf32> to vector<16x1xf32>
    %1119 = math.log %1118 : vector<16x1xf32>
    %1120 = vector.broadcast %1119 : vector<16x1xf32> to vector<16x16xf32>
    %1121 = arith.subf %1115, %1120 : vector<16x16xf32>
    %cst_414 = arith.constant 0.000000e+00 : f32
    %1122 = vector.broadcast %cst_414 : f32 to vector<16x16xf32>
    %1123 = arith.cmpf one, %1078, %1122 : vector<16x16xf32>
    %1124 = arith.extui %1123 : vector<16x16xi1> to vector<16x16xi32>
    %1125 = arith.sitofp %1124 : vector<16x16xi32> to vector<16x16xf32>
    %1126 = arith.mulf %1125, %1078 : vector<16x16xf32>
    %1127 = tpu.transpose %1121, [1, 0] : vector<16x16xf32> -> vector<16x16xf32>
    %1128 = arith.addf %1109, %1127 : vector<16x16xf32>
    %1129 = arith.mulf %1126, %1128 : vector<16x16xf32>
    %1130 = vector.shape_cast %1129 : vector<16x16xf32> to vector<1x16x16xf32>
    %cst_415 = arith.constant dense<0.000000e+00> : vector<1xf32>
    %1131 = vector.multi_reduction <add>, %1130, %cst_415 [1, 2] : vector<1x16x16xf32> to vector<1xf32>
    %1132 = vector.shape_cast %1131 : vector<1xf32> to vector<1x1x1xf32>
    %1133 = vector.extract %1132[0, 0, 0] : f32 from vector<1x1x1xf32>
    %cst_416 = arith.constant 0.000000e+00 : f32
    %1134 = arith.subf %cst_416, %1133 : f32
    %1135 = arith.addf %1097, %1134 : f32
    %c0_417 = arith.constant 0 : index
    %c0_418 = arith.constant 0 : index
    %1136 = memref.load %arg26[%c0_417, %c0_418] : memref<1x1xf32, #tpu.memory_space<smem>>
    memref.store %1135, %arg26[%c0_417, %c0_418] : memref<1x1xf32, #tpu.memory_space<smem>>
    return
  }
}

</mosaic_0001>

<bundles_post_ra>
// kernel: read_forward.1
= control target key start
LH: loop header
LB: loop body
LE: loop exit
PB: predicated region body
PF: predicated region fallthrough
CT: control target
= control target key end

     0   :  { %s16964_s0 = inlined_call_operand.vmem [shape: f32[16,9], index: 0, kind: input, shape index: {}]   ;;  %s16965_s1 = inlined_call_operand.vmem [shape: f32[16,270], index: 1, kind: input, shape index: {}]   ;;  %s16966_s2 = inlined_call_operand.vmem [shape: f32[16,270], index: 2, kind: input, shape index: {}]   ;;  %s16967_s3 = inlined_call_operand.vmem [shape: f32[9,32], index: 3, kind: input, shape index: {}]   ;;  %s16968_s4 = inlined_call_operand.vmem [shape: f32[270,32], index: 4, kind: input, shape index: {}]   ;;  %s16969_s5 = inlined_call_operand.vmem [shape: f32[270,32], index: 5, kind: input, shape index: {}]   ;;  %s16970_s6 = inlined_call_operand.hbm [shape: f32[3,1,32], index: 6, kind: input, shape index: {}]   ;;  %s16971_s7 = inlined_call_operand.vmem [shape: f32[3,32,96], index: 7, kind: input, shape index: {}]   ;;  %s16972_s8 = inlined_call_operand.hbm [shape: f32[3,1,96], index: 8, kind: input, shape index: {}]   ;;  %s16973_s9 = inlined_call_operand.vmem [shape: f32[3,32,32], index: 9, kind: input, shape index: {}]   ;;  %s16974_s10 = inlined_call_operand.hbm [shape: f32[3,1,32], index: 10, kind: input, shape index: {}]   ;;  %s16975_s11 = inlined_call_operand.vmem [shape: f32[3,32,32], index: 11, kind: input, shape index: {}]   ;;  %s16976_s12 = inlined_call_operand.vmem [shape: f32[3,32,32], index: 12, kind: input, shape index: {}]   ;;  %s16977_s13 = inlined_call_operand.vmem [shape: f32[2,32,32], index: 13, kind: input, shape index: {}]   ;;  %s16978_s14 = inlined_call_operand.vmem [shape: f32[2,1,32], index: 14, kind: input, shape index: {}]   ;;  %s16979_s15 = inlined_call_operand.hbm [shape: f32[1,1,32], index: 15, kind: input, shape index: {}]   ;;  %s16980_s16 = inlined_call_operand.hbm [shape: f32[1,1,32], index: 16, kind: input, shape index: {}]   ;;  %s16981_s17 = inlined_call_operand.vmem [shape: f32[32,96], index: 17, kind: input, shape index: {}]   ;;  %s16982_s18 = inlined_call_operand.hbm [shape: f32[1,96], index: 18, kind: input, shape index: {}]   ;;  %s16983_s19 = inlined_call_operand.vmem [shape: f32[32,32], index: 19, kind: input, shape index: {}]   ;;  %s16984_s20 = inlined_call_operand.hbm [shape: f32[1,32], index: 20, kind: input, shape index: {}]   ;;  %s16985_s21 = inlined_call_operand.vmem [shape: f32[32,32], index: 21, kind: input, shape index: {}]   ;;  %s16986_s22 = inlined_call_operand.hbm [shape: f32[1,32], index: 22, kind: input, shape index: {}]   ;;  %s16987_s23 = inlined_call_operand.hbm [shape: f32[1,32], index: 23, kind: input, shape index: {}]   ;;  %s16988_s24 = inlined_call_operand.vmem [shape: f32[16,16], index: 24, kind: input, shape index: {}]   ;;  %s16989_s25 = inlined_call_operand.vmem [shape: f32[16,16], index: 25, kind: input, shape index: {}]   ;;  %s16990_s26 = inlined_call_operand.hbm [shape: f32[1,1], index: 26, kind: output, shape index: {}]  }
   0x1   :  { %17044 = sst [smem:[#allocation47_spill]] %s16964_s0 }
   0x2   :  { %17045 = sst [smem:[#allocation48_spill]] %s16965_s1 }
   0x3   :  { %17046 = sst [smem:[#allocation49_spill]] %s16966_s2 }
   0x4   :  { %17047 = sst [smem:[#allocation50_spill]] %s16967_s3 }
   0x5   :  { %17048 = sst [smem:[#allocation51_spill]] %s16968_s4 }
   0x6   :  { %17049 = sst [smem:[#allocation52_spill]] %s16969_s5 }
   0x7   :  { %17050 = sst [smem:[#allocation53_spill]] %s16970_s6 }
   0x8   :  { %17051 = sst [smem:[#allocation54_spill]] %s16971_s7 }
   0x9   :  { %17052 = sst [smem:[#allocation55_spill]] %s16972_s8 }
   0xa   :  { %17053 = sst [smem:[#allocation56_spill]] %s16973_s9 }
   0xb   :  { %17054 = sst [smem:[#allocation57_spill]] %s16974_s10 }
   0xc   :  { %31 = vsyncpa [#allocation3], 0 }
   0xd   :  { %32 = vsyncpa [#allocation6], 0 }
   0xe   :  { %33 = vsyncpa [#allocation9], 0 }
   0xf   :  { %34 = vsyncpa [#allocation12], 0 }
  0x10   :  { %35 = vsyncpa [#allocation15], 0 }
  0x11   :  { %36 = vsyncpa [#allocation4], 0  ;;  %s14489_s27 = smov [#allocation5]   ;;  %s14490_s7 = smov [#allocation8]  }
  0x12   :  { %s68_s3 = sshll.u32 %s14489_s27, 4  ;;  %s103_s28 = sshll.u32 %s14490_s7, 4  ;;  %s69_s3 = int_to_ptr.vmem [resolvable:$true] %s68_s3  ;;  %s14643_s28 = int_to_ptr.vmem [resolvable:$true] %s103_s28 }
  0x13   :  { %s17055_s29 = sld [smem:[#allocation55_spill]] }
  0x19   :  { %s14269_s0 = scalar_lea.hbm %s17055_s29, 48 }
  0x1a   :  { %p14270_p0 = scmp.ne.s32.totalorder %s17055_s29, %s14269_s0  ;;  %p14273_p1 = scmp.lt.u32.totalorder %s14269_s0, %s17055_s29 }
  0x1c   :  { %p14275_p2 = pnand %p14273_p1, %p14270_p0 }
  0x1e   :  { %14278 = shalt.err (!%p14275_p2)
}
  0x1f   :  { %s14279_s10 = scalar_lea.vmem %s69_s3, 48  ;;  %s14283_s6 = scalar_lea.vmem %s69_s3, 64 }
  0x20   :  { %p14280_p3 = scmp.ne.s32.totalorder %s69_s3, %s14279_s10  ;;  %p14284_p4 = scmp.lt.s32.totalorder %s69_s3, %s69_s3 }
  0x21   :  { %p14285_p5 = scmp.lt.s32.totalorder %s14283_s6, %s14279_s10 }
  0x23   :  { %p14286_p6 = por %p14285_p5, %p14284_p4 }
  0x25   :  { %p14287_p7 = pnand %p14286_p6, %p14280_p3 }
  0x27   :  { %14290 = shalt.err (!%p14287_p7)
}
  0x28   :  { %s17002_s1 = smov 16   ;;  %s14492_s27 = smov 1  }
  0x29   :  { %74 = dma.hbm_to_vmem [thread:$0]  %s17055_s29, 48, %s69_s3, [#allocation6], %s17002_s1, %s17002_s1, %s14492_s27  }
  0x2a   :  { %s14291_s9 = scalar_lea.hbm %s16979_s15, 16 }
  0x2b   :  { %p14292_p8 = scmp.ne.s32.totalorder %s16979_s15, %s14291_s9  ;;  %p14295_p9 = scmp.lt.u32.totalorder %s14291_s9, %s16979_s15 }
  0x2d   :  { %p14297_p10 = pnand %p14295_p9, %p14292_p8 }
  0x2f   :  { %14300 = shalt.err (!%p14297_p10)
}
  0x30   :  { %s14301_s6 = scalar_lea.vmem %s14643_s28, 16  ;;  %s14305_s3 = scalar_lea.vmem %s14643_s28, 32 }
  0x31   :  { %p14302_p11 = scmp.ne.s32.totalorder %s14643_s28, %s14301_s6  ;;  %p14306_p12 = scmp.lt.s32.totalorder %s14643_s28, %s14643_s28 }
  0x32   :  { %p14307_p13 = scmp.lt.s32.totalorder %s14305_s3, %s14301_s6 }
  0x34   :  { %p14308_p0 = por %p14307_p13, %p14306_p12 }
  0x36   :  { %p14309_p1 = pnand %p14308_p0, %p14302_p11 }
  0x38   :  { %14312 = shalt.err (!%p14309_p1)
}
  0x39   :  { %106 = dma.hbm_to_vmem [thread:$0]  %s16979_s15, 16, %s14643_s28, [#allocation9]  }
  0x3a   :  { %s14493_s8 = smov [#allocation11]   ;;  %s14494_s0 = smov [#allocation14]  }
  0x3b   :  { %s125_s4 = sshll.u32 %s14493_s8, 4  ;;  %s149_s9 = sshll.u32 %s14494_s0, 4  ;;  %s126_s4 = int_to_ptr.vmem [resolvable:$true] %s125_s4  ;;  %s150_s9 = int_to_ptr.vmem [resolvable:$true] %s149_s9 }
  0x3c   :  { %s14313_s5 = scalar_lea.hbm %s16982_s18, 16 }
  0x3d   :  { %p14314_p2 = scmp.ne.s32.totalorder %s16982_s18, %s14313_s5  ;;  %p14317_p3 = scmp.lt.u32.totalorder %s14313_s5, %s16982_s18 }
  0x3f   :  { %p14319_p4 = pnand %p14317_p3, %p14314_p2 }
  0x41   :  { %14322 = shalt.err (!%p14319_p4)
}
  0x42   :  { %s14323_s15 = scalar_lea.vmem %s126_s4, 16  ;;  %s14327_s28 = scalar_lea.vmem %s126_s4, 32 }
  0x43   :  { %p14324_p5 = scmp.ne.s32.totalorder %s126_s4, %s14323_s15  ;;  %p14328_p6 = scmp.lt.s32.totalorder %s126_s4, %s126_s4 }
  0x44   :  { %p14329_p7 = scmp.lt.s32.totalorder %s14327_s28, %s14323_s15 }
  0x46   :  { %p14330_p8 = por %p14329_p7, %p14328_p6 }
  0x48   :  { %p14331_p9 = pnand %p14330_p8, %p14324_p5 }
  0x4a   :  { %14334 = shalt.err (!%p14331_p9)
}
  0x4b   :  { %128 = dma.hbm_to_vmem [thread:$0]  %s16982_s18, 16, %s126_s4, [#allocation12]  }
  0x4c   :  { %s14335_s30 = scalar_lea.hbm %s16986_s22, 16 }
  0x4d   :  { %p14336_p10 = scmp.ne.s32.totalorder %s16986_s22, %s14335_s30  ;;  %p14339_p11 = scmp.lt.u32.totalorder %s14335_s30, %s16986_s22 }
  0x4f   :  { %p14341_p12 = pnand %p14339_p11, %p14336_p10 }
  0x51   :  { %14344 = shalt.err (!%p14341_p12)
}
  0x52   :  { %s14345_s6 = scalar_lea.vmem %s150_s9, 16  ;;  %s14349_s3 = scalar_lea.vmem %s150_s9, 32 }
  0x53   :  { %p14346_p13 = scmp.ne.s32.totalorder %s150_s9, %s14345_s6  ;;  %p14350_p0 = scmp.lt.s32.totalorder %s150_s9, %s150_s9 }
  0x54   :  { %p14351_p1 = scmp.lt.s32.totalorder %s14349_s3, %s14345_s6 }
  0x56   :  { %p14352_p2 = por %p14351_p1, %p14350_p0 }
  0x58   :  { %p14353_p3 = pnand %p14352_p2, %p14346_p13 }
  0x5a   :  { %14356 = shalt.err (!%p14353_p3)
}
  0x5b   :  { %152 = dma.hbm_to_vmem [thread:$0]  %s16986_s22, 16, %s150_s9, [#allocation15]  }
  0x5c   :  { %s14495_s15 = smov [#allocation2]   ;;  %s14496_s29 = smov [#allocation7]  }
  0x5d   :  { %s54_s28 = sshll.u32 %s14495_s15, 4  ;;  %s82_s7 = sshll.u32 %s14496_s29, 4  ;;  %s55_s28 = int_to_ptr.vmem [resolvable:$true] %s54_s28  ;;  %s14702_s7 = int_to_ptr.vmem [resolvable:$true] %s82_s7 }
  0x5e   :  { %s17056_s30 = sld [smem:[#allocation53_spill]] }
  0x64   :  { %s14357_s1 = scalar_lea.hbm %s17056_s30, 48 }
  0x65   :  { %p14358_p4 = scmp.ne.s32.totalorder %s17056_s30, %s14357_s1  ;;  %p14361_p5 = scmp.lt.u32.totalorder %s14357_s1, %s17056_s30 }
  0x67   :  { %p14363_p6 = pnand %p14361_p5, %p14358_p4 }
  0x69   :  { %14366 = shalt.err (!%p14363_p6)
}
  0x6a   :  { %s14367_s22 = scalar_lea.vmem %s55_s28, 48  ;;  %s14371_s9 = scalar_lea.vmem %s55_s28, 64 }
  0x6b   :  { %p14368_p7 = scmp.ne.s32.totalorder %s55_s28, %s14367_s22  ;;  %p14372_p8 = scmp.lt.s32.totalorder %s55_s28, %s55_s28 }
  0x6c   :  { %p14373_p9 = scmp.lt.s32.totalorder %s14371_s9, %s14367_s22 }
  0x6e   :  { %p14374_p10 = por %p14373_p9, %p14372_p8 }
  0x70   :  { %p14375_p11 = pnand %p14374_p10, %p14368_p7 }
  0x72   :  { %14378 = shalt.err (!%p14375_p11)
}
  0x73   :  { %s17057_s3 = smov 16   ;;  %s17058_s8 = sld [smem:[#allocation57_spill]] }
  0x74   :  { %60 = dma.hbm_to_vmem [thread:$0]  %s17056_s30, 48, %s55_s28, [#allocation3], %s17057_s3, %s17057_s3, %s14492_s27  }
  0x79   :  { %s14379_s0 = scalar_lea.hbm %s17058_s8, 48 }
  0x7a   :  { %p14380_p12 = scmp.ne.s32.totalorder %s17058_s8, %s14379_s0  ;;  %p14383_p13 = scmp.lt.u32.totalorder %s14379_s0, %s17058_s8 }
  0x7c   :  { %p14385_p0 = pnand %p14383_p13, %p14380_p12 }
  0x7e   :  { %14388 = shalt.err (!%p14385_p0)
}
  0x7f   :  { %s14389_s6 = scalar_lea.vmem %s14702_s7, 48  ;;  %s14393_s28 = scalar_lea.vmem %s14702_s7, 64 }
  0x80   :  { %p14390_p1 = scmp.ne.s32.totalorder %s14702_s7, %s14389_s6  ;;  %p14394_p2 = scmp.lt.s32.totalorder %s14702_s7, %s14702_s7 }
  0x81   :  { %p14395_p3 = scmp.lt.s32.totalorder %s14393_s28, %s14389_s6 }
  0x83   :  { %p14396_p4 = por %p14395_p3, %p14394_p2 }
  0x85   :  { %p14397_p5 = pnand %p14396_p4, %p14390_p1 }
  0x87   :  { %14400 = shalt.err (!%p14397_p5)
}
  0x88   :  { %88 = dma.hbm_to_vmem [thread:$0]  %s17058_s8, 48, %s14702_s7, [#allocation6], %s17057_s3, %s17057_s3, %s14492_s27  }
  0x89   :  { %s14497_s9 = smov [#allocation10]   ;;  %s14498_s4 = smov [#allocation13]  }
  0x8a   :  { %s113_s18 = sshll.u32 %s14497_s9, 4  ;;  %s137_s15 = sshll.u32 %s14498_s4, 4  ;;  %s114_s18 = int_to_ptr.vmem [resolvable:$true] %s113_s18  ;;  %s138_s15 = int_to_ptr.vmem [resolvable:$true] %s137_s15 }
  0x8b   :  { %s14401_s1 = scalar_lea.hbm %s16980_s16, 16 }
  0x8c   :  { %p14402_p6 = scmp.ne.s32.totalorder %s16980_s16, %s14401_s1  ;;  %p14405_p7 = scmp.lt.u32.totalorder %s14401_s1, %s16980_s16 }
  0x8e   :  { %p14407_p8 = pnand %p14405_p7, %p14402_p6 }
  0x90   :  { %14410 = shalt.err (!%p14407_p8)
}
  0x91   :  { %s14411_s27 = scalar_lea.vmem %s114_s18, 16  ;;  %s14415_s7 = scalar_lea.vmem %s114_s18, 32 }
  0x92   :  { %p14412_p9 = scmp.ne.s32.totalorder %s114_s18, %s14411_s27  ;;  %p14416_p10 = scmp.lt.s32.totalorder %s114_s18, %s114_s18 }
  0x93   :  { %p14417_p11 = scmp.lt.s32.totalorder %s14415_s7, %s14411_s27 }
  0x95   :  { %p14418_p12 = por %p14417_p11, %p14416_p10 }
  0x97   :  { %p14419_p13 = pnand %p14418_p12, %p14412_p9 }
  0x99   :  { %14422 = shalt.err (!%p14419_p13)
}
  0x9a   :  { %116 = dma.hbm_to_vmem [thread:$0]  %s16980_s16, 16, %s114_s18, [#allocation9]  }
  0x9b   :  { %s14423_s22 = scalar_lea.hbm %s16984_s20, 16 }
  0x9c   :  { %p14424_p0 = scmp.ne.s32.totalorder %s16984_s20, %s14423_s22  ;;  %p14427_p1 = scmp.lt.u32.totalorder %s14423_s22, %s16984_s20 }
  0x9e   :  { %p14429_p2 = pnand %p14427_p1, %p14424_p0 }
  0xa0   :  { %14432 = shalt.err (!%p14429_p2)
}
  0xa1   :  { %s14433_s1 = scalar_lea.vmem %s138_s15, 16  ;;  %s14437_s2 = scalar_lea.vmem %s138_s15, 32 }
  0xa2   :  { %p14434_p3 = scmp.ne.s32.totalorder %s138_s15, %s14433_s1  ;;  %p14438_p4 = scmp.lt.s32.totalorder %s138_s15, %s138_s15 }
  0xa3   :  { %p14439_p5 = scmp.lt.s32.totalorder %s14437_s2, %s14433_s1 }
  0xa5   :  { %p14440_p6 = por %p14439_p5, %p14438_p4 }
  0xa7   :  { %p14441_p7 = pnand %p14440_p6, %p14434_p3 }
  0xa9   :  { %14444 = shalt.err (!%p14441_p7)
}
  0xaa   :  { %140 = dma.hbm_to_vmem [thread:$0]  %s16984_s20, 16, %s138_s15, [#allocation12]  }
  0xab   :  { %s14499_s5 = smov [#allocation16]   ;;  %s14445_s7 = scalar_lea.hbm %s16987_s23, 16 }
  0xac   :  { %s159_s10 = sshll.u32 %s14499_s5, 4  ;;  %p14446_p8 = scmp.ne.s32.totalorder %s16987_s23, %s14445_s7  ;;  %s160_s10 = int_to_ptr.vmem [resolvable:$true] %s159_s10 }
  0xad   :  { %p14449_p9 = scmp.lt.u32.totalorder %s14445_s7, %s16987_s23 }
  0xaf   :  { %p14451_p10 = pnand %p14449_p9, %p14446_p8 }
  0xb1   :  { %14454 = shalt.err (!%p14451_p10)
}
  0xb2   :  { %s14455_s22 = scalar_lea.vmem %s160_s10, 16  ;;  %s14459_s20 = scalar_lea.vmem %s160_s10, 32 }
  0xb3   :  { %p14456_p11 = scmp.ne.s32.totalorder %s160_s10, %s14455_s22  ;;  %p14460_p12 = scmp.lt.s32.totalorder %s160_s10, %s160_s10 }
  0xb4   :  { %p14461_p13 = scmp.lt.s32.totalorder %s14459_s20, %s14455_s22 }
  0xb6   :  { %p14462_p0 = por %p14461_p13, %p14460_p12 }
  0xb8   :  { %p14463_p1 = pnand %p14462_p0, %p14456_p11 }
  0xba   :  { %14466 = shalt.err (!%p14463_p1)
}
  0xbb   :  { %162 = dma.hbm_to_vmem [thread:$0]  %s16987_s23, 16, %s160_s10, [#allocation15]  }
  0xbc   :  { %14477 = dma.done.wait [#allocation3], 48  }
  0xbd   :  { %14478 = vsyncadd [#allocation3], 4294967248 }
  0xbe   :  { %14479 = dma.done.wait [#allocation6], 96  }
  0xbf   :  { %14480 = vsyncadd [#allocation6], 4294967200 }
  0xc0   :  { %14481 = dma.done.wait [#allocation9], 32  }
  0xc1   :  { %14482 = vsyncadd [#allocation9], 4294967264 }
  0xc2   :  { %14483 = dma.done.wait [#allocation12], 32  }
  0xc3   :  { %14484 = vsyncadd [#allocation12], 4294967264 }
  0xc4   :  { %14485 = dma.done.wait [#allocation15], 32  }
  0xc5   :  { %14486 = vsyncadd [#allocation15], 4294967264  ;;  %vm330_vm0 = vcmask 1040384   ;;  %vm323_vm1 = vcmask 72704   ;;  %vm14500_vm2 = vmmov 1   ;;  %s17059_s0 = sld [smem:[#allocation50_spill]]  ;;  %v194_v16 = vlaneseq }
  0xc6   :  { %vm13036_vm3 = vmpackc.low %vm330_vm0, %vm14500_vm2  ;;  %s17060_s18 = sld [smem:[#allocation47_spill]]  ;;  %s17061_s6 = sld [smem:[#allocation54_spill]]  ;;  %v11198_v11 = vld [vmem:[#allocation2] ss:$0 sm:$0xff]  ;;  %vm17043_vm4 = vcmask 261120   ;;  %v17064_v22 = vmov 0 }
  0xc7   :  { %v14809_v17 = vshrl.u32 %v194_v16, 7  ;;  %v14812_v19 = vand.u32 127, %v194_v16  ;;  %v11202_v23 = vld [vmem:[#allocation5] ss:$0 sm:$0xff]  ;;  %v17004_v26 = vmov 0.0   ;;  %s14502_s15 = smov 96   ;;  %vm14852_vm8 = vmpackc.low %vm17043_vm4, %vm17043_vm4 }
  0xc8   :  { %vm17042_vm9 = vcmask 130048   ;;  %s14503_s9 = smov 64   ;;  %vm2991_vm14 = vcmask 1045504   ;;  %s17087_s27 = sld [smem:[#allocation51_spill]]  ;;  %vm2984_vm0 = vcmask 113664  }
  0xc9   :  { %17062 = vst [vmem:[#allocation24_spill] sm:$0xff] %v14809_v17  ;;  %v226_v18 = vadd.s32 1, %v14809_v17  ;;  %17063 = vst [vmem:[#allocation25_spill] sm:$0xff] %v14812_v19  ;;  %v224_v20 = vmul.u32 4, %v14809_v17  ;;  %v506_v24 = vsub.s32 0, %v14809_v17  ;;  %v632_v25 = vsub.s32 1, %v14809_v17 }
  0xca   :  { %v925_v43 = vsub.s32 2, %v14809_v17  ;;  %v1337_v49 = vsub.s32 4, %v14809_v17  ;;  %v1543_v53 = vsub.s32 5, %v14809_v17  ;;  %v1749_v57 = vsub.s32 6, %v14809_v17  ;;  %vm15295_vm15 = vmpackc.low %vm2991_vm14, %vm14500_vm2  ;;  %s17088_s30 = sld [smem:[#allocation48_spill]]  ;;  %s17102_s8 = sld [smem:[#allocation49_spill]] }
  0xcb   :  { %v246_v0 = vld [vmem:[%s17059_s0] sm:$0xff]  ;;  %v247_v1 = vld [vmem:[%s17059_s0 + $0x8] sm:$0x1]  ;;  %v227_v21 = vmul.u32 4, %v226_v18  ;;  %vm225_vm5 = vcmp.ge.s32.totalorder %v14812_v19, %v224_v20  ;;  %s17081_s0 = sld [smem:[#allocation56_spill]]  ;;  %vm2557_vm11 = vcmp.eq.s32.totalorder %v14809_v17, %v14812_v19  ;;  %s14506_s3 = smov 1.0  }
  0xcc   :  { %v232_v2 = vld [vmem:[%s17060_s18] sm:$0xff]  ;;  %v13035_v3 = vpack.c.bf16 %v247_v1, %v246_v0  ;;  %v410_v5 = vld [vmem:[%s17061_s6 + $0x8] sm:$0xff]  ;;  %v411_v8 = vld [vmem:[%s17061_s6 + $0x10] sm:$0xff] }
  0xcd   :  { %12157 = vmatprep.mubr.msk.f32.mxu1 %vm323_vm1, %v232_v2  ;;  %v409_v4 = vld [vmem:[%s17061_s6] sm:$0xff]  ;;  %v233_v7 = vld [vmem:[%s17060_s18 + $0x8] sm:$0xff]  ;;  %v412_v9 = vld [vmem:[%s17061_s6 + $0x18] sm:$0xff]  ;;  %vm228_vm6 = vcmp.lt.s32.totalorder %v14812_v19, %v227_v21 }
  0xce   :  { %v13041_v6 = vpack.c.bf16 %v410_v5, %v409_v4  ;;  %13037 = vmatprep.subr.msk.bf16.mxu1 %vm13036_vm3, %v13035_v3  ;;  %v13045_v10 = vpack.c.bf16 %v412_v9, %v411_v8  ;;  %vm14817_vm7 = vmand %vm225_vm5, %vm228_vm6 }
  0xcf   :  { %13040 = vmatpush3.bf16.msk.msra.mxu1 %vm13036_vm3, %v13035_v3  ;;  %v17065_v22 = vsel %vm14817_vm7, 4294967295, %v17064_v22  ;;  %v14826_v27 = vsel %vm14817_vm7, 1.0, %v17004_v26 }
  0xd0   :  { %13042 = vmatprep.subr.bf16.mxu1 %v13041_v6  ;;  %17066 = vst [vmem:[#allocation26_spill] sm:$0xff] %v17065_v22  ;;  %v14833_v32 = vrot.slane %v14826_v27, %v506_v24  ;;  %v14836_v33 = vrot.slane %v14826_v27, %v632_v25  ;;  %v14878_v45 = vrot.slane %v14826_v27, %v925_v43 }
  0xd1   :  { %v14897_v50 = vrot.slane %v14826_v27, %v1337_v49  ;;  %v14913_v54 = vrot.slane %v14826_v27, %v1543_v53  ;;  %v14929_v58 = vrot.slane %v14826_v27, %v1749_v57 }
  0xd2   :  { %12158 = vmatmul.mubr.msk.f32.vlgmr.msra.gmra.mrb[0].mxu1 %vm323_vm1, %v233_v7  ;;  %17067 = vst [vmem:[#allocation27_spill] sm:$0xff] %v14836_v33  ;;  %17070 = vst [vmem:[#allocation28_spill] sm:$0xff] %v14878_v45 }
  0xd3   :  { %13044 = vmatpush3.bf16.msra.mxu1 %v13041_v6  ;;  %17071 = vst [vmem:[#allocation29_spill] sm:$0xff] %v14913_v54  ;;  %17072 = vst [vmem:[#allocation30_spill] sm:$0xff] %v14929_v58 }
  0xd4   :  { %13046 = vmatprep.subr.bf16.mxu1 %v13045_v10 }
  0xd7   :  { %13048 = vmatpush3.bf16.msra.mxu1 %v13045_v10 }
 0x1a5   :  { %v12159_v12 = vpop.f32.mrb[0].mxu1 }
 0x1a6   :  { %v400_v13 = vpop.f32.mrb[1].mxu1  ;;  %v14803_v15 = vadd.f32 %v12159_v12, %v11198_v11 }
 0x1a7   :  { %v14801_v14 = vadd.f32 %v11198_v11, %v400_v13 }
 0x1a9   :  { %12168 = vmatprep.mubr.msk.f32.mxu1 %vm17043_vm4, %v14801_v14 }
 0x1aa   :  { %12169 = vmatmul.mubr.msk.f32.vlgmr.msra.gmra.mrb[2].mxu1 %vm17043_vm4, %v14803_v15 }
 0x27d   :  { %v12170_v28 = vpop.f32.mrb[2].mxu1 }
 0x27e   :  { %v14828_v29 = vadd.f32 %v12170_v28, %v11202_v23  ;;  %v493_v30 = vpop.f32.mrb[3].mxu1 }
 0x27f   :  { %v14830_v31 = vadd.f32 %v11202_v23, %v493_v30 }
 0x280   :  { %v14875_v44 = vmul.f32 0.5, %v14828_v29 }
 0x281   :  { %v13786_v34 = vpack.i.bf16 %v14828_v29, %v14830_v31  ;;  %v14841_v35 = vmul.f32 0.5, %v14830_v31 }
 0x282   :  { %v509_v46 = vmul.f32 %v14833_v32, %v14875_v44  ;;  %v635_v47 = vmul.f32 %v14836_v33, %v14875_v44  ;;  %v928_v51 = vmul.f32 %v14878_v45, %v14875_v44  ;;  %v1340_v55 = vmul.f32 %v14897_v50, %v14875_v44 }
 0x283   :  { %13787 = vrot.lane.b32.xlu0 %v13786_v34, %s14502_s15  ;;  %v508_v36 = vmul.f32 %v14833_v32, %v14841_v35  ;;  %v634_v37 = vmul.f32 %v14836_v33, %v14841_v35  ;;  %v927_v48 = vmul.f32 %v14878_v45, %v14841_v35  ;;  %v1339_v52 = vmul.f32 %v14897_v50, %v14841_v35 }
 0x284   :  { %v1545_v56 = vmul.f32 %v14913_v54, %v14841_v35  ;;  %v1546_v59 = vmul.f32 %v14913_v54, %v14875_v44  ;;  %v1751_v60 = vmul.f32 %v14929_v58, %v14841_v35  ;;  %v1752_v61 = vmul.f32 %v14929_v58, %v14875_v44 }
 0x285   :  { %12175 = vmatprep.mubr.msk.f32.mxu0 %vm17043_vm4, %v508_v36  ;;  %12182 = vmatprep.mubr.msk.f32.mxu1 %vm17043_vm4, %v634_v37 }
 0x2f5   :  { %v13788_v38 = vpop.permute.xlu0 %13787 }
 0x2f6   :  { %v13790_v39 = vunpack.i.h.bf16 %v13788_v38  ;;  %v13789_v40 = vunpack.i.l.bf16 %v13788_v38 }
 0x2f8   :  { %v14856_v42 = vpack.c.bf16 %v13790_v39, %v13789_v40 }
 0x2fa   :  { %13051 = vmatprep.subr.msk.bf16.mxu0 %vm14852_vm8, %v14856_v42  ;;  %13057 = vmatprep.subr.msk.bf16.mxu1 %vm14852_vm8, %v14856_v42 }
 0x2fb   :  { %13054 = vmatpush3.bf16.xpose.msk.msra.mxu0 %vm14852_vm8, %v14856_v42  ;;  %13060 = vmatpush3.bf16.xpose.msk.msra.mxu1 %vm14852_vm8, %v14856_v42 }
 0x2fc   :  { %13071 = vmatprep.subr.msk.bf16.mxu1 %vm14852_vm8, %v14856_v42 }
 0x302   :  { %12176 = vmatmul.mubr.msk.f32.vlgmr.msra.gmra.mrb[0].mxu0 %vm17043_vm4, %v509_v46  ;;  %12183 = vmatmul.mubr.msk.f32.vlgmr.msra.gmra.mrb[4].mxu1 %vm17043_vm4, %v635_v47 }
 0x303   :  { %13074 = vmatpush3.bf16.xpose.msk.msra.mxu1 %vm14852_vm8, %v14856_v42  ;;  %12203 = vmatprep.mubr.msk.f32.mxu1 %vm17043_vm4, %v927_v48 }
 0x304   :  { %13091 = vmatprep.subr.msk.bf16.mxu1 %vm14852_vm8, %v14856_v42 }
 0x30a   :  { %12204 = vmatmul.mubr.msk.f32.vlgmr.msra.gmra.mrb[6].mxu1 %vm17043_vm4, %v928_v51 }
 0x30b   :  { %13094 = vmatpush3.bf16.xpose.msk.msra.mxu1 %vm14852_vm8, %v14856_v42  ;;  %12231 = vmatprep.mubr.msk.f32.mxu1 %vm17043_vm4, %v1339_v52 }
 0x30c   :  { %13101 = vmatprep.subr.msk.bf16.mxu1 %vm14852_vm8, %v14856_v42 }
 0x312   :  { %12232 = vmatmul.mubr.msk.f32.vlgmr.msra.gmra.mrb[8].mxu1 %vm17043_vm4, %v1340_v55 }
 0x313   :  { %13104 = vmatpush3.bf16.xpose.msk.msra.mxu1 %vm14852_vm8, %v14856_v42  ;;  %12245 = vmatprep.mubr.msk.f32.mxu1 %vm17043_vm4, %v1545_v56 }
 0x314   :  { %13111 = vmatprep.subr.msk.bf16.mxu1 %vm14852_vm8, %v14856_v42 }
 0x31a   :  { %12246 = vmatmul.mubr.msk.f32.vlgmr.msra.gmra.mrb[10].mxu1 %vm17043_vm4, %v1546_v59 }
 0x31b   :  { %13114 = vmatpush3.bf16.xpose.msk.msra.mxu1 %vm14852_vm8, %v14856_v42  ;;  %12259 = vmatprep.mubr.msk.f32.mxu1 %vm17043_vm4, %v1751_v60 }
 0x322   :  { %12260 = vmatmul.mubr.msk.f32.vlgmr.msra.gmra.mrb[12].mxu1 %vm17043_vm4, %v1752_v61 }
 0x3d5   :  { %v12177_v62 = vpop.f32.mrb[0].mxu0  ;;  %v12184_v63 = vpop.f32.mrb[4].mxu1 }
 0x3d6   :  { %v592_v0 = vpop.f32.mrb[1].mxu0  ;;  %v708_v1 = vpop.f32.mrb[5].mxu1  ;;  %v720_v2 = vsel %vm17042_vm9, %v12184_v63, -inf  ;;  %v605_v4 = vsel %vm17042_vm9, %v12177_v62, -inf }
 0x3d7   :  { %721 = vmax.xlane.f32.xlu1 %v720_v2  ;;  %v717_v3 = vsel %vm17042_vm9, %v708_v1, -inf  ;;  %v602_v13 = vsel %vm17042_vm9, %v592_v0, -inf }
 0x3d8   :  { %718 = vmax.xlane.f32.xlu0 %v717_v3 }
 0x3db   :  { %606 = vmax.xlane.f32.xlu1 %v605_v4 }
 0x3dd   :  { %v12205_v5 = vpop.f32.mrb[6].mxu1 }
 0x3de   :  { %v1001_v6 = vpop.f32.mrb[7].mxu1  ;;  %v1013_v16 = vsel %vm17042_vm9, %v12205_v5, -inf }
 0x3df   :  { %v1010_v18 = vsel %vm17042_vm9, %v1001_v6, -inf }
 0x3e5   :  { %v14946_v7 = vpop.f32.mrb[8].mxu1 }
 0x3e6   :  { %v14948_v8 = vpop.f32.mrb[9].mxu1 }
 0x3ec   :  { %740 = vrot.lane.b32.xlu1 %v14836_v33, %s14503_s9 }
 0x3ed   :  { %v14952_v9 = vpop.f32.mrb[10].mxu1 }
 0x3ee   :  { %v14954_v10 = vpop.f32.mrb[11].mxu1  ;;  %625 = vrot.lane.b32.xlu0 %v14833_v32, %s14503_s9 }
 0x3f5   :  { %v14958_v11 = vpop.f32.mrb[12].mxu1 }
 0x3f6   :  { %v14960_v12 = vpop.f32.mrb[13].mxu1 }
 0x410   :  { %603 = vmax.xlane.f32.xlu1 %v602_v13 }
 0x414   :  { %1014 = vmax.xlane.f32.xlu1 %v1013_v16 }
 0x418   :  { %1011 = vmax.xlane.f32.xlu1 %v1010_v18 }
 0x429   :  { %1033 = vrot.lane.b32.xlu1 %v14878_v45, %s14503_s9 }
 0x464   :  { %v722_v20 = vpop.xlane.xlu1 %721 }
 0x465   :  { %v724_v21 = vsub.f32 %v12184_v63, %v722_v20  ;;  %v719_v39 = vpop.xlane.xlu0 %718 }
 0x466   :  { %v723_v40 = vsub.f32 %v708_v1, %v719_v39 }
 0x467   :  { %v727_v23 = vmul.f32 1.442695, %v724_v21 }
 0x468   :  { %v607_v24 = vpop.xlane.xlu1 %606  ;;  %v725_v46 = vmul.f32 1.442695, %v723_v40 }
 0x469   :  { %13931 = vpow2.f32 %v727_v23  ;;  %v609_v38 = vsub.f32 %v12177_v62, %v607_v24  ;;  %v14988_v13 = vpop.permute.xlu0 %625 }
 0x46a   :  { %v628_v18 = vmul.f32 %v14988_v13, %v14830_v31  ;;  %v629_v20 = vmul.f32 %v14988_v13, %v14828_v29 }
 0x46b   :  { %v612_v43 = vmul.f32 1.442695, %v609_v38 }
 0x46c   :  { %v14967_v25 = vpop.permute.xlu1 %740  ;;  %v13796_v23 = vpack.i.bf16 %v629_v20, %v628_v18 }
 0x46d   :  { %v743_v28 = vmul.f32 %v14967_v25, %v14830_v31  ;;  %v744_v30 = vmul.f32 %v14967_v25, %v14828_v29  ;;  %13933 = vpow2.f32 %v612_v43 }
 0x46e   :  { %13935 = vpow2.f32 %v725_v46 }
 0x46f   :  { %v13791_v34 = vpack.i.bf16 %v744_v30, %v743_v28 }
 0x471   :  { %13792 = vrot.lane.b32.xlu1 %v13791_v34, %s14503_s9 }
 0x473   :  { %v13932_v36 = vpop.eup %13931 }
 0x474   :  { %v732_v37 = vsel %vm17042_vm9, %v13932_v36, 0.0 }
 0x475   :  { %733 = vadd.xlane.f32.xlu0 %v732_v37 }
 0x477   :  { %v14975_v47 = vpop.eup %13933 }
 0x478   :  { %v617_v48 = vsel %vm17042_vm9, %v14975_v47, 0.0  ;;  %v13936_v49 = vpop.eup %13935 }
 0x479   :  { %v729_v51 = vsel %vm17042_vm9, %v13936_v49, 0.0 }
 0x495   :  { %618 = vadd.xlane.f32.xlu1 %v617_v48 }
 0x499   :  { %730 = vadd.xlane.f32.xlu1 %v729_v51 }
 0x49d   :  { %v604_v52 = vpop.xlane.xlu1 %603 }
 0x49e   :  { %v608_v53 = vsub.f32 %v592_v0, %v604_v52 }
 0x4a0   :  { %v610_v55 = vmul.f32 1.442695, %v608_v53 }
 0x4a1   :  { %v1015_v56 = vpop.xlane.xlu1 %1014 }
 0x4a2   :  { %13937 = vpow2.f32 %v610_v55  ;;  %v1017_v57 = vsub.f32 %v12205_v5, %v1015_v56 }
 0x4a4   :  { %v1020_v59 = vmul.f32 1.442695, %v1017_v57 }
 0x4a5   :  { %v1012_v60 = vpop.xlane.xlu1 %1011 }
 0x4a6   :  { %13939 = vpow2.f32 %v1020_v59  ;;  %v1016_v61 = vsub.f32 %v1001_v6, %v1012_v60 }
 0x4a8   :  { %v1018_v62 = vmul.f32 1.442695, %v1016_v61 }
 0x4a9   :  { %v14986_v5 = vpop.permute.xlu1 %1033 }
 0x4aa   :  { %13941 = vpow2.f32 %v1018_v62  ;;  %17073 = vst [vmem:[#allocation31_spill] sm:$0xff] %v14986_v5  ;;  %v1036_v6 = vmul.f32 %v14986_v5, %v14830_v31  ;;  %v1037_v16 = vmul.f32 %v14986_v5, %v14828_v29 }
 0x4ac   :  { %v13938_v63 = vpop.eup %13937  ;;  %v13801_v21 = vpack.i.bf16 %v1037_v16, %v1036_v6  ;;  %v1131_v6 = vsub.s32 3, %v14809_v17 }
 0x4ad   :  { %v614_v1 = vsel %vm17042_vm9, %v13938_v63, 0.0 }
 0x4ae   :  { %615 = vadd.xlane.f32.xlu1 %v614_v1  ;;  %v15010_v20 = vrot.slane %v14826_v27, %v1131_v6 }
 0x4b0   :  { %v14981_v2 = vpop.eup %13939  ;;  %17074 = vst [vmem:[#allocation32_spill] sm:$0xff] %v15010_v20 }
 0x4b1   :  { %v1025_v3 = vsel %vm17042_vm9, %v14981_v2, 0.0 }
 0x4b2   :  { %1026 = vadd.xlane.f32.xlu0 %v1025_v3 }
 0x4b4   :  { %v13942_v0 = vpop.eup %13941 }
 0x4b5   :  { %v1022_v4 = vsel %vm17042_vm9, %v13942_v0, 0.0 }
 0x4b6   :  { %1023 = vadd.xlane.f32.xlu1 %v1022_v4 }
 0x4c7   :  { %13802 = vrot.lane.b32.xlu1 %v13801_v21, %s14503_s9  ;;  %v1133_v21 = vmul.f32 %v15010_v20, %v14841_v35 }
 0x4c8   :  { %13797 = vrot.lane.b32.xlu0 %v13796_v23, %s14503_s9 }
 0x4e3   :  { %v13793_v24 = vpop.permute.xlu1 %13792 }
 0x4e4   :  { %v13795_v28 = vunpack.i.h.bf16 %v13793_v24  ;;  %v13794_v30 = vunpack.i.l.bf16 %v13793_v24 }
 0x4e6   :  { %v13061_v34 = vpack.c.bf16 %v13795_v28, %v13794_v30  ;;  %v1422_v30 = vsel %vm17042_vm9, %v14948_v8, -inf }
 0x4e8   :  { %13062 = vmatprep.subr.bf16.mxu0 %v13061_v34 }
 0x4e9   :  { %13064 = vmatpush3.bf16.msra.mxu0 %v13061_v34  ;;  %v1425_v34 = vsel %vm17042_vm9, %v14946_v7, -inf }
 0x502   :  { %v734_v38 = vpop.xlane.xlu0 %733 }
 0x503   :  { %13943 = vrcp.f32 %v734_v38  ;;  %v1631_v38 = vsel %vm17042_vm9, %v14952_v9, -inf }
 0x50d   :  { %v13944_v40 = vpop.eup %13943 }
 0x50e   :  { %v738_v48 = vmul.f32 %v13944_v40, %v13932_v36  ;;  %v1837_v40 = vsel %vm17042_vm9, %v14958_v11, -inf }
 0x522   :  { %v619_v37 = vpop.xlane.xlu1 %618 }
 0x526   :  { %v731_v39 = vpop.xlane.xlu1 %730 }
 0x527   :  { %13945 = vrcp.f32 %v731_v39  ;;  %v1834_v39 = vsel %vm17042_vm9, %v14960_v12, -inf }
 0x531   :  { %v13946_v43 = vpop.eup %13945 }
 0x532   :  { %v737_v46 = vmul.f32 %v13946_v43, %v13936_v49  ;;  %v13811_v43 = vpack.i.bf16 %v14929_v58, %v14913_v54 }
 0x534   :  { %12189 = vmatprep.mubr.msk.f32.mxu0 %vm17042_vm9, %v737_v46  ;;  %v13806_v46 = vpack.i.bf16 %v14897_v50, %v15010_v20 }
 0x535   :  { %12190 = vmatmul.mubr.msk.f32.vlgmr.msra.gmra.mrb[2].mxu0 %vm17042_vm9, %v738_v48 }
 0x53b   :  { %v616_v51 = vpop.xlane.xlu1 %615 }
 0x53c   :  { %13947 = vrcp.f32 %v616_v51 }
 0x53d   :  { %13949 = vrcp.f32 %v619_v37  ;;  %v1628_v37 = vsel %vm17042_vm9, %v14954_v10, -inf }
 0x53f   :  { %v1027_v52 = vpop.xlane.xlu0 %1026 }
 0x543   :  { %v13798_v53 = vpop.permute.xlu0 %13797  ;;  %v1024_v55 = vpop.xlane.xlu1 %1023 }
 0x544   :  { %v13800_v56 = vunpack.i.h.bf16 %v13798_v53  ;;  %v13799_v57 = vunpack.i.l.bf16 %v13798_v53  ;;  %13951 = vrcp.f32 %v1024_v55 }
 0x545   :  { %13953 = vrcp.f32 %v1027_v52 }
 0x546   :  { %v13948_v59 = vpop.eup %13947  ;;  %v13065_v60 = vpack.c.bf16 %v13800_v56, %v13799_v57 }
 0x547   :  { %v13950_v61 = vpop.eup %13949  ;;  %v13803_v62 = vpop.permute.xlu1 %13802  ;;  %v622_v49 = vmul.f32 %v13948_v59, %v13938_v63 }
 0x548   :  { %v13805_v36 = vunpack.i.h.bf16 %v13803_v62  ;;  %v13804_v1 = vunpack.i.l.bf16 %v13803_v62  ;;  %13066 = vmatprep.subr.bf16.mxu0 %v13065_v60  ;;  %v623_v3 = vmul.f32 %v13950_v61, %v14975_v47 }
 0x549   :  { %13068 = vmatpush3.bf16.msra.mxu0 %v13065_v60  ;;  %12196 = vmatprep.mubr.msk.f32.mxu0 %vm17042_vm9, %v622_v49 }
 0x54a   :  { %v13075_v4 = vpack.c.bf16 %v13805_v36, %v13804_v1 }
 0x54c   :  { %12197 = vmatmul.mubr.msk.f32.vlgmr.msra.gmra.mrb[2].mxu0 %vm17042_vm9, %v623_v3  ;;  %13076 = vmatprep.subr.bf16.mxu0 %v13075_v4 }
 0x54d   :  { %13078 = vmatpush3.bf16.msra.mxu0 %v13075_v4 }
 0x54e   :  { %v13952_v16 = vpop.eup %13951  ;;  %13081 = vmatprep.subr.msk.bf16.mxu0 %vm14852_vm8, %v14856_v42 }
 0x54f   :  { %v13954_v63 = vpop.eup %13953  ;;  %v1030_v18 = vmul.f32 %v13952_v16, %v13942_v0  ;;  %v1134_v0 = vmul.f32 %v15010_v20, %v14875_v44 }
 0x550   :  { %v1031_v47 = vmul.f32 %v13954_v63, %v14981_v2 }
 0x551   :  { %12210 = vmatprep.mubr.msk.f32.mxu0 %vm17042_vm9, %v1030_v18 }
 0x554   :  { %12211 = vmatmul.mubr.msk.f32.vlgmr.msra.gmra.mrb[2].mxu0 %vm17042_vm9, %v1031_v47 }
 0x555   :  { %12217 = vmatprep.mubr.msk.f32.mxu0 %vm17043_vm4, %v1133_v21 }
 0x556   :  { %13084 = vmatpush3.bf16.xpose.msk.msra.mxu0 %vm14852_vm8, %v14856_v42 }
 0x55d   :  { %12218 = vmatmul.mubr.msk.f32.vlgmr.msra.gmra.mrb[4].mxu0 %vm17043_vm4, %v1134_v0 }
 0x630   :  { %v12219_v23 = vpop.f32.mrb[4].mxu0 }
 0x631   :  { %v1207_v24 = vpop.f32.mrb[5].mxu0  ;;  %v1219_v2 = vsel %vm17042_vm9, %v12219_v23, -inf }
 0x632   :  { %1220 = vmax.xlane.f32.xlu0 %v1219_v2  ;;  %v1216_v28 = vsel %vm17042_vm9, %v1207_v24, -inf }
 0x633   :  { %1217 = vmax.xlane.f32.xlu1 %v1216_v28 }
 0x636   :  { %1423 = vmax.xlane.f32.xlu0 %v1422_v30 }
 0x637   :  { %1426 = vmax.xlane.f32.xlu1 %v1425_v34 }
 0x63a   :  { %1629 = vmax.xlane.f32.xlu0 %v1628_v37 }
 0x63b   :  { %1632 = vmax.xlane.f32.xlu1 %v1631_v38 }
 0x63e   :  { %1835 = vmax.xlane.f32.xlu0 %v1834_v39 }
 0x63f   :  { %1838 = vmax.xlane.f32.xlu1 %v1837_v40 }
 0x650   :  { %13812 = vrot.lane.b32.xlu1 %v13811_v43, %s14503_s9 }
 0x654   :  { %13807 = vrot.lane.b32.xlu0 %v13806_v46, %s14503_s9 }
 0x6bf   :  { %v1221_v48 = vpop.xlane.xlu0 %1220 }
 0x6c0   :  { %v1218_v51 = vpop.xlane.xlu1 %1217  ;;  %v1223_v57 = vsub.f32 %v12219_v23, %v1221_v48 }
 0x6c1   :  { %v1222_v18 = vsub.f32 %v1207_v24, %v1218_v51 }
 0x6c2   :  { %v1226_v1 = vmul.f32 1.442695, %v1223_v57 }
 0x6c3   :  { %v1424_v52 = vpop.xlane.xlu0 %1423 }
 0x6c4   :  { %v1428_v53 = vsub.f32 %v14948_v8, %v1424_v52  ;;  %v1427_v55 = vpop.xlane.xlu1 %1426 }
 0x6c5   :  { %v1429_v56 = vsub.f32 %v14946_v7, %v1427_v55 }
 0x6c6   :  { %v1430_v59 = vmul.f32 1.442695, %v1428_v53 }
 0x6c7   :  { %v1432_v60 = vmul.f32 1.442695, %v1429_v56  ;;  %v1630_v61 = vpop.xlane.xlu0 %1629 }
 0x6c8   :  { %13955 = vpow2.f32 %v1430_v59  ;;  %v1634_v62 = vsub.f32 %v14954_v10, %v1630_v61  ;;  %v1633_v49 = vpop.xlane.xlu1 %1632 }
 0x6c9   :  { %13957 = vpow2.f32 %v1432_v60  ;;  %v1635_v36 = vsub.f32 %v14952_v9, %v1633_v49  ;;  %v1224_v9 = vmul.f32 1.442695, %v1222_v18 }
 0x6ca   :  { %v1636_v3 = vmul.f32 1.442695, %v1634_v62 }
 0x6cb   :  { %v1638_v4 = vmul.f32 1.442695, %v1635_v36  ;;  %v1836_v6 = vpop.xlane.xlu0 %1835 }
 0x6cc   :  { %13959 = vpow2.f32 %v1636_v3  ;;  %v1840_v8 = vsub.f32 %v14960_v12, %v1836_v6  ;;  %v1839_v16 = vpop.xlane.xlu1 %1838 }
 0x6cd   :  { %13961 = vpow2.f32 %v1638_v4  ;;  %v1841_v7 = vsub.f32 %v14958_v11, %v1839_v16 }
 0x6ce   :  { %13963 = vpow2.f32 %v1226_v1  ;;  %v1842_v63 = vmul.f32 1.442695, %v1840_v8 }
 0x6cf   :  { %v1844_v47 = vmul.f32 1.442695, %v1841_v7  ;;  %v13808_v46 = vpop.permute.xlu0 %13807 }
 0x6d0   :  { %13965 = vpow2.f32 %v1842_v63  ;;  %v15079_v48 = vunpack.i.l.bf16 %v13808_v46  ;;  %v13813_v51 = vpop.permute.xlu1 %13812  ;;  %v15081_v52 = vunpack.i.h.bf16 %v13808_v46 }
 0x6d1   :  { %13967 = vpow2.f32 %v1844_v47  ;;  %v15083_v53 = vunpack.i.l.bf16 %v13813_v51  ;;  %v15089_v57 = vunpack.i.h.bf16 %v13813_v51 }
 0x6d2   :  { %v15050_v10 = vpop.eup %13955  ;;  %13969 = vpow2.f32 %v1224_v9  ;;  %17075 = vst [vmem:[#allocation33_spill] sm:$0xff] %v15079_v48  ;;  %17076 = vst [vmem:[#allocation34_spill] sm:$0xff] %v15081_v52  ;;  %v1242_v55 = vmul.f32 %v15079_v48, %v14830_v31  ;;  %v1243_v56 = vmul.f32 %v15079_v48, %v14828_v29  ;;  %v1448_v59 = vmul.f32 %v15081_v52, %v14830_v31 }
 0x6d3   :  { %v15052_v21 = vpop.eup %13957  ;;  %v1434_v0 = vsel %vm17042_vm9, %v15050_v10, 0.0  ;;  %17077 = vst [vmem:[#allocation35_spill] sm:$0xff] %v15083_v53  ;;  %17078 = vst [vmem:[#allocation36_spill] sm:$0xff] %v15089_v57  ;;  %v1449_v61 = vmul.f32 %v15081_v52, %v14828_v29  ;;  %v1654_v62 = vmul.f32 %v15083_v53, %v14830_v31  ;;  %v1655_v49 = vmul.f32 %v15083_v53, %v14828_v29 }
 0x6d4   :  { %1435 = vadd.xlane.f32.xlu0 %v1434_v0  ;;  %v1437_v12 = vsel %vm17042_vm9, %v15052_v21, 0.0  ;;  %v13816_v60 = vpack.i.bf16 %v1243_v56, %v1242_v55  ;;  %v1860_v3 = vmul.f32 %v15089_v57, %v14830_v31  ;;  %v1861_v4 = vmul.f32 %v15089_v57, %v14828_v29 }
 0x6d5   :  { %1438 = vadd.xlane.f32.xlu1 %v1437_v12  ;;  %v13821_v36 = vpack.i.bf16 %v1449_v61, %v1448_v59  ;;  %v13826_v1 = vpack.i.bf16 %v1655_v49, %v1654_v62 }
 0x6d6   :  { %v15058_v11 = vpop.eup %13959  ;;  %v13831_v6 = vpack.i.bf16 %v1861_v4, %v1860_v3 }
 0x6d7   :  { %v15060_v23 = vpop.eup %13961  ;;  %v1640_v24 = vsel %vm17042_vm9, %v15058_v11, 0.0 }
 0x6d8   :  { %v15064_v2 = vpop.eup %13963  ;;  %1641 = vadd.xlane.f32.xlu0 %v1640_v24  ;;  %v1643_v28 = vsel %vm17042_vm9, %v15060_v23, 0.0 }
 0x6d9   :  { %1644 = vadd.xlane.f32.xlu1 %v1643_v28  ;;  %v1231_v34 = vsel %vm17042_vm9, %v15064_v2, 0.0 }
 0x6da   :  { %v15068_v30 = vpop.eup %13965 }
 0x6db   :  { %v1846_v37 = vsel %vm17042_vm9, %v15068_v30, 0.0  ;;  %v15074_v38 = vpop.eup %13967 }
 0x6dc   :  { %1232 = vadd.xlane.f32.xlu0 %v1231_v34  ;;  %v1849_v39 = vsel %vm17042_vm9, %v15074_v38, 0.0  ;;  %v13970_v40 = vpop.eup %13969 }
 0x6dd   :  { %1847 = vadd.xlane.f32.xlu1 %v1846_v37  ;;  %v1228_v43 = vsel %vm17042_vm9, %v13970_v40, 0.0 }
 0x6e1   :  { %1850 = vadd.xlane.f32.xlu1 %v1849_v39 }
 0x6e5   :  { %1229 = vadd.xlane.f32.xlu1 %v1228_v43 }
 0x6f2   :  { %13817 = vrot.lane.b32.xlu0 %v13816_v60, %s14503_s9 }
 0x6f6   :  { %13822 = vrot.lane.b32.xlu1 %v13821_v36, %s14503_s9  ;;  %13827 = vrot.lane.b32.xlu0 %v13826_v1, %s14503_s9 }
 0x6fa   :  { %13832 = vrot.lane.b32.xlu0 %v13831_v6, %s14503_s9 }
 0x761   :  { %v1436_v8 = vpop.xlane.xlu0 %1435 }
 0x762   :  { %v1439_v16 = vpop.xlane.xlu1 %1438  ;;  %13971 = vrcp.f32 %v1436_v8 }
 0x765   :  { %v1642_v7 = vpop.xlane.xlu0 %1641 }
 0x766   :  { %v1645_v63 = vpop.xlane.xlu1 %1644 }
 0x769   :  { %v1233_v18 = vpop.xlane.xlu0 %1232 }
 0x76a   :  { %v1848_v47 = vpop.xlane.xlu1 %1847  ;;  %13973 = vrcp.f32 %v1233_v18 }
 0x76c   :  { %v13972_v55 = vpop.eup %13971 }
 0x76d   :  { %v13818_v9 = vpop.permute.xlu0 %13817  ;;  %v1442_v36 = vmul.f32 %v13972_v55, %v15050_v10 }
 0x76e   :  { %v13820_v0 = vunpack.i.h.bf16 %v13818_v9  ;;  %v13819_v12 = vunpack.i.l.bf16 %v13818_v9  ;;  %v1851_v24 = vpop.xlane.xlu1 %1850  ;;  %v1955_v9 = vsub.s32 7, %v14809_v17 }
 0x770   :  { %v13085_v28 = vpack.c.bf16 %v13820_v0, %v13819_v12 }
 0x771   :  { %v13828_v51 = vpop.permute.xlu0 %13827 }
 0x772   :  { %13086 = vmatprep.subr.bf16.mxu0 %v13085_v28  ;;  %v1230_v34 = vpop.xlane.xlu1 %1229  ;;  %v13830_v60 = vunpack.i.h.bf16 %v13828_v51  ;;  %v13829_v61 = vunpack.i.l.bf16 %v13828_v51 }
 0x773   :  { %13975 = vrcp.f32 %v1230_v34  ;;  %13088 = vmatpush3.bf16.msra.mxu0 %v13085_v28 }
 0x774   :  { %13977 = vrcp.f32 %v1439_v16  ;;  %v13974_v56 = vpop.eup %13973  ;;  %v13105_v1 = vpack.c.bf16 %v13830_v60, %v13829_v61  ;;  %v2159_v61 = vld [vmem:[%s17081_s0] sm:$0xff] }
 0x775   :  { %13979 = vrcp.f32 %v1642_v7  ;;  %v1237_v49 = vmul.f32 %v13974_v56, %v15064_v2  ;;  %v13833_v3 = vpop.permute.xlu0 %13832 }
 0x776   :  { %v13823_v37 = vpop.permute.xlu1 %13822  ;;  %13981 = vrcp.f32 %v1645_v63  ;;  %v13835_v8 = vunpack.i.h.bf16 %v13833_v3 }
 0x777   :  { %v13825_v39 = vunpack.i.h.bf16 %v13823_v37  ;;  %v13824_v43 = vunpack.i.l.bf16 %v13823_v37  ;;  %13983 = vrcp.f32 %v1848_v47 }
 0x778   :  { %13985 = vrcp.f32 %v1851_v24 }
 0x779   :  { %v13095_v46 = vpack.c.bf16 %v13825_v39, %v13824_v43 }
 0x77b   :  { %13096 = vmatprep.subr.bf16.mxu0 %v13095_v46 }
 0x77d   :  { %v13976_v59 = vpop.eup %13975 }
 0x77e   :  { %v1236_v62 = vmul.f32 %v13976_v59, %v13970_v40  ;;  %v13978_v4 = vpop.eup %13977  ;;  %v13834_v40 = vunpack.i.l.bf16 %v13833_v3 }
 0x77f   :  { %v13980_v6 = vpop.eup %13979  ;;  %v1443_v2 = vmul.f32 %v13978_v4, %v15052_v21 }
 0x780   :  { %12224 = vmatprep.mubr.msk.f32.mxu0 %vm17042_vm9, %v1236_v62  ;;  %v1648_v16 = vmul.f32 %v13980_v6, %v15058_v11  ;;  %v13115_v10 = vpack.c.bf16 %v13835_v8, %v13834_v40  ;;  %v13982_v7 = vpop.eup %13981  ;;  %v15125_v11 = vrot.slane %v14826_v27, %v1955_v9  ;;  %v2160_v62 = vld [vmem:[%s17081_s0 + $0x8] sm:$0xff] }
 0x781   :  { %12225 = vmatmul.mubr.msk.f32.vlgmr.msra.gmra.mrb[2].mxu0 %vm17042_vm9, %v1237_v49  ;;  %v13984_v63 = vpop.eup %13983  ;;  %v1649_v18 = vmul.f32 %v13982_v7, %v15060_v23  ;;  %v2161_v49 = vld [vmem:[%s17081_s0 + $0x10] sm:$0xff]  ;;  %v11255_v9 = vld [vmem:[#allocation7] ss:$0 sm:$0xff] }
 0x782   :  { %13098 = vmatpush3.bf16.msra.mxu0 %v13095_v46  ;;  %12238 = vmatprep.mubr.msk.f32.mxu0 %vm17042_vm9, %v1442_v36  ;;  %v1854_v47 = vmul.f32 %v13984_v63, %v15068_v30  ;;  %v13986_v21 = vpop.eup %13985  ;;  %17079 = vst [vmem:[#allocation37_spill] sm:$0xff] %v15125_v11  ;;  %v1957_v23 = vmul.f32 %v15125_v11, %v14841_v35 }
 0x783   :  { %13106 = vmatprep.subr.bf16.mxu0 %v13105_v1  ;;  %v1855_v0 = vmul.f32 %v13986_v21, %v15074_v38  ;;  %v1958_v30 = vmul.f32 %v15125_v11, %v14875_v44  ;;  %v13129_v36 = vpack.c.bf16 %v2160_v62, %v2159_v61  ;;  %v2370_v61 = vld [vmem:[%s16976_s12 + $0x18] sm:$0xff] }
 0x785   :  { %13130 = vmatprep.subr.bf16.mxu1 %v13129_v36 }
 0x786   :  { %13132 = vmatpush3.bf16.msra.mxu1 %v13129_v36  ;;  %v2284_v36 = vld [vmem:[%s16975_s11 + $0x10] sm:$0xff] }
 0x789   :  { %12239 = vmatmul.mubr.msk.f32.vlgmr.msra.gmra.mrb[2].mxu0 %vm17042_vm9, %v1443_v2 }
 0x78a   :  { %13108 = vmatpush3.bf16.msra.mxu0 %v13105_v1  ;;  %12252 = vmatprep.mubr.msk.f32.mxu0 %vm17042_vm9, %v1648_v16 }
 0x78b   :  { %13116 = vmatprep.subr.bf16.mxu0 %v13115_v10 }
 0x791   :  { %12253 = vmatmul.mubr.msk.f32.vlgmr.msra.gmra.mrb[2].mxu0 %vm17042_vm9, %v1649_v18 }
 0x792   :  { %13118 = vmatpush3.bf16.msra.mxu0 %v13115_v10  ;;  %12266 = vmatprep.mubr.msk.f32.mxu0 %vm17042_vm9, %v1854_v47 }
 0x793   :  { %13121 = vmatprep.subr.msk.bf16.mxu0 %vm14852_vm8, %v14856_v42 }
 0x799   :  { %12267 = vmatmul.mubr.msk.f32.vlgmr.msra.gmra.mrb[2].mxu0 %vm17042_vm9, %v1855_v0 }
 0x79a   :  { %12273 = vmatprep.mubr.msk.f32.mxu0 %vm17043_vm4, %v1957_v23 }
 0x79b   :  { %13124 = vmatpush3.bf16.xpose.msk.msra.mxu0 %vm14852_vm8, %v14856_v42 }
 0x7a2   :  { %12274 = vmatmul.mubr.msk.f32.vlgmr.msra.gmra.mrb[6].mxu0 %vm17043_vm4, %v1958_v30 }
 0x875   :  { %v12275_v27 = vpop.f32.mrb[6].mxu0 }
 0x876   :  { %v2031_v12 = vpop.f32.mrb[7].mxu0  ;;  %v2043_v38 = vsel %vm17042_vm9, %v12275_v27, -inf }
 0x877   :  { %2044 = vmax.xlane.f32.xlu0 %v2043_v38  ;;  %v2040_v35 = vsel %vm17042_vm9, %v2031_v12, -inf }
 0x878   :  { %2041 = vmax.xlane.f32.xlu1 %v2040_v35 }
 0x88d   :  { %2063 = vrot.lane.b32.xlu0 %v15125_v11, %s14503_s9 }
 0x904   :  { %v2045_v24 = vpop.xlane.xlu0 %2044 }
 0x905   :  { %v2047_v28 = vsub.f32 %v12275_v27, %v2045_v24  ;;  %v2042_v34 = vpop.xlane.xlu1 %2041 }
 0x906   :  { %v2046_v42 = vsub.f32 %v2031_v12, %v2042_v34 }
 0x907   :  { %v2050_v37 = vmul.f32 1.442695, %v2047_v28 }
 0x908   :  { %v2048_v39 = vmul.f32 1.442695, %v2046_v42  ;;  %v15144_v55 = vpop.permute.xlu0 %2063 }
 0x909   :  { %13987 = vpow2.f32 %v2050_v37  ;;  %17080 = vst [vmem:[#allocation38_spill] sm:$0xff] %v15144_v55  ;;  %v2066_v56 = vmul.f32 %v15144_v55, %v14830_v31  ;;  %v2067_v59 = vmul.f32 %v15144_v55, %v14828_v29  ;;  %v2162_v29 = vld [vmem:[%s17081_s0 + $0x18] sm:$0xff] }
 0x90a   :  { %13989 = vpow2.f32 %v2048_v39  ;;  %v13133_v31 = vpack.c.bf16 %v2162_v29, %v2161_v49  ;;  %v2285_v29 = vld [vmem:[%s16975_s11 + $0x18] sm:$0xff] }
 0x90b   :  { %v13836_v60 = vpack.i.bf16 %v2067_v59, %v2066_v56  ;;  %v2283_v59 = vld [vmem:[%s16975_s11 + $0x8] sm:$0xff] }
 0x90c   :  { %13134 = vmatprep.subr.bf16.mxu1 %v13133_v31 }
 0x90d   :  { %13136 = vmatpush3.bf16.msra.mxu1 %v13133_v31  ;;  %v13141_v31 = vpack.c.bf16 %v2285_v29, %v2284_v36  ;;  %v15234_v29 = vadd.s32 8, %v14809_v17 }
 0x90f   :  { %17082 = vst [vmem:[#allocation39_spill] sm:$0xff] %v15234_v29  ;;  %vm2558_vm10 = vcmp.eq.s32.totalorder %v15234_v29, %v14812_v19 }
 0x913   :  { %v13988_v44 = vpop.eup %13987 }
 0x914   :  { %v2055_v43 = vsel %vm17042_vm9, %v13988_v44, 0.0  ;;  %v13990_v46 = vpop.eup %13989 }
 0x915   :  { %2056 = vadd.xlane.f32.xlu1 %v2055_v43  ;;  %v2052_v51 = vsel %vm17042_vm9, %v13990_v46, 0.0  ;;  %v2367_v43 = vld [vmem:[%s16976_s12] sm:$0xff] }
 0x919   :  { %2053 = vadd.xlane.f32.xlu1 %v2052_v51  ;;  %v2282_v51 = vld [vmem:[%s16975_s11] sm:$0xff] }
 0x91a   :  { %v13137_v62 = vpack.c.bf16 %v2283_v59, %v2282_v51 }
 0x91c   :  { %13138 = vmatprep.subr.bf16.mxu1 %v13137_v62 }
 0x92a   :  { %13837 = vrot.lane.b32.xlu1 %v13836_v60, %s14503_s9  ;;  %v2369_v60 = vld [vmem:[%s16976_s12 + $0x10] sm:$0xff] }
 0x92b   :  { %v13149_v49 = vpack.c.bf16 %v2370_v61, %v2369_v60 }
 0x9a2   :  { %v2057_v1 = vpop.xlane.xlu1 %2056 }
 0x9a3   :  { %13991 = vrcp.f32 %v2057_v1  ;;  %v2575_v1 = vld [vmem:[%s16977_s13] sm:$0xff] }
 0x9a6   :  { %v2054_v3 = vpop.xlane.xlu1 %2053 }
 0x9a7   :  { %13993 = vrcp.f32 %v2054_v3  ;;  %v2576_v3 = vld [vmem:[%s16977_s13 + $0x8] sm:$0xff] }
 0x9aa   :  { %v13838_v4 = vpop.permute.xlu1 %13837 }
 0x9ab   :  { %v13840_v6 = vunpack.i.h.bf16 %v13838_v4  ;;  %v13839_v8 = vunpack.i.l.bf16 %v13838_v4  ;;  %v15203_v4 = vpack.c.bf16 %v2576_v3, %v2575_v1  ;;  %v15241_v1 = vsel %vm2558_vm10, 1.0, %v17004_v26 }
 0x9ad   :  { %v13125_v40 = vpack.c.bf16 %v13840_v6, %v13839_v8  ;;  %v13992_v2 = vpop.eup %13991 }
 0x9ae   :  { %v2061_v7 = vmul.f32 %v13992_v2, %v13988_v44 }
 0x9af   :  { %13126 = vmatprep.subr.bf16.mxu0 %v13125_v40 }
 0x9b0   :  { %13128 = vmatpush3.bf16.msra.mxu0 %v13125_v40 }
 0x9b1   :  { %v13994_v16 = vpop.eup %13993 }
 0x9b2   :  { %v2060_v10 = vmul.f32 %v13994_v16, %v13990_v46  ;;  %v2368_v46 = vld [vmem:[%s16976_s12 + $0x8] sm:$0xff] }
 0x9b3   :  { %v13145_v56 = vpack.c.bf16 %v2368_v46, %v2367_v43 }
 0x9b4   :  { %12280 = vmatprep.mubr.msk.f32.mxu0 %vm17042_vm9, %v2060_v10 }
 0x9b5   :  { %12281 = vmatmul.mubr.msk.f32.vlgmr.msra.gmra.mrb[2].mxu0 %vm17042_vm9, %v2061_v7  ;;  %13146 = vmatprep.subr.bf16.mxu0 %v13145_v56 }
 0x9b6   :  { %13148 = vmatpush3.bf16.msra.mxu0 %v13145_v56 }
 0x9b7   :  { %13150 = vmatprep.subr.bf16.mxu0 %v13149_v49 }
 0x9ba   :  { %13152 = vmatpush3.bf16.msra.mxu0 %v13149_v49 }
 0x9bb   :  { %13160 = vmatprep.subr.bf16.mxu0 %v15203_v4 }
 0xa88   :  { %v12282_v63 = vpop.f32.mrb[2].mxu0 }
 0xa89   :  { %v2148_v18 = vpop.f32.mrb[3].mxu0 }
 0xa8a   :  { %12291 = vmatprep.mubr.msk.f32.mxu1 %vm17043_vm4, %v2148_v18  ;;  %v2577_v18 = vld [vmem:[%s16977_s13 + $0x10] sm:$0xff] }
 0xa8b   :  { %12292 = vmatmul.mubr.msk.f32.vlgmr.msra.gmra.mrb[14].mxu1 %vm17043_vm4, %v12282_v63 }
 0xa8c   :  { %13140 = vmatpush3.bf16.msra.mxu1 %v13137_v62 }
 0xa8d   :  { %13142 = vmatprep.subr.bf16.mxu1 %v13141_v31 }
 0xa90   :  { %13144 = vmatpush3.bf16.msra.mxu1 %v13141_v31 }
 0xb5e   :  { %v12293_v47 = vpop.f32.mrb[14].mxu1 }
 0xb5f   :  { %v2245_v21 = vadd.f32 %v12293_v47, %v14803_v15  ;;  %v2235_v0 = vpop.f32.mrb[15].mxu1  ;;  %v2578_v47 = vld [vmem:[%s16977_s13 + $0x18] sm:$0xff] }
 0xb60   :  { %v2244_v23 = vadd.f32 %v2235_v0, %v14801_v14  ;;  %v15214_v0 = vpack.c.bf16 %v2578_v47, %v2577_v18 }
 0xb61   :  { %v2254_v30 = vadd.f32 %v11255_v9, %v2245_v21 }
 0xb62   :  { %v2253_v27 = vadd.f32 %v11255_v9, %v2244_v23 }
 0xb63   :  { %v2258_v12 = vsel %vm17043_vm4, %v2254_v30, 0.0 }
 0xb64   :  { %2259 = vadd.xlane.f32.xlu1 %v2258_v12  ;;  %v2255_v38 = vsel %vm17043_vm4, %v2253_v27, 0.0 }
 0xb65   :  { %2256 = vadd.xlane.f32.xlu0 %v2255_v38 }
 0xbf1   :  { %v2260_v35 = vpop.xlane.xlu1 %2259 }
 0xbf2   :  { %v2263_v24 = vmul.f32 0.03125, %v2260_v35  ;;  %v2257_v28 = vpop.xlane.xlu0 %2256 }
 0xbf3   :  { %v2262_v34 = vmul.f32 0.03125, %v2257_v28 }
 0xbf4   :  { %v2265_v42 = vsub.f32 %v2254_v30, %v2263_v24 }
 0xbf5   :  { %v2264_v37 = vsub.f32 %v2253_v27, %v2262_v34 }
 0xbf6   :  { %v2267_v44 = vmul.f32 %v2265_v42, %v2265_v42 }
 0xbf7   :  { %v2266_v39 = vmul.f32 %v2264_v37, %v2264_v37 }
 0xbf8   :  { %v2271_v14 = vsel %vm17043_vm4, %v2267_v44, 0.0 }
 0xbf9   :  { %v2268_v15 = vsel %vm17043_vm4, %v2266_v39, 0.0 }
 0xbfa   :  { %2269 = vadd.xlane.f32.xlu0 %v2268_v15 }
 0xbfe   :  { %2272 = vadd.xlane.f32.xlu0 %v2271_v14 }
 0xc87   :  { %v2270_v6 = vpop.xlane.xlu0 %2269 }
 0xc88   :  { %v2274_v8 = vmul.f32 0.03125, %v2270_v6 }
 0xc8a   :  { %v2276_v40 = vadd.f32 1e-05, %v2274_v8  ;;  %v15244_v8 = vsel %vm2557_vm11, 1.0, %v17004_v26 }
 0xc8b   :  { %v2273_v2 = vpop.xlane.xlu0 %2272 }
 0xc8c   :  { %13995 = vrsqrt.f32 %v2276_v40  ;;  %v2275_v16 = vmul.f32 0.03125, %v2273_v2 }
 0xc8e   :  { %v2277_v10 = vadd.f32 1e-05, %v2275_v16 }
 0xc90   :  { %13997 = vrsqrt.f32 %v2277_v10 }
 0xc96   :  { %v13996_v7 = vpop.eup %13995 }
 0xc97   :  { %v2280_v63 = vmul.f32 %v13996_v7, %v2264_v37 }
 0xc99   :  { %12302 = vmatprep.mubr.msk.f32.mxu1 %vm17043_vm4, %v2280_v63  ;;  %12313 = vmatprep.mubr.msk.f32.mxu0 %vm17043_vm4, %v2280_v63 }
 0xc9a   :  { %v13998_v9 = vpop.eup %13997 }
 0xc9b   :  { %v2281_v21 = vmul.f32 %v13998_v9, %v2265_v42 }
 0xc9d   :  { %12303 = vmatmul.mubr.msk.f32.vlgmr.msra.gmra.mrb[16].mxu1 %vm17043_vm4, %v2281_v21  ;;  %12314 = vmatmul.mubr.msk.f32.vlgmr.msra.gmra.mrb[8].mxu0 %vm17043_vm4, %v2281_v21 }
 0xc9e   :  { %13162 = vmatpush3.bf16.msra.mxu0 %v15203_v4  ;;  %12331 = vmatprep.mubr.msk.f32.mxu0 %vm17043_vm4, %v2280_v63 }
 0xc9f   :  { %13164 = vmatprep.subr.bf16.mxu0 %v15214_v0 }
 0xca2   :  { %13166 = vmatpush3.bf16.msra.mxu0 %v15214_v0 }
 0xca5   :  { %12332 = vmatmul.mubr.msk.f32.vlgmr.msra.gmra.mrb[10].mxu0 %vm17043_vm4, %v2281_v21 }
 0xd70   :  { %v12304_v23 = vpop.f32.mrb[16].mxu1  ;;  %v12315_v30 = vpop.f32.mrb[8].mxu0 }
 0xd71   :  { %v2358_v27 = vpop.f32.mrb[17].mxu1  ;;  %v2437_v12 = vpop.f32.mrb[9].mxu0 }
 0xd72   :  { %v13153_v38 = vpack.c.bf16 %v12315_v30, %v2437_v12  ;;  %12320 = vmatprep.mubr.msk.f32.mxu1 %vm17043_vm4, %v2358_v27 }
 0xd74   :  { %13155 = vmatprep.subr.msk.bf16.mxu1 %vm14852_vm8, %v13153_v38 }
 0xd75   :  { %13158 = vmatpush3.bf16.xpose.msk.msra.mxu1 %vm14852_vm8, %v13153_v38  ;;  %v11273_v38 = vld [vmem:[%s16977_s13 + $0x20] sm:$0xff] }
 0xd78   :  { %v12333_v35 = vpop.f32.mrb[10].mxu0 }
 0xd79   :  { %v2645_v24 = vpop.f32.mrb[11].mxu0 }
 0xd7c   :  { %12321 = vmatmul.mubr.msk.f32.vlgmr.msra.gmra.mrb[18].mxu1 %vm17043_vm4, %v12304_v23 }
 0xe4f   :  { %v12322_v28 = vpop.f32.mrb[18].mxu1 }
 0xe50   :  { %v2534_v34 = vmax.f32 %v12322_v28, 0.0  ;;  %v2524_v42 = vpop.f32.mrb[19].mxu1  ;;  %v11274_v28 = vld [vmem:[%s16977_s13 + $0x28] sm:$0xff] }
 0xe51   :  { %v2533_v37 = vmax.f32 %v2524_v42, 0.0 }
 0xe52   :  { %v2538_v39 = vsel %vm17042_vm9, %v2534_v34, -inf }
 0xe53   :  { %2539 = vmax.xlane.f32.xlu1 %v2538_v39  ;;  %v2535_v15 = vsel %vm17042_vm9, %v2533_v37, -inf  ;;  %v11270_v39 = vld [vmem:[%s16978_s14] ss:$0 sm:$0xff] }
 0xe54   :  { %2536 = vmax.xlane.f32.xlu0 %v2535_v15 }
 0xee0   :  { %v2540_v44 = vpop.xlane.xlu1 %2539 }
 0xee1   :  { %v2542_v14 = vsub.f32 %v2534_v34, %v2540_v44  ;;  %v2537_v43 = vpop.xlane.xlu0 %2536  ;;  %v11276_v34 = vld [vmem:[%s16977_s13 + $0x38] sm:$0xff] }
 0xee2   :  { %v2541_v46 = vsub.f32 %v2533_v37, %v2537_v43 }
 0xee3   :  { %v2545_v51 = vmul.f32 1.442695, %v2542_v14 }
 0xee4   :  { %v2543_v56 = vmul.f32 1.442695, %v2541_v46 }
 0xee5   :  { %13999 = vpow2.f32 %v2545_v51 }
 0xee6   :  { %14001 = vpow2.f32 %v2543_v56 }
 0xeef   :  { %v14000_v59 = vpop.eup %13999 }
 0xef0   :  { %v14002_v60 = vpop.eup %14001  ;;  %v2550_v61 = vsel %vm17042_vm9, %v14000_v59, 0.0 }
 0xef1   :  { %2551 = vadd.xlane.f32.xlu1 %v2550_v61  ;;  %v2547_v62 = vsel %vm17042_vm9, %v14002_v60, 0.0 }
 0xef2   :  { %2548 = vadd.xlane.f32.xlu0 %v2547_v62 }
 0xf7e   :  { %v2552_v49 = vpop.xlane.xlu1 %2551 }
 0xf7f   :  { %14003 = vrcp.f32 %v2552_v49  ;;  %v2549_v36 = vpop.xlane.xlu0 %2548 }
 0xf80   :  { %14005 = vrcp.f32 %v2549_v36 }
 0xf89   :  { %v14004_v31 = vpop.eup %14003 }
 0xf8a   :  { %v14006_v3 = vpop.eup %14005  ;;  %v2556_v6 = vmul.f32 %v14004_v31, %v14000_v59 }
 0xf8b   :  { %v2555_v40 = vmul.f32 %v14006_v3, %v14002_v60 }
 0xf8c   :  { %v15247_v2 = vadd.f32 %v15241_v1, %v2556_v6 }
 0xf8d   :  { %v2563_v16 = vadd.f32 %v15244_v8, %v2555_v40 }
 0xf8e   :  { %v2568_v10 = vsel %vm17042_vm9, %v15247_v2, 0.0 }
 0xf8f   :  { %2569 = vadd.xlane.f32.xlu1 %v2568_v10  ;;  %12338 = vmatprep.mubr.msk.f32.mxu1 %vm17042_vm9, %v2563_v16  ;;  %v2565_v7 = vsel %vm17042_vm9, %v2563_v16, 0.0 }
 0xf90   :  { %2566 = vadd.xlane.f32.xlu0 %v2565_v7 }
0x101c   :  { %v2570_v63 = vpop.xlane.xlu1 %2569 }
0x101d   :  { %v2572_v18 = vmax.f32 %v2570_v63, 1e-12  ;;  %v2567_v47 = vpop.xlane.xlu0 %2566 }
0x101e   :  { %v2571_v9 = vmax.f32 %v2567_v47, 1e-12 }
0x101f   :  { %14007 = vrsqrt.f32 %v2572_v18 }
0x1020   :  { %14009 = vrsqrt.f32 %v2571_v9 }
0x1029   :  { %v15254_v21 = vpop.eup %14007 }
0x102a   :  { %17083 = vst [vmem:[#allocation40_spill] sm:$0xff] %v15254_v21  ;;  %v15256_v23 = vpop.eup %14009  ;;  %v2655_v30 = vmul.f32 %v15254_v21, %v12333_v35  ;;  %v11275_v35 = vld [vmem:[%s16977_s13 + $0x30] sm:$0xff] }
0x102b   :  { %17084 = vst [vmem:[#allocation41_spill] sm:$0xff] %v15256_v23  ;;  %v2654_v27 = vmul.f32 %v15256_v23, %v2645_v24  ;;  %v15272_v24 = vpack.c.bf16 %v11274_v28, %v11273_v38  ;;  %v15277_v42 = vpack.c.bf16 %v11276_v34, %v11275_v35 }
0x102d   :  { %v13167_v12 = vpack.c.bf16 %v2655_v30, %v2654_v27  ;;  %13172 = vmatprep.subr.bf16.mxu0 %v15272_v24 }
0x102e   :  { %13174 = vmatpush3.bf16.msra.mxu0 %v15272_v24 }
0x102f   :  { %13168 = vmatprep.subr.bf16.mxu1 %v13167_v12  ;;  %13176 = vmatprep.subr.bf16.mxu0 %v15277_v42 }
0x1030   :  { %13170 = vmatpush3.bf16.msra.mxu1 %v13167_v12 }
0x1032   :  { %13178 = vmatpush3.bf16.msra.mxu0 %v15277_v42 }
0x1033   :  { %12339 = vmatmul.mubr.msk.f32.vlgmr.msra.gmra.mrb[20].mxu1 %vm17042_vm9, %v15247_v2 }
0x1034   :  { %12356 = vmatprep.mubr.msk.f32.mxu1 %vm17042_vm9, %v2563_v16 }
0x1106   :  { %v12340_v37 = vpop.f32.mrb[20].mxu1 }
0x1107   :  { %v2738_v15 = vmul.f32 %v15254_v21, %v12340_v37  ;;  %v2728_v44 = vpop.f32.mrb[21].mxu1  ;;  %v11271_v37 = vld [vmem:[#allocation8] ss:$0 sm:$0xff] }
0x1108   :  { %v2737_v14 = vmul.f32 %v15256_v23, %v2728_v44  ;;  %v11272_v44 = vld [vmem:[#allocation10] ss:$0 sm:$0xff] }
0x1109   :  { %v2747_v43 = vadd.f32 %v11270_v39, %v2738_v15 }
0x110a   :  { %v2746_v46 = vadd.f32 %v11270_v39, %v2737_v14 }
0x110b   :  { %v2749_v51 = vsel %vm17043_vm4, %v2747_v43, 0.0 }
0x110c   :  { %v2748_v56 = vsel %vm17043_vm4, %v2746_v46, 0.0 }
0x110d   :  { %v2750_v59 = vadd.f32 %v2749_v51, %v2748_v56 }
0x110f   :  { %v2751_v60 = vrot.slane %v2750_v59, 4 }
0x1111   :  { %v2752_v61 = vadd.f32 %v2751_v60, %v2750_v59 }
0x1113   :  { %v2753_v62 = vrot.slane %v2752_v61, 2 }
0x1115   :  { %v2754_v49 = vadd.f32 %v2753_v62, %v2752_v61 }
0x1117   :  { %v2755_v36 = vrot.slane %v2754_v49, 1 }
0x1119   :  { %v2756_v31 = vadd.f32 %v2755_v36, %v2754_v49  ;;  %v280_v49 = vld [vmem:[%s17087_s27 + $0x100] sm:$0xff]  ;;  %v281_v36 = vld [vmem:[%s17087_s27 + $0x108] sm:$0x3f] }
0x111b   :  { %v2758_v3 = vmul.f32 0.0625, %v2756_v31  ;;  %v13215_v31 = vpack.c.bf16 %v281_v36, %v280_v49  ;;  %v255_v49 = vld [vmem:[%s17087_s27 + $0x38] sm:$0xff]  ;;  %v272_v36 = vld [vmem:[%s17087_s27 + $0xc0] sm:$0xff] }
0x111d   :  { %v2759_v6 = vsub.f32 %v2746_v46, %v2758_v3  ;;  %v2760_v40 = vsub.f32 %v2747_v43, %v2758_v3  ;;  %v236_v3 = vld [vmem:[%s17088_s30 + $0x10] sm:$0xff]  ;;  %13217 = vmatprep.subr.msk.bf16.mxu0 %vm15295_vm15, %v13215_v31 }
0x111f   :  { %v2761_v16 = vmul.f32 %v2759_v6, %v2759_v6  ;;  %v2762_v10 = vmul.f32 %v2760_v40, %v2760_v40 }
0x1121   :  { %v2763_v7 = vsel %vm17043_vm4, %v2761_v16, 0.0  ;;  %v2764_v63 = vsel %vm17043_vm4, %v2762_v10, 0.0 }
0x1122   :  { %v2765_v18 = vadd.f32 %v2764_v63, %v2763_v7  ;;  %v264_v7 = vld [vmem:[%s17087_s27 + $0x80] sm:$0xff]  ;;  %v265_v63 = vld [vmem:[%s17087_s27 + $0x88] sm:$0xff] }
0x1124   :  { %v2766_v47 = vrot.slane %v2765_v18, 4 }
0x1126   :  { %v2767_v9 = vadd.f32 %v2766_v47, %v2765_v18 }
0x1128   :  { %v2768_v30 = vrot.slane %v2767_v9, 2 }
0x112a   :  { %v2769_v27 = vadd.f32 %v2768_v30, %v2767_v9  ;;  %v13183_v9 = vpack.c.bf16 %v265_v63, %v264_v7  ;;  %v248_v30 = vld [vmem:[%s17087_s27] sm:$0xff]  ;;  %v275_v7 = vld [vmem:[%s17087_s27 + $0xd8] sm:$0xff] }
0x112c   :  { %v2770_v12 = vrot.slane %v2769_v27, 1 }
0x112e   :  { %v2771_v38 = vadd.f32 %v2770_v12, %v2769_v27  ;;  %v249_v27 = vld [vmem:[%s17087_s27 + $0x8] sm:$0xff]  ;;  %v266_v12 = vld [vmem:[%s17087_s27 + $0x90] sm:$0xff] }
0x1130   :  { %v2772_v28 = vmul.f32 0.0625, %v2771_v38  ;;  %v267_v38 = vld [vmem:[%s17087_s27 + $0x98] sm:$0xff] }
0x1132   :  { %v2773_v35 = vadd.f32 1e-05, %v2772_v28  ;;  %v13185_v28 = vpack.c.bf16 %v249_v27, %v248_v30  ;;  %v276_v30 = vld [vmem:[%s17087_s27 + $0xe0] sm:$0xff]  ;;  %v277_v27 = vld [vmem:[%s17087_s27 + $0xe8] sm:$0xff] }
0x1134   :  { %14011 = vrsqrt.f32 %v2773_v35  ;;  %v13187_v35 = vpack.c.bf16 %v267_v38, %v266_v12  ;;  %v13207_v38 = vpack.c.bf16 %v277_v27, %v276_v30 }
0x113e   :  { %v14012_v34 = vpop.eup %14011 }
0x113f   :  { %v2775_v39 = vmul.f32 %v14012_v34, %v2759_v6  ;;  %v2776_v15 = vmul.f32 %v14012_v34, %v2760_v40  ;;  %v239_v6 = vld [vmem:[%s17088_s30 + $0x28] sm:$0xff]  ;;  %v250_v34 = vld [vmem:[%s17087_s27 + $0x10] sm:$0xff] }
0x1141   :  { %v2784_v14 = vmul.f32 %v11271_v37, %v2775_v39  ;;  %v2785_v43 = vmul.f32 %v11271_v37, %v2776_v15  ;;  %v251_v37 = vld [vmem:[%s17087_s27 + $0x18] sm:$0xff]  ;;  %v235_v39 = vld [vmem:[%s17088_s30 + $0x8] sm:$0xff]  ;;  %v268_v15 = vld [vmem:[%s17087_s27 + $0xa0] sm:$0xff] }
0x1143   :  { %v2793_v46 = vadd.f32 %v11272_v44, %v2784_v14  ;;  %v2794_v51 = vadd.f32 %v11272_v44, %v2785_v43  ;;  %v269_v44 = vld [vmem:[%s17087_s27 + $0xa8] sm:$0xff]  ;;  %v13189_v14 = vpack.c.bf16 %v251_v37, %v250_v34  ;;  %v278_v34 = vld [vmem:[%s17087_s27 + $0xf0] sm:$0xff]  ;;  %v279_v37 = vld [vmem:[%s17087_s27 + $0xf8] sm:$0xff] }
0x1144   :  { %v13191_v43 = vpack.c.bf16 %v269_v44, %v268_v15  ;;  %v13211_v15 = vpack.c.bf16 %v279_v37, %v278_v34  ;;  %v262_v44 = vld [vmem:[%s17087_s27 + $0x70] sm:$0xff] }
0x1145   :  { %vm2795_vm12 = vcmp.ge.f32.partialorder %v2793_v46, 0.0  ;;  %v2797_v56 = vmul.f32 0.01, %v2793_v46  ;;  %vm2796_vm13 = vcmp.ge.f32.partialorder %v2794_v51, 0.0  ;;  %v2798_v59 = vmul.f32 0.01, %v2794_v51 }
0x1147   :  { %v2799_v60 = vsel %vm2795_vm12, %v2793_v46, %v2797_v56  ;;  %v2800_v61 = vsel %vm2796_vm13, %v2794_v51, %v2798_v59  ;;  %v252_v46 = vld [vmem:[%s17087_s27 + $0x20] sm:$0xff]  ;;  %v253_v51 = vld [vmem:[%s17087_s27 + $0x28] sm:$0xff]  ;;  %v270_v56 = vld [vmem:[%s17087_s27 + $0xb0] sm:$0xff] }
0x1148   :  { %12349 = vmatprep.mubr.msk.f32.mxu0 %vm17043_vm4, %v2799_v60  ;;  %v13193_v59 = vpack.c.bf16 %v253_v51, %v252_v46  ;;  %v234_v46 = vld [vmem:[%s17088_s30] sm:$0xff] }
0x1149   :  { %12350 = vmatmul.mubr.msk.f32.vlgmr.msra.gmra.mrb[12].mxu0 %vm17043_vm4, %v2800_v61  ;;  %v254_v61 = vld [vmem:[%s17087_s27 + $0x30] sm:$0xff]  ;;  %v238_v51 = vld [vmem:[%s17088_s30 + $0x20] sm:$0xff] }
0x114a   :  { %12363 = vmatprep.mubr.msk.f32.mxu0 %vm2984_vm0, %v236_v3  ;;  %13220 = vmatpush3.bf16.msk.msra.mxu0 %vm15295_vm15, %v13215_v31  ;;  %v273_v31 = vld [vmem:[%s17087_s27 + $0xc8] sm:$0xff]  ;;  %v13197_v3 = vpack.c.bf16 %v255_v49, %v254_v61 }
0x114d   :  { %12364 = vmatmul.mubr.msk.f32.vlgmr.msra.gmra.mrb[14].mxu0 %vm2984_vm0, %v239_v6  ;;  %v13199_v6 = vpack.c.bf16 %v273_v31, %v272_v36  ;;  %v11289_v36 = vld [vmem:[%s17061_s6 + $0x30] sm:$0xff]  ;;  %v11290_v31 = vld [vmem:[%s17061_s6 + $0x38] sm:$0xff] }
0x121c   :  { %v12351_v40 = vpop.f32.mrb[12].mxu0 }
0x121d   :  { %v2888_v16 = vmul.f32 %v15254_v21, %v12351_v40  ;;  %v2878_v10 = vpop.f32.mrb[13].mxu0  ;;  %v256_v40 = vld [vmem:[%s17087_s27 + $0x40] sm:$0xff] }
0x121e   :  { %v2887_v18 = vmul.f32 %v15256_v23, %v2878_v10  ;;  %v274_v10 = vld [vmem:[%s17087_s27 + $0xd0] sm:$0xff] }
0x1220   :  { %v13179_v47 = vpack.c.bf16 %v2888_v16, %v2887_v18  ;;  %v257_v16 = vld [vmem:[%s17087_s27 + $0x48] sm:$0xff]  ;;  %v13203_v18 = vpack.c.bf16 %v275_v7, %v274_v10  ;;  %v12365_v61 = vpop.f32.mrb[14].mxu0  ;;  %v11283_v7 = vld [vmem:[#allocation2 + $0x1] ss:$0 sm:$0xff] }
0x1221   :  { %v13201_v63 = vpack.c.bf16 %v257_v16, %v256_v40  ;;  %v3136_v49 = vpop.f32.mrb[15].mxu0 }
0x1222   :  { %13180 = vmatprep.subr.bf16.mxu1 %v13179_v47 }
0x1223   :  { %13182 = vmatpush3.bf16.msra.mxu1 %v13179_v47  ;;  %v258_v47 = vld [vmem:[%s17087_s27 + $0x50] sm:$0xff] }
0x1224   :  { %13184 = vmatprep.subr.bf16.mxu1 %v13183_v9  ;;  %v259_v9 = vld [vmem:[%s17087_s27 + $0x58] sm:$0xff] }
0x1225   :  { %v13205_v12 = vpack.c.bf16 %v259_v9, %v258_v47 }
0x1226   :  { %12357 = vmatmul.mubr.msk.f32.vlgmr.msra.gmra.mrb[22].mxu1 %vm17042_vm9, %v15247_v2  ;;  %v271_v2 = vld [vmem:[%s17087_s27 + $0xb8] sm:$0xff] }
0x1227   :  { %13186 = vmatpush3.bf16.msra.mxu1 %v13185_v28  ;;  %3059 = vmatprep.mubr.f32.mxu1 %v235_v39  ;;  %v13195_v60 = vpack.c.bf16 %v271_v2, %v270_v56  ;;  %v260_v28 = vld [vmem:[%s17087_s27 + $0x60] sm:$0xff]  ;;  %v237_v56 = vld [vmem:[%s17088_s30 + $0x18] sm:$0xff] }
0x1228   :  { %13188 = vmatprep.subr.bf16.mxu1 %v13187_v35  ;;  %v261_v35 = vld [vmem:[%s17087_s27 + $0x68] sm:$0xff]  ;;  %v11287_v2 = vld [vmem:[%s17061_s6 + $0x20] sm:$0xff] }
0x1229   :  { %v13209_v39 = vpack.c.bf16 %v261_v35, %v260_v28  ;;  %v11291_v28 = vld [vmem:[#allocation5 + $0x1] ss:$0 sm:$0xff] }
0x122b   :  { %13190 = vmatpush3.bf16.msra.mxu1 %v13189_v14  ;;  %v263_v14 = vld [vmem:[%s17087_s27 + $0x78] sm:$0xff]  ;;  %s17101_s27 = sld [smem:[#allocation52_spill]] }
0x122c   :  { %13192 = vmatprep.subr.bf16.mxu1 %v13191_v43  ;;  %v13213_v43 = vpack.c.bf16 %v263_v14, %v262_v44 }
0x122f   :  { %13194 = vmatpush3.bf16.msra.mxu1 %v13193_v59  ;;  %v11288_v59 = vld [vmem:[%s17061_s6 + $0x28] sm:$0xff] }
0x1230   :  { %13196 = vmatprep.subr.bf16.mxu1 %v13195_v60  ;;  %v13221_v60 = vpack.c.bf16 %v11288_v59, %v11287_v2 }
0x1231   :  { %v298_v62 = vld [vmem:[%s17101_s27 + $0x80] sm:$0xff] }
0x1232   :  { %13222 = vmatprep.subr.bf16.mxu0 %v13221_v60 }
0x1233   :  { %13198 = vmatpush3.bf16.msra.mxu1 %v13197_v3  ;;  %13224 = vmatpush3.bf16.msra.mxu0 %v13221_v60  ;;  %v13225_v3 = vpack.c.bf16 %v11290_v31, %v11289_v36 }
0x1234   :  { %13200 = vmatprep.subr.bf16.mxu1 %v13199_v6 }
0x1235   :  { %13226 = vmatprep.subr.bf16.mxu0 %v13225_v3 }
0x1237   :  { %13202 = vmatpush3.bf16.msra.mxu1 %v13201_v63  ;;  %13228 = vmatpush3.bf16.msra.mxu0 %v13225_v3 }
0x1238   :  { %13204 = vmatprep.subr.bf16.mxu1 %v13203_v18 }
0x123b   :  { %13206 = vmatpush3.bf16.msra.mxu1 %v13205_v12 }
0x123c   :  { %13208 = vmatprep.subr.bf16.mxu1 %v13207_v38 }
0x123f   :  { %13210 = vmatpush3.bf16.msra.mxu1 %v13209_v39 }
0x1240   :  { %13212 = vmatprep.subr.bf16.mxu1 %v13211_v15 }
0x1243   :  { %13214 = vmatpush3.bf16.msra.mxu1 %v13213_v43 }
0x1246   :  { %3060 = vmatmul.mubr.f32.vlgmr.msra.gmra.mrb[24].mxu1 %v234_v46 }
0x1247   :  { %3064 = vmatprep.mubr.f32.mxu1 %v238_v51 }
0x124a   :  { %3065 = vmatmul.mubr.f32.gmra.mrb[26].mxu1 %v237_v56 }
0x12f9   :  { %v15441_v6 = vpop.f32.mrb[22].mxu1 }
0x12fa   :  { %17089 = vst [vmem:[#allocation42_spill] sm:$0xff] %v15441_v6  ;;  %v15443_v40 = vpop.f32.mrb[23].mxu1 }
0x12fb   :  { %17090 = vst [vmem:[#allocation43_spill] sm:$0xff] %v15443_v40 }
0x1319   :  { %v11730_v16 = vpop.f32.mrb[24].mxu1 }
0x131a   :  { %v11731_v10 = vpop.f32.mrb[25].mxu1 }
0x131b   :  { %v11732_v63 = vadd.f32 %v11731_v10, %v11730_v16 }
0x131d   :  { %v11733_v18 = vpop.f32.mrb[26].mxu1  ;;  %v3062_v47 = vadd.f32 %v11732_v63, %v11283_v7 }
0x131e   :  { %v11734_v9 = vpop.f32.mrb[27].mxu1 }
0x131f   :  { %v11735_v30 = vadd.f32 %v11734_v9, %v11733_v18  ;;  %v15445_v27 = vadd.f32 %v3136_v49, %v3062_v47 }
0x1321   :  { %v3067_v12 = vadd.f32 %v11735_v30, %v11283_v7  ;;  %12374 = vmatprep.mubr.msk.f32.mxu0 %vm17043_vm4, %v15445_v27 }
0x1323   :  { %v15449_v38 = vadd.f32 %v12365_v61, %v3067_v12 }
0x1325   :  { %12375 = vmatmul.mubr.msk.f32.vlgmr.msra.gmra.mrb[16].mxu0 %vm17043_vm4, %v15449_v38 }
0x13f8   :  { %v12376_v35 = vpop.f32.mrb[16].mxu0 }
0x13f9   :  { %v3236_v34 = vadd.f32 %v12376_v35, %v11291_v28  ;;  %v3230_v37 = vpop.f32.mrb[17].mxu0 }
0x13fa   :  { %v3231_v39 = vadd.f32 %v11291_v28, %v3230_v37 }
0x13fb   :  { %v15459_v43 = vmul.f32 %v3236_v34, %v14967_v25  ;;  %v15465_v51 = vmul.f32 %v3236_v34, %v14986_v5  ;;  %v15473_v59 = vmul.f32 %v3236_v34, %v14988_v13  ;;  %v15488_v31 = vmul.f32 %v15079_v48, %v3236_v34 }
0x13fc   :  { %v13841_v15 = vpack.i.bf16 %v3236_v34, %v3231_v39  ;;  %v15453_v44 = vmul.f32 0.5, %v3231_v39  ;;  %v15456_v14 = vmul.f32 %v3231_v39, %v14967_v25  ;;  %v15462_v46 = vmul.f32 %v3231_v39, %v14986_v5 }
0x13fd   :  { %v15482_v49 = vmul.f32 %v3231_v39, %v14988_v13  ;;  %v15485_v36 = vmul.f32 %v15079_v48, %v3231_v39  ;;  %v15491_v3 = vmul.f32 %v15081_v52, %v3231_v39  ;;  %v15494_v16 = vmul.f32 %v15081_v52, %v3236_v34 }
0x13fe   :  { %13842 = vrot.lane.b32.xlu0 %v13841_v15, %s14502_s15  ;;  %v3241_v56 = vmul.f32 %v15453_v44, %v14833_v32  ;;  %v3643_v2 = vmul.f32 %v15453_v44, %v14878_v45  ;;  %v15501_v63 = vmul.f32 %v15083_v53, %v3231_v39  ;;  %v15504_v18 = vmul.f32 %v15083_v53, %v3236_v34 }
0x13ff   :  { %v15509_v9 = vmul.f32 %v15089_v57, %v3231_v39  ;;  %v15512_v30 = vmul.f32 %v15089_v57, %v3236_v34  ;;  %v15515_v12 = vmul.f32 %v3231_v39, %v15144_v55  ;;  %v15520_v35 = vmul.f32 %v3236_v34, %v15144_v55 }
0x1400   :  { %12381 = vmatprep.mubr.msk.f32.mxu0 %vm17043_vm4, %v3241_v56  ;;  %12409 = vmatprep.mubr.msk.f32.mxu1 %vm17043_vm4, %v3643_v2  ;;  %v3841_v15 = vmul.f32 %v15453_v44, %v15010_v20  ;;  %v17091_v23 = vpack.i.bf16 %v15459_v43, %v15456_v14 }
0x1470   :  { %v13843_v56 = vpop.permute.xlu0 %13842 }
0x1471   :  { %v13845_v2 = vunpack.i.h.bf16 %v13843_v56  ;;  %v13844_v26 = vunpack.i.l.bf16 %v13843_v56 }
0x1473   :  { %v15526_v47 = vpack.c.bf16 %v13845_v2, %v13844_v26  ;;  %v15546_v26 = vmul.f32 0.5, %v3236_v34  ;;  %v3358_v2 = vmul.f32 %v15453_v44, %v14836_v33 }
0x1475   :  { %13231 = vmatprep.subr.msk.bf16.mxu0 %vm14852_vm8, %v15526_v47  ;;  %13251 = vmatprep.subr.msk.bf16.mxu1 %vm14852_vm8, %v15526_v47  ;;  %v3242_v39 = vmul.f32 %v15546_v26, %v14833_v32  ;;  %v3644_v56 = vmul.f32 %v15546_v26, %v14878_v45  ;;  %v3359_v34 = vmul.f32 %v15546_v26, %v14836_v33 }
0x1476   :  { %13234 = vmatpush3.bf16.xpose.msk.msra.mxu0 %vm14852_vm8, %v15526_v47  ;;  %13254 = vmatpush3.bf16.xpose.msk.msra.mxu1 %vm14852_vm8, %v15526_v47 }
0x1477   :  { %13237 = vmatprep.subr.msk.bf16.mxu0 %vm14852_vm8, %v15526_v47  ;;  %13261 = vmatprep.subr.msk.bf16.mxu1 %vm14852_vm8, %v15526_v47 }
0x147d   :  { %12382 = vmatmul.mubr.msk.f32.vlgmr.msra.gmra.mrb[18].mxu0 %vm17043_vm4, %v3242_v39  ;;  %12410 = vmatmul.mubr.msk.f32.vlgmr.msra.gmra.mrb[28].mxu1 %vm17043_vm4, %v3644_v56  ;;  %v3842_v39 = vmul.f32 %v15546_v26, %v15010_v20  ;;  %v4237_v56 = vmul.f32 %v15453_v44, %v14913_v54 }
0x147e   :  { %13240 = vmatpush3.bf16.xpose.msk.msra.mxu0 %vm14852_vm8, %v15526_v47  ;;  %12388 = vmatprep.mubr.msk.f32.mxu0 %vm17043_vm4, %v3358_v2  ;;  %v4435_v2 = vmul.f32 %v15453_v44, %v14929_v58 }
0x147f   :  { %13264 = vmatpush3.bf16.xpose.msk.msra.mxu1 %vm14852_vm8, %v15526_v47  ;;  %12423 = vmatprep.mubr.msk.f32.mxu1 %vm17043_vm4, %v3841_v15  ;;  %v4238_v15 = vmul.f32 %v15546_v26, %v14913_v54 }
0x1480   :  { %13281 = vmatprep.subr.msk.bf16.mxu1 %vm14852_vm8, %v15526_v47 }
0x1485   :  { %12389 = vmatmul.mubr.msk.f32.vlgmr.msra.gmra.mrb[20].mxu0 %vm17043_vm4, %v3359_v34  ;;  %v4436_v34 = vmul.f32 %v15546_v26, %v14929_v58 }
0x1486   :  { %12424 = vmatmul.mubr.msk.f32.vlgmr.msra.gmra.mrb[30].mxu1 %vm17043_vm4, %v3842_v39  ;;  %v4633_v39 = vmul.f32 %v15453_v44, %v15125_v11 }
0x1487   :  { %13284 = vmatpush3.bf16.xpose.msk.msra.mxu1 %vm14852_vm8, %v15526_v47  ;;  %12451 = vmatprep.mubr.msk.f32.mxu1 %vm17043_vm4, %v4237_v56  ;;  %v4634_v56 = vmul.f32 %v15546_v26, %v15125_v11 }
0x1488   :  { %13291 = vmatprep.subr.msk.bf16.mxu1 %vm14852_vm8, %v15526_v47 }
0x148e   :  { %12452 = vmatmul.mubr.msk.f32.vlgmr.msra.gmra.mrb[32].mxu1 %vm17043_vm4, %v4238_v15 }
0x148f   :  { %13294 = vmatpush3.bf16.xpose.msk.msra.mxu1 %vm14852_vm8, %v15526_v47  ;;  %12465 = vmatprep.mubr.msk.f32.mxu1 %vm17043_vm4, %v4435_v2 }
0x1490   :  { %13301 = vmatprep.subr.msk.bf16.mxu1 %vm14852_vm8, %v15526_v47 }
0x1496   :  { %12466 = vmatmul.mubr.msk.f32.vlgmr.msra.gmra.mrb[34].mxu1 %vm17043_vm4, %v4436_v34 }
0x1497   :  { %13304 = vmatpush3.bf16.xpose.msk.msra.mxu1 %vm14852_vm8, %v15526_v47  ;;  %12479 = vmatprep.mubr.msk.f32.mxu1 %vm17043_vm4, %v4633_v39 }
0x149e   :  { %12480 = vmatmul.mubr.msk.f32.vlgmr.msra.gmra.mrb[36].mxu1 %vm17043_vm4, %v4634_v56 }
0x1550   :  { %v12383_v15 = vpop.f32.mrb[18].mxu0  ;;  %v12411_v2 = vpop.f32.mrb[28].mxu1 }
0x1551   :  { %v3325_v37 = vpop.f32.mrb[19].mxu0  ;;  %v3717_v28 = vpop.f32.mrb[29].mxu1  ;;  %v3337_v7 = vsel %vm17042_vm9, %v12383_v15, -inf  ;;  %v3729_v19 = vsel %vm17042_vm9, %v12411_v2, -inf }
0x1552   :  { %3338 = vmax.xlane.f32.xlu1 %v3337_v7  ;;  %v3334_v34 = vsel %vm17042_vm9, %v3325_v37, -inf  ;;  %v3726_v7 = vsel %vm17042_vm9, %v3717_v28, -inf }
0x1556   :  { %3335 = vmax.xlane.f32.xlu1 %v3334_v34 }
0x1558   :  { %v12390_v10 = vpop.f32.mrb[20].mxu0 }
0x1559   :  { %v12425_v61 = vpop.f32.mrb[30].mxu1  ;;  %v3432_v60 = vpop.f32.mrb[21].mxu0  ;;  %v3444_v39 = vsel %vm17042_vm9, %v12390_v10, -inf }
0x155a   :  { %v15611_v22 = vpop.f32.mrb[31].mxu1  ;;  %3445 = vmax.xlane.f32.xlu1 %v3444_v39  ;;  %v3441_v29 = vsel %vm17042_vm9, %v3432_v60, -inf  ;;  %v3927_v39 = vsel %vm17042_vm9, %v12425_v61, -inf }
0x155b   :  { %v3924_v56 = vsel %vm17042_vm9, %v15611_v22, -inf }
0x155c   :  { %3925 = vmax.xlane.f32.xlu0 %v3924_v56 }
0x155e   :  { %3442 = vmax.xlane.f32.xlu1 %v3441_v29 }
0x1561   :  { %v15616_v17 = vpop.f32.mrb[32].mxu1 }
0x1562   :  { %v15619_v34 = vpop.f32.mrb[33].mxu1  ;;  %3727 = vmax.xlane.f32.xlu1 %v3726_v7 }
0x1566   :  { %3730 = vmax.xlane.f32.xlu1 %v3729_v19  ;;  %v17092_v19 = vpack.i.bf16 %v15465_v51, %v15462_v46 }
0x1569   :  { %v15622_v21 = vpop.f32.mrb[34].mxu1 }
0x156a   :  { %v15625_v6 = vpop.f32.mrb[35].mxu1  ;;  %3928 = vmax.xlane.f32.xlu1 %v3927_v39 }
0x1571   :  { %v15627_v56 = vpop.f32.mrb[36].mxu1 }
0x1572   :  { %v15629_v29 = vpop.f32.mrb[37].mxu1  ;;  %13847 = vrot.lane.b32.xlu0 %v17091_v23, %s14503_s9 }
0x1576   :  { %13857 = vrot.lane.b32.xlu0 %v17092_v19, %s14503_s9 }
0x15df   :  { %v3339_v7 = vpop.xlane.xlu1 %3338 }
0x15e0   :  { %v3341_v40 = vsub.f32 %v12383_v15, %v3339_v7 }
0x15e2   :  { %v3344_v11 = vmul.f32 1.442695, %v3341_v40 }
0x15e3   :  { %v3336_v58 = vpop.xlane.xlu1 %3335 }
0x15e4   :  { %14013 = vpow2.f32 %v3344_v11  ;;  %v3340_v46 = vsub.f32 %v3325_v37, %v3336_v58 }
0x15e6   :  { %v3342_v11 = vmul.f32 1.442695, %v3340_v46 }
0x15e7   :  { %v3446_v39 = vpop.xlane.xlu1 %3445 }
0x15e8   :  { %v3448_v7 = vsub.f32 %v12390_v10, %v3446_v39 }
0x15e9   :  { %v3926_v54 = vpop.xlane.xlu0 %3925 }
0x15eb   :  { %v3443_v20 = vpop.xlane.xlu1 %3442 }
0x15ed   :  { %v13848_v33 = vpop.permute.xlu0 %13847 }
0x15ee   :  { %v15639_v53 = vpop.eup %14013  ;;  %v13850_v55 = vunpack.i.h.bf16 %v13848_v33  ;;  %v13849_v57 = vunpack.i.l.bf16 %v13848_v33  ;;  %v3451_v33 = vmul.f32 1.442695, %v3448_v7 }
0x15ef   :  { %v3728_v14 = vpop.xlane.xlu1 %3727  ;;  %v3349_v23 = vsel %vm17042_vm9, %v15639_v53, 0.0 }
0x15f0   :  { %3350 = vadd.xlane.f32.xlu1 %v3349_v23  ;;  %v13241_v43 = vpack.c.bf16 %v13850_v55, %v13849_v57  ;;  %v3732_v15 = vsub.f32 %v3717_v28, %v3728_v14  ;;  %v3447_v57 = vsub.f32 %v3432_v60, %v3443_v20  ;;  %v17093_v14 = vpack.i.bf16 %v15473_v59, %v15482_v49 }
0x15f1   :  { %v3930_v23 = vsub.f32 %v15611_v22, %v3926_v54 }
0x15f2   :  { %13242 = vmatprep.subr.bf16.mxu0 %v13241_v43  ;;  %v3734_v52 = vmul.f32 1.442695, %v3732_v15  ;;  %v3449_v28 = vmul.f32 1.442695, %v3447_v57 }
0x15f3   :  { %13244 = vmatpush3.bf16.msra.mxu0 %v13241_v43  ;;  %v3731_v40 = vpop.xlane.xlu1 %3730  ;;  %v3932_v43 = vmul.f32 1.442695, %v3930_v23 }
0x15f4   :  { %v3733_v51 = vsub.f32 %v12411_v2, %v3731_v40 }
0x15f6   :  { %v3736_v19 = vmul.f32 1.442695, %v3733_v51  ;;  %v17094_v51 = vpack.i.bf16 %v15488_v31, %v15485_v36 }
0x15f7   :  { %v3929_v48 = vpop.xlane.xlu1 %3928 }
0x15f8   :  { %14015 = vpow2.f32 %v3736_v19  ;;  %v3931_v5 = vsub.f32 %v12425_v61, %v3929_v48 }
0x15f9   :  { %14017 = vpow2.f32 %v3342_v11 }
0x15fa   :  { %14019 = vpow2.f32 %v3734_v52  ;;  %v3934_v58 = vmul.f32 1.442695, %v3931_v5 }
0x15fb   :  { %14021 = vpow2.f32 %v3451_v33 }
0x15fc   :  { %14023 = vpow2.f32 %v3934_v58 }
0x15fd   :  { %14025 = vpow2.f32 %v3449_v28 }
0x15fe   :  { %14027 = vpow2.f32 %v3932_v43 }
0x1602   :  { %v15643_v45 = vpop.eup %14015 }
0x1603   :  { %v3741_v55 = vsel %vm17042_vm9, %v15643_v45, 0.0  ;;  %v14018_v37 = vpop.eup %14017 }
0x1604   :  { %3742 = vadd.xlane.f32.xlu1 %v3741_v55  ;;  %v3346_v2 = vsel %vm17042_vm9, %v14018_v37, 0.0  ;;  %v14020_v10 = vpop.eup %14019  ;;  %v13858_v55 = vpop.permute.xlu0 %13857 }
0x1605   :  { %v3738_v52 = vsel %vm17042_vm9, %v14020_v10, 0.0  ;;  %v14022_v48 = vpop.eup %14021 }
0x1606   :  { %v3456_v61 = vsel %vm17042_vm9, %v14022_v48, 0.0  ;;  %v15650_v20 = vpop.eup %14023 }
0x1607   :  { %v3939_v5 = vsel %vm17042_vm9, %v15650_v20, 0.0  ;;  %v14026_v60 = vpop.eup %14025 }
0x1608   :  { %3347 = vadd.xlane.f32.xlu1 %v3346_v2  ;;  %v3453_v39 = vsel %vm17042_vm9, %v14026_v60, 0.0  ;;  %v14028_v46 = vpop.eup %14027  ;;  %v13860_v2 = vunpack.i.h.bf16 %v13858_v55 }
0x1609   :  { %v3936_v40 = vsel %vm17042_vm9, %v14028_v46, 0.0 }
0x160c   :  { %3739 = vadd.xlane.f32.xlu1 %v3738_v52  ;;  %v13859_v52 = vunpack.i.l.bf16 %v13858_v55  ;;  %v4716_v55 = vsel %vm17042_vm9, %v15629_v29, -inf }
0x1610   :  { %3457 = vadd.xlane.f32.xlu1 %v3456_v61 }
0x1614   :  { %3940 = vadd.xlane.f32.xlu1 %v3939_v5 }
0x1618   :  { %3454 = vadd.xlane.f32.xlu1 %v3453_v39 }
0x1629   :  { %13852 = vrot.lane.b32.xlu1 %v17093_v14, %s14503_s9  ;;  %v13255_v14 = vpack.c.bf16 %v13860_v2, %v13859_v52 }
0x164d   :  { %3937 = vadd.xlane.f32.xlu1 %v3936_v40 }
0x165e   :  { %13862 = vrot.lane.b32.xlu1 %v17094_v51, %s14503_s9 }
0x167d   :  { %v3351_v11 = vpop.xlane.xlu1 %3350 }
0x1691   :  { %v3743_v15 = vpop.xlane.xlu1 %3742 }
0x1695   :  { %v3348_v19 = vpop.xlane.xlu1 %3347 }
0x1696   :  { %14029 = vrcp.f32 %v3348_v19 }
0x1699   :  { %v3740_v7 = vpop.xlane.xlu1 %3739 }
0x169d   :  { %v3458_v33 = vpop.xlane.xlu1 %3457 }
0x169e   :  { %14031 = vrcp.f32 %v3458_v33 }
0x16a0   :  { %v14030_v28 = vpop.eup %14029 }
0x16a1   :  { %v3941_v59 = vpop.xlane.xlu1 %3940  ;;  %v3354_v39 = vmul.f32 %v14030_v28, %v14018_v37 }
0x16a5   :  { %v3455_v22 = vpop.xlane.xlu1 %3454 }
0x16a6   :  { %14033 = vrcp.f32 %v3455_v22  ;;  %v4040_v22 = vmul.f32 %v15546_v26, %v14897_v50  ;;  %v4719_v26 = vsel %vm17042_vm9, %v15627_v56, -inf }
0x16a7   :  { %14035 = vrcp.f32 %v3351_v11 }
0x16a8   :  { %14037 = vrcp.f32 %v3740_v7  ;;  %v14032_v36 = vpop.eup %14031 }
0x16a9   :  { %v13853_v54 = vpop.permute.xlu1 %13852  ;;  %v3462_v5 = vmul.f32 %v14032_v36, %v14022_v48  ;;  %14039 = vrcp.f32 %v3743_v15 }
0x16aa   :  { %v13855_v49 = vunpack.i.h.bf16 %v13853_v54  ;;  %v13854_v57 = vunpack.i.l.bf16 %v13853_v54  ;;  %14041 = vrcp.f32 %v3941_v59  ;;  %v4039_v59 = vmul.f32 %v15453_v44, %v14897_v50 }
0x16ac   :  { %v13245_v58 = vpack.c.bf16 %v13855_v49, %v13854_v57  ;;  %v4521_v49 = vsel %vm17042_vm9, %v15622_v21, -inf  ;;  %v4323_v57 = vsel %vm17042_vm9, %v15616_v17, -inf }
0x16ae   :  { %13246 = vmatprep.subr.bf16.mxu0 %v13245_v58 }
0x16b0   :  { %v14034_v31 = vpop.eup %14033 }
0x16b1   :  { %v3461_v61 = vmul.f32 %v14034_v31, %v14026_v60  ;;  %v14036_v23 = vpop.eup %14035 }
0x16b2   :  { %v14038_v43 = vpop.eup %14037  ;;  %v3355_v40 = vmul.f32 %v14036_v23, %v15639_v53 }
0x16b3   :  { %12395 = vmatprep.mubr.msk.f32.mxu0 %vm17042_vm9, %v3461_v61  ;;  %v3746_v51 = vmul.f32 %v14038_v43, %v14020_v10  ;;  %v14040_v48 = vpop.eup %14039 }
0x16b4   :  { %12396 = vmatmul.mubr.msk.f32.vlgmr.msra.gmra.mrb[22].mxu0 %vm17042_vm9, %v3462_v5  ;;  %v3747_v37 = vmul.f32 %v14040_v48, %v15643_v45  ;;  %v14042_v53 = vpop.eup %14041 }
0x16b5   :  { %13248 = vmatpush3.bf16.msra.mxu0 %v13245_v58  ;;  %12402 = vmatprep.mubr.msk.f32.mxu0 %vm17042_vm9, %v3354_v39  ;;  %v3945_v45 = vmul.f32 %v14042_v53, %v15650_v20  ;;  %v4518_v58 = vsel %vm17042_vm9, %v15625_v6, -inf }
0x16b6   :  { %13256 = vmatprep.subr.bf16.mxu0 %v13255_v14 }
0x16bc   :  { %12403 = vmatmul.mubr.msk.f32.vlgmr.msra.gmra.mrb[22].mxu0 %vm17042_vm9, %v3355_v40 }
0x16bd   :  { %13258 = vmatpush3.bf16.msra.mxu0 %v13255_v14  ;;  %12416 = vmatprep.mubr.msk.f32.mxu0 %vm17042_vm9, %v3746_v51 }
0x16c4   :  { %12417 = vmatmul.mubr.msk.f32.vlgmr.msra.gmra.mrb[22].mxu0 %vm17042_vm9, %v3747_v37 }
0x16da   :  { %v3938_v60 = vpop.xlane.xlu1 %3937 }
0x16db   :  { %14043 = vrcp.f32 %v3938_v60 }
0x16de   :  { %v13863_v11 = vpop.permute.xlu1 %13862 }
0x16df   :  { %v13865_v15 = vunpack.i.h.bf16 %v13863_v11  ;;  %v13864_v19 = vunpack.i.l.bf16 %v13863_v11 }
0x16e1   :  { %v13265_v7 = vpack.c.bf16 %v13865_v15, %v13864_v19 }
0x16e3   :  { %13266 = vmatprep.subr.bf16.mxu0 %v13265_v7 }
0x16e4   :  { %13268 = vmatpush3.bf16.msra.mxu0 %v13265_v7 }
0x16e5   :  { %v14044_v10 = vpop.eup %14043  ;;  %13271 = vmatprep.subr.msk.bf16.mxu0 %vm14852_vm8, %v15526_v47 }
0x16e6   :  { %v3944_v33 = vmul.f32 %v14044_v10, %v14028_v46 }
0x16e8   :  { %12430 = vmatprep.mubr.msk.f32.mxu0 %vm17042_vm9, %v3944_v33 }
0x16e9   :  { %12431 = vmatmul.mubr.msk.f32.vlgmr.msra.gmra.mrb[22].mxu0 %vm17042_vm9, %v3945_v45 }
0x16ea   :  { %12437 = vmatprep.mubr.msk.f32.mxu0 %vm17043_vm4, %v4039_v59 }
0x16ed   :  { %13274 = vmatpush3.bf16.xpose.msk.msra.mxu0 %vm14852_vm8, %v15526_v47  ;;  %v4320_v47 = vsel %vm17042_vm9, %v15619_v34, -inf }
0x16f4   :  { %12438 = vmatmul.mubr.msk.f32.vlgmr.msra.gmra.mrb[24].mxu0 %vm17043_vm4, %v4040_v22 }
0x17c7   :  { %v12439_v46 = vpop.f32.mrb[24].mxu0 }
0x17c8   :  { %v4113_v20 = vpop.f32.mrb[25].mxu0  ;;  %v4125_v54 = vsel %vm17042_vm9, %v12439_v46, -inf }
0x17c9   :  { %4126 = vmax.xlane.f32.xlu1 %v4125_v54  ;;  %v4122_v44 = vsel %vm17042_vm9, %v4113_v20, -inf }
0x17ca   :  { %4123 = vmax.xlane.f32.xlu0 %v4122_v44 }
0x17cd   :  { %4522 = vmax.xlane.f32.xlu1 %v4521_v49 }
0x17ce   :  { %4321 = vmax.xlane.f32.xlu0 %v4320_v47 }
0x17d1   :  { %4720 = vmax.xlane.f32.xlu1 %v4719_v26 }
0x17d2   :  { %4324 = vmax.xlane.f32.xlu0 %v4323_v57 }
0x17d6   :  { %4519 = vmax.xlane.f32.xlu0 %v4518_v58  ;;  %v17095_v58 = vpack.i.bf16 %v15494_v16, %v15491_v3 }
0x17da   :  { %4717 = vmax.xlane.f32.xlu0 %v4716_v55  ;;  %v17096_v55 = vpack.i.bf16 %v15504_v18, %v15501_v63 }
0x1856   :  { %v4127_v28 = vpop.xlane.xlu1 %4126 }
0x1857   :  { %v4124_v36 = vpop.xlane.xlu0 %4123  ;;  %v4129_v23 = vsub.f32 %v12439_v46, %v4127_v28  ;;  %v17097_v28 = vpack.i.bf16 %v15512_v30, %v15509_v9 }
0x1858   :  { %v4128_v43 = vsub.f32 %v4113_v20, %v4124_v36  ;;  %v17098_v36 = vpack.i.bf16 %v15520_v35, %v15515_v12 }
0x1859   :  { %v4132_v60 = vmul.f32 1.442695, %v4129_v23 }
0x185a   :  { %v4523_v31 = vpop.xlane.xlu1 %4522  ;;  %v4130_v11 = vmul.f32 1.442695, %v4128_v43 }
0x185b   :  { %v4322_v2 = vpop.xlane.xlu0 %4321  ;;  %v4525_v61 = vsub.f32 %v15622_v21, %v4523_v31 }
0x185c   :  { %v4326_v52 = vsub.f32 %v15619_v34, %v4322_v2 }
0x185d   :  { %v4528_v40 = vmul.f32 1.442695, %v4525_v61 }
0x185e   :  { %v4328_v5 = vmul.f32 1.442695, %v4326_v52  ;;  %v4721_v34 = vpop.xlane.xlu1 %4720 }
0x185f   :  { %v4325_v39 = vpop.xlane.xlu0 %4324 }
0x1860   :  { %14045 = vpow2.f32 %v4328_v5  ;;  %v4327_v14 = vsub.f32 %v15616_v17, %v4325_v39  ;;  %v4723_v17 = vsub.f32 %v15627_v56, %v4721_v34 }
0x1862   :  { %v4330_v51 = vmul.f32 1.442695, %v4327_v14  ;;  %v4726_v33 = vmul.f32 1.442695, %v4723_v17 }
0x1863   :  { %v4520_v48 = vpop.xlane.xlu0 %4519 }
0x1864   :  { %14047 = vpow2.f32 %v4330_v51  ;;  %v4524_v37 = vsub.f32 %v15625_v6, %v4520_v48 }
0x1865   :  { %14049 = vpow2.f32 %v4528_v40 }
0x1866   :  { %v4526_v15 = vmul.f32 1.442695, %v4524_v37 }
0x1867   :  { %v4718_v19 = vpop.xlane.xlu0 %4717 }
0x1868   :  { %14051 = vpow2.f32 %v4526_v15  ;;  %v4722_v21 = vsub.f32 %v15629_v29, %v4718_v19 }
0x1869   :  { %14053 = vpow2.f32 %v4132_v60 }
0x186a   :  { %v15707_v7 = vpop.eup %14045  ;;  %14055 = vpow2.f32 %v4130_v11  ;;  %v4724_v53 = vmul.f32 1.442695, %v4722_v21 }
0x186b   :  { %v4332_v10 = vsel %vm17042_vm9, %v15707_v7, 0.0 }
0x186c   :  { %4333 = vadd.xlane.f32.xlu0 %v4332_v10  ;;  %14057 = vpow2.f32 %v4724_v53 }
0x186d   :  { %14059 = vpow2.f32 %v4726_v33 }
0x186e   :  { %v15712_v6 = vpop.eup %14047 }
0x186f   :  { %v4335_v45 = vsel %vm17042_vm9, %v15712_v6, 0.0  ;;  %v15716_v59 = vpop.eup %14049 }
0x1870   :  { %4336 = vadd.xlane.f32.xlu1 %v4335_v45  ;;  %v4533_v56 = vsel %vm17042_vm9, %v15716_v59, 0.0 }
0x1872   :  { %v15718_v29 = vpop.eup %14051 }
0x1873   :  { %v14054_v22 = vpop.eup %14053  ;;  %v4530_v46 = vsel %vm17042_vm9, %v15718_v29, 0.0 }
0x1874   :  { %v14056_v20 = vpop.eup %14055  ;;  %4534 = vadd.xlane.f32.xlu1 %v4533_v56  ;;  %4531 = vadd.xlane.f32.xlu0 %v4530_v46  ;;  %v4137_v54 = vsel %vm17042_vm9, %v14054_v22, 0.0  ;;  %v11342_v46 = vld [vmem:[%s17081_s0 + $0x20] sm:$0xff] }
0x1875   :  { %v4134_v44 = vsel %vm17042_vm9, %v14056_v20, 0.0 }
0x1876   :  { %v15726_v49 = vpop.eup %14057 }
0x1877   :  { %v4728_v47 = vsel %vm17042_vm9, %v15726_v49, 0.0  ;;  %v15730_v26 = vpop.eup %14059 }
0x1878   :  { %4138 = vadd.xlane.f32.xlu1 %v4137_v54  ;;  %4135 = vadd.xlane.f32.xlu0 %v4134_v44  ;;  %v4731_v57 = vsel %vm17042_vm9, %v15730_v26, 0.0 }
0x187c   :  { %4729 = vadd.xlane.f32.xlu1 %v4728_v47 }
0x1880   :  { %4732 = vadd.xlane.f32.xlu1 %v4731_v57  ;;  %v11344_v57 = vld [vmem:[%s17081_s0 + $0x30] sm:$0xff] }
0x188e   :  { %13867 = vrot.lane.b32.xlu0 %v17095_v58, %s14503_s9  ;;  %v11345_v58 = vld [vmem:[%s17081_s0 + $0x38] sm:$0xff] }
0x1891   :  { %13872 = vrot.lane.b32.xlu1 %v17096_v55, %s14503_s9  ;;  %v13313_v55 = vpack.c.bf16 %v11345_v58, %v11344_v57 }
0x1892   :  { %13877 = vrot.lane.b32.xlu0 %v17097_v28, %s14503_s9 }
0x1895   :  { %13882 = vrot.lane.b32.xlu1 %v17098_v36, %s14503_s9 }
0x18f9   :  { %v4334_v31 = vpop.xlane.xlu0 %4333 }
0x18fa   :  { %14061 = vrcp.f32 %v4334_v31  ;;  %v11348_v31 = vld [vmem:[#allocation7 + $0x1] ss:$0 sm:$0xff] }
0x18fd   :  { %v4337_v2 = vpop.xlane.xlu1 %4336 }
0x1901   :  { %v4535_v52 = vpop.xlane.xlu1 %4534  ;;  %v4532_v3 = vpop.xlane.xlu0 %4531 }
0x1904   :  { %v14062_v12 = vpop.eup %14061 }
0x1905   :  { %v4139_v16 = vpop.xlane.xlu1 %4138  ;;  %v4136_v61 = vpop.xlane.xlu0 %4135  ;;  %v4340_v15 = vmul.f32 %v14062_v12, %v15707_v7 }
0x1906   :  { %14063 = vrcp.f32 %v4139_v16 }
0x1907   :  { %14065 = vrcp.f32 %v4136_v61 }
0x1908   :  { %14067 = vrcp.f32 %v4337_v2 }
0x1909   :  { %v4730_v63 = vpop.xlane.xlu1 %4729  ;;  %v13868_v18 = vpop.permute.xlu0 %13867  ;;  %14069 = vrcp.f32 %v4532_v3 }
0x190a   :  { %v13870_v5 = vunpack.i.h.bf16 %v13868_v18  ;;  %v13869_v39 = vunpack.i.l.bf16 %v13868_v18  ;;  %14071 = vrcp.f32 %v4535_v52 }
0x190b   :  { %14073 = vrcp.f32 %v4730_v63 }
0x190c   :  { %v13275_v9 = vpack.c.bf16 %v13870_v5, %v13869_v39 }
0x190d   :  { %v4733_v30 = vpop.xlane.xlu1 %4732  ;;  %v13878_v14 = vpop.permute.xlu0 %13877 }
0x190e   :  { %13276 = vmatprep.subr.bf16.mxu0 %v13275_v9  ;;  %v13880_v43 = vunpack.i.h.bf16 %v13878_v14  ;;  %v13879_v48 = vunpack.i.l.bf16 %v13878_v14  ;;  %14075 = vrcp.f32 %v4733_v30 }
0x190f   :  { %13278 = vmatpush3.bf16.msra.mxu0 %v13275_v9 }
0x1910   :  { %v14064_v35 = vpop.eup %14063  ;;  %v13295_v19 = vpack.c.bf16 %v13880_v43, %v13879_v48  ;;  %v11356_v43 = vld [vmem:[%s16976_s12 + $0x28] sm:$0xff] }
0x1911   :  { %v14066_v23 = vpop.eup %14065  ;;  %v13873_v40 = vpop.permute.xlu1 %13872  ;;  %v4143_v51 = vmul.f32 %v14064_v35, %v14054_v22  ;;  %v11350_v48 = vld [vmem:[%s16975_s11 + $0x28] sm:$0xff] }
0x1912   :  { %v13875_v37 = vunpack.i.h.bf16 %v13873_v40  ;;  %v13874_v60 = vunpack.i.l.bf16 %v13873_v40  ;;  %v4142_v11 = vmul.f32 %v14066_v23, %v14056_v20  ;;  %v14068_v17 = vpop.eup %14067  ;;  %v11343_v20 = vld [vmem:[%s17081_s0 + $0x28] sm:$0xff]  ;;  %v11355_v23 = vld [vmem:[%s16976_s12 + $0x20] sm:$0xff] }
0x1913   :  { %v14070_v53 = vpop.eup %14069  ;;  %v4341_v45 = vmul.f32 %v14068_v17, %v15712_v6  ;;  %v13309_v54 = vpack.c.bf16 %v11343_v20, %v11342_v46  ;;  %v11349_v40 = vld [vmem:[%s16975_s11 + $0x20] sm:$0xff] }
0x1914   :  { %12444 = vmatprep.mubr.msk.f32.mxu0 %vm17042_vm9, %v4142_v11  ;;  %v13285_v34 = vpack.c.bf16 %v13875_v37, %v13874_v60  ;;  %v4538_v7 = vmul.f32 %v14070_v53, %v15718_v29  ;;  %v14072_v56 = vpop.eup %14071  ;;  %v11357_v37 = vld [vmem:[%s16976_s12 + $0x30] sm:$0xff]  ;;  %v11358_v60 = vld [vmem:[%s16976_s12 + $0x38] sm:$0xff]  ;;  %v13317_v11 = vpack.c.bf16 %v11350_v48, %v11349_v40 }
0x1915   :  { %12445 = vmatmul.mubr.msk.f32.vlgmr.msra.gmra.mrb[22].mxu0 %vm17042_vm9, %v4143_v51  ;;  %v13883_v21 = vpop.permute.xlu1 %13882  ;;  %v14074_v6 = vpop.eup %14073  ;;  %v4539_v29 = vmul.f32 %v14072_v56, %v15716_v59  ;;  %v13325_v51 = vpack.c.bf16 %v11356_v43, %v11355_v23 }
0x1916   :  { %12458 = vmatprep.mubr.msk.f32.mxu0 %vm17042_vm9, %v4340_v15  ;;  %13286 = vmatprep.subr.bf16.mxu0 %v13285_v34  ;;  %v13885_v10 = vunpack.i.h.bf16 %v13883_v21  ;;  %v13884_v33 = vunpack.i.l.bf16 %v13883_v21  ;;  %v4736_v44 = vmul.f32 %v14074_v6, %v15726_v49  ;;  %v13329_v15 = vpack.c.bf16 %v11358_v60, %v11357_v37 }
0x1917   :  { %13288 = vmatpush3.bf16.msra.mxu0 %v13285_v34  ;;  %v11351_v34 = vld [vmem:[%s16975_s11 + $0x30] sm:$0xff]  ;;  %13318 = vmatprep.subr.bf16.mxu1 %v13317_v11 }
0x1918   :  { %13296 = vmatprep.subr.bf16.mxu0 %v13295_v19  ;;  %v13305_v22 = vpack.c.bf16 %v13885_v10, %v13884_v33  ;;  %v14076_v47 = vpop.eup %14075  ;;  %13320 = vmatpush3.bf16.msra.mxu1 %v13317_v11 }
0x1919   :  { %v4737_v59 = vmul.f32 %v14076_v47, %v15730_v26 }
0x191d   :  { %12459 = vmatmul.mubr.msk.f32.vlgmr.msra.gmra.mrb[22].mxu0 %vm17042_vm9, %v4341_v45 }
0x191e   :  { %13298 = vmatpush3.bf16.msra.mxu0 %v13295_v19  ;;  %12472 = vmatprep.mubr.msk.f32.mxu0 %vm17042_vm9, %v4538_v7  ;;  %v11352_v19 = vld [vmem:[%s16975_s11 + $0x38] sm:$0xff] }
0x191f   :  { %13306 = vmatprep.subr.bf16.mxu0 %v13305_v22  ;;  %v13321_v21 = vpack.c.bf16 %v11352_v19, %v11351_v34 }
0x1921   :  { %13322 = vmatprep.subr.bf16.mxu1 %v13321_v21 }
0x1922   :  { %13324 = vmatpush3.bf16.msra.mxu1 %v13321_v21 }
0x1925   :  { %12473 = vmatmul.mubr.msk.f32.vlgmr.msra.gmra.mrb[22].mxu0 %vm17042_vm9, %v4539_v29 }
0x1926   :  { %13308 = vmatpush3.bf16.msra.mxu0 %v13305_v22  ;;  %12486 = vmatprep.mubr.msk.f32.mxu0 %vm17042_vm9, %v4736_v44 }
0x1927   :  { %13310 = vmatprep.subr.bf16.mxu0 %v13309_v54 }
0x192d   :  { %12487 = vmatmul.mubr.msk.f32.vlgmr.msra.gmra.mrb[22].mxu0 %vm17042_vm9, %v4737_v59 }
0x192e   :  { %13312 = vmatpush3.bf16.msra.mxu0 %v13309_v54 }
0x192f   :  { %13314 = vmatprep.subr.bf16.mxu0 %v13313_v55 }
0x1932   :  { %13316 = vmatpush3.bf16.msra.mxu0 %v13313_v55 }
0x1933   :  { %13326 = vmatprep.subr.bf16.mxu0 %v13325_v51 }
0x1a00   :  { %v12488_v49 = vpop.f32.mrb[22].mxu0 }
0x1a01   :  { %v4820_v28 = vpop.f32.mrb[23].mxu0 }
0x1a02   :  { %12497 = vmatprep.mubr.msk.f32.mxu0 %vm17043_vm4, %v4820_v28 }
0x1a03   :  { %12498 = vmatmul.mubr.msk.f32.vlgmr.msra.gmra.mrb[26].mxu0 %vm17043_vm4, %v12488_v49 }
0x1a04   :  { %13328 = vmatpush3.bf16.msra.mxu0 %v13325_v51 }
0x1a05   :  { %13330 = vmatprep.subr.bf16.mxu0 %v13329_v15 }
0x1a08   :  { %13332 = vmatpush3.bf16.msra.mxu0 %v13329_v15 }
0x1a09   :  { %13340 = vmatprep.subr.bf16.mxu0 %v15203_v4 }
0x1ad6   :  { %v12499_v36 = vpop.f32.mrb[26].mxu0 }
0x1ad7   :  { %v4918_v2 = vadd.f32 %v12499_v36, %v15449_v38  ;;  %v4908_v52 = vpop.f32.mrb[27].mxu0 }
0x1ad8   :  { %v4917_v3 = vadd.f32 %v4908_v52, %v15445_v27 }
0x1ad9   :  { %v4928_v26 = vadd.f32 %v11348_v31, %v4918_v2 }
0x1ada   :  { %v4927_v16 = vadd.f32 %v11348_v31, %v4917_v3 }
0x1adb   :  { %v4932_v61 = vsel %vm17043_vm4, %v4928_v26, 0.0 }
0x1adc   :  { %4933 = vadd.xlane.f32.xlu1 %v4932_v61  ;;  %v4929_v63 = vsel %vm17043_vm4, %v4927_v16, 0.0 }
0x1add   :  { %4930 = vadd.xlane.f32.xlu0 %v4929_v63 }
0x1b69   :  { %v4934_v18 = vpop.xlane.xlu1 %4933 }
0x1b6a   :  { %v4936_v5 = vmul.f32 0.03125, %v4934_v18  ;;  %v4931_v39 = vpop.xlane.xlu0 %4930 }
0x1b6b   :  { %v4935_v9 = vmul.f32 0.03125, %v4931_v39 }
0x1b6c   :  { %v4938_v30 = vsub.f32 %v4928_v26, %v4936_v5 }
0x1b6d   :  { %v4937_v14 = vsub.f32 %v4927_v16, %v4935_v9 }
0x1b6e   :  { %v4940_v35 = vmul.f32 %v4938_v30, %v4938_v30 }
0x1b6f   :  { %v4939_v12 = vmul.f32 %v4937_v14, %v4937_v14 }
0x1b70   :  { %v4944_v27 = vsel %vm17043_vm4, %v4940_v35, 0.0 }
0x1b71   :  { %v4941_v38 = vsel %vm17043_vm4, %v4939_v12, 0.0 }
0x1b72   :  { %4942 = vadd.xlane.f32.xlu0 %v4941_v38 }
0x1b76   :  { %4945 = vadd.xlane.f32.xlu0 %v4944_v27 }
0x1bff   :  { %v4943_v17 = vpop.xlane.xlu0 %4942 }
0x1c00   :  { %v4947_v53 = vmul.f32 0.03125, %v4943_v17 }
0x1c02   :  { %v4949_v10 = vadd.f32 1e-05, %v4947_v53 }
0x1c03   :  { %v4946_v33 = vpop.xlane.xlu0 %4945 }
0x1c04   :  { %14077 = vrsqrt.f32 %v4949_v10  ;;  %v4948_v45 = vmul.f32 0.03125, %v4946_v33 }
0x1c06   :  { %v4950_v7 = vadd.f32 1e-05, %v4948_v45  ;;  %v14263_v45 = vld [vmem:[%s16978_s14] ss:$0 sm:$0xff] }
0x1c08   :  { %14079 = vrsqrt.f32 %v4950_v7 }
0x1c0e   :  { %v14078_v22 = vpop.eup %14077 }
0x1c0f   :  { %v4953_v56 = vmul.f32 %v14078_v22, %v4937_v14 }
0x1c11   :  { %12508 = vmatprep.mubr.msk.f32.mxu1 %vm17043_vm4, %v4953_v56  ;;  %12519 = vmatprep.mubr.msk.f32.mxu0 %vm17043_vm4, %v4953_v56 }
0x1c12   :  { %v14080_v46 = vpop.eup %14079 }
0x1c13   :  { %v4954_v20 = vmul.f32 %v14080_v46, %v4938_v30 }
0x1c15   :  { %12509 = vmatmul.mubr.msk.f32.vlgmr.msra.gmra.mrb[38].mxu1 %vm17043_vm4, %v4954_v20  ;;  %12520 = vmatmul.mubr.msk.f32.vlgmr.msra.gmra.mrb[28].mxu0 %vm17043_vm4, %v4954_v20 }
0x1c16   :  { %13342 = vmatpush3.bf16.msra.mxu0 %v15203_v4  ;;  %12537 = vmatprep.mubr.msk.f32.mxu0 %vm17043_vm4, %v4953_v56 }
0x1c17   :  { %13344 = vmatprep.subr.bf16.mxu0 %v15214_v0 }
0x1c1a   :  { %13346 = vmatpush3.bf16.msra.mxu0 %v15214_v0 }
0x1c1d   :  { %12538 = vmatmul.mubr.msk.f32.vlgmr.msra.gmra.mrb[30].mxu0 %vm17043_vm4, %v4954_v20 }
0x1ce8   :  { %v12510_v6 = vpop.f32.mrb[38].mxu1  ;;  %v12521_v29 = vpop.f32.mrb[28].mxu0 }
0x1ce9   :  { %v5032_v54 = vpop.f32.mrb[39].mxu1  ;;  %v5112_v44 = vpop.f32.mrb[29].mxu0 }
0x1cea   :  { %v13333_v47 = vpack.c.bf16 %v12521_v29, %v5112_v44  ;;  %12526 = vmatprep.mubr.msk.f32.mxu1 %vm17043_vm4, %v5032_v54 }
0x1cec   :  { %13335 = vmatprep.subr.msk.bf16.mxu1 %vm14852_vm8, %v13333_v47 }
0x1ced   :  { %13338 = vmatpush3.bf16.xpose.msk.msra.mxu1 %vm14852_vm8, %v13333_v47 }
0x1cf0   :  { %v12539_v57 = vpop.f32.mrb[30].mxu0 }
0x1cf1   :  { %v5310_v58 = vpop.f32.mrb[31].mxu0 }
0x1cf4   :  { %12527 = vmatmul.mubr.msk.f32.vlgmr.msra.gmra.mrb[40].mxu1 %vm17043_vm4, %v12510_v6 }
0x1dc7   :  { %v12528_v59 = vpop.f32.mrb[40].mxu1 }
0x1dc8   :  { %v5209_v55 = vmax.f32 %v12528_v59, 0.0  ;;  %v5199_v49 = vpop.f32.mrb[41].mxu1 }
0x1dc9   :  { %v5208_v28 = vmax.f32 %v5199_v49, 0.0 }
0x1dca   :  { %v5213_v36 = vsel %vm17042_vm9, %v5209_v55, -inf }
0x1dcb   :  { %5214 = vmax.xlane.f32.xlu1 %v5213_v36  ;;  %v5210_v31 = vsel %vm17042_vm9, %v5208_v28, -inf }
0x1dcc   :  { %5211 = vmax.xlane.f32.xlu0 %v5210_v31 }
0x1e58   :  { %v5215_v2 = vpop.xlane.xlu1 %5214 }
0x1e59   :  { %v5217_v52 = vsub.f32 %v5209_v55, %v5215_v2  ;;  %v5212_v3 = vpop.xlane.xlu0 %5211 }
0x1e5a   :  { %v5216_v26 = vsub.f32 %v5208_v28, %v5212_v3 }
0x1e5b   :  { %v5220_v16 = vmul.f32 1.442695, %v5217_v52 }
0x1e5c   :  { %v5218_v61 = vmul.f32 1.442695, %v5216_v26 }
0x1e5d   :  { %14081 = vpow2.f32 %v5220_v16 }
0x1e5e   :  { %14083 = vpow2.f32 %v5218_v61 }
0x1e67   :  { %v14082_v63 = vpop.eup %14081 }
0x1e68   :  { %v14084_v18 = vpop.eup %14083  ;;  %v5225_v5 = vsel %vm17042_vm9, %v14082_v63, 0.0 }
0x1e69   :  { %5226 = vadd.xlane.f32.xlu1 %v5225_v5  ;;  %v5222_v39 = vsel %vm17042_vm9, %v14084_v18, 0.0 }
0x1e6a   :  { %5223 = vadd.xlane.f32.xlu0 %v5222_v39 }
0x1ef6   :  { %v5227_v9 = vpop.xlane.xlu1 %5226 }
0x1ef7   :  { %14085 = vrcp.f32 %v5227_v9  ;;  %v5224_v30 = vpop.xlane.xlu0 %5223 }
0x1ef8   :  { %14087 = vrcp.f32 %v5224_v30 }
0x1f01   :  { %v14086_v14 = vpop.eup %14085 }
0x1f02   :  { %v14088_v12 = vpop.eup %14087  ;;  %v5231_v38 = vmul.f32 %v14086_v14, %v14082_v63  ;;  %v14264_v14 = vld [vmem:[#allocation8] ss:$0 sm:$0xff] }
0x1f03   :  { %v5230_v35 = vmul.f32 %v14088_v12, %v14084_v18 }
0x1f04   :  { %v15829_v27 = vadd.f32 %v15241_v1, %v5231_v38 }
0x1f05   :  { %v5232_v23 = vadd.f32 %v15244_v8, %v5230_v35  ;;  %v14265_v35 = vld [vmem:[#allocation10] ss:$0 sm:$0xff] }
0x1f06   :  { %v5237_v43 = vsel %vm17042_vm9, %v15829_v27, 0.0 }
0x1f07   :  { %5238 = vadd.xlane.f32.xlu1 %v5237_v43  ;;  %12544 = vmatprep.mubr.msk.f32.mxu1 %vm17042_vm9, %v5232_v23  ;;  %v5234_v40 = vsel %vm17042_vm9, %v5232_v23, 0.0 }
0x1f08   :  { %12562 = vmatprep.mubr.msk.f32.mxu0 %vm17042_vm9, %v5232_v23  ;;  %5235 = vadd.xlane.f32.xlu0 %v5234_v40 }
0x1f94   :  { %v5239_v51 = vpop.xlane.xlu1 %5238 }
0x1f95   :  { %v5241_v48 = vmax.f32 %v5239_v51, 1e-12  ;;  %v5236_v37 = vpop.xlane.xlu0 %5235 }
0x1f96   :  { %v5240_v60 = vmax.f32 %v5236_v37, 1e-12 }
0x1f97   :  { %14089 = vrsqrt.f32 %v5241_v48 }
0x1f98   :  { %14091 = vrsqrt.f32 %v5240_v60  ;;  %v314_v60 = vld [vmem:[%s17101_s27 + $0x100] sm:$0xff] }
0x1fa1   :  { %v15837_v11 = vpop.eup %14089 }
0x1fa2   :  { %17099 = vst [vmem:[#allocation44_spill] sm:$0xff] %v15837_v11  ;;  %v15839_v15 = vpop.eup %14091  ;;  %v5320_v34 = vmul.f32 %v15837_v11, %v12539_v57 }
0x1fa3   :  { %17100 = vst [vmem:[#allocation45_spill] sm:$0xff] %v15839_v15  ;;  %v5319_v19 = vmul.f32 %v15839_v15, %v5310_v58 }
0x1fa5   :  { %v13347_v21 = vpack.c.bf16 %v5320_v34, %v5319_v19  ;;  %v315_v34 = vld [vmem:[%s17101_s27 + $0x108] sm:$0x3f] }
0x1fa6   :  { %v13395_v19 = vpack.c.bf16 %v315_v34, %v314_v60  ;;  %v295_v60 = vld [vmem:[%s17101_s27 + $0x68] sm:$0xff]  ;;  %v312_v34 = vld [vmem:[%s17101_s27 + $0xf0] sm:$0xff] }
0x1fa7   :  { %13348 = vmatprep.subr.bf16.mxu1 %v13347_v21 }
0x1fa8   :  { %13350 = vmatpush3.bf16.msra.mxu1 %v13347_v21  ;;  %v242_v21 = vld [vmem:[%s17102_s8 + $0x10] sm:$0xff] }
0x1fa9   :  { %13352 = vmatprep.subr.bf16.mxu1 %v15272_v24 }
0x1fab   :  { %12545 = vmatmul.mubr.msk.f32.vlgmr.msra.gmra.mrb[42].mxu1 %vm17042_vm9, %v15829_v27 }
0x1fac   :  { %13354 = vmatpush3.bf16.msra.mxu1 %v15272_v24 }
0x1fad   :  { %13356 = vmatprep.subr.bf16.mxu1 %v15277_v42 }
0x1fb0   :  { %13358 = vmatpush3.bf16.msra.mxu1 %v15277_v42 }
0x1fb1   :  { %13397 = vmatprep.subr.msk.bf16.mxu1 %vm15295_vm15, %v13395_v19 }
0x207e   :  { %v12546_v17 = vpop.f32.mrb[42].mxu1 }
0x207f   :  { %v5403_v53 = vmul.f32 %v15837_v11, %v12546_v17  ;;  %v5393_v10 = vpop.f32.mrb[43].mxu1  ;;  %v245_v17 = vld [vmem:[%s17102_s8 + $0x28] sm:$0xff] }
0x2080   :  { %v5402_v33 = vmul.f32 %v15839_v15, %v5393_v10 }
0x2081   :  { %v5405_v7 = vadd.f32 %v14263_v45, %v5403_v53 }
0x2082   :  { %v5404_v22 = vadd.f32 %v14263_v45, %v5402_v33  ;;  %v299_v45 = vld [vmem:[%s17101_s27 + $0x88] sm:$0xff] }
0x2083   :  { %v5407_v56 = vsel %vm17043_vm4, %v5405_v7, 0.0 }
0x2084   :  { %v5406_v46 = vsel %vm17043_vm4, %v5404_v22, 0.0 }
0x2085   :  { %v5408_v20 = vadd.f32 %v5407_v56, %v5406_v46  ;;  %v13363_v56 = vpack.c.bf16 %v299_v45, %v298_v62  ;;  %v282_v46 = vld [vmem:[%s17101_s27] sm:$0xff] }
0x2086   :  { %v240_v62 = vld [vmem:[%s17102_s8] sm:$0xff] }
0x2087   :  { %v5409_v6 = vrot.slane %v5408_v20, 4  ;;  %v244_v45 = vld [vmem:[%s17102_s8 + $0x20] sm:$0xff] }
0x2089   :  { %v5410_v29 = vadd.f32 %v5409_v6, %v5408_v20  ;;  %v283_v20 = vld [vmem:[%s17101_s27 + $0x8] sm:$0xff]  ;;  %v300_v6 = vld [vmem:[%s17101_s27 + $0x90] sm:$0xff] }
0x208b   :  { %v5411_v54 = vrot.slane %v5410_v29, 2 }
0x208d   :  { %v5412_v44 = vadd.f32 %v5411_v54, %v5410_v29  ;;  %v301_v29 = vld [vmem:[%s17101_s27 + $0x98] sm:$0xff]  ;;  %v13365_v54 = vpack.c.bf16 %v283_v20, %v282_v46 }
0x208f   :  { %v5413_v47 = vrot.slane %v5412_v44, 1 }
0x2091   :  { %v5414_v57 = vadd.f32 %v5413_v47, %v5412_v44  ;;  %v13367_v44 = vpack.c.bf16 %v301_v29, %v300_v6  ;;  %v284_v47 = vld [vmem:[%s17101_s27 + $0x10] sm:$0xff] }
0x2092   :  { %v11379_v29 = vld [vmem:[%s17061_s6 + $0x50] sm:$0xff] }
0x2093   :  { %v5415_v58 = vmul.f32 0.0625, %v5414_v57  ;;  %v285_v57 = vld [vmem:[%s17101_s27 + $0x18] sm:$0xff] }
0x2095   :  { %v5416_v59 = vsub.f32 %v5404_v22, %v5415_v58  ;;  %v5417_v55 = vsub.f32 %v5405_v7, %v5415_v58  ;;  %v241_v58 = vld [vmem:[%s17102_s8 + $0x8] sm:$0xff] }
0x2097   :  { %v5418_v49 = vmul.f32 %v5416_v59, %v5416_v59  ;;  %v5419_v28 = vmul.f32 %v5417_v55, %v5417_v55 }
0x2099   :  { %v5420_v36 = vsel %vm17043_vm4, %v5418_v49, 0.0  ;;  %v5421_v31 = vsel %vm17043_vm4, %v5419_v28, 0.0  ;;  %v13369_v49 = vpack.c.bf16 %v285_v57, %v284_v47 }
0x209a   :  { %v5422_v2 = vadd.f32 %v5421_v31, %v5420_v36  ;;  %v286_v36 = vld [vmem:[%s17101_s27 + $0x20] sm:$0xff]  ;;  %v287_v31 = vld [vmem:[%s17101_s27 + $0x28] sm:$0xff] }
0x209c   :  { %v5423_v52 = vrot.slane %v5422_v2, 4 }
0x209e   :  { %v5424_v3 = vadd.f32 %v5423_v52, %v5422_v2  ;;  %v304_v2 = vld [vmem:[%s17101_s27 + $0xb0] sm:$0xff]  ;;  %v13373_v52 = vpack.c.bf16 %v287_v31, %v286_v36 }
0x20a0   :  { %v5425_v26 = vrot.slane %v5424_v3, 2 }
0x20a2   :  { %v5426_v16 = vadd.f32 %v5425_v26, %v5424_v3  ;;  %v288_v26 = vld [vmem:[%s17101_s27 + $0x30] sm:$0xff] }
0x20a4   :  { %v5427_v61 = vrot.slane %v5426_v16, 1 }
0x20a6   :  { %v5428_v63 = vadd.f32 %v5427_v61, %v5426_v16  ;;  %v289_v16 = vld [vmem:[%s17101_s27 + $0x38] sm:$0xff]  ;;  %v306_v61 = vld [vmem:[%s17101_s27 + $0xc0] sm:$0xff] }
0x20a8   :  { %v5429_v18 = vmul.f32 0.0625, %v5428_v63  ;;  %v307_v63 = vld [vmem:[%s17101_s27 + $0xc8] sm:$0xff] }
0x20aa   :  { %v5430_v5 = vadd.f32 1e-05, %v5429_v18  ;;  %v13377_v18 = vpack.c.bf16 %v289_v16, %v288_v26  ;;  %v11381_v26 = vld [vmem:[#allocation5 + $0x2] ss:$0 sm:$0xff] }
0x20ac   :  { %14093 = vrsqrt.f32 %v5430_v5  ;;  %v13379_v5 = vpack.c.bf16 %v307_v63, %v306_v61 }
0x20b6   :  { %v14094_v39 = vpop.eup %14093 }
0x20b7   :  { %v5432_v9 = vmul.f32 %v14094_v39, %v5416_v59  ;;  %v5433_v30 = vmul.f32 %v14094_v39, %v5417_v55  ;;  %v302_v59 = vld [vmem:[%s17101_s27 + $0xa0] sm:$0xff]  ;;  %v303_v55 = vld [vmem:[%s17101_s27 + $0xa8] sm:$0xff] }
0x20b8   :  { %v13371_v28 = vpack.c.bf16 %v303_v55, %v302_v59  ;;  %v290_v39 = vld [vmem:[%s17101_s27 + $0x40] sm:$0xff] }
0x20b9   :  { %v5434_v12 = vmul.f32 %v14264_v14, %v5432_v9  ;;  %v5435_v38 = vmul.f32 %v14264_v14, %v5433_v30  ;;  %v291_v9 = vld [vmem:[%s17101_s27 + $0x48] sm:$0xff]  ;;  %v308_v30 = vld [vmem:[%s17101_s27 + $0xd0] sm:$0xff]  ;;  %v309_v14 = vld [vmem:[%s17101_s27 + $0xd8] sm:$0xff] }
0x20ba   :  { %v11373_v55 = vld [vmem:[#allocation2 + $0x2] ss:$0 sm:$0xff] }
0x20bb   :  { %v5436_v23 = vadd.f32 %v14265_v35, %v5434_v12  ;;  %v5437_v43 = vadd.f32 %v14265_v35, %v5435_v38  ;;  %v13381_v12 = vpack.c.bf16 %v291_v9, %v290_v39  ;;  %v13383_v38 = vpack.c.bf16 %v309_v14, %v308_v30  ;;  %v292_v35 = vld [vmem:[%s17101_s27 + $0x50] sm:$0xff] }
0x20bd   :  { %vm5438_vm1 = vcmp.ge.f32.partialorder %v5436_v23, 0.0  ;;  %v5440_v40 = vmul.f32 0.01, %v5436_v23  ;;  %vm5439_vm2 = vcmp.ge.f32.partialorder %v5437_v43, 0.0  ;;  %v5441_v51 = vmul.f32 0.01, %v5437_v43 }
0x20bf   :  { %v5442_v48 = vsel %vm5438_vm1, %v5436_v23, %v5440_v40  ;;  %v5443_v37 = vsel %vm5439_vm2, %v5437_v43, %v5441_v51  ;;  %v293_v23 = vld [vmem:[%s17101_s27 + $0x58] sm:$0xff]  ;;  %v310_v43 = vld [vmem:[%s17101_s27 + $0xe0] sm:$0xff]  ;;  %v311_v40 = vld [vmem:[%s17101_s27 + $0xe8] sm:$0xff] }
0x20c0   :  { %12555 = vmatprep.mubr.msk.f32.mxu1 %vm17043_vm4, %v5442_v48  ;;  %v13385_v51 = vpack.c.bf16 %v293_v23, %v292_v35  ;;  %v13387_v48 = vpack.c.bf16 %v311_v40, %v310_v43  ;;  %v17104_v35 = vld [vmem:[#allocation28_spill] sm:$0xff]  ;;  %v17105_v43 = vld [vmem:[#allocation31_spill] sm:$0xff] }
0x20c1   :  { %12556 = vmatmul.mubr.msk.f32.vlgmr.msra.gmra.mrb[44].mxu1 %vm17043_vm4, %v5443_v37  ;;  %v294_v37 = vld [vmem:[%s17101_s27 + $0x60] sm:$0xff] }
0x20c2   :  { %13400 = vmatpush3.bf16.msk.msra.mxu1 %vm15295_vm15, %v13395_v19  ;;  %12569 = vmatprep.mubr.msk.f32.mxu1 %vm2984_vm0, %v242_v21  ;;  %v313_v19 = vld [vmem:[%s17101_s27 + $0xf8] sm:$0xff]  ;;  %v13389_v21 = vpack.c.bf16 %v295_v60, %v294_v37 }
0x20c5   :  { %12570 = vmatmul.mubr.msk.f32.vlgmr.msra.gmra.mrb[46].mxu1 %vm2984_vm0, %v245_v17  ;;  %v13391_v17 = vpack.c.bf16 %v313_v19, %v312_v34  ;;  %v17107_v34 = vld [vmem:[#allocation34_spill] sm:$0xff] }
0x2194   :  { %v12557_v53 = vpop.f32.mrb[44].mxu1 }
0x2195   :  { %v5526_v10 = vmul.f32 %v15837_v11, %v12557_v53  ;;  %v5516_v33 = vpop.f32.mrb[45].mxu1  ;;  %v296_v53 = vld [vmem:[%s17101_s27 + $0x70] sm:$0xff] }
0x2196   :  { %v5525_v7 = vmul.f32 %v15839_v15, %v5516_v33 }
0x2198   :  { %v13359_v22 = vpack.c.bf16 %v5526_v10, %v5525_v7  ;;  %v297_v10 = vld [vmem:[%s17101_s27 + $0x78] sm:$0xff]  ;;  %v12571_v20 = vpop.f32.mrb[46].mxu1 }
0x2199   :  { %v13393_v33 = vpack.c.bf16 %v297_v10, %v296_v53  ;;  %v243_v7 = vld [vmem:[%s17102_s8 + $0x18] sm:$0xff]  ;;  %v5764_v6 = vpop.f32.mrb[47].mxu1 }
0x219a   :  { %13360 = vmatprep.subr.bf16.mxu0 %v13359_v22  ;;  %v17108_v10 = vld [vmem:[#allocation36_spill] sm:$0xff] }
0x219b   :  { %13362 = vmatpush3.bf16.msra.mxu0 %v13359_v22  ;;  %v11377_v22 = vld [vmem:[%s17061_s6 + $0x40] sm:$0xff] }
0x219c   :  { %13364 = vmatprep.subr.bf16.mxu0 %v13363_v56  ;;  %v11378_v56 = vld [vmem:[%s17061_s6 + $0x48] sm:$0xff] }
0x219d   :  { %v13401_v46 = vpack.c.bf16 %v11378_v56, %v11377_v22 }
0x219e   :  { %12563 = vmatmul.mubr.msk.f32.vlgmr.msra.gmra.mrb[32].mxu0 %vm17042_vm9, %v15829_v27  ;;  %v305_v27 = vld [vmem:[%s17101_s27 + $0xb8] sm:$0xff] }
0x219f   :  { %13366 = vmatpush3.bf16.msra.mxu0 %v13365_v54  ;;  %5687 = vmatprep.mubr.f32.mxu0 %v241_v58  ;;  %v13375_v3 = vpack.c.bf16 %v305_v27, %v304_v2  ;;  %v11380_v54 = vld [vmem:[%s17061_s6 + $0x58] sm:$0xff] }
0x21a0   :  { %13368 = vmatprep.subr.bf16.mxu0 %v13367_v44  ;;  %13402 = vmatprep.subr.bf16.mxu1 %v13401_v46  ;;  %v13405_v44 = vpack.c.bf16 %v11380_v54, %v11379_v29 }
0x21a1   :  { %13404 = vmatpush3.bf16.msra.mxu1 %v13401_v46  ;;  %v17110_v46 = vld [vmem:[#allocation35_spill] sm:$0xff] }
0x21a2   :  { %13406 = vmatprep.subr.bf16.mxu1 %v13405_v44 }
0x21a3   :  { %13370 = vmatpush3.bf16.msra.mxu0 %v13369_v49 }
0x21a4   :  { %13372 = vmatprep.subr.bf16.mxu0 %v13371_v28 }
0x21a5   :  { %13408 = vmatpush3.bf16.msra.mxu1 %v13405_v44 }
0x21a7   :  { %13374 = vmatpush3.bf16.msra.mxu0 %v13373_v52 }
0x21a8   :  { %13376 = vmatprep.subr.bf16.mxu0 %v13375_v3 }
0x21ab   :  { %13378 = vmatpush3.bf16.msra.mxu0 %v13377_v18 }
0x21ac   :  { %13380 = vmatprep.subr.bf16.mxu0 %v13379_v5 }
0x21af   :  { %13382 = vmatpush3.bf16.msra.mxu0 %v13381_v12 }
0x21b0   :  { %13384 = vmatprep.subr.bf16.mxu0 %v13383_v38 }
0x21b3   :  { %13386 = vmatpush3.bf16.msra.mxu0 %v13385_v51 }
0x21b4   :  { %13388 = vmatprep.subr.bf16.mxu0 %v13387_v48  ;;  %v17106_v48 = vld [vmem:[#allocation33_spill] sm:$0xff] }
0x21b7   :  { %13390 = vmatpush3.bf16.msra.mxu0 %v13389_v21 }
0x21b8   :  { %13392 = vmatprep.subr.bf16.mxu0 %v13391_v17 }
0x21bb   :  { %13394 = vmatpush3.bf16.msra.mxu0 %v13393_v33 }
0x21be   :  { %5688 = vmatmul.mubr.f32.vlgmr.msra.gmra.mrb[34].mxu0 %v240_v62 }
0x21bf   :  { %5692 = vmatprep.mubr.f32.mxu0 %v244_v45 }
0x21c2   :  { %5693 = vmatmul.mubr.f32.gmra.mrb[36].mxu0 %v243_v7  ;;  %v17109_v7 = vld [vmem:[#allocation38_spill] sm:$0xff] }
0x2271   :  { %v16002_v47 = vpop.f32.mrb[32].mxu0 }
0x2272   :  { %17103 = vst [vmem:[#allocation46_spill] sm:$0xff] %v16002_v47  ;;  %v16004_v57 = vpop.f32.mrb[33].mxu0 }
0x2291   :  { %v11884_v58 = vpop.f32.mrb[34].mxu0 }
0x2292   :  { %v11885_v59 = vpop.f32.mrb[35].mxu0 }
0x2293   :  { %v11886_v49 = vadd.f32 %v11885_v59, %v11884_v58 }
0x2295   :  { %v11887_v28 = vpop.f32.mrb[36].mxu0  ;;  %v5690_v36 = vadd.f32 %v11886_v49, %v11373_v55 }
0x2296   :  { %v11888_v31 = vpop.f32.mrb[37].mxu0 }
0x2297   :  { %v11889_v2 = vadd.f32 %v11888_v31, %v11887_v28  ;;  %v16006_v27 = vadd.f32 %v5764_v6, %v5690_v36 }
0x2299   :  { %v5695_v52 = vadd.f32 %v11889_v2, %v11373_v55  ;;  %12580 = vmatprep.mubr.msk.f32.mxu1 %vm17043_vm4, %v16006_v27  ;;  %v17111_v2 = vld [vmem:[#allocation27_spill] sm:$0xff] }
0x229b   :  { %v16010_v3 = vadd.f32 %v12571_v20, %v5695_v52 }
0x229d   :  { %12581 = vmatmul.mubr.msk.f32.vlgmr.msra.gmra.mrb[48].mxu1 %vm17043_vm4, %v16010_v3 }
0x2370   :  { %v12582_v16 = vpop.f32.mrb[48].mxu1 }
0x2371   :  { %v5864_v61 = vadd.f32 %v12582_v16, %v11381_v26  ;;  %v5858_v63 = vpop.f32.mrb[49].mxu1 }
0x2372   :  { %v5859_v18 = vadd.f32 %v11381_v26, %v5858_v63  ;;  %v17112_v26 = vld [vmem:[#allocation32_spill] sm:$0xff]  ;;  %v17113_v63 = vld [vmem:[#allocation29_spill] sm:$0xff] }
0x2373   :  { %v16020_v30 = vmul.f32 %v5864_v61, %v14988_v13  ;;  %v16026_v12 = vmul.f32 %v5864_v61, %v14967_v25  ;;  %v16034_v40 = vmul.f32 %v5864_v61, %v17105_v43  ;;  %v16049_v60 = vmul.f32 %v17106_v48, %v5864_v61 }
0x2374   :  { %v13886_v5 = vpack.i.bf16 %v5864_v61, %v5859_v18  ;;  %v16014_v39 = vmul.f32 0.5, %v5859_v18  ;;  %v16017_v9 = vmul.f32 %v5859_v18, %v14988_v13  ;;  %v16023_v14 = vmul.f32 %v5859_v18, %v14967_v25 }
0x2375   :  { %v16043_v51 = vmul.f32 %v5859_v18, %v17105_v43  ;;  %v16046_v37 = vmul.f32 %v17106_v48, %v5859_v18  ;;  %v16052_v19 = vmul.f32 %v17107_v34, %v5859_v18  ;;  %v16055_v21 = vmul.f32 %v17107_v34, %v5864_v61  ;;  %v17115_v43 = vld [vmem:[#allocation37_spill] sm:$0xff] }
0x2376   :  { %13887 = vrot.lane.b32.xlu0 %v13886_v5, %s14502_s15  ;;  %v5869_v38 = vmul.f32 %v16014_v39, %v14833_v32  ;;  %v6271_v23 = vmul.f32 %v16014_v39, %v17104_v35  ;;  %v16062_v33 = vmul.f32 %v17108_v10, %v5859_v18  ;;  %v16065_v62 = vmul.f32 %v17108_v10, %v5864_v61 }
0x2377   :  { %v16070_v22 = vmul.f32 %v5859_v18, %v17109_v7  ;;  %v16073_v56 = vmul.f32 %v5864_v61, %v17109_v7  ;;  %v16076_v20 = vmul.f32 %v17110_v46, %v5859_v18  ;;  %v16081_v29 = vmul.f32 %v17110_v46, %v5864_v61 }
0x2378   :  { %12587 = vmatprep.mubr.msk.f32.mxu1 %vm17043_vm4, %v5869_v38  ;;  %12615 = vmatprep.mubr.msk.f32.mxu0 %vm17043_vm4, %v6271_v23  ;;  %v16107_v28 = vmul.f32 0.5, %v5864_v61  ;;  %v5986_v52 = vmul.f32 %v16014_v39, %v17111_v2  ;;  %v6469_v16 = vmul.f32 %v16014_v39, %v17112_v26  ;;  %v6865_v18 = vmul.f32 %v16014_v39, %v17113_v63  ;;  %v17114_v38 = vld [vmem:[#allocation30_spill] sm:$0xff] }
0x2379   :  { %v7261_v48 = vmul.f32 %v16014_v39, %v17115_v43 }
0x237a   :  { %v5870_v36 = vmul.f32 %v16107_v28, %v14833_v32  ;;  %v6272_v31 = vmul.f32 %v16107_v28, %v17104_v35  ;;  %v5987_v32 = vmul.f32 %v16107_v28, %v17111_v2  ;;  %v6470_v61 = vmul.f32 %v16107_v28, %v17112_v26 }
0x237b   :  { %v6866_v5 = vmul.f32 %v16107_v28, %v17113_v63  ;;  %v7063_v35 = vmul.f32 %v16014_v39, %v17114_v38  ;;  %v7064_v23 = vmul.f32 %v16107_v28, %v17114_v38  ;;  %v7262_v34 = vmul.f32 %v16107_v28, %v17115_v43 }
0x23e8   :  { %v13888_v58 = vpop.permute.xlu0 %13887 }
0x23e9   :  { %v13890_v59 = vunpack.i.h.bf16 %v13888_v58  ;;  %v13889_v55 = vunpack.i.l.bf16 %v13888_v58 }
0x23eb   :  { %v16087_v49 = vpack.c.bf16 %v13890_v59, %v13889_v55 }
0x23ed   :  { %13411 = vmatprep.subr.msk.bf16.mxu1 %vm14852_vm8, %v16087_v49  ;;  %13431 = vmatprep.subr.msk.bf16.mxu0 %vm14852_vm8, %v16087_v49 }
0x23ee   :  { %13414 = vmatpush3.bf16.xpose.msk.msra.mxu1 %vm14852_vm8, %v16087_v49  ;;  %13434 = vmatpush3.bf16.xpose.msk.msra.mxu0 %vm14852_vm8, %v16087_v49 }
0x23ef   :  { %13417 = vmatprep.subr.msk.bf16.mxu1 %vm14852_vm8, %v16087_v49  ;;  %13441 = vmatprep.subr.msk.bf16.mxu0 %vm14852_vm8, %v16087_v49 }
0x23f5   :  { %12588 = vmatmul.mubr.msk.f32.vlgmr.msra.gmra.mrb[50].mxu1 %vm17043_vm4, %v5870_v36  ;;  %12616 = vmatmul.mubr.msk.f32.vlgmr.msra.gmra.mrb[38].mxu0 %vm17043_vm4, %v6272_v31 }
0x23f6   :  { %13420 = vmatpush3.bf16.xpose.msk.msra.mxu1 %vm14852_vm8, %v16087_v49  ;;  %12594 = vmatprep.mubr.msk.f32.mxu1 %vm17043_vm4, %v5986_v52 }
0x23f7   :  { %13444 = vmatpush3.bf16.xpose.msk.msra.mxu0 %vm14852_vm8, %v16087_v49  ;;  %12629 = vmatprep.mubr.msk.f32.mxu0 %vm17043_vm4, %v6469_v16 }
0x23f8   :  { %13461 = vmatprep.subr.msk.bf16.mxu0 %vm14852_vm8, %v16087_v49 }
0x23fd   :  { %12595 = vmatmul.mubr.msk.f32.vlgmr.msra.gmra.mrb[52].mxu1 %vm17043_vm4, %v5987_v32 }
0x23fe   :  { %12630 = vmatmul.mubr.msk.f32.vlgmr.msra.gmra.mrb[40].mxu0 %vm17043_vm4, %v6470_v61 }
0x23ff   :  { %13464 = vmatpush3.bf16.xpose.msk.msra.mxu0 %vm14852_vm8, %v16087_v49  ;;  %12657 = vmatprep.mubr.msk.f32.mxu0 %vm17043_vm4, %v6865_v18 }
0x2400   :  { %13471 = vmatprep.subr.msk.bf16.mxu0 %vm14852_vm8, %v16087_v49 }
0x2406   :  { %12658 = vmatmul.mubr.msk.f32.vlgmr.msra.gmra.mrb[42].mxu0 %vm17043_vm4, %v6866_v5 }
0x2407   :  { %13474 = vmatpush3.bf16.xpose.msk.msra.mxu0 %vm14852_vm8, %v16087_v49  ;;  %12671 = vmatprep.mubr.msk.f32.mxu0 %vm17043_vm4, %v7063_v35 }
0x2408   :  { %13481 = vmatprep.subr.msk.bf16.mxu0 %vm14852_vm8, %v16087_v49 }
0x240e   :  { %12672 = vmatmul.mubr.msk.f32.vlgmr.msra.gmra.mrb[44].mxu0 %vm17043_vm4, %v7064_v23 }
0x240f   :  { %13484 = vmatpush3.bf16.xpose.msk.msra.mxu0 %vm14852_vm8, %v16087_v49  ;;  %12685 = vmatprep.mubr.msk.f32.mxu0 %vm17043_vm4, %v7261_v48 }
0x2416   :  { %12686 = vmatmul.mubr.msk.f32.vlgmr.msra.gmra.mrb[46].mxu0 %vm17043_vm4, %v7262_v34 }
0x24c8   :  { %v12589_v10 = vpop.f32.mrb[50].mxu1  ;;  %v12617_v7 = vpop.f32.mrb[38].mxu0 }
0x24c9   :  { %v5953_v46 = vpop.f32.mrb[51].mxu1  ;;  %v6345_v58 = vpop.f32.mrb[39].mxu0  ;;  %v5965_v63 = vsel %vm17042_vm9, %v12589_v10, -inf  ;;  %v6357_v35 = vsel %vm17042_vm9, %v12617_v7, -inf }
0x24ca   :  { %v5962_v61 = vsel %vm17042_vm9, %v5953_v46, -inf  ;;  %v6354_v38 = vsel %vm17042_vm9, %v6345_v58, -inf }
0x24d0   :  { %v12596_v59 = vpop.f32.mrb[52].mxu1 }
0x24d1   :  { %v12631_v55 = vpop.f32.mrb[40].mxu0  ;;  %v6060_v36 = vpop.f32.mrb[53].mxu1  ;;  %v6072_v26 = vsel %vm17042_vm9, %v12596_v59, -inf }
0x24d2   :  { %v6543_v31 = vpop.f32.mrb[41].mxu0  ;;  %v6069_v2 = vsel %vm17042_vm9, %v6060_v36, -inf  ;;  %v6555_v48 = vsel %vm17042_vm9, %v12631_v55, -inf }
0x24d3   :  { %v6552_v52 = vsel %vm17042_vm9, %v6543_v31, -inf  ;;  %6070 = vmax.xlane.f32.xlu1 %v6069_v2 }
0x24d4   :  { %6553 = vmax.xlane.f32.xlu0 %v6552_v52 }
0x24d7   :  { %6073 = vmax.xlane.f32.xlu1 %v6072_v26 }
0x24d9   :  { %v16172_v16 = vpop.f32.mrb[42].mxu0 }
0x24da   :  { %v16174_v32 = vpop.f32.mrb[43].mxu0 }
0x24db   :  { %5963 = vmax.xlane.f32.xlu1 %v5962_v61 }
0x24df   :  { %5966 = vmax.xlane.f32.xlu1 %v5965_v63 }
0x24e1   :  { %v16178_v18 = vpop.f32.mrb[44].mxu0 }
0x24e2   :  { %v16180_v5 = vpop.f32.mrb[45].mxu0 }
0x24e3   :  { %6355 = vmax.xlane.f32.xlu1 %v6354_v38 }
0x24e7   :  { %6358 = vmax.xlane.f32.xlu1 %v6357_v35 }
0x24e9   :  { %v16184_v23 = vpop.f32.mrb[46].mxu0 }
0x24ea   :  { %v16186_v43 = vpop.f32.mrb[47].mxu0 }
0x24eb   :  { %6556 = vmax.xlane.f32.xlu1 %v6555_v48 }
0x2560   :  { %v6071_v34 = vpop.xlane.xlu1 %6070 }
0x2561   :  { %v6554_v54 = vpop.xlane.xlu0 %6553 }
0x2562   :  { %v6558_v35 = vsub.f32 %v6543_v31, %v6554_v54 }
0x2564   :  { %v6074_v2 = vpop.xlane.xlu1 %6073  ;;  %v6560_v48 = vmul.f32 1.442695, %v6558_v35 }
0x2565   :  { %v6076_v15 = vsub.f32 %v12596_v59, %v6074_v2  ;;  %v17117_v2 = vpack.i.bf16 %v16026_v12, %v16023_v14 }
0x2567   :  { %v6079_v54 = vmul.f32 1.442695, %v6076_v15 }
0x2568   :  { %v5964_v52 = vpop.xlane.xlu1 %5963 }
0x2569   :  { %v5968_v38 = vsub.f32 %v5953_v46, %v5964_v52  ;;  %v17118_v52 = vpack.i.bf16 %v16034_v40, %v16043_v51 }
0x256b   :  { %v5970_v53 = vmul.f32 1.442695, %v5968_v38 }
0x256c   :  { %v5967_v26 = vpop.xlane.xlu1 %5966 }
0x256d   :  { %v5969_v61 = vsub.f32 %v12589_v10, %v5967_v26 }
0x256f   :  { %v5972_v63 = vmul.f32 1.442695, %v5969_v61 }
0x2570   :  { %v6356_v44 = vpop.xlane.xlu1 %6355 }
0x2571   :  { %14095 = vpow2.f32 %v5972_v63  ;;  %v6360_v17 = vsub.f32 %v6345_v58, %v6356_v44  ;;  %v17119_v63 = vpack.i.bf16 %v16049_v60, %v16046_v37 }
0x2573   :  { %v6362_v10 = vmul.f32 1.442695, %v6360_v17 }
0x2574   :  { %v6359_v6 = vpop.xlane.xlu1 %6358 }
0x2575   :  { %v6361_v45 = vsub.f32 %v12617_v7, %v6359_v6  ;;  %v6075_v6 = vsub.f32 %v6060_v36, %v6071_v34  ;;  %v17116_v34 = vpack.i.bf16 %v16020_v30, %v16017_v9 }
0x2577   :  { %v6364_v25 = vmul.f32 1.442695, %v6361_v45 }
0x2578   :  { %v6557_v13 = vpop.xlane.xlu1 %6556 }
0x2579   :  { %14097 = vpow2.f32 %v6364_v25  ;;  %v6559_v11 = vsub.f32 %v12631_v55, %v6557_v13  ;;  %v6077_v25 = vmul.f32 1.442695, %v6075_v6 }
0x257a   :  { %14099 = vpow2.f32 %v5970_v53 }
0x257b   :  { %v16189_v47 = vpop.eup %14095  ;;  %v6562_v26 = vmul.f32 1.442695, %v6559_v11 }
0x257c   :  { %v5977_v61 = vsel %vm17042_vm9, %v16189_v47, 0.0 }
0x257d   :  { %14101 = vpow2.f32 %v6562_v26  ;;  %5978 = vadd.xlane.f32.xlu1 %v5977_v61 }
0x257e   :  { %14103 = vpow2.f32 %v6560_v48 }
0x257f   :  { %14105 = vpow2.f32 %v6362_v10 }
0x2580   :  { %14107 = vpow2.f32 %v6079_v54 }
0x2581   :  { %14109 = vpow2.f32 %v6077_v25 }
0x2583   :  { %v16193_v45 = vpop.eup %14097 }
0x2584   :  { %v6369_v13 = vsel %vm17042_vm9, %v16193_v45, 0.0  ;;  %v14100_v44 = vpop.eup %14099 }
0x2585   :  { %6370 = vadd.xlane.f32.xlu1 %v6369_v13  ;;  %v5974_v53 = vsel %vm17042_vm9, %v14100_v44, 0.0 }
0x2587   :  { %v16197_v17 = vpop.eup %14101 }
0x2588   :  { %v16199_v11 = vpop.eup %14103  ;;  %v6567_v15 = vsel %vm17042_vm9, %v16197_v17, 0.0 }
0x2589   :  { %v16204_v7 = vpop.eup %14105  ;;  %5975 = vadd.xlane.f32.xlu1 %v5974_v53  ;;  %6568 = vadd.xlane.f32.xlu0 %v6567_v15  ;;  %v6564_v58 = vsel %vm17042_vm9, %v16199_v11, 0.0 }
0x258a   :  { %v6366_v46 = vsel %vm17042_vm9, %v16204_v7, 0.0  ;;  %v14108_v59 = vpop.eup %14107 }
0x258b   :  { %v6084_v55 = vsel %vm17042_vm9, %v14108_v59, 0.0  ;;  %v14110_v36 = vpop.eup %14109 }
0x258c   :  { %v6081_v31 = vsel %vm17042_vm9, %v14110_v36, 0.0 }
0x258d   :  { %6367 = vadd.xlane.f32.xlu1 %v6366_v46  ;;  %6565 = vadd.xlane.f32.xlu0 %v6564_v58 }
0x2591   :  { %6085 = vadd.xlane.f32.xlu1 %v6084_v55 }
0x2595   :  { %6082 = vadd.xlane.f32.xlu1 %v6081_v31 }
0x25a3   :  { %13897 = vrot.lane.b32.xlu0 %v17116_v34, %s14503_s9 }
0x25a6   :  { %13892 = vrot.lane.b32.xlu1 %v17117_v2, %s14503_s9 }
0x25aa   :  { %13902 = vrot.lane.b32.xlu1 %v17118_v52, %s14503_s9 }
0x25ae   :  { %13907 = vrot.lane.b32.xlu1 %v17119_v63, %s14503_s9 }
0x260a   :  { %v5979_v38 = vpop.xlane.xlu1 %5978 }
0x2612   :  { %v6371_v35 = vpop.xlane.xlu1 %6370 }
0x2616   :  { %v5976_v48 = vpop.xlane.xlu1 %5975  ;;  %v6569_v9 = vpop.xlane.xlu0 %6568 }
0x2617   :  { %14111 = vrcp.f32 %v5976_v48 }
0x261a   :  { %v6368_v30 = vpop.xlane.xlu1 %6367  ;;  %v6566_v10 = vpop.xlane.xlu0 %6565 }
0x261e   :  { %v6086_v26 = vpop.xlane.xlu1 %6085  ;;  %v13898_v12 = vpop.permute.xlu0 %13897 }
0x261f   :  { %14113 = vrcp.f32 %v6086_v26  ;;  %v13900_v40 = vunpack.i.h.bf16 %v13898_v12  ;;  %v13899_v51 = vunpack.i.l.bf16 %v13898_v12 }
0x2621   :  { %v14112_v60 = vpop.eup %14111  ;;  %v13425_v13 = vpack.c.bf16 %v13900_v40, %v13899_v51  ;;  %v7347_v40 = vsel %vm17042_vm9, %v16184_v23, -inf  ;;  %v7344_v51 = vsel %vm17042_vm9, %v16186_v43, -inf }
0x2622   :  { %v6083_v14 = vpop.xlane.xlu1 %6082  ;;  %v5982_v34 = vmul.f32 %v14112_v60, %v14100_v44 }
0x2623   :  { %14115 = vrcp.f32 %v6083_v14 }
0x2624   :  { %14117 = vrcp.f32 %v5979_v38 }
0x2625   :  { %14119 = vrcp.f32 %v6368_v30 }
0x2626   :  { %v13893_v61 = vpop.permute.xlu1 %13892  ;;  %14121 = vrcp.f32 %v6371_v35 }
0x2627   :  { %v13895_v6 = vunpack.i.h.bf16 %v13893_v61  ;;  %v13894_v54 = vunpack.i.l.bf16 %v13893_v61  ;;  %14123 = vrcp.f32 %v6566_v10  ;;  %v6951_v61 = vsel %vm17042_vm9, %v16172_v16, -inf }
0x2628   :  { %14125 = vrcp.f32 %v6569_v9  ;;  %v6667_v9 = vmul.f32 %v16014_v39, %v14897_v50 }
0x2629   :  { %v13421_v25 = vpack.c.bf16 %v13895_v6, %v13894_v54  ;;  %v14114_v53 = vpop.eup %14113 }
0x262a   :  { %v13903_v37 = vpop.permute.xlu1 %13902  ;;  %v6090_v31 = vmul.f32 %v14114_v53, %v14108_v59 }
0x262b   :  { %13422 = vmatprep.subr.bf16.mxu1 %v13421_v25  ;;  %v13905_v46 = vunpack.i.h.bf16 %v13903_v37  ;;  %v13904_v58 = vunpack.i.l.bf16 %v13903_v37 }
0x262c   :  { %13424 = vmatpush3.bf16.msra.mxu1 %v13421_v25 }
0x262d   :  { %v14116_v15 = vpop.eup %14115  ;;  %13426 = vmatprep.subr.bf16.mxu1 %v13425_v13  ;;  %v13435_v2 = vpack.c.bf16 %v13905_v46, %v13904_v58 }
0x262e   :  { %v6089_v55 = vmul.f32 %v14116_v15, %v14110_v36  ;;  %v13908_v52 = vpop.permute.xlu1 %13907  ;;  %v14118_v63 = vpop.eup %14117 }
0x262f   :  { %v14120_v38 = vpop.eup %14119  ;;  %v13910_v48 = vunpack.i.h.bf16 %v13908_v52  ;;  %v13909_v30 = vunpack.i.l.bf16 %v13908_v52  ;;  %v5983_v36 = vmul.f32 %v14118_v63, %v16189_v47 }
0x2630   :  { %12601 = vmatprep.mubr.msk.f32.mxu1 %vm17042_vm9, %v6089_v55  ;;  %v6374_v59 = vmul.f32 %v14120_v38, %v16204_v7  ;;  %v14122_v44 = vpop.eup %14121 }
0x2631   :  { %12602 = vmatmul.mubr.msk.f32.vlgmr.msra.gmra.mrb[54].mxu1 %vm17042_vm9, %v6090_v31  ;;  %v13445_v26 = vpack.c.bf16 %v13910_v48, %v13909_v30  ;;  %v14124_v35 = vpop.eup %14123  ;;  %v6375_v10 = vmul.f32 %v14122_v44, %v16193_v45  ;;  %v6668_v45 = vmul.f32 %v16107_v28, %v14897_v50  ;;  %v7149_v50 = vsel %vm17042_vm9, %v16178_v18, -inf }
0x2632   :  { %13428 = vmatpush3.bf16.msra.mxu1 %v13425_v13  ;;  %12608 = vmatprep.mubr.msk.f32.mxu1 %vm17042_vm9, %v5982_v34  ;;  %v6572_v14 = vmul.f32 %v14124_v35, %v16199_v11  ;;  %v14126_v47 = vpop.eup %14125  ;;  %v7146_v28 = vsel %vm17042_vm9, %v16180_v5, -inf }
0x2633   :  { %13436 = vmatprep.subr.bf16.mxu1 %v13435_v2  ;;  %v6573_v7 = vmul.f32 %v14126_v47, %v16197_v17 }
0x2639   :  { %12609 = vmatmul.mubr.msk.f32.vlgmr.msra.gmra.mrb[54].mxu1 %vm17042_vm9, %v5983_v36 }
0x263a   :  { %13438 = vmatpush3.bf16.msra.mxu1 %v13435_v2  ;;  %12622 = vmatprep.mubr.msk.f32.mxu1 %vm17042_vm9, %v6374_v59 }
0x263b   :  { %13446 = vmatprep.subr.bf16.mxu1 %v13445_v26 }
0x2641   :  { %12623 = vmatmul.mubr.msk.f32.vlgmr.msra.gmra.mrb[54].mxu1 %vm17042_vm9, %v6375_v10 }
0x2642   :  { %13448 = vmatpush3.bf16.msra.mxu1 %v13445_v26  ;;  %12636 = vmatprep.mubr.msk.f32.mxu1 %vm17042_vm9, %v6572_v14 }
0x2643   :  { %13451 = vmatprep.subr.msk.bf16.mxu1 %vm14852_vm8, %v16087_v49 }
0x2649   :  { %12637 = vmatmul.mubr.msk.f32.vlgmr.msra.gmra.mrb[54].mxu1 %vm17042_vm9, %v6573_v7 }
0x264a   :  { %12643 = vmatprep.mubr.msk.f32.mxu1 %vm17043_vm4, %v6667_v9 }
0x264b   :  { %13454 = vmatpush3.bf16.xpose.msk.msra.mxu1 %vm14852_vm8, %v16087_v49  ;;  %v6948_v49 = vsel %vm17042_vm9, %v16174_v32, -inf }
0x2652   :  { %12644 = vmatmul.mubr.msk.f32.vlgmr.msra.gmra.mrb[56].mxu1 %vm17043_vm4, %v6668_v45 }
0x2725   :  { %v12645_v11 = vpop.f32.mrb[56].mxu1 }
0x2726   :  { %v6741_v12 = vpop.f32.mrb[57].mxu1  ;;  %v6753_v17 = vsel %vm17042_vm9, %v12645_v11, -inf }
0x2727   :  { %6754 = vmax.xlane.f32.xlu0 %v6753_v17  ;;  %v6750_v39 = vsel %vm17042_vm9, %v6741_v12, -inf }
0x2728   :  { %6751 = vmax.xlane.f32.xlu1 %v6750_v39 }
0x272b   :  { %6952 = vmax.xlane.f32.xlu0 %v6951_v61  ;;  %v17120_v61 = vpack.i.bf16 %v16055_v21, %v16052_v19 }
0x272c   :  { %6949 = vmax.xlane.f32.xlu1 %v6948_v49  ;;  %v17121_v49 = vpack.i.bf16 %v16065_v62, %v16062_v33 }
0x272f   :  { %7150 = vmax.xlane.f32.xlu0 %v7149_v50  ;;  %v17122_v50 = vpack.i.bf16 %v16073_v56, %v16070_v22 }
0x2730   :  { %7147 = vmax.xlane.f32.xlu1 %v7146_v28  ;;  %v17123_v28 = vpack.i.bf16 %v16081_v29, %v16076_v20 }
0x2733   :  { %7348 = vmax.xlane.f32.xlu0 %v7347_v40 }
0x2734   :  { %7345 = vmax.xlane.f32.xlu1 %v7344_v51 }
0x27b4   :  { %v6755_v6 = vpop.xlane.xlu0 %6754 }
0x27b5   :  { %v6752_v54 = vpop.xlane.xlu1 %6751  ;;  %v6757_v53 = vsub.f32 %v12645_v11, %v6755_v6 }
0x27b6   :  { %v6756_v46 = vsub.f32 %v6741_v12, %v6752_v54 }
0x27b7   :  { %v6760_v52 = vmul.f32 1.442695, %v6757_v53 }
0x27b8   :  { %v6953_v25 = vpop.xlane.xlu0 %6952  ;;  %v6758_v38 = vmul.f32 1.442695, %v6756_v46 }
0x27b9   :  { %v6955_v37 = vsub.f32 %v16172_v16, %v6953_v25  ;;  %v6950_v60 = vpop.xlane.xlu1 %6949 }
0x27ba   :  { %v6954_v13 = vsub.f32 %v16174_v32, %v6950_v60 }
0x27bb   :  { %v6958_v15 = vmul.f32 1.442695, %v6955_v37 }
0x27bc   :  { %v6956_v58 = vmul.f32 1.442695, %v6954_v13  ;;  %v7151_v55 = vpop.xlane.xlu0 %7150 }
0x27bd   :  { %14127 = vpow2.f32 %v6958_v15  ;;  %v7153_v31 = vsub.f32 %v16178_v18, %v7151_v55  ;;  %v7148_v34 = vpop.xlane.xlu1 %7147 }
0x27be   :  { %14129 = vpow2.f32 %v6956_v58  ;;  %v7152_v2 = vsub.f32 %v16180_v5, %v7148_v34 }
0x27bf   :  { %v7156_v63 = vmul.f32 1.442695, %v7153_v31 }
0x27c0   :  { %v7154_v48 = vmul.f32 1.442695, %v7152_v2  ;;  %v7349_v16 = vpop.xlane.xlu0 %7348 }
0x27c1   :  { %14131 = vpow2.f32 %v7156_v63  ;;  %v7346_v30 = vpop.xlane.xlu1 %7345  ;;  %v7351_v36 = vsub.f32 %v16184_v23, %v7349_v16 }
0x27c2   :  { %14133 = vpow2.f32 %v7154_v48  ;;  %v7350_v32 = vsub.f32 %v16186_v43, %v7346_v30 }
0x27c3   :  { %14135 = vpow2.f32 %v6760_v52  ;;  %v7354_v26 = vmul.f32 1.442695, %v7351_v36 }
0x27c4   :  { %14137 = vpow2.f32 %v6758_v38  ;;  %v7352_v59 = vmul.f32 1.442695, %v7350_v32 }
0x27c6   :  { %14139 = vpow2.f32 %v7352_v59 }
0x27c7   :  { %v16273_v18 = vpop.eup %14127  ;;  %14141 = vpow2.f32 %v7354_v26 }
0x27c8   :  { %v14130_v5 = vpop.eup %14129  ;;  %v6963_v44 = vsel %vm17042_vm9, %v16273_v18, 0.0 }
0x27c9   :  { %6964 = vadd.xlane.f32.xlu0 %v6963_v44  ;;  %v6960_v35 = vsel %vm17042_vm9, %v14130_v5, 0.0  ;;  %v11432_v44 = vld [vmem:[%s17081_s0 + $0x40] sm:$0xff] }
0x27ca   :  { %6961 = vadd.xlane.f32.xlu1 %v6960_v35  ;;  %v11433_v35 = vld [vmem:[%s17081_s0 + $0x48] sm:$0xff] }
0x27cb   :  { %v16278_v10 = vpop.eup %14131 }
0x27cc   :  { %v16280_v43 = vpop.eup %14133  ;;  %v7161_v23 = vsel %vm17042_vm9, %v16278_v10, 0.0 }
0x27cd   :  { %v14136_v14 = vpop.eup %14135  ;;  %7162 = vadd.xlane.f32.xlu0 %v7161_v23  ;;  %v7158_v47 = vsel %vm17042_vm9, %v16280_v43, 0.0  ;;  %v13489_v23 = vpack.c.bf16 %v11433_v35, %v11432_v44 }
0x27ce   :  { %v14138_v7 = vpop.eup %14137  ;;  %7159 = vadd.xlane.f32.xlu1 %v7158_v47  ;;  %v6765_v9 = vsel %vm17042_vm9, %v14136_v14, 0.0 }
0x27cf   :  { %v6762_v11 = vsel %vm17042_vm9, %v14138_v7, 0.0 }
0x27d0   :  { %v16287_v45 = vpop.eup %14139 }
0x27d1   :  { %6766 = vadd.xlane.f32.xlu0 %v6765_v9  ;;  %v7356_v12 = vsel %vm17042_vm9, %v16287_v45, 0.0  ;;  %v16292_v17 = vpop.eup %14141  ;;  %v11435_v9 = vld [vmem:[%s17081_s0 + $0x58] sm:$0xff] }
0x27d2   :  { %6763 = vadd.xlane.f32.xlu1 %v6762_v11  ;;  %v7359_v39 = vsel %vm17042_vm9, %v16292_v17, 0.0 }
0x27d5   :  { %7357 = vadd.xlane.f32.xlu0 %v7356_v12 }
0x27d9   :  { %7360 = vadd.xlane.f32.xlu0 %v7359_v39 }
0x27e3   :  { %13912 = vrot.lane.b32.xlu1 %v17120_v61, %s14503_s9  ;;  %v11438_v61 = vld [vmem:[#allocation7 + $0x2] ss:$0 sm:$0xff] }
0x27e7   :  { %13922 = vrot.lane.b32.xlu1 %v17121_v49, %s14503_s9 }
0x27eb   :  { %13927 = vrot.lane.b32.xlu1 %v17122_v50, %s14503_s9 }
0x27ef   :  { %13917 = vrot.lane.b32.xlu0 %v17123_v28, %s14503_s9 }
0x2856   :  { %v6965_v40 = vpop.xlane.xlu0 %6964 }
0x2857   :  { %v6962_v51 = vpop.xlane.xlu1 %6961 }
0x2858   :  { %14143 = vrcp.f32 %v6962_v51 }
0x285a   :  { %v7163_v6 = vpop.xlane.xlu0 %7162 }
0x285b   :  { %v7160_v19 = vpop.xlane.xlu1 %7159 }
0x285e   :  { %v6767_v21 = vpop.xlane.xlu0 %6766 }
0x285f   :  { %14145 = vrcp.f32 %v6767_v21  ;;  %v6764_v54 = vpop.xlane.xlu1 %6763 }
0x2860   :  { %14147 = vrcp.f32 %v6764_v54 }
0x2861   :  { %14149 = vrcp.f32 %v6965_v40 }
0x2862   :  { %v7358_v33 = vpop.xlane.xlu0 %7357  ;;  %v14144_v13 = vpop.eup %14143  ;;  %14151 = vrcp.f32 %v7160_v19 }
0x2863   :  { %v13913_v62 = vpop.permute.xlu1 %13912  ;;  %v6968_v52 = vmul.f32 %v14144_v13, %v14130_v5  ;;  %14153 = vrcp.f32 %v7163_v6  ;;  %v11439_v13 = vld [vmem:[%s16975_s11 + $0x40] sm:$0xff] }
0x2864   :  { %v13915_v25 = vunpack.i.h.bf16 %v13913_v62  ;;  %v13914_v37 = vunpack.i.l.bf16 %v13913_v62  ;;  %14155 = vrcp.f32 %v7358_v33 }
0x2866   :  { %v13455_v22 = vpack.c.bf16 %v13915_v25, %v13914_v37  ;;  %v7361_v56 = vpop.xlane.xlu0 %7360 }
0x2867   :  { %v13923_v60 = vpop.permute.xlu1 %13922  ;;  %14157 = vrcp.f32 %v7361_v56  ;;  %v11445_v56 = vld [vmem:[%s16976_s12 + $0x40] sm:$0xff] }
0x2868   :  { %13456 = vmatprep.subr.bf16.mxu1 %v13455_v22  ;;  %v13925_v53 = vunpack.i.h.bf16 %v13923_v60  ;;  %v13924_v46 = vunpack.i.l.bf16 %v13923_v60  ;;  %v11446_v60 = vld [vmem:[%s16976_s12 + $0x48] sm:$0xff] }
0x2869   :  { %v14146_v20 = vpop.eup %14145  ;;  %13458 = vmatpush3.bf16.msra.mxu1 %v13455_v22 }
0x286a   :  { %v14148_v29 = vpop.eup %14147  ;;  %v13918_v15 = vpop.permute.xlu0 %13917  ;;  %v6771_v34 = vmul.f32 %v14146_v20, %v14136_v14  ;;  %v13475_v63 = vpack.c.bf16 %v13925_v53, %v13924_v46  ;;  %v13505_v20 = vpack.c.bf16 %v11446_v60, %v11445_v56  ;;  %v11447_v53 = vld [vmem:[%s16976_s12 + $0x50] sm:$0xff] }
0x286b   :  { %v13920_v58 = vunpack.i.h.bf16 %v13918_v15  ;;  %v13919_v55 = vunpack.i.l.bf16 %v13918_v15  ;;  %v6770_v31 = vmul.f32 %v14148_v29, %v14138_v7  ;;  %v13928_v38 = vpop.permute.xlu1 %13927  ;;  %v14150_v48 = vpop.eup %14149  ;;  %v11434_v7 = vld [vmem:[%s17081_s0 + $0x50] sm:$0xff]  ;;  %v11440_v29 = vld [vmem:[%s16975_s11 + $0x48] sm:$0xff]  ;;  %v11448_v15 = vld [vmem:[%s16976_s12 + $0x58] sm:$0xff] }
0x286c   :  { %v14152_v16 = vpop.eup %14151  ;;  %v13930_v30 = vunpack.i.h.bf16 %v13928_v38  ;;  %v13929_v32 = vunpack.i.l.bf16 %v13928_v38  ;;  %v6969_v36 = vmul.f32 %v14150_v48, %v16273_v18  ;;  %v13493_v11 = vpack.c.bf16 %v11435_v9, %v11434_v7 }
0x286d   :  { %v13465_v2 = vpack.c.bf16 %v13920_v58, %v13919_v55  ;;  %12650 = vmatprep.mubr.msk.f32.mxu1 %vm17042_vm9, %v6770_v31  ;;  %v7166_v59 = vmul.f32 %v14152_v16, %v16280_v43  ;;  %v14154_v5 = vpop.eup %14153  ;;  %v13497_v46 = vpack.c.bf16 %v11440_v29, %v11439_v13  ;;  %v13509_v58 = vpack.c.bf16 %v11448_v15, %v11447_v53  ;;  %v11441_v55 = vld [vmem:[%s16975_s11 + $0x50] sm:$0xff]  ;;  %v11442_v31 = vld [vmem:[%s16975_s11 + $0x58] sm:$0xff]  ;;  %v8234_v29 = vld [vmem:[%s16981_s17] sm:$0xff] }
0x286e   :  { %12651 = vmatmul.mubr.msk.f32.vlgmr.msra.gmra.mrb[54].mxu1 %vm17042_vm9, %v6771_v34  ;;  %v13485_v26 = vpack.c.bf16 %v13930_v30, %v13929_v32  ;;  %v14156_v18 = vpop.eup %14155  ;;  %v7167_v43 = vmul.f32 %v14154_v5, %v16278_v10  ;;  %v13501_v34 = vpack.c.bf16 %v11442_v31, %v11441_v55  ;;  %v8235_v53 = vld [vmem:[%s16981_s17 + $0x8] sm:$0xff] }
0x286f   :  { %13466 = vmatprep.subr.bf16.mxu1 %v13465_v2  ;;  %12664 = vmatprep.mubr.msk.f32.mxu1 %vm17042_vm9, %v6968_v52  ;;  %v7364_v14 = vmul.f32 %v14156_v18, %v16287_v45  ;;  %v16416_v15 = vpack.c.bf16 %v8235_v53, %v8234_v29 }
0x2870   :  { %13468 = vmatpush3.bf16.msra.mxu1 %v13465_v2  ;;  %13498 = vmatprep.subr.bf16.mxu0 %v13497_v46 }
0x2871   :  { %13476 = vmatprep.subr.bf16.mxu1 %v13475_v63  ;;  %v14158_v47 = vpop.eup %14157  ;;  %13500 = vmatpush3.bf16.msra.mxu0 %v13497_v46 }
0x2872   :  { %v7365_v10 = vmul.f32 %v14158_v47, %v16292_v17  ;;  %13502 = vmatprep.subr.bf16.mxu0 %v13501_v34 }
0x2875   :  { %13504 = vmatpush3.bf16.msra.mxu0 %v13501_v34 }
0x2876   :  { %12665 = vmatmul.mubr.msk.f32.vlgmr.msra.gmra.mrb[54].mxu1 %vm17042_vm9, %v6969_v36 }
0x2877   :  { %13478 = vmatpush3.bf16.msra.mxu1 %v13475_v63  ;;  %12678 = vmatprep.mubr.msk.f32.mxu1 %vm17042_vm9, %v7166_v59 }
0x2878   :  { %13486 = vmatprep.subr.bf16.mxu1 %v13485_v26 }
0x287e   :  { %12679 = vmatmul.mubr.msk.f32.vlgmr.msra.gmra.mrb[54].mxu1 %vm17042_vm9, %v7167_v43 }
0x287f   :  { %13488 = vmatpush3.bf16.msra.mxu1 %v13485_v26  ;;  %12692 = vmatprep.mubr.msk.f32.mxu1 %vm17042_vm9, %v7364_v14 }
0x2880   :  { %13490 = vmatprep.subr.bf16.mxu1 %v13489_v23 }
0x2886   :  { %12693 = vmatmul.mubr.msk.f32.vlgmr.msra.gmra.mrb[54].mxu1 %vm17042_vm9, %v7365_v10 }
0x2887   :  { %13492 = vmatpush3.bf16.msra.mxu1 %v13489_v23 }
0x2888   :  { %13494 = vmatprep.subr.bf16.mxu1 %v13493_v11 }
0x288b   :  { %13496 = vmatpush3.bf16.msra.mxu1 %v13493_v11 }
0x288c   :  { %13506 = vmatprep.subr.bf16.mxu1 %v13505_v20 }
0x2959   :  { %v12694_v45 = vpop.f32.mrb[54].mxu1 }
0x295a   :  { %v7448_v12 = vpop.f32.mrb[55].mxu1 }
0x295b   :  { %12703 = vmatprep.mubr.msk.f32.mxu1 %vm17043_vm4, %v7448_v12 }
0x295c   :  { %12704 = vmatmul.mubr.msk.f32.vlgmr.msra.gmra.mrb[58].mxu1 %vm17043_vm4, %v12694_v45 }
0x295d   :  { %13508 = vmatpush3.bf16.msra.mxu1 %v13505_v20 }
0x295e   :  { %13510 = vmatprep.subr.bf16.mxu1 %v13509_v58 }
0x2961   :  { %13512 = vmatpush3.bf16.msra.mxu1 %v13509_v58 }
0x2962   :  { %13520 = vmatprep.subr.bf16.mxu1 %v15203_v4 }
0x2a2f   :  { %v12705_v39 = vpop.f32.mrb[58].mxu1 }
0x2a30   :  { %v7546_v49 = vadd.f32 %v12705_v39, %v16010_v3  ;;  %v7536_v50 = vpop.f32.mrb[59].mxu1 }
0x2a31   :  { %v7545_v28 = vadd.f32 %v7536_v50, %v16006_v27 }
0x2a32   :  { %v7556_v17 = vadd.f32 %v11438_v61, %v7546_v49 }
0x2a33   :  { %v7555_v40 = vadd.f32 %v11438_v61, %v7545_v28 }
0x2a34   :  { %v7560_v51 = vsel %vm17043_vm4, %v7556_v17, 0.0 }
0x2a35   :  { %7561 = vadd.xlane.f32.xlu0 %v7560_v51  ;;  %v7557_v6 = vsel %vm17043_vm4, %v7555_v40, 0.0 }
0x2a36   :  { %7558 = vadd.xlane.f32.xlu1 %v7557_v6 }
0x2ac2   :  { %v7562_v19 = vpop.xlane.xlu0 %7561 }
0x2ac3   :  { %v7564_v21 = vmul.f32 0.03125, %v7562_v19  ;;  %v7559_v54 = vpop.xlane.xlu1 %7558 }
0x2ac4   :  { %v7563_v33 = vmul.f32 0.03125, %v7559_v54 }
0x2ac5   :  { %v7566_v62 = vsub.f32 %v7556_v17, %v7564_v21 }
0x2ac6   :  { %v7565_v25 = vsub.f32 %v7555_v40, %v7563_v33 }
0x2ac7   :  { %v7568_v37 = vmul.f32 %v7566_v62, %v7566_v62 }
0x2ac8   :  { %v7567_v22 = vmul.f32 %v7565_v25, %v7565_v25 }
0x2ac9   :  { %v7572_v3 = vsel %vm17043_vm4, %v7568_v37, 0.0 }
0x2aca   :  { %7573 = vadd.xlane.f32.xlu0 %v7572_v3  ;;  %v7569_v27 = vsel %vm17043_vm4, %v7567_v22, 0.0 }
0x2acb   :  { %7570 = vadd.xlane.f32.xlu1 %v7569_v27 }
0x2b57   :  { %v7574_v2 = vpop.xlane.xlu0 %7573 }
0x2b58   :  { %v7576_v52 = vmul.f32 0.03125, %v7574_v2  ;;  %v7571_v63 = vpop.xlane.xlu1 %7570 }
0x2b59   :  { %v7575_v38 = vmul.f32 0.03125, %v7571_v63 }
0x2b5a   :  { %v7578_v48 = vadd.f32 1e-05, %v7576_v52 }
0x2b5b   :  { %v7577_v16 = vadd.f32 1e-05, %v7575_v38 }
0x2b5c   :  { %14159 = vrsqrt.f32 %v7578_v48 }
0x2b5d   :  { %14161 = vrsqrt.f32 %v7577_v16 }
0x2b66   :  { %v14160_v30 = vpop.eup %14159 }
0x2b67   :  { %v14162_v32 = vpop.eup %14161  ;;  %v7582_v59 = vmul.f32 %v14160_v30, %v7566_v62 }
0x2b68   :  { %v7581_v36 = vmul.f32 %v14162_v32, %v7565_v25 }
0x2b6a   :  { %12714 = vmatprep.mubr.msk.f32.mxu0 %vm17043_vm4, %v7581_v36  ;;  %12725 = vmatprep.mubr.msk.f32.mxu1 %vm17043_vm4, %v7581_v36 }
0x2b6b   :  { %12715 = vmatmul.mubr.msk.f32.vlgmr.msra.gmra.mrb[48].mxu0 %vm17043_vm4, %v7582_v59  ;;  %12726 = vmatmul.mubr.msk.f32.vlgmr.msra.gmra.mrb[60].mxu1 %vm17043_vm4, %v7582_v59 }
0x2b6c   :  { %13522 = vmatpush3.bf16.msra.mxu1 %v15203_v4  ;;  %12743 = vmatprep.mubr.msk.f32.mxu1 %vm17043_vm4, %v7581_v36 }
0x2b6d   :  { %13524 = vmatprep.subr.bf16.mxu1 %v15214_v0 }
0x2b70   :  { %13526 = vmatpush3.bf16.msra.mxu1 %v15214_v0 }
0x2b73   :  { %12744 = vmatmul.mubr.msk.f32.vlgmr.msra.gmra.mrb[62].mxu1 %vm17043_vm4, %v7582_v59 }
0x2c3e   :  { %v12716_v26 = vpop.f32.mrb[48].mxu0  ;;  %v12727_v5 = vpop.f32.mrb[60].mxu1 }
0x2c3f   :  { %v7660_v44 = vpop.f32.mrb[49].mxu0  ;;  %v7740_v35 = vpop.f32.mrb[61].mxu1 }
0x2c40   :  { %v13513_v18 = vpack.c.bf16 %v12727_v5, %v7740_v35  ;;  %12732 = vmatprep.mubr.msk.f32.mxu0 %vm17043_vm4, %v7660_v44 }
0x2c42   :  { %13515 = vmatprep.subr.msk.bf16.mxu0 %vm14852_vm8, %v13513_v18 }
0x2c43   :  { %13518 = vmatpush3.bf16.xpose.msk.msra.mxu0 %vm14852_vm8, %v13513_v18 }
0x2c46   :  { %v12745_v4 = vpop.f32.mrb[62].mxu1 }
0x2c47   :  { %v7938_v43 = vpop.f32.mrb[63].mxu1 }
0x2c4a   :  { %12733 = vmatmul.mubr.msk.f32.vlgmr.msra.gmra.mrb[50].mxu0 %vm17043_vm4, %v12716_v26 }
0x2d1d   :  { %v12734_v0 = vpop.f32.mrb[50].mxu0 }
0x2d1e   :  { %v7837_v23 = vmax.f32 %v12734_v0, 0.0  ;;  %v7827_v14 = vpop.f32.mrb[51].mxu0 }
0x2d1f   :  { %v7836_v47 = vmax.f32 %v7827_v14, 0.0 }
0x2d20   :  { %v7841_v7 = vsel %vm17042_vm9, %v7837_v23, -inf }
0x2d21   :  { %7842 = vmax.xlane.f32.xlu0 %v7841_v7  ;;  %v7838_v9 = vsel %vm17042_vm9, %v7836_v47, -inf }
0x2d22   :  { %7839 = vmax.xlane.f32.xlu1 %v7838_v9 }
0x2dae   :  { %v7843_v10 = vpop.xlane.xlu0 %7842 }
0x2daf   :  { %v7845_v11 = vsub.f32 %v7837_v23, %v7843_v10  ;;  %v7840_v45 = vpop.xlane.xlu1 %7839 }
0x2db0   :  { %v7844_v12 = vsub.f32 %v7836_v47, %v7840_v45 }
0x2db1   :  { %v7848_v39 = vmul.f32 1.442695, %v7845_v11 }
0x2db2   :  { %v7846_v61 = vmul.f32 1.442695, %v7844_v12 }
0x2db3   :  { %14163 = vpow2.f32 %v7848_v39 }
0x2db4   :  { %14165 = vpow2.f32 %v7846_v61  ;;  %v14267_v61 = vld [vmem:[#allocation8] ss:$0 sm:$0xff] }
0x2dbd   :  { %v14164_v49 = vpop.eup %14163 }
0x2dbe   :  { %v14166_v50 = vpop.eup %14165  ;;  %v7853_v28 = vsel %vm17042_vm9, %v14164_v49, 0.0 }
0x2dbf   :  { %7854 = vadd.xlane.f32.xlu0 %v7853_v28  ;;  %v7850_v17 = vsel %vm17042_vm9, %v14166_v50, 0.0  ;;  %v14268_v28 = vld [vmem:[#allocation10] ss:$0 sm:$0xff] }
0x2dc0   :  { %7851 = vadd.xlane.f32.xlu1 %v7850_v17 }
0x2e4c   :  { %v7855_v40 = vpop.xlane.xlu0 %7854 }
0x2e4d   :  { %14167 = vrcp.f32 %v7855_v40  ;;  %v7852_v51 = vpop.xlane.xlu1 %7851 }
0x2e4e   :  { %14169 = vrcp.f32 %v7852_v51  ;;  %v17124_v51 = vld [vmem:[#allocation45_spill] sm:$0xff] }
0x2e57   :  { %v14168_v6 = vpop.eup %14167 }
0x2e58   :  { %v14170_v19 = vpop.eup %14169  ;;  %v7859_v21 = vmul.f32 %v14168_v6, %v14164_v49  ;;  %v5602_v6 = vmul.f32 %v17124_v51, %v16004_v57 }
0x2e59   :  { %v7858_v54 = vmul.f32 %v14170_v19, %v14166_v50  ;;  %v8236_v19 = vld [vmem:[%s16981_s17 + $0x10] sm:$0xff] }
0x2e5a   :  { %v16390_v33 = vadd.f32 %v15241_v1, %v7859_v21  ;;  %v8237_v21 = vld [vmem:[%s16981_s17 + $0x18] sm:$0xff] }
0x2e5b   :  { %v7860_v62 = vadd.f32 %v15244_v8, %v7858_v54  ;;  %v13547_v57 = vpack.c.bf16 %v8237_v21, %v8236_v19 }
0x2e5c   :  { %v7865_v25 = vsel %vm17042_vm9, %v16390_v33, 0.0 }
0x2e5d   :  { %7866 = vadd.xlane.f32.xlu0 %v7865_v25  ;;  %12750 = vmatprep.mubr.msk.f32.mxu0 %vm17042_vm9, %v7860_v62  ;;  %v7862_v37 = vsel %vm17042_vm9, %v7860_v62, 0.0  ;;  %v16439_v25 = vld [vmem:[%s16978_s14 + $0x1] ss:$0 sm:$0xff] }
0x2e5e   :  { %12768 = vmatprep.mubr.msk.f32.mxu1 %vm17042_vm9, %v7860_v62  ;;  %7863 = vadd.xlane.f32.xlu1 %v7862_v37 }
0x2eea   :  { %v7867_v22 = vpop.xlane.xlu0 %7866 }
0x2eeb   :  { %v7869_v3 = vmax.f32 %v7867_v22, 1e-12  ;;  %v7864_v27 = vpop.xlane.xlu1 %7863 }
0x2eec   :  { %v7868_v56 = vmax.f32 %v7864_v27, 1e-12  ;;  %v17125_v27 = vld [vmem:[#allocation46_spill] sm:$0xff] }
0x2eed   :  { %14171 = vrsqrt.f32 %v7869_v3  ;;  %v16442_v3 = vadd.f32 %v16439_v25, %v5602_v6 }
0x2eee   :  { %14173 = vrsqrt.f32 %v7868_v56  ;;  %v17126_v56 = vld [vmem:[#allocation44_spill] sm:$0xff] }
0x2ef7   :  { %v16398_v1 = vpop.eup %14171 }
0x2ef8   :  { %v16400_v8 = vpop.eup %14173  ;;  %v7948_v60 = vmul.f32 %v16398_v1, %v12745_v4 }
0x2ef9   :  { %v7947_v13 = vmul.f32 %v16400_v8, %v7938_v43 }
0x2efb   :  { %v13527_v20 = vpack.c.bf16 %v7948_v60, %v7947_v13  ;;  %v5603_v60 = vmul.f32 %v17126_v56, %v17125_v27 }
0x2efd   :  { %13528 = vmatprep.subr.bf16.mxu0 %v13527_v20  ;;  %v16452_v13 = vadd.f32 %v16439_v25, %v5603_v60 }
0x2efe   :  { %13530 = vmatpush3.bf16.msra.mxu0 %v13527_v20 }
0x2eff   :  { %13532 = vmatprep.subr.bf16.mxu0 %v15272_v24 }
0x2f01   :  { %12751 = vmatmul.mubr.msk.f32.vlgmr.msra.gmra.mrb[52].mxu0 %vm17042_vm9, %v16390_v33 }
0x2f02   :  { %13534 = vmatpush3.bf16.msra.mxu0 %v15272_v24 }
0x2f03   :  { %13536 = vmatprep.subr.bf16.mxu0 %v15277_v42 }
0x2f06   :  { %13538 = vmatpush3.bf16.msra.mxu0 %v15277_v42  ;;  %v14266_v42 = vld [vmem:[%s16978_s14] ss:$0 sm:$0xff] }
0x2f07   :  { %13552 = vmatprep.subr.bf16.mxu0 %v16416_v15 }
0x2fd4   :  { %v12752_v46 = vpop.f32.mrb[52].mxu0 }
0x2fd5   :  { %v8031_v58 = vmul.f32 %v16398_v1, %v12752_v46  ;;  %v8021_v24 = vpop.f32.mrb[53].mxu0 }
0x2fd6   :  { %v8030_v55 = vmul.f32 %v16400_v8, %v8021_v24  ;;  %v17127_v24 = vld [vmem:[#allocation43_spill] sm:$0xff] }
0x2fd7   :  { %v8033_v31 = vadd.f32 %v14266_v42, %v8031_v58 }
0x2fd8   :  { %v8032_v34 = vadd.f32 %v14266_v42, %v8030_v55  ;;  %v17128_v55 = vld [vmem:[#allocation41_spill] sm:$0xff] }
0x2fd9   :  { %v8035_v2 = vsel %vm17043_vm4, %v8033_v31, 0.0  ;;  %v2964_v42 = vmul.f32 %v17128_v55, %v17127_v24 }
0x2fda   :  { %v8034_v52 = vsel %vm17043_vm4, %v8032_v34, 0.0 }
0x2fdb   :  { %v8036_v63 = vadd.f32 %v8035_v2, %v8034_v52  ;;  %v16466_v2 = vadd.f32 %v16439_v25, %v2964_v42 }
0x2fdd   :  { %v8037_v38 = vrot.slane %v8036_v63, 4 }
0x2fdf   :  { %v8038_v48 = vadd.f32 %v8037_v38, %v8036_v63  ;;  %v17129_v38 = vld [vmem:[#allocation42_spill] sm:$0xff] }
0x2fe1   :  { %v8039_v16 = vrot.slane %v8038_v48, 2 }
0x2fe3   :  { %v8040_v30 = vadd.f32 %v8039_v16, %v8038_v48  ;;  %v17130_v48 = vld [vmem:[#allocation40_spill] sm:$0xff] }
0x2fe4   :  { %v2965_v16 = vmul.f32 %v17130_v48, %v17129_v38 }
0x2fe5   :  { %v8041_v32 = vrot.slane %v8040_v30, 1 }
0x2fe7   :  { %v8042_v36 = vadd.f32 %v8041_v32, %v8040_v30  ;;  %v16481_v30 = vadd.f32 %v16439_v25, %v2965_v16 }
0x2fe9   :  { %v8043_v59 = vmul.f32 0.0625, %v8042_v36 }
0x2feb   :  { %v8044_v26 = vsub.f32 %v8032_v34, %v8043_v59  ;;  %v8045_v5 = vsub.f32 %v8033_v31, %v8043_v59  ;;  %v16460_v31 = vld [vmem:[#allocation11] ss:$0 sm:$0xff] }
0x2fed   :  { %v8046_v44 = vmul.f32 %v8044_v26, %v8044_v26  ;;  %v8047_v35 = vmul.f32 %v8045_v5, %v8045_v5 }
0x2fef   :  { %v8048_v18 = vsel %vm17043_vm4, %v8046_v44, 0.0  ;;  %v8049_v4 = vsel %vm17043_vm4, %v8047_v35, 0.0  ;;  %v17133_v35 = vld [vmem:[#allocation39_spill] sm:$0xff] }
0x2ff0   :  { %v8050_v43 = vadd.f32 %v8049_v4, %v8048_v18  ;;  %v14504_v4 = vmov 1.0|1.0  }
0x2ff2   :  { %v8051_v0 = vrot.slane %v8050_v43, 4 }
0x2ff4   :  { %v8052_v23 = vadd.f32 %v8051_v0, %v8050_v43 }
0x2ff6   :  { %v8053_v14 = vrot.slane %v8052_v23, 2 }
0x2ff8   :  { %v8054_v47 = vadd.f32 %v8053_v14, %v8052_v23 }
0x2ffa   :  { %v8055_v7 = vrot.slane %v8054_v47, 1 }
0x2ffc   :  { %v8056_v9 = vadd.f32 %v8055_v7, %v8054_v47 }
0x2ffe   :  { %v8057_v10 = vmul.f32 0.0625, %v8056_v9 }
0x3000   :  { %v8058_v11 = vadd.f32 1e-05, %v8057_v10 }
0x3002   :  { %14175 = vrsqrt.f32 %v8058_v11 }
0x300c   :  { %v14176_v45 = vpop.eup %14175 }
0x300d   :  { %v8060_v12 = vmul.f32 %v14176_v45, %v8044_v26  ;;  %v8061_v39 = vmul.f32 %v14176_v45, %v8045_v5  ;;  %v17132_v26 = vld [vmem:[#allocation24_spill] sm:$0xff] }
0x300e   :  { %v197_v5 = vadd.s32 16, %v17132_v26  ;;  %v198_v44 = vadd.s32 24, %v17132_v26 }
0x300f   :  { %v8062_v49 = vmul.f32 %v14267_v61, %v8060_v12  ;;  %v8063_v50 = vmul.f32 %v14267_v61, %v8061_v39 }
0x3011   :  { %v8064_v17 = vadd.f32 %v14268_v28, %v8062_v49  ;;  %v8065_v40 = vadd.f32 %v14268_v28, %v8063_v50 }
0x3013   :  { %vm8066_vm3 = vcmp.ge.f32.partialorder %v8064_v17, 0.0  ;;  %v8068_v54 = vmul.f32 0.01, %v8064_v17  ;;  %vm8067_vm5 = vcmp.ge.f32.partialorder %v8065_v40, 0.0  ;;  %v8069_v62 = vmul.f32 0.01, %v8065_v40 }
0x3015   :  { %v8070_v37 = vsel %vm8066_vm3, %v8064_v17, %v8068_v54  ;;  %v8071_v22 = vsel %vm8067_vm5, %v8065_v40, %v8069_v62 }
0x3016   :  { %12761 = vmatprep.mubr.msk.f32.mxu0 %vm17043_vm4, %v8070_v37 }
0x3017   :  { %12762 = vmatmul.mubr.msk.f32.vlgmr.msra.gmra.mrb[54].mxu0 %vm17043_vm4, %v8071_v22 }
0x3018   :  { %13554 = vmatpush3.bf16.msra.mxu0 %v16416_v15  ;;  %12790 = vmatprep.mubr.msk.f32.mxu0 %vm17043_vm4, %v16442_v3 }
0x3019   :  { %13556 = vmatprep.subr.bf16.mxu0 %v13547_v57 }
0x301c   :  { %13558 = vmatpush3.bf16.msra.mxu0 %v13547_v57 }
0x301f   :  { %12791 = vmatmul.mubr.msk.f32.vlgmr.msra.gmra.mrb[56].mxu0 %vm17043_vm4, %v16452_v13 }
0x30ea   :  { %v12763_v20 = vpop.f32.mrb[54].mxu0 }
0x30eb   :  { %v8154_v29 = vmul.f32 %v16398_v1, %v12763_v20  ;;  %v8144_v53 = vpop.f32.mrb[55].mxu0 }
0x30ec   :  { %v8153_v46 = vmul.f32 %v16400_v8, %v8144_v53 }
0x30ee   :  { %v13539_v58 = vpack.c.bf16 %v8154_v29, %v8153_v46 }
0x30f0   :  { %13540 = vmatprep.subr.bf16.mxu1 %v13539_v58 }
0x30f1   :  { %13542 = vmatpush3.bf16.msra.mxu1 %v13539_v58 }
0x30f2   :  { %v16462_v34 = vpop.f32.mrb[56].mxu0  ;;  %13544 = vmatprep.subr.bf16.mxu1 %v16416_v15 }
0x30f3   :  { %v8400_v52 = vpop.f32.mrb[57].mxu0  ;;  %v8406_v12 = vadd.f32 %v16462_v34, %v16460_v31 }
0x30f4   :  { %v16469_v63 = vadd.f32 %v16460_v31, %v8400_v52  ;;  %12769 = vmatmul.mubr.msk.f32.vlgmr.msra.gmra.mrb[64].mxu1 %vm17042_vm9, %v16390_v33  ;;  %v17131_v33 = vld [vmem:[#allocation25_spill] sm:$0xff] }
0x30f5   :  { %13546 = vmatpush3.bf16.msra.mxu1 %v16416_v15  ;;  %12779 = vmatprep.mubr.msk.f32.mxu1 %vm17043_vm4, %v16466_v2  ;;  %v206_v32 = vadd.s32 1, %v17131_v33  ;;  %v201_v36 = vmul.u32 4, %v17131_v33  ;;  %v8410_v21 = vmul.f32 0.5, %v8406_v12 }
0x30f6   :  { %8587 = vrot.lane.b32.xlu1 %v16469_v63, %s14502_s15  ;;  %13548 = vmatprep.subr.bf16.mxu1 %v13547_v57  ;;  %v8409_v40 = vmul.f32 0.5, %v16469_v63 }
0x30f7   :  { %v207_v59 = vmul.u32 4, %v206_v32  ;;  %vm202_vm6 = vcmp.ge.s32.totalorder %v17132_v26, %v201_v36  ;;  %vm203_vm11 = vcmp.ge.s32.totalorder %v17133_v35, %v201_v36  ;;  %vm204_vm13 = vcmp.ge.s32.totalorder %v197_v5, %v201_v36 }
0x30f8   :  { %vm205_vm15 = vcmp.ge.s32.totalorder %v198_v44, %v201_v36 }
0x30f9   :  { %13550 = vmatpush3.bf16.msra.mxu1 %v13547_v57  ;;  %vm208_vm10 = vcmp.lt.s32.totalorder %v17132_v26, %v207_v59  ;;  %vm209_vm12 = vcmp.lt.s32.totalorder %v17133_v35, %v207_v59  ;;  %vm210_vm14 = vcmp.lt.s32.totalorder %v197_v5, %v207_v59  ;;  %vm211_vm0 = vcmp.lt.s32.totalorder %v198_v44, %v207_v59 }
0x30fa   :  { %13560 = vmatprep.subr.bf16.mxu1 %v16416_v15  ;;  %vm212_vm1 = vmand %vm202_vm6, %vm208_vm10  ;;  %vm17138_vm6 = vcmask 261120   ;;  %v14505_v5 = vmov 1.0  }
0x30fb   :  { %vm213_vm2 = vmand %vm203_vm11, %vm209_vm12 }
0x30fc   :  { %12780 = vmatmul.mubr.msk.f32.vlgmr.msra.gmra.mrb[66].mxu1 %vm17043_vm4, %v16481_v30  ;;  %vm214_vm3 = vmand %vm204_vm13, %vm210_vm14 }
0x30fd   :  { %13562 = vmatpush3.bf16.msra.mxu1 %v16416_v15  ;;  %vm215_vm5 = vmand %vm205_vm15, %vm211_vm0 }
0x30fe   :  { %13564 = vmatprep.subr.bf16.mxu1 %v13547_v57  ;;  %vm16495_vm9 = vmpackc.low %vm213_vm2, %vm212_vm1 }
0x30ff   :  { %vm16499_vm4 = vmpackc.low %vm215_vm5, %vm214_vm3  ;;  %13568 = vmatprep.subr.msk.bf16.mxu0 %vm16495_vm9, %v14504_v4 }
0x3100   :  { %13570 = vmatpush3.bf16.msk.msra.mxu0 %vm16495_vm9, %v14504_v4  ;;  %vm17139_vm10 = vmmov %vm17138_vm6 }
0x3101   :  { %13566 = vmatpush3.bf16.msra.mxu1 %v13547_v57  ;;  %13572 = vmatprep.subr.msk.bf16.mxu0 %vm16499_vm4, %v14504_v4  ;;  %vm17140_vm11 = vmmov %vm17138_vm6 }
0x3102   :  { %13576 = vmatprep.subr.msk.bf16.mxu1 %vm16495_vm9, %v14504_v4  ;;  %vm17141_vm12 = vmmov %vm17138_vm6 }
0x3103   :  { %vm17142_vm13 = vmmov %vm17138_vm6 }
0x3104   :  { %13574 = vmatpush3.bf16.msk.msra.mxu0 %vm16499_vm4, %v14504_v4  ;;  %vm17143_vm14 = vmmov %vm17138_vm6 }
0x3105   :  { %13584 = vmatprep.subr.msk.bf16.mxu0 %vm16495_vm9, %v14504_v4  ;;  %vm17144_vm15 = vmmov %vm17138_vm6 }
0x3106   :  { %vm17145_vm0 = vmmov %vm17138_vm6 }
0x3107   :  { %vm17146_vm1 = vmmov %vm17145_vm0 }
0x3108   :  { %vm17147_vm2 = vmmov %vm17145_vm0 }
0x3109   :  { %vm17148_vm3 = vmmov %vm17145_vm0 }
0x310a   :  { %vm17149_vm5 = vmmov %vm17145_vm0 }
0x3168   :  { %v8588_v45 = vpop.permute.xlu1 %8587 }
0x3169   :  { %v8850_v46 = vmul.f32 %v8588_v45, %v8409_v40 }
0x31c7   :  { %v12770_v43 = vpop.f32.mrb[64].mxu1 }
0x31c8   :  { %v8231_v0 = vmul.f32 %v16398_v1, %v12770_v43  ;;  %v8221_v23 = vpop.f32.mrb[65].mxu1 }
0x31c9   :  { %v8230_v14 = vmul.f32 %v16400_v8, %v8221_v23 }
0x31ca   :  { %v16527_v7 = vadd.f32 %v16439_v25, %v8231_v0 }
0x31cb   :  { %v16524_v47 = vadd.f32 %v16439_v25, %v8230_v14 }
0x31cd   :  { %12801 = vmatprep.mubr.msk.f32.mxu1 %vm17138_vm6, %v16524_v47  ;;  %vm17150_vm6 = vmmov %vm17145_vm0 }
0x31ce   :  { %12802 = vmatmul.mubr.msk.f32.vlgmr.msra.gmra.mrb[68].mxu1 %vm17139_vm10, %v16527_v7  ;;  %vm17151_vm10 = vmmov %vm17145_vm0 }
0x31cf   :  { %v12781_v9 = vpop.f32.mrb[66].mxu1  ;;  %13578 = vmatpush3.bf16.msk.msra.mxu1 %vm16495_vm9, %v14504_v4 }
0x31d0   :  { %v8323_v1 = vadd.f32 %v12781_v9, %v16460_v31  ;;  %v8317_v8 = vpop.f32.mrb[67].mxu1  ;;  %13580 = vmatprep.subr.msk.bf16.mxu1 %vm16499_vm4, %v14504_v4 }
0x31d1   :  { %v8318_v10 = vadd.f32 %v16460_v31, %v8317_v8 }
0x31d2   :  { %8498 = vrot.lane.b32.xlu0 %v8323_v1, %s14502_s15  ;;  %v8327_v49 = vmul.f32 0.5, %v8323_v1 }
0x31d3   :  { %v8326_v11 = vmul.f32 0.5, %v8318_v10  ;;  %8496 = vrot.lane.b32.xlu1 %v8318_v10, %s14502_s15  ;;  %13582 = vmatpush3.bf16.msk.msra.mxu1 %vm16499_vm4, %v14504_v4 }
0x31d4   :  { %13592 = vmatprep.subr.msk.bf16.mxu1 %vm16495_vm9, %v14504_v4 }
0x31d5   :  { %v8593_v39 = vmul.f32 %v8588_v45, %v8326_v11 }
0x31d7   :  { %8589 = vrot.lane.b32.xlu1 %v8406_v12, %s14502_s15  ;;  %12823 = vmatprep.mubr.msk.f32.mxu1 %vm17140_vm11, %v8593_v39  ;;  %vm17152_vm11 = vmmov %vm17145_vm0 }
0x3244   :  { %v16553_v61 = vpop.permute.xlu0 %8498 }
0x3245   :  { %v16555_v50 = vpop.permute.xlu1 %8496  ;;  %v8503_v17 = vmul.f32 %v16553_v61, %v8327_v49  ;;  %v8768_v54 = vmul.f32 %v16553_v61, %v8410_v21 }
0x3246   :  { %v8502_v28 = vmul.f32 %v16555_v50, %v8326_v11  ;;  %v8767_v19 = vmul.f32 %v16555_v50, %v8409_v40 }
0x3248   :  { %12812 = vmatprep.mubr.msk.f32.mxu0 %vm17141_vm12, %v8502_v28  ;;  %vm17153_vm12 = vmmov %vm17145_vm0 }
0x3249   :  { %v8590_v51 = vpop.permute.xlu1 %8589  ;;  %12813 = vmatmul.mubr.msk.f32.vlgmr.msra.gmra.mrb[58].mxu0 %vm17142_vm13, %v8503_v17  ;;  %vm17154_vm13 = vmmov %vm17145_vm0 }
0x324a   :  { %v8594_v6 = vmul.f32 %v8590_v51, %v8327_v49  ;;  %13586 = vmatpush3.bf16.msk.msra.mxu0 %vm16495_vm9, %v14504_v4 }
0x324b   :  { %13588 = vmatprep.subr.msk.bf16.mxu0 %vm16499_vm4, %v14504_v4 }
0x324c   :  { %12824 = vmatmul.mubr.msk.f32.vlgmr.msra.gmra.mrb[70].mxu1 %vm17143_vm14, %v8594_v6  ;;  %vm17155_vm14 = vmmov %vm17145_vm0 }
0x324d   :  { %13594 = vmatpush3.bf16.msk.msra.mxu1 %vm16495_vm9, %v14504_v4  ;;  %12845 = vmatprep.mubr.msk.f32.mxu1 %vm17144_vm15, %v8767_v19  ;;  %vm17156_vm15 = vmmov %vm17145_vm0 }
0x324e   :  { %13596 = vmatprep.subr.msk.bf16.mxu1 %vm16499_vm4, %v14504_v4  ;;  %13590 = vmatpush3.bf16.msk.msra.mxu0 %vm16499_vm4, %v14504_v4 }
0x324f   :  { %13600 = vmatprep.subr.msk.bf16.mxu0 %vm16495_vm9, %v14504_v4 }
0x3251   :  { %13598 = vmatpush3.bf16.msk.msra.mxu1 %vm16499_vm4, %v14504_v4 }
0x3252   :  { %13608 = vmatprep.subr.msk.bf16.mxu1 %vm16495_vm9, %v14504_v4 }
0x3254   :  { %12846 = vmatmul.mubr.msk.f32.vlgmr.msra.gmra.mrb[72].mxu1 %vm17145_vm0, %v8768_v54 }
0x3255   :  { %13610 = vmatpush3.bf16.msk.msra.mxu1 %vm16495_vm9, %v14504_v4 }
0x3256   :  { %13612 = vmatprep.subr.msk.bf16.mxu1 %vm16499_vm4, %v14504_v4 }
0x3259   :  { %13614 = vmatpush3.bf16.msk.msra.mxu1 %vm16499_vm4, %v14504_v4 }
0x325a   :  { %13624 = vmatprep.subr.msk.bf16.mxu1 %vm16495_vm9, %v14504_v4 }
0x32a1   :  { %v12803_v62 = vpop.f32.mrb[68].mxu1 }
0x32a2   :  { %v8489_v25 = vadd.f32 %v12803_v62, %v16460_v31  ;;  %v8483_v37 = vpop.f32.mrb[69].mxu1 }
0x32a3   :  { %v8484_v22 = vadd.f32 %v16460_v31, %v8483_v37 }
0x32a4   :  { %8680 = vrot.lane.b32.xlu1 %v8489_v25, %s14502_s15  ;;  %v8493_v55 = vmul.f32 0.5, %v8489_v25 }
0x32a5   :  { %8678 = vrot.lane.b32.xlu0 %v8484_v22, %s14502_s15  ;;  %v8492_v27 = vmul.f32 0.5, %v8484_v22 }
0x32a6   :  { %v9100_v38 = vmul.f32 %v8590_v51, %v8493_v55  ;;  %v9017_v36 = vmul.f32 %v16553_v61, %v8493_v55 }
0x32a7   :  { %v9099_v58 = vmul.f32 %v8588_v45, %v8492_v27  ;;  %v9016_v16 = vmul.f32 %v16555_v50, %v8492_v27 }
0x32a8   :  { %9468 = vrot.lane.b32.xlu1 %v16469_v63, %s14503_s9  ;;  %v8851_v63 = vmul.f32 %v8590_v51, %v8410_v21 }
0x32a9   :  { %9377 = vrot.lane.b32.xlu0 %v8318_v10, %s14503_s9 }
0x32ac   :  { %9470 = vrot.lane.b32.xlu1 %v8406_v12, %s14503_s9 }
0x32ad   :  { %9379 = vrot.lane.b32.xlu0 %v8323_v1, %s14503_s9 }
0x32b0   :  { %9563 = vrot.lane.b32.xlu1 %v8489_v25, %s14503_s9 }
0x32b1   :  { %9561 = vrot.lane.b32.xlu0 %v8484_v22, %s14503_s9 }
0x3316   :  { %v8681_v57 = vpop.permute.xlu1 %8680 }
0x3317   :  { %v8679_v56 = vpop.permute.xlu0 %8678  ;;  %v8685_v29 = vmul.f32 %v8681_v57, %v8327_v49  ;;  %v8934_v53 = vmul.f32 %v8681_v57, %v8410_v21  ;;  %v9183_v26 = vmul.f32 %v8681_v57, %v8493_v55 }
0x3318   :  { %v8684_v60 = vmul.f32 %v8679_v56, %v8326_v11  ;;  %v8933_v20 = vmul.f32 %v8679_v56, %v8409_v40  ;;  %v9182_v59 = vmul.f32 %v8679_v56, %v8492_v27 }
0x331a   :  { %12834 = vmatprep.mubr.msk.f32.mxu0 %vm17146_vm1, %v8684_v60  ;;  %12867 = vmatprep.mubr.msk.f32.mxu1 %vm17147_vm2, %v8933_v20  ;;  %vm17159_vm1 = vmmov %vm17145_vm0 }
0x331b   :  { %12835 = vmatmul.mubr.msk.f32.vlgmr.msra.gmra.mrb[60].mxu0 %vm17148_vm3, %v8685_v29  ;;  %12868 = vmatmul.mubr.msk.f32.vlgmr.msra.gmra.mrb[74].mxu1 %vm17149_vm5, %v8934_v53  ;;  %vm17160_vm2 = vmmov %vm17145_vm0 }
0x331c   :  { %13602 = vmatpush3.bf16.msk.msra.mxu0 %vm16495_vm9, %v14504_v4  ;;  %13626 = vmatpush3.bf16.msk.msra.mxu1 %vm16495_vm9, %v14504_v4  ;;  %v12814_v24 = vpop.f32.mrb[58].mxu0  ;;  %vm17161_vm3 = vmmov %vm17145_vm0 }
0x331d   :  { %12856 = vmatprep.mubr.msk.f32.mxu0 %vm17150_vm6, %v8850_v46  ;;  %12889 = vmatprep.mubr.msk.f32.mxu1 %vm17151_vm10, %v9099_v58  ;;  %v8576_v42 = vpop.f32.mrb[59].mxu0  ;;  %vm17163_vm5 = vmmov %vm17145_vm0 }
0x331e   :  { %13604 = vmatprep.subr.msk.bf16.mxu0 %vm16499_vm4, %v14504_v4  ;;  %13628 = vmatprep.subr.msk.bf16.mxu1 %vm16499_vm4, %v14504_v4  ;;  %vm17164_vm6 = vmmov %vm17145_vm0 }
0x331f   :  { %v12825_v31 = vpop.f32.mrb[70].mxu1  ;;  %vm17165_vm10 = vmmov %vm17145_vm0 }
0x3320   :  { %v9266_v34 = vmax.f32 %v12814_v24, %v12825_v31  ;;  %13606 = vmatpush3.bf16.msk.msra.mxu0 %vm16499_vm4, %v14504_v4  ;;  %13630 = vmatpush3.bf16.msk.msra.mxu1 %vm16499_vm4, %v14504_v4  ;;  %v8667_v52 = vpop.f32.mrb[71].mxu1 }
0x3321   :  { %v9265_v48 = vmax.f32 %v8576_v42, %v8667_v52  ;;  %13616 = vmatprep.subr.msk.bf16.mxu0 %vm16495_vm9, %v14504_v4  ;;  %12903 = vmatprep.subr.msk.mxu1 %vm14817_vm7, %v14505_v5 }
0x3323   :  { %12857 = vmatmul.mubr.msk.f32.vlgmr.msra.gmra.mrb[62].mxu0 %vm17152_vm11, %v8851_v63  ;;  %12890 = vmatmul.mubr.msk.f32.vlgmr.msra.gmra.mrb[76].mxu1 %vm17153_vm12, %v9100_v38  ;;  %vm17166_vm11 = vmmov %vm17145_vm0 }
0x3324   :  { %13618 = vmatpush3.bf16.msk.msra.mxu0 %vm16495_vm9, %v14504_v4  ;;  %12878 = vmatprep.mubr.msk.f32.mxu0 %vm17154_vm13, %v9016_v16  ;;  %vm17167_vm12 = vmmov %vm17145_vm0 }
0x3325   :  { %13620 = vmatprep.subr.msk.bf16.mxu0 %vm16499_vm4, %v14504_v4  ;;  %12904 = vmatpush3.msk.msra.mxu1 %vm14817_vm7, %v14505_v5  ;;  %vm17168_vm13 = vmmov %vm17145_vm0 }
0x3326   :  { %12913 = vmatprep.subr.msk.mxu1 %vm14817_vm7, %v14505_v5 }
0x3327   :  { %v12847_v33 = vpop.f32.mrb[72].mxu1 }
0x3328   :  { %v8841_v32 = vpop.f32.mrb[73].mxu1  ;;  %13622 = vmatpush3.bf16.msk.msra.mxu0 %vm16499_vm4, %v14504_v4 }
0x3329   :  { %13632 = vmatprep.subr.msk.bf16.mxu0 %vm16495_vm9, %v14504_v4 }
0x332b   :  { %12879 = vmatmul.mubr.msk.f32.vlgmr.msra.gmra.mrb[64].mxu0 %vm17155_vm14, %v9017_v36  ;;  %vm17169_vm14 = vmmov %vm17145_vm0 }
0x332c   :  { %13634 = vmatpush3.bf16.msk.msra.mxu0 %vm16495_vm9, %v14504_v4  ;;  %12900 = vmatprep.mubr.msk.f32.mxu0 %vm17156_vm15, %v9182_v59  ;;  %vm17158_vm9 = vmmov %vm17145_vm0 }
0x332d   :  { %13636 = vmatprep.subr.msk.bf16.mxu0 %vm16499_vm4, %v14504_v4  ;;  %vm17170_vm15 = vmmov %vm17145_vm0 }
0x3330   :  { %13638 = vmatpush3.bf16.msk.msra.mxu0 %vm16499_vm4, %v14504_v4  ;;  %vm9295_vm4 = vcmask 64512  }
0x3331   :  { %12908 = vmatprep.subr.msk.mxu0 %vm14817_vm7, %v14505_v5 }
0x3333   :  { %12901 = vmatmul.mubr.msk.f32.vlgmr.msra.gmra.mrb[66].mxu0 %vm17145_vm0, %v9183_v26 }
0x3334   :  { %12909 = vmatpush3.msk.msra.mxu0 %vm14817_vm7, %v14505_v5 }
0x33ee   :  { %v12836_v35 = vpop.f32.mrb[60].mxu0  ;;  %v12869_v15 = vpop.f32.mrb[74].mxu1 }
0x33ef   :  { %v9268_v18 = vmax.f32 %v9266_v34, %v12836_v35  ;;  %v8758_v4 = vpop.f32.mrb[61].mxu0  ;;  %v9007_v43 = vpop.f32.mrb[75].mxu1 }
0x33f0   :  { %v9267_v0 = vmax.f32 %v9265_v48, %v8758_v4 }
0x33f1   :  { %v9270_v23 = vsub.f32 %v12814_v24, %v9268_v18  ;;  %v9276_v14 = vsub.f32 %v12825_v31, %v9268_v18  ;;  %v9282_v9 = vsub.f32 %v12836_v35, %v9268_v18 }
0x33f2   :  { %v9269_v1 = vsub.f32 %v8576_v42, %v9267_v0  ;;  %v9275_v8 = vsub.f32 %v8667_v52, %v9267_v0  ;;  %v9281_v10 = vsub.f32 %v8758_v4, %v9267_v0 }
0x33f3   :  { %v9273_v11 = vmul.f32 1.442695, %v9270_v23  ;;  %v9279_v45 = vmul.f32 1.442695, %v9276_v14  ;;  %v9285_v12 = vmul.f32 1.442695, %v9282_v9 }
0x33f4   :  { %v9271_v39 = vmul.f32 1.442695, %v9269_v1  ;;  %v9277_v61 = vmul.f32 1.442695, %v9275_v8  ;;  %v9283_v28 = vmul.f32 1.442695, %v9281_v10 }
0x33f5   :  { %14177 = vpow2.f32 %v9273_v11 }
0x33f6   :  { %14179 = vpow2.f32 %v9279_v45  ;;  %v12858_v49 = vpop.f32.mrb[62].mxu0  ;;  %v12891_v50 = vpop.f32.mrb[76].mxu1 }
0x33f7   :  { %14181 = vpow2.f32 %v9285_v12  ;;  %v9670_v17 = vmax.f32 %v12847_v33, %v12858_v49  ;;  %v8924_v40 = vpop.f32.mrb[63].mxu0  ;;  %v16685_v51 = vpop.f32.mrb[77].mxu1 }
0x33f8   :  { %14183 = vpow2.f32 %v9271_v39  ;;  %v9669_v6 = vmax.f32 %v8841_v32, %v8924_v40 }
0x33f9   :  { %14185 = vpow2.f32 %v9277_v61  ;;  %v9672_v19 = vmax.f32 %v9670_v17, %v12869_v15 }
0x33fa   :  { %v9671_v21 = vmax.f32 %v9669_v6, %v9007_v43  ;;  %14187 = vpow2.f32 %v9283_v28 }
0x33fb   :  { %v9674_v54 = vsub.f32 %v12847_v33, %v9672_v19  ;;  %v9680_v62 = vsub.f32 %v12858_v49, %v9672_v19  ;;  %v9686_v25 = vsub.f32 %v12869_v15, %v9672_v19 }
0x33fc   :  { %v9673_v37 = vsub.f32 %v8841_v32, %v9671_v21  ;;  %v9679_v22 = vsub.f32 %v8924_v40, %v9671_v21  ;;  %v9685_v57 = vsub.f32 %v9007_v43, %v9671_v21 }
0x33fd   :  { %v9677_v27 = vmul.f32 1.442695, %v9674_v54  ;;  %v9683_v56 = vmul.f32 1.442695, %v9680_v62  ;;  %v9689_v60 = vmul.f32 1.442695, %v9686_v25 }
0x33fe   :  { %v9675_v20 = vmul.f32 1.442695, %v9673_v37  ;;  %v9681_v53 = vmul.f32 1.442695, %v9679_v22  ;;  %v12880_v46 = vpop.f32.mrb[64].mxu0 }
0x33ff   :  { %v14178_v29 = vpop.eup %14177  ;;  %14189 = vpow2.f32 %v9677_v27  ;;  %v9687_v24 = vmul.f32 1.442695, %v9685_v57  ;;  %v10044_v55 = vmax.f32 %v12880_v46, %v12891_v50  ;;  %v9090_v42 = vpop.f32.mrb[65].mxu0 }
0x3400   :  { %v14180_v58 = vpop.eup %14179  ;;  %14191 = vpow2.f32 %v9683_v56  ;;  %v10043_v52 = vmax.f32 %v9090_v42, %v16685_v51 }
0x3401   :  { %v14182_v31 = vpop.eup %14181  ;;  %v9288_v34 = vadd.f32 %v14180_v58, %v14178_v29  ;;  %14193 = vpow2.f32 %v9689_v60 }
0x3402   :  { %v14184_v63 = vpop.eup %14183  ;;  %14195 = vpow2.f32 %v9675_v20 }
0x3403   :  { %v14186_v38 = vpop.eup %14185  ;;  %v9290_v48 = vadd.f32 %v14182_v31, %v9288_v34  ;;  %14197 = vpow2.f32 %v9681_v53 }
0x3404   :  { %v9287_v16 = vadd.f32 %v14186_v38, %v14184_v63  ;;  %14199 = vpow2.f32 %v9687_v24  ;;  %v14188_v33 = vpop.eup %14187 }
0x3405   :  { %14201 = vrcp.f32 %v9290_v48 }
0x3406   :  { %v9289_v32 = vadd.f32 %v14188_v33, %v9287_v16  ;;  %v12902_v36 = vpop.f32.mrb[66].mxu0 }
0x3407   :  { %v10046_v59 = vmax.f32 %v10044_v55, %v12902_v36  ;;  %v9256_v26 = vpop.f32.mrb[67].mxu0 }
0x3408   :  { %14203 = vrcp.f32 %v9289_v32  ;;  %v10045_v35 = vmax.f32 %v10043_v52, %v9256_v26 }
0x3409   :  { %v14190_v15 = vpop.eup %14189  ;;  %v10048_v18 = vsub.f32 %v12880_v46, %v10046_v59  ;;  %v10054_v4 = vsub.f32 %v12891_v50, %v10046_v59  ;;  %v10060_v43 = vsub.f32 %v12902_v36, %v10046_v59 }
0x340a   :  { %v14192_v0 = vpop.eup %14191  ;;  %v10047_v23 = vsub.f32 %v9090_v42, %v10045_v35  ;;  %v10053_v14 = vsub.f32 %v16685_v51, %v10045_v35  ;;  %v10059_v9 = vsub.f32 %v9256_v26, %v10045_v35 }
0x340b   :  { %v14194_v1 = vpop.eup %14193  ;;  %v9692_v8 = vadd.f32 %v14192_v0, %v14190_v15  ;;  %v10051_v10 = vmul.f32 1.442695, %v10048_v18  ;;  %v10057_v11 = vmul.f32 1.442695, %v10054_v4  ;;  %v10063_v12 = vmul.f32 1.442695, %v10060_v43 }
0x340c   :  { %v14196_v45 = vpop.eup %14195  ;;  %v10049_v49 = vmul.f32 1.442695, %v10047_v23  ;;  %v10055_v40 = vmul.f32 1.442695, %v10053_v14  ;;  %v10061_v21 = vmul.f32 1.442695, %v10059_v9  ;;  %v16742_v9 = vpop.permute.xlu1 %9468 }
0x340d   :  { %v14198_v39 = vpop.eup %14197  ;;  %v9694_v61 = vadd.f32 %v14194_v1, %v9692_v8  ;;  %14205 = vpow2.f32 %v10051_v10  ;;  %v9571_v18 = vld [vmem:[%s16983_s19] sm:$0xff]  ;;  %v9572_v4 = vld [vmem:[%s16983_s19 + $0x8] sm:$0xff]  ;;  %v9574_v23 = vld [vmem:[%s16983_s19 + $0x18] sm:$0xff] }
0x340e   :  { %v14200_v28 = vpop.eup %14199  ;;  %v9691_v17 = vadd.f32 %v14198_v39, %v14196_v45  ;;  %14207 = vpow2.f32 %v10057_v11  ;;  %v13639_v43 = vpack.c.bf16 %v9572_v4, %v9571_v18  ;;  %v10419_v4 = vld [vmem:[%s16985_s21 + $0x10] sm:$0xff] }
0x340f   :  { %v14202_v50 = vpop.eup %14201  ;;  %14209 = vrcp.f32 %v9694_v61 }
0x3410   :  { %v9693_v6 = vadd.f32 %v14200_v28, %v9691_v17  ;;  %14211 = vpow2.f32 %v10063_v12  ;;  %v9294_v51 = vmul.f32 %v14202_v50, %v14178_v29  ;;  %v9386_v19 = vmul.f32 %v14202_v50, %v14180_v58  ;;  %13640 = vmatprep.subr.bf16.mxu0 %v13639_v43  ;;  %v16746_v8 = vpop.permute.xlu1 %9470 }
0x3411   :  { %14213 = vpow2.f32 %v10049_v49  ;;  %v9479_v54 = vmul.f32 %v14202_v50, %v14182_v31 }
0x3412   :  { %v14204_v62 = vpop.eup %14203  ;;  %14215 = vrcp.f32 %v9693_v6 }
0x3413   :  { %14217 = vpow2.f32 %v10055_v40  ;;  %v9293_v25 = vmul.f32 %v14204_v62, %v14184_v63  ;;  %v9385_v37 = vmul.f32 %v14204_v62, %v14186_v38  ;;  %v9478_v22 = vmul.f32 %v14204_v62, %v14188_v33 }
0x3414   :  { %14219 = vpow2.f32 %v10061_v21  ;;  %v16754_v40 = vpop.permute.xlu1 %9563 }
0x3415   :  { %12905 = vmatprep.mubr.msk.f32.mxu1 %vm9295_vm4, %v9293_v25  ;;  %12910 = vmatprep.mubr.msk.f32.mxu0 %vm9295_vm4, %v9385_v37 }
0x3416   :  { %12906 = vmatmul.mubr.msk.f32.vlgmr.msra.gmra.mrb[78].mxu1 %vm9295_vm4, %v9294_v51  ;;  %12911 = vmatmul.mubr.msk.f32.vlgmr.msra.gmra.mrb[68].mxu0 %vm9295_vm4, %v9386_v19 }
0x3417   :  { %v14206_v57 = vpop.eup %14205  ;;  %12915 = vmatprep.mubr.msk.f32.mxu1 %vm9295_vm4, %v9478_v22  ;;  %12914 = vmatpush3.msk.msra.mxu1 %vm14817_vm7, %v14505_v5 }
0x3418   :  { %v14208_v27 = vpop.eup %14207  ;;  %12929 = vmatprep.subr.msk.mxu1 %vm14817_vm7, %v14505_v5  ;;  %13642 = vmatpush3.bf16.msra.mxu0 %v13639_v43 }
0x3419   :  { %v14210_v56 = vpop.eup %14209  ;;  %v10066_v60 = vadd.f32 %v14208_v27, %v14206_v57 }
0x341a   :  { %v14212_v20 = vpop.eup %14211  ;;  %12916 = vmatmul.mubr.msk.f32.vlgmr.msra.gmra.mrb[80].mxu1 %vm9295_vm4, %v9479_v54  ;;  %v9698_v29 = vmul.f32 %v14210_v56, %v14190_v15  ;;  %v9783_v53 = vmul.f32 %v14210_v56, %v14192_v0  ;;  %v16701_v46 = vmul.f32 %v14210_v56, %v14194_v1  ;;  %v9573_v0 = vld [vmem:[%s16983_s19 + $0x10] sm:$0xff]  ;;  %v16744_v1 = vpop.permute.xlu0 %9377 }
0x341b   :  { %v14214_v58 = vpop.eup %14213  ;;  %v10068_v24 = vadd.f32 %v14212_v20, %v10066_v60  ;;  %12930 = vmatpush3.msk.msra.mxu1 %vm14817_vm7, %v14505_v5  ;;  %v13643_v14 = vpack.c.bf16 %v9574_v23, %v9573_v0  ;;  %v9665_v0 = vmul.f32 0.8, %v16466_v2 }
0x341c   :  { %v14216_v55 = vpop.eup %14215  ;;  %12934 = vmatprep.subr.msk.mxu1 %vm14817_vm7, %v14505_v5 }
0x341d   :  { %v14218_v42 = vpop.eup %14217  ;;  %14221 = vrcp.f32 %v10068_v24  ;;  %v9697_v31 = vmul.f32 %v14216_v55, %v14196_v45  ;;  %v9782_v34 = vmul.f32 %v14216_v55, %v14198_v39  ;;  %v9869_v52 = vmul.f32 %v14216_v55, %v14200_v28  ;;  %13644 = vmatprep.subr.bf16.mxu0 %v13643_v14  ;;  %v10418_v55 = vld [vmem:[%s16985_s21 + $0x8] sm:$0xff] }
0x341e   :  { %v10065_v63 = vadd.f32 %v14218_v42, %v14214_v58  ;;  %v14220_v38 = vpop.eup %14219  ;;  %13646 = vmatpush3.bf16.msra.mxu0 %v13643_v14  ;;  %v16748_v10 = vpop.permute.xlu0 %9379 }
0x341f   :  { %12931 = vmatprep.mubr.msk.f32.mxu1 %vm9295_vm4, %v9697_v31  ;;  %12939 = vmatprep.subr.msk.mxu0 %vm14817_vm7, %v14505_v5 }
0x3420   :  { %v10067_v48 = vadd.f32 %v14220_v38, %v10065_v63  ;;  %12932 = vmatmul.mubr.msk.f32.vlgmr.msra.gmra.mrb[82].mxu1 %vm9295_vm4, %v9698_v29 }
0x3421   :  { %12936 = vmatprep.mubr.msk.f32.mxu1 %vm9295_vm4, %v9782_v34  ;;  %12935 = vmatpush3.msk.msra.mxu1 %vm14817_vm7, %v14505_v5 }
0x3422   :  { %14223 = vrcp.f32 %v10067_v48  ;;  %13648 = vmatprep.subr.bf16.mxu1 %v13639_v43  ;;  %v16756_v19 = vpop.permute.xlu0 %9561 }
0x3424   :  { %12937 = vmatmul.mubr.msk.f32.vlgmr.msra.gmra.mrb[84].mxu1 %vm9295_vm4, %v9783_v53 }
0x3425   :  { %13650 = vmatpush3.bf16.msra.mxu1 %v13639_v43 }
0x3426   :  { %13652 = vmatprep.subr.bf16.mxu1 %v13643_v14 }
0x3427   :  { %v14222_v16 = vpop.eup %14221 }
0x3428   :  { %v16716_v33 = vmul.f32 %v14222_v16, %v14206_v57  ;;  %v16718_v32 = vmul.f32 %v14222_v16, %v14208_v27  ;;  %v16720_v36 = vmul.f32 %v14222_v16, %v14212_v20 }
0x3429   :  { %13654 = vmatpush3.bf16.msra.mxu1 %v13643_v14 }
0x342a   :  { %12965 = vmatprep.subr.msk.mxu1 %vm14817_vm7, %v14505_v5 }
0x342c   :  { %v14224_v59 = vpop.eup %14223 }
0x342d   :  { %v10071_v26 = vmul.f32 %v14224_v59, %v14214_v58  ;;  %v10156_v35 = vmul.f32 %v14224_v59, %v14218_v42  ;;  %v16722_v15 = vmul.f32 %v14224_v59, %v14220_v38 }
0x34e9   :  { %v12907_v11 = vpop.f32.mrb[78].mxu1  ;;  %v12912_v45 = vpop.f32.mrb[68].mxu0 }
0x34ea   :  { %v9384_v12 = vmul.f32 %v12907_v11, %v16748_v10  ;;  %v9475_v39 = vmul.f32 %v12912_v45, %v16746_v8  ;;  %v9368_v61 = vpop.f32.mrb[79].mxu1  ;;  %v9459_v49 = vpop.f32.mrb[69].mxu0 }
0x34eb   :  { %v9383_v28 = vmul.f32 %v16744_v1, %v9368_v61  ;;  %v9474_v17 = vmul.f32 %v16742_v9, %v9459_v49 }
0x34ec   :  { %v9477_v50 = vadd.f32 %v9475_v39, %v9384_v12 }
0x34ed   :  { %v9476_v6 = vadd.f32 %v9474_v17, %v9383_v28  ;;  %v12917_v51 = vpop.f32.mrb[80].mxu1 }
0x34ee   :  { %v9568_v21 = vmul.f32 %v12917_v51, %v16754_v40  ;;  %v9552_v54 = vpop.f32.mrb[81].mxu1 }
0x34ef   :  { %v9567_v62 = vmul.f32 %v16756_v19, %v9552_v54 }
0x34f0   :  { %v9570_v25 = vadd.f32 %v9568_v21, %v9477_v50 }
0x34f1   :  { %v9569_v37 = vadd.f32 %v9567_v62, %v9476_v6  ;;  %v10039_v62 = vmul.f32 0.8, %v16442_v3 }
0x34f3   :  { %v12933_v22 = vpop.f32.mrb[82].mxu1  ;;  %12926 = vmatprep.mubr.msk.f32.mxu0 %vm17158_vm9, %v9569_v37  ;;  %vm17172_vm9 = vmmov %vm17145_vm0 }
0x34f4   :  { %v9771_v57 = vpop.f32.mrb[83].mxu1  ;;  %12927 = vmatmul.mubr.msk.f32.vlgmr.msra.gmra.mrb[70].mxu0 %vm17159_vm1, %v9570_v25  ;;  %v9781_v56 = vmul.f32 %v12933_v22, %v16748_v10  ;;  %vm17173_vm1 = vmmov %vm17145_vm0 }
0x34f5   :  { %12941 = vmatprep.mubr.msk.f32.mxu0 %vm9295_vm4, %v9869_v52  ;;  %12940 = vmatpush3.msk.msra.mxu0 %vm14817_vm7, %v14505_v5  ;;  %v9780_v29 = vmul.f32 %v9771_v57, %v16744_v1  ;;  %v16799_v52 = vld [vmem:[#allocation13] ss:$0 sm:$0xff]  ;;  %v16846_v57 = vld [vmem:[#allocation14] ss:$0 sm:$0xff] }
0x34f6   :  { %12955 = vmatprep.subr.msk.mxu0 %vm14817_vm7, %v14505_v5 }
0x34f7   :  { %v12938_v27 = vpop.f32.mrb[84].mxu1 }
0x34f8   :  { %v9866_v60 = vmul.f32 %v12938_v27, %v16746_v8  ;;  %v9856_v20 = vpop.f32.mrb[85].mxu1  ;;  %12942 = vmatmul.mubr.msk.f32.vlgmr.msra.gmra.mrb[72].mxu0 %vm9295_vm4, %v16701_v46  ;;  %v10417_v46 = vld [vmem:[%s16985_s21] sm:$0xff] }
0x34f9   :  { %v9865_v53 = vmul.f32 %v9856_v20, %v16742_v9  ;;  %12957 = vmatprep.mubr.msk.f32.mxu0 %vm9295_vm4, %v10071_v26  ;;  %12956 = vmatpush3.msk.msra.mxu0 %vm14817_vm7, %v14505_v5  ;;  %v16796_v42 = vpack.c.bf16 %v10418_v55, %v10417_v46  ;;  %v10040_v20 = vmul.f32 0.8, %v16452_v13 }
0x34fa   :  { %v9868_v58 = vadd.f32 %v9866_v60, %v9781_v56  ;;  %12960 = vmatprep.subr.msk.mxu0 %vm14817_vm7, %v14505_v5 }
0x34fb   :  { %v9867_v24 = vadd.f32 %v9865_v53, %v9780_v29  ;;  %v11561_v53 = vld [vmem:[#allocation16] ss:$0 sm:$0xff] }
0x34fc   :  { %12958 = vmatmul.mubr.msk.f32.vlgmr.msra.gmra.mrb[74].mxu0 %vm9295_vm4, %v16716_v33 }
0x34fd   :  { %12962 = vmatprep.mubr.msk.f32.mxu0 %vm9295_vm4, %v10156_v35  ;;  %12961 = vmatpush3.msk.msra.mxu0 %vm14817_vm7, %v14505_v5 }
0x34fe   :  { %13656 = vmatprep.subr.bf16.mxu0 %v13639_v43 }
0x3500   :  { %12963 = vmatmul.mubr.msk.f32.vlgmr.msra.gmra.mrb[76].mxu0 %vm9295_vm4, %v16718_v32 }
0x3501   :  { %13658 = vmatpush3.bf16.msra.mxu0 %v13639_v43  ;;  %v10420_v43 = vld [vmem:[%s16985_s21 + $0x18] sm:$0xff] }
0x3502   :  { %13660 = vmatprep.subr.bf16.mxu0 %v13643_v14  ;;  %v13667_v39 = vpack.c.bf16 %v10420_v43, %v10419_v4 }
0x3505   :  { %13662 = vmatpush3.bf16.msra.mxu0 %v13643_v14 }
0x3506   :  { %13672 = vmatprep.subr.bf16.mxu0 %v16796_v42 }
0x35c7   :  { %v12928_v31 = vpop.f32.mrb[70].mxu0 }
0x35c8   :  { %v9654_v34 = vpop.f32.mrb[71].mxu0  ;;  %v9660_v14 = vadd.f32 %v12928_v31, %v16799_v52 }
0x35c9   :  { %v9655_v16 = vadd.f32 %v16799_v52, %v9654_v34 }
0x35ca   :  { %v9664_v44 = vmul.f32 0.2, %v9660_v14  ;;  %v10413_v14 = vmul.f32 0.8, %v16524_v47 }
0x35cb   :  { %v12943_v63 = vpop.f32.mrb[72].mxu0  ;;  %v9663_v18 = vmul.f32 0.2, %v9655_v16 }
0x35cc   :  { %v9953_v38 = vmul.f32 %v12943_v63, %v16754_v40  ;;  %v9943_v48 = vpop.f32.mrb[73].mxu0 }
0x35cd   :  { %v9952_v33 = vmul.f32 %v9943_v48, %v16756_v19  ;;  %v16822_v61 = vadd.f32 %v9665_v0, %v9663_v18  ;;  %v10414_v0 = vmul.f32 0.8, %v16527_v7 }
0x35ce   :  { %v9955_v32 = vadd.f32 %v9953_v38, %v9868_v58 }
0x35cf   :  { %v9954_v59 = vadd.f32 %v9952_v33, %v9867_v24  ;;  %v12959_v26 = vpop.f32.mrb[74].mxu0 }
0x35d0   :  { %v10145_v35 = vpop.f32.mrb[75].mxu0  ;;  %v10155_v11 = vmul.f32 %v12959_v26, %v16748_v10 }
0x35d1   :  { %12952 = vmatprep.mubr.msk.f32.mxu1 %vm17160_vm2, %v9954_v59  ;;  %v10154_v49 = vmul.f32 %v10145_v35, %v16744_v1  ;;  %vm17174_vm2 = vmmov %vm17145_vm0 }
0x35d2   :  { %12953 = vmatmul.mubr.msk.f32.vlgmr.msra.gmra.mrb[86].mxu1 %vm17161_vm3, %v9955_v32  ;;  %vm17175_vm3 = vmmov %vm17145_vm0 }
0x35d3   :  { %v12964_v23 = vpop.f32.mrb[76].mxu0  ;;  %12967 = vmatprep.mubr.msk.f32.mxu1 %vm9295_vm4, %v16722_v15  ;;  %12966 = vmatpush3.msk.msra.mxu1 %vm14817_vm7, %v14505_v5  ;;  %vm17162_vm7 = vmmov %vm17145_vm0 }
0x35d4   :  { %v10240_v45 = vmul.f32 %v12964_v23, %v16746_v8  ;;  %v10230_v12 = vpop.f32.mrb[77].mxu0  ;;  %13664 = vmatprep.subr.bf16.mxu1 %v16796_v42  ;;  %v9666_v8 = vmul.f32 0.8, %v16481_v30 }
0x35d5   :  { %v10239_v15 = vmul.f32 %v10230_v12, %v16742_v9 }
0x35d6   :  { %v10242_v28 = vadd.f32 %v10240_v45, %v10155_v11  ;;  %12968 = vmatmul.mubr.msk.f32.vlgmr.msra.gmra.mrb[88].mxu1 %vm9295_vm4, %v16720_v36  ;;  %v16832_v10 = vadd.f32 %v9666_v8, %v9664_v44  ;;  %vm17171_vm4 = vmmov %vm17145_vm0 }
0x35d7   :  { %v10241_v5 = vadd.f32 %v10239_v15, %v10154_v49  ;;  %13666 = vmatpush3.bf16.msra.mxu1 %v16796_v42  ;;  %12989 = vmatprep.mubr.msk.f32.mxu1 %vm17162_vm7, %v16822_v61  ;;  %vm17176_vm7 = vmmov %vm17145_vm0 }
0x35d8   :  { %13668 = vmatprep.subr.bf16.mxu1 %v13667_v39 }
0x35db   :  { %13670 = vmatpush3.bf16.msra.mxu1 %v13667_v39 }
0x35dc   :  { %13680 = vmatprep.subr.bf16.mxu1 %v16796_v42 }
0x35de   :  { %12990 = vmatmul.mubr.msk.f32.vlgmr.msra.gmra.mrb[90].mxu1 %vm17163_vm5, %v16832_v10  ;;  %vm17177_vm5 = vmmov %vm17145_vm0 }
0x35df   :  { %13682 = vmatpush3.bf16.msra.mxu1 %v16796_v42 }
0x35e0   :  { %13684 = vmatprep.subr.bf16.mxu1 %v13667_v39 }
0x35e3   :  { %13686 = vmatpush3.bf16.msra.mxu1 %v13667_v39 }
0x36a5   :  { %v12954_v36 = vpop.f32.mrb[86].mxu1 }
0x36a6   :  { %v10028_v9 = vpop.f32.mrb[87].mxu1  ;;  %v10034_v37 = vadd.f32 %v12954_v36, %v16799_v52 }
0x36a7   :  { %v10029_v1 = vadd.f32 %v16799_v52, %v10028_v9 }
0x36a9   :  { %v12969_v17 = vpop.f32.mrb[88].mxu1  ;;  %v10037_v51 = vmul.f32 0.2, %v10029_v1 }
0x36aa   :  { %v10327_v50 = vmul.f32 %v12969_v17, %v16754_v40  ;;  %v10317_v6 = vpop.f32.mrb[89].mxu1  ;;  %v10038_v40 = vmul.f32 0.2, %v10034_v37 }
0x36ab   :  { %v10326_v21 = vmul.f32 %v10317_v6, %v16756_v19  ;;  %v16843_v22 = vadd.f32 %v10039_v62, %v10037_v51 }
0x36ac   :  { %v10329_v54 = vadd.f32 %v10327_v50, %v10242_v28  ;;  %v16855_v29 = vadd.f32 %v10040_v20, %v10038_v40 }
0x36ad   :  { %v10328_v25 = vadd.f32 %v10326_v21, %v10241_v5 }
0x36af   :  { %12978 = vmatprep.mubr.msk.f32.mxu0 %vm17164_vm6, %v10328_v25  ;;  %vm17178_vm6 = vmmov %vm17145_vm0 }
0x36b0   :  { %12979 = vmatmul.mubr.msk.f32.vlgmr.msra.gmra.mrb[78].mxu0 %vm17165_vm10, %v10329_v54  ;;  %vm17179_vm10 = vmmov %vm17145_vm0 }
0x36b1   :  { %v12991_v27 = vpop.f32.mrb[90].mxu1  ;;  %13674 = vmatpush3.bf16.msra.mxu0 %v16796_v42  ;;  %13000 = vmatprep.mubr.msk.f32.mxu0 %vm17166_vm11, %v16843_v22  ;;  %vm17180_vm11 = vmmov %vm17145_vm0 }
0x36b2   :  { %v10506_v19 = vadd.f32 %v12991_v27, %v16846_v57  ;;  %v10500_v56 = vpop.f32.mrb[91].mxu1  ;;  %13676 = vmatprep.subr.bf16.mxu0 %v13667_v39 }
0x36b3   :  { %v10501_v60 = vadd.f32 %v16846_v57, %v10500_v56 }
0x36b4   :  { %14225 = vtanh.f32 %v10506_v19 }
0x36b5   :  { %14227 = vtanh.f32 %v10501_v60  ;;  %13678 = vmatpush3.bf16.msra.mxu0 %v13667_v39 }
0x36b8   :  { %13001 = vmatmul.mubr.msk.f32.vlgmr.msra.gmra.mrb[80].mxu0 %vm17167_vm12, %v16855_v29 }
0x36be   :  { %v14226_v58 = vpop.eup %14225 }
0x36bf   :  { %v14228_v24 = vpop.eup %14227  ;;  %v10519_v46 = vmul.f32 %v14226_v58, %v11561_v53 }
0x36c0   :  { %v10518_v55 = vmul.f32 %v14228_v24, %v11561_v53 }
0x36c1   :  { %v10521_v42 = vsel %vm17168_vm13, %v10519_v46, 0.0 }
0x36c2   :  { %v10520_v31 = vsel %vm17169_vm14, %v10518_v55, 0.0 }
0x36c3   :  { %v10522_v34 = vadd.f32 %v10521_v42, %v10520_v31 }
0x36c5   :  { %10523 = vadd.xlane.f32.xlu0 %v10522_v34 }
0x3752   :  { %v10524_v63 = vpop.xlane.xlu0 %10523 }
0x3753   :  { %v10525_v38 = vrot.slane %v10524_v63, 4 }
0x3755   :  { %v10526_v48 = vadd.f32 %v10525_v38, %v10524_v63 }
0x3757   :  { %v10527_v16 = vrot.slane %v10526_v48, 2 }
0x3759   :  { %v10528_v33 = vadd.f32 %v10527_v16, %v10526_v48 }
0x375b   :  { %v10529_v32 = vrot.slane %v10528_v33, 1 }
0x375d   :  { %v10530_v59 = vadd.f32 %v10529_v32, %v10528_v33 }
0x375f   :  { %13747 = vpush %v10530_v59 }
0x3783   :  { %v12980_v26 = vpop.f32.mrb[78].mxu0 }
0x3784   :  { %v10408_v35 = vadd.f32 %v12980_v26, %v16799_v52  ;;  %v10402_v18 = vpop.f32.mrb[79].mxu0 }
0x3785   :  { %v10403_v4 = vadd.f32 %v16799_v52, %v10402_v18 }
0x3786   :  { %v10412_v43 = vmul.f32 0.2, %v10408_v35 }
0x3787   :  { %v10411_v23 = vmul.f32 0.2, %v10403_v4 }
0x3788   :  { %v16865_v11 = vadd.f32 %v10414_v0, %v10412_v43 }
0x3789   :  { %v16867_v45 = vadd.f32 %v10413_v14, %v10411_v23 }
0x378b   :  { %v13002_v12 = vpop.f32.mrb[80].mxu0  ;;  %13011 = vmatprep.mubr.msk.f32.mxu1 %vm17170_vm15, %v16867_v45 }
0x378c   :  { %v10611_v39 = vadd.f32 %v13002_v12, %v16846_v57  ;;  %v10605_v49 = vpop.f32.mrb[81].mxu0  ;;  %13012 = vmatmul.mubr.msk.f32.vlgmr.msra.gmra.mrb[92].mxu1 %vm17145_vm0, %v16865_v11 }
0x378d   :  { %v10606_v52 = vadd.f32 %v16846_v57, %v10605_v49 }
0x378e   :  { %14229 = vtanh.f32 %v10611_v39 }
0x378f   :  { %14231 = vtanh.f32 %v10606_v52 }
0x3790   :  { %s13748_s21 = spop %13747 }
0x3791   :  { %s10532_s4 = smul.f32 0.0625, %s13748_s21 }
0x3798   :  { %v14230_v15 = vpop.eup %14229 }
0x3799   :  { %v14232_v28 = vpop.eup %14231  ;;  %v10617_v5 = vmul.f32 %v14230_v15, %v11561_v53 }
0x379a   :  { %v10616_v44 = vmul.f32 %v14232_v28, %v11561_v53 }
0x379b   :  { %v10619_v8 = vsel %vm17171_vm4, %v10617_v5, 0.0 }
0x379c   :  { %v10618_v36 = vsel %vm17172_vm9, %v10616_v44, 0.0 }
0x379d   :  { %v10620_v9 = vadd.f32 %v10619_v8, %v10618_v36 }
0x379f   :  { %10621 = vadd.xlane.f32.xlu1 %v10620_v9 }
0x382c   :  { %v10622_v1 = vpop.xlane.xlu1 %10621 }
0x382d   :  { %v10623_v17 = vrot.slane %v10622_v1, 4 }
0x382f   :  { %v10624_v50 = vadd.f32 %v10623_v17, %v10622_v1 }
0x3831   :  { %v10625_v6 = vrot.slane %v10624_v50, 2 }
0x3833   :  { %v10626_v51 = vadd.f32 %v10625_v6, %v10624_v50  ;;  %v10772_v50 = vmul.f32 0.5, %v16452_v13  ;;  %v10780_v13 = vld [vmem:[%s16988_s24 + $0x8] sm:$0xff] }
0x3834   :  { %vm10784_vm12 = vcmp.ne.f32.partialorder %v10780_v13, 0.0 }
0x3835   :  { %v10627_v21 = vrot.slane %v10626_v51, 1 }
0x3837   :  { %v10628_v54 = vadd.f32 %v10627_v21, %v10626_v51 }
0x3839   :  { %13749 = vpush %v10628_v54 }
0x385f   :  { %v13013_v62 = vpop.f32.mrb[92].mxu1 }
0x3860   :  { %v10709_v25 = vadd.f32 %v13013_v62, %v16846_v57  ;;  %v10703_v37 = vpop.f32.mrb[93].mxu1 }
0x3861   :  { %v10704_v27 = vadd.f32 %v16846_v57, %v10703_v37 }
0x3862   :  { %14233 = vtanh.f32 %v10709_v25 }
0x3863   :  { %14235 = vtanh.f32 %v10704_v27 }
0x386a   :  { %s13750_s12 = spop %13749 }
0x386b   :  { %s10630_s20 = smul.f32 0.0625, %s13750_s12 }
0x386c   :  { %v14234_v40 = vpop.eup %14233 }
0x386d   :  { %v14236_v19 = vpop.eup %14235  ;;  %v10715_v56 = vmul.f32 %v14234_v40, %v11561_v53  ;;  %s10729_s0 = smax.f32 %s10630_s20, %s10532_s4 }
0x386e   :  { %v10714_v60 = vmul.f32 %v14236_v19, %v11561_v53 }
0x386f   :  { %v10717_v20 = vsel %vm17173_vm1, %v10715_v56, 0.0 }
0x3870   :  { %v10716_v58 = vsel %vm17174_vm2, %v10714_v60, 0.0 }
0x3871   :  { %v10718_v24 = vadd.f32 %v10717_v20, %v10716_v58 }
0x3873   :  { %10719 = vadd.xlane.f32.xlu0 %v10718_v24 }
0x3900   :  { %v10720_v46 = vpop.xlane.xlu0 %10719 }
0x3901   :  { %v10721_v55 = vrot.slane %v10720_v46, 4 }
0x3903   :  { %v10722_v42 = vadd.f32 %v10721_v55, %v10720_v46 }
0x3905   :  { %v10723_v31 = vrot.slane %v10722_v42, 2 }
0x3907   :  { %v10724_v34 = vadd.f32 %v10723_v31, %v10722_v42 }
0x3909   :  { %v10725_v63 = vrot.slane %v10724_v34, 1 }
0x390b   :  { %v10726_v38 = vadd.f32 %v10725_v63, %v10724_v34 }
0x390d   :  { %13751 = vpush %v10726_v38 }
0x393e   :  { %s13752_s29 = spop %13751 }
0x393f   :  { %s10728_s23 = smul.f32 0.0625, %s13752_s29 }
0x3941   :  { %s10730_s1 = smax.f32 %s10729_s0, %s10728_s23 }
0x3942   :  { %s10731_s2 = ssub.f32 %s10532_s4, %s10730_s1 }
0x3943   :  { %s10736_s16 = ssub.f32 %s10630_s20, %s10730_s1 }
0x3944   :  { %v10732_v57 = vstv %s10731_s2  ;;  %s10741_s27 = ssub.f32 %s10728_s23, %s10730_s1  ;;  %s14467_s23 = scalar_lea.hbm %s16990_s26, 16 }
0x3945   :  { %v10733_v53 = vmul.f32 1.442695, %v10732_v57  ;;  %v10737_v48 = vstv %s10736_s16  ;;  %p14468_p2 = scmp.ne.s32.totalorder %s16990_s26, %s14467_s23  ;;  %p14471_p3 = scmp.lt.u32.totalorder %s14467_s23, %s16990_s26 }
0x3946   :  { %v10738_v16 = vmul.f32 1.442695, %v10737_v48  ;;  %v10742_v33 = vstv %s10741_s27 }
0x3947   :  { %14237 = vpow2.f32 %v10733_v53  ;;  %v10743_v32 = vmul.f32 1.442695, %v10742_v33  ;;  %p14473_p4 = pnand %p14471_p3, %p14468_p2 }
0x3948   :  { %14239 = vpow2.f32 %v10738_v16 }
0x3949   :  { %14241 = vpow2.f32 %v10743_v32 }
0x3951   :  { %v14238_v59 = vpop.eup %14237 }
0x3952   :  { %v14240_v26 = vpop.eup %14239  ;;  %13753 = vpush %v14238_v59 }
0x3953   :  { %v14242_v35 = vpop.eup %14241  ;;  %13755 = vpush %v14240_v26 }
0x3954   :  { %13757 = vpush %v14242_v35 }
0x3983   :  { %s13754_s18 = spop %13753 }
0x3984   :  { %s13756_s14 = spop %13755  ;;  %v10748_v18 = vstv %s13754_s18 }
0x3985   :  { %s10746_s17 = sadd.f32 %s13756_s14, %s13754_s18  ;;  %s13758_s15 = spop %13757  ;;  %v10751_v4 = vstv %s13756_s14  ;;  %v10749_v0 = vmul.f32 %v10748_v18, %v16822_v61  ;;  %v10750_v23 = vmul.f32 %v10748_v18, %v16832_v10  ;;  %v10766_v61 = vmul.f32 0.5, %v16481_v30 }
0x3986   :  { %v10752_v14 = vmul.f32 %v10751_v4, %v16843_v22  ;;  %v10753_v12 = vmul.f32 %v10751_v4, %v16855_v29  ;;  %v10756_v39 = vstv %s13758_s15  ;;  %v10765_v10 = vmul.f32 0.5, %v16466_v2 }
0x3987   :  { %s10747_s9 = sadd.f32 %s13758_s15, %s10746_s17  ;;  %v10757_v15 = vmul.f32 %v10756_v39, %v16867_v45  ;;  %v10758_v28 = vmul.f32 %v10756_v39, %v16865_v11  ;;  %v10771_v22 = vmul.f32 0.5, %v16442_v3  ;;  %v10775_v29 = vmul.f32 0.5, %v16524_v47  ;;  %v10779_v47 = vld [vmem:[%s16988_s24] sm:$0xff] }
0x3988   :  { %v10754_v49 = vadd.f32 %v10752_v14, %v10749_v0  ;;  %v10755_v52 = vadd.f32 %v10753_v12, %v10750_v23  ;;  %v10776_v45 = vmul.f32 0.5, %v16527_v7  ;;  %vm10783_vm13 = vcmp.ne.f32.partialorder %v10779_v47, 0.0 }
0x3989   :  { %v10761_v43 = vstv %s10747_s9  ;;  %v17181_v7 = vmov 0.0  }
0x398a   :  { %14243 = vrcp.f32 %v10761_v43  ;;  %v10759_v5 = vadd.f32 %v10757_v15, %v10754_v49  ;;  %v10760_v44 = vadd.f32 %v10758_v28, %v10755_v52  ;;  %v11567_v25 = vsel %vm10784_vm12, 1.0, %v17181_v7 }
0x398b   :  { %v11566_v40 = vsel %vm10783_vm13, 1.0, %v17181_v7 }
0x3994   :  { %v14244_v8 = vpop.eup %14243 }
0x3995   :  { %v10763_v36 = vmul.f32 %v14244_v8, %v10759_v5  ;;  %v10764_v9 = vmul.f32 %v14244_v8, %v10760_v44 }
0x3997   :  { %v10767_v1 = vmul.f32 0.5, %v10763_v36  ;;  %v10768_v17 = vmul.f32 0.5, %v10764_v9 }
0x3999   :  { %v10769_v11 = vadd.f32 %v10767_v1, %v10765_v10  ;;  %v10773_v6 = vadd.f32 %v10771_v22, %v10767_v1  ;;  %v10770_v51 = vadd.f32 %v10768_v17, %v10766_v61  ;;  %v10777_v21 = vadd.f32 %v10775_v29, %v10767_v1 }
0x399a   :  { %v10778_v54 = vadd.f32 %v10776_v45, %v10768_v17  ;;  %v10774_v62 = vadd.f32 %v10772_v50, %v10768_v17 }
0x399b   :  { %13018 = vmatprep.mubr.msk.f32.mxu0 %vm17175_vm3, %v10769_v11  ;;  %13025 = vmatprep.mubr.msk.f32.mxu1 %vm17176_vm7, %v10773_v6  ;;  %v13687_v2 = vpack.c.bf16 %v10770_v51, %v10769_v11 }
0x399c   :  { %v13693_v3 = vpack.c.bf16 %v10778_v54, %v10777_v21  ;;  %v13699_v30 = vpack.c.bf16 %v10774_v62, %v10773_v6 }
0x399d   :  { %13689 = vmatprep.subr.msk.bf16.mxu0 %vm14852_vm8, %v13687_v2 }
0x399e   :  { %13695 = vmatprep.subr.msk.bf16.mxu1 %vm14852_vm8, %v13693_v3  ;;  %13692 = vmatpush3.bf16.xpose.msk.msra.mxu0 %vm14852_vm8, %v13687_v2 }
0x399f   :  { %13698 = vmatpush3.bf16.xpose.msk.msra.mxu1 %vm14852_vm8, %v13693_v3  ;;  %13701 = vmatprep.subr.msk.bf16.mxu0 %vm14852_vm8, %v13699_v30 }
0x39a5   :  { %13019 = vmatmul.mubr.msk.f32.vlgmr.msra.gmra.mrb[82].mxu0 %vm17177_vm5, %v10770_v51 }
0x39a6   :  { %13026 = vmatmul.mubr.msk.f32.vlgmr.msra.gmra.mrb[94].mxu1 %vm17178_vm6, %v10774_v62  ;;  %13704 = vmatpush3.bf16.xpose.msk.msra.mxu0 %vm14852_vm8, %v13699_v30  ;;  %vm17182_vm8 = vcmask 130048  }
0x39a7   :  { %13032 = vmatprep.mubr.msk.f32.mxu0 %vm17179_vm10, %v10777_v21  ;;  %vm17183_vm14 = vmmov %vm17182_vm8 }
0x39a8   :  { %vm17184_vm15 = vmmov %vm17182_vm8 }
0x39a9   :  { %vm17185_vm0 = vmmov %vm17182_vm8 }
0x39aa   :  { %vm17186_vm4 = vmmov %vm17185_vm0 }
0x39ab   :  { %vm17187_vm9 = vmmov %vm17185_vm0 }
0x39ac   :  { %vm17188_vm1 = vmmov %vm17185_vm0 }
0x39ad   :  { %13033 = vmatmul.mubr.msk.f32.vlgmr.msra.gmra.mrb[84].mxu0 %vm17180_vm11, %v10778_v54  ;;  %vm17189_vm2 = vmmov %vm17185_vm0 }
0x39ae   :  { %vm17190_vm3 = vmmov %vm17185_vm0 }
0x39af   :  { %v10889_v15 = vsel %vm17190_vm3, %v11567_v25, 0.0  ;;  %vm17191_vm7 = vmmov %vm17185_vm0 }
0x39b0   :  { %v10888_v28 = vsel %vm17191_vm7, %v11566_v40, 0.0  ;;  %vm17192_vm5 = vmmov %vm17185_vm0 }
0x39b1   :  { %vm17193_vm6 = vmmov %vm17185_vm0  ;;  %v10890_v9 = vadd.f32 %v10889_v15, %v10888_v28 }
0x39b2   :  { %vm17194_vm12 = vmmov %vm17185_vm0 }
0x39b3   :  { %vm17195_vm13 = vmmov %vm17185_vm0 }
0x3a78   :  { %v13020_v37 = vpop.f32.mrb[82].mxu0 }
0x3a79   :  { %v10871_v27 = vsub.f32 %v13020_v37, %v10780_v13  ;;  %v13027_v41 = vpop.f32.mrb[94].mxu1  ;;  %v10861_v19 = vpop.f32.mrb[83].mxu0 }
0x3a7a   :  { %v10870_v56 = vsub.f32 %v10861_v19, %v10779_v47  ;;  %v10983_v60 = vpop.f32.mrb[95].mxu1  ;;  %v10995_v53 = vsel %vm17186_vm4, %v13027_v41, -inf }
0x3a7b   :  { %v10873_v20 = vmul.f32 %v11567_v25, %v10871_v27  ;;  %v10992_v48 = vsel %vm17187_vm9, %v10983_v60, -inf }
0x3a7c   :  { %v10872_v58 = vmul.f32 %v11566_v40, %v10870_v56 }
0x3a7d   :  { %v10875_v24 = vmul.f32 %v10873_v20, %v10873_v20  ;;  %v10781_v20 = vld [vmem:[%s16989_s25] sm:$0xff] }
0x3a7e   :  { %v10874_v46 = vmul.f32 %v10872_v58, %v10872_v58  ;;  %v10782_v58 = vld [vmem:[%s16989_s25 + $0x8] sm:$0xff]  ;;  %vm11115_vm10 = vcmp.ne.f32.partialorder %v10781_v20, 0.0 }
0x3a7f   :  { %v10877_v55 = vsel %vm17182_vm8, %v10875_v24, 0.0  ;;  %vm11116_vm11 = vcmp.ne.f32.partialorder %v10782_v58, 0.0 }
0x3a80   :  { %v13034_v42 = vpop.f32.mrb[84].mxu0  ;;  %v10876_v31 = vsel %vm17183_vm14, %v10874_v46, 0.0 }
0x3a81   :  { %v11082_v34 = vpop.f32.mrb[85].mxu0  ;;  %v11094_v63 = vsel %vm17184_vm15, %v13034_v42, -inf  ;;  %v10878_v38 = vadd.f32 %v10877_v55, %v10876_v31  ;;  %v11580_v55 = vsel %vm11115_vm10, 1.0, %v17181_v7 }
0x3a82   :  { %v11091_v57 = vsel %vm17185_vm0, %v11082_v34, -inf  ;;  %11095 = vmax.xlane.f32.xlu1 %v11094_v63  ;;  %v11581_v63 = vsel %vm11116_vm11, 1.0, %v17181_v7 }
0x3a83   :  { %11092 = vmax.xlane.f32.xlu0 %v11091_v57 }
0x3a86   :  { %10996 = vmax.xlane.f32.xlu1 %v10995_v53 }
0x3a87   :  { %10993 = vmax.xlane.f32.xlu0 %v10992_v48  ;;  %v11122_v48 = vmul.f32 %v11581_v63, %v10782_v58 }
0x3b0f   :  { %v11096_v16 = vpop.xlane.xlu1 %11095 }
0x3b10   :  { %v11098_v33 = vsub.f32 %v13034_v42, %v11096_v16  ;;  %v11093_v32 = vpop.xlane.xlu0 %11092 }
0x3b11   :  { %v11097_v59 = vsub.f32 %v11082_v34, %v11093_v32 }
0x3b12   :  { %v11101_v26 = vmul.f32 1.442695, %v11098_v33 }
0x3b13   :  { %v11099_v35 = vmul.f32 1.442695, %v11097_v59  ;;  %v10997_v18 = vpop.xlane.xlu1 %10996 }
0x3b14   :  { %14245 = vpow2.f32 %v11101_v26  ;;  %v16925_v4 = vsub.f32 %v13027_v41, %v10997_v18  ;;  %v10994_v43 = vpop.xlane.xlu0 %10993 }
0x3b15   :  { %14247 = vpow2.f32 %v11099_v35  ;;  %v16927_v0 = vsub.f32 %v10983_v60, %v10994_v43 }
0x3b16   :  { %v11002_v23 = vmul.f32 1.442695, %v16925_v4 }
0x3b17   :  { %v11000_v14 = vmul.f32 1.442695, %v16927_v0 }
0x3b18   :  { %14249 = vpow2.f32 %v11002_v23 }
0x3b19   :  { %14251 = vpow2.f32 %v11000_v14 }
0x3b1e   :  { %v14246_v12 = vpop.eup %14245 }
0x3b1f   :  { %v14248_v39 = vpop.eup %14247  ;;  %v11106_v49 = vsel %vm17188_vm1, %v14246_v12, 0.0 }
0x3b20   :  { %11107 = vadd.xlane.f32.xlu1 %v11106_v49  ;;  %v11103_v52 = vsel %vm17189_vm2, %v14248_v39, 0.0 }
0x3b21   :  { %11104 = vadd.xlane.f32.xlu0 %v11103_v52 }
0x3b22   :  { %v14250_v5 = vpop.eup %14249 }
0x3b23   :  { %v14252_v44 = vpop.eup %14251  ;;  %v11007_v8 = vsel %vm17192_vm5, %v14250_v5, 0.0 }
0x3b24   :  { %11008 = vadd.xlane.f32.xlu1 %v11007_v8  ;;  %v11004_v36 = vsel %vm17193_vm6, %v14252_v44, 0.0 }
0x3b25   :  { %11005 = vadd.xlane.f32.xlu0 %v11004_v36 }
0x3b28   :  { %10891 = vadd.xlane.f32.xlu1 %v10890_v9 }
0x3b29   :  { %10879 = vadd.xlane.f32.xlu0 %v10878_v38  ;;  %v11121_v38 = vmul.f32 %v11580_v55, %v10781_v20 }
0x3bad   :  { %v11108_v61 = vpop.xlane.xlu1 %11107 }
0x3bae   :  { %14253 = vlog2.f32 %v11108_v61  ;;  %v11105_v10 = vpop.xlane.xlu0 %11104 }
0x3baf   :  { %14255 = vlog2.f32 %v11105_v10 }
0x3bb1   :  { %v11009_v22 = vpop.xlane.xlu1 %11008 }
0x3bb2   :  { %v11006_v29 = vpop.xlane.xlu0 %11005 }
0x3bb5   :  { %v10892_v1 = vpop.xlane.xlu1 %10891 }
0x3bb6   :  { %v10893_v17 = vrot.slane %v10892_v1, 4  ;;  %v10880_v50 = vpop.xlane.xlu0 %10879 }
0x3bb7   :  { %v10881_v45 = vrot.slane %v10880_v50, 4 }
0x3bb8   :  { %v14254_v11 = vpop.eup %14253  ;;  %v10894_v6 = vadd.f32 %v10893_v17, %v10892_v1 }
0x3bb9   :  { %v14256_v51 = vpop.eup %14255  ;;  %v10882_v21 = vadd.f32 %v10881_v45, %v10880_v50  ;;  %v11112_v3 = vmul.f32 0.6931472, %v14254_v11 }
0x3bba   :  { %v11110_v54 = vmul.f32 0.6931472, %v14256_v51  ;;  %v10895_v62 = vrot.slane %v10894_v6, 2 }
0x3bbb   :  { %v10883_v2 = vrot.slane %v10882_v21, 2  ;;  %v11114_v27 = vsub.f32 %v11098_v33, %v11112_v3 }
0x3bbc   :  { %v11113_v30 = vsub.f32 %v11097_v59, %v11110_v54  ;;  %v10896_v13 = vadd.f32 %v10895_v62, %v10894_v6 }
0x3bbd   :  { %v10884_v47 = vadd.f32 %v10883_v2, %v10882_v21 }
0x3bbe   :  { %11123 = vxpose.xlu0.b32.start [1/2] (short) (narrow) %v11113_v30, 16  ;;  %v10897_v25 = vrot.slane %v10896_v13, 1 }
0x3bbf   :  { %v10885_v37 = vrot.slane %v10884_v47, 1 }
0x3bc0   :  { %v10898_v41 = vadd.f32 %v10897_v25, %v10896_v13 }
0x3bc1   :  { %v10886_v40 = vadd.f32 %v10885_v37, %v10884_v47 }
0x3bc2   :  { %11124 = vxpose.xlu0.b32.end [2/2] (short) (narrow) %v11114_v27, 16 }
0x3bc3   :  { %13759 = vpush %v10886_v40 }
0x3bc4   :  { %13761 = vpush %v10898_v41 }
0x3bf4   :  { %s16937_s24 = spop %13759 }
0x3bf5   :  { %s13762_s19 = spop %13761 }
0x3bf6   :  { %s10900_s8 = smax.f32 %s14506_s3, %s13762_s19 }
0x3bf7   :  { %v10901_v19 = vstv %s10900_s8 }
0x3bf8   :  { %14257 = vrcp.f32 %v10901_v19 }
0x3bf9   :  { %14259 = vlog2.f32 %v11006_v29 }
0x3bfa   :  { %14261 = vlog2.f32 %v11009_v22 }
0x3c02   :  { %v14258_v56 = vpop.eup %14257 }
0x3c03   :  { %13763 = vpush %v14258_v56  ;;  %v14260_v60 = vpop.eup %14259 }
0x3c04   :  { %v11011_v24 = vmul.f32 0.6931472, %v14260_v60  ;;  %v14262_v46 = vpop.eup %14261 }
0x3c05   :  { %v11013_v42 = vmul.f32 0.6931472, %v14262_v46 }
0x3c06   :  { %v11014_v31 = vsub.f32 %v16927_v0, %v11011_v24 }
0x3c07   :  { %v11015_v53 = vsub.f32 %v16925_v4, %v11013_v42 }
0x3c34   :  { %s13764_s25 = spop %13763 }
0x3c35   :  { %s10904_s21 = smul.f32 %s13764_s25, %s16937_s24 }
0x3c3e   :  { %v11139_v34 = vpop.trf.xlu0 }
0x3c3f   :  { %v11155_v57 = vadd.f32 %v11139_v34, %v11014_v31 }
0x3c41   :  { %v11157_v33 = vmul.f32 %v11155_v57, %v11121_v38 }
0x3c42   :  { %v11140_v16 = vpop.trf.xlu0 }
0x3c43   :  { %v11156_v32 = vadd.f32 %v11140_v16, %v11015_v53  ;;  %v11159_v26 = vsel %vm17194_vm12, %v11157_v33, 0.0 }
0x3c45   :  { %v11158_v59 = vmul.f32 %v11156_v32, %v11122_v48 }
0x3c47   :  { %v11160_v35 = vsel %vm17195_vm13, %v11158_v59, 0.0 }
0x3c48   :  { %v11161_v18 = vadd.f32 %v11160_v35, %v11159_v26 }
0x3c4a   :  { %11162 = vadd.xlane.f32.xlu1 %v11161_v18 }
0x3cd7   :  { %v11163_v43 = vpop.xlane.xlu1 %11162 }
0x3cd8   :  { %v11164_v0 = vrot.slane %v11163_v43, 4 }
0x3cda   :  { %v11165_v23 = vadd.f32 %v11164_v0, %v11163_v43 }
0x3cdc   :  { %v11166_v7 = vrot.slane %v11165_v23, 2 }
0x3cde   :  { %v11167_v14 = vadd.f32 %v11166_v7, %v11165_v23 }
0x3ce0   :  { %v11168_v12 = vrot.slane %v11167_v14, 1 }
0x3ce2   :  { %v11169_v39 = vadd.f32 %v11168_v12, %v11167_v14 }
0x3ce4   :  { %13765 = vpush %v11169_v39 }
0x3d15   :  { %s13766_s11 = spop %13765 }
0x3d16   :  { %s11171_s12 = ssub.f32 0.0, %s13766_s11 }
0x3d18   :  { %s11172_s20 = sadd.f32 %s11171_s12, %s10904_s21 }
0x3d1a   :  { %11174 = sst [smem:[#allocation17]] %s11172_s20 }
0x3d1b   :  { %14476 = shalt.err (!%p14473_p4)
}
0x3d1c   :  { %s14507_s27 = smov [#allocation17]  }
0x3d1d   :  { %11182 = dma.smem_to_hbm %s14507_s27, 16, %s16990_s26, [#allocation4]  }
0x3d1e   :  { %14487 = dma.done.wait [#allocation4], 16  }
0x3d1f   :  { %14488 = vsyncadd [#allocation4], 4294967280 }
0x3d20   :  { %11186 = sfence }
0x3d21   :  { %11187 = vsyncpa [#allocation3], 1 }
0x3d22   :  { %11188 = vsyncpa [#allocation6], 1 }
0x3d23   :  { %11189 = vsyncpa [#allocation9], 1 }
0x3d24   :  { %11190 = vsyncpa [#allocation12], 1 }
0x3d25   :  { %11191 = vsyncpa [#allocation15], 1 }
0x3d26   :  { %11192 = vsyncpa [#allocation4], 1 }

</bundles_post_ra>
